<compile_context>
chip_gen: v6e
topology: v6e:2x2x1
jax: 0.10.0
libtpu: 0.0.40
codegen_flags: <defaults>
</compile_context>

<pallas_src>
import functools
import collections

import numpy as np
import jax
import jax.numpy as jnp
from jax.experimental import pallas as pl
from jax.experimental.pallas import tpu as pltpu


# ---------------------------------------------------------------------------
# Single fused kernel: GNN stack + rel projection + node heads + pair heads
#                      + stacked one-hot gather + NF add
# ---------------------------------------------------------------------------

def _espa_fused_kernel(adj_ref, x_ref, rel_ref,
                       gw_ref, gb_ref, wr_ref, br_ref,
                       nfeat_ref, nw1_ref, nb1_ref, nw2_ref, nb2_ref,
                       nw3_ref, nb3_ref, nwmix_ref, nbmix_ref,
                       pfeat_ref, pw1_ref, pb1_ref, pw2_ref, pb2_ref,
                       pw3_ref, pb3_ref, pwmix_ref, pbmix_ref,
                       idx_ref,
                       sub_o_ref, obj_o_ref, pair_o_ref, rel_o_ref,
                       *, layer_num, num_pairs, num_node_heads, num_pair_heads):
    # ------------------------- GNN stack (unrolled) -------------------------
    adj = adj_ref[...]                       # (ENT, ENT) bf16
    x = x_ref[...]                           # (ENT, D)   f32
    lf_sum = None
    for i in range(layer_num):               # static unroll
        prev = x
        # G op (fixed representative primitive): relu((A_norm @ X) @ W + b)
        ax = jnp.dot(adj, x.astype(jnp.bfloat16),
                     preferred_element_type=jnp.float32)
        y = jnp.dot(ax.astype(jnp.bfloat16), gw_ref[i],
                    preferred_element_type=jnp.float32) + gb_ref[i]
        x = jnp.maximum(y, 0.0)
        # hidden_drop: identity in eval mode
        lf_sum = x if lf_sum is None else lf_sum + x     # LF op: sum fusion
        if i != layer_num - 1:
            x = x + prev                                 # LC op: skip-connect sum

    # --------------- folded relation projection (single matmul) -------------
    rel_o_ref[...] = (jnp.dot(rel_ref[...].astype(jnp.bfloat16), wr_ref[...],
                              preferred_element_type=jnp.float32)
                      + br_ref[...]).astype(rel_o_ref.dtype)

    # ----------------- scalar-feature heads + concat + mix ------------------
    def heads(feats, w1, b1, w2, b2, w3, b3, wmix, bmix, num_heads):
        h_list = []
        for k in range(num_heads):                        # static unroll
            col = feats[:, k:k + 1]                       # (M, 1)
            # Linear(1,D) -> ReLU -> Linear(D,D) -> ReLU -> Linear(D,D)
            # (dropout = eval identity, LayerNorm disabled (ln=False))
            h = jnp.maximum(col * w1[k] + b1[k], 0.0)
            h = jnp.maximum(
                jnp.dot(h.astype(jnp.bfloat16), w2[k],
                        preferred_element_type=jnp.float32) + b2[k], 0.0)
            h = jnp.dot(h.astype(jnp.bfloat16), w3[k],
                        preferred_element_type=jnp.float32) + b3[k]
            h_list.append(h.astype(jnp.bfloat16))
        # lane-concatenate then ONE long-K matmul against flat (H*D, D) Wmix
        concat = jnp.concatenate(h_list, axis=-1)         # (M, H*D) bf16
        mixed = jnp.dot(concat, wmix, preferred_element_type=jnp.float32)
        return jnp.maximum(mixed + bmix, 0.0)             # (M, D) f32

    # node path (M = ENT): degree, cen, pgrank, netw, katz + node_mlp + relu
    node_info = heads(nfeat_ref[...], nw1_ref, nb1_ref, nw2_ref, nb2_ref,
                      nw3_ref, nb3_ref, nwmix_ref[...], nbmix_ref[...],
                      num_node_heads)
    # pair path (M = P): cn, jaccaard, ra, adamic + pair_mlp + relu
    pair_info = heads(pfeat_ref[...], pw1_ref, pb1_ref, pw2_ref, pb2_ref,
                      pw3_ref, pb3_ref, pwmix_ref[...], pbmix_ref[...],
                      num_pair_heads)
    pair_o_ref[...] = pair_info.astype(pair_o_ref.dtype)

    # -------- stacked one-hot gather (sub over obj, one M=2P matmul) --------
    # NF op (add fusion): (gnn + node_info)[idx] == onehot(idx) @ (gnn + node_info)
    combined = lf_sum + node_info                          # (ENT, D) f32
    ent = adj_ref.shape[0]
    ids = jax.lax.broadcasted_iota(jnp.int32, (2 * num_pairs, ent), 1)
    onehot = (ids == idx_ref[...]).astype(jnp.float32)     # exact f32 gather
    gathered = jnp.dot(onehot, combined, preferred_element_type=jnp.float32)
    sub_o_ref[...] = gathered[:num_pairs].astype(sub_o_ref.dtype)
    obj_o_ref[...] = gathered[num_pairs:].astype(obj_o_ref.dtype)


def espa_fused(adj, x, rel, idx, node_feats, pair_feats, params, *, layer_num):
    ENT, D = x.shape
    REL = rel.shape[0]
    P2 = idx.shape[0]
    P = P2 // 2
    gp = params["gnn"]
    nh = params["node_heads"]
    ph = params["pair_heads"]
    NH = nh["w1"].shape[0]
    PH = ph["w1"].shape[0]

    args = (adj, x, rel,
            gp["w"], gp["b"], gp["wr_eff"], gp["br_eff"],
            node_feats, nh["w1"], nh["b1"], nh["w2"], nh["b2"],
            nh["w3"], nh["b3"], nh["wmix"], nh["bmix"],
            pair_feats, ph["w1"], ph["b1"], ph["w2"], ph["b2"],
            ph["w3"], ph["b3"], ph["wmix"], ph["bmix"],
            idx)

    flops = int(
        2 * layer_num * (ENT * ENT * D + ENT * D * D)            # GNN stack
        + 2 * REL * D * D                                         # folded rel proj
        + NH * (2 * ENT * D + 4 * ENT * D * D) + 2 * ENT * NH * D * D   # node path
        + PH * (2 * P * D + 4 * P * D * D) + 2 * P * PH * D * D         # pair path
        + 2 * P2 * ENT * D)                                       # gather
    bytes_accessed = int(sum(a.size * a.dtype.itemsize for a in args)
                         + (3 * P * D + REL * D) * 4)

    return pl.pallas_call(
        functools.partial(_espa_fused_kernel, layer_num=layer_num,
                          num_pairs=P, num_node_heads=NH, num_pair_heads=PH),
        out_shape=(jax.ShapeDtypeStruct((P, D), jnp.float32),
                   jax.ShapeDtypeStruct((P, D), jnp.float32),
                   jax.ShapeDtypeStruct((P, D), jnp.float32),
                   jax.ShapeDtypeStruct((REL, D), jnp.float32)),
        in_specs=[pl.BlockSpec(memory_space=pltpu.MemorySpace.VMEM)] * len(args),
        out_specs=tuple(pl.BlockSpec(memory_space=pltpu.MemorySpace.VMEM)
                        for _ in range(4)),
        cost_estimate=pl.CostEstimate(flops=flops, transcendentals=0,
                                      bytes_accessed=bytes_accessed),
    )(*args)


# ---------------------------------------------------------------------------
# Model (functional, fixed single-path choices for the SPOS supernet)
# ---------------------------------------------------------------------------

def espa_forward(params, ent_embeds, adj, rel_embeds, sub, obj,
                 node_feats, pair_feats, *, layer_num):
    P = sub.shape[0]
    # stack sub over obj so the kernel does one M=2P gather matmul
    idx = jnp.concatenate([sub.reshape(P, 1), obj.reshape(P, 1)],
                          axis=0).astype(jnp.int32)
    sub_gnn_node, obj_gnn_node, optpair_info_embed, rel_out = espa_fused(
        adj, ent_embeds, rel_embeds, idx, node_feats, pair_feats, params,
        layer_num=layer_num)
    return sub_gnn_node, obj_gnn_node, optpair_info_embed, rel_out


# ---------------------------------------------------------------------------
# Deterministic parameter construction (stacked / folded / bf16-cast up front)
# ---------------------------------------------------------------------------

def build_params(key, dim, layer_num):
    # NOTE: the LC skip-connect placeholder and the stacked-weight layout require
    # input_dim == hidden_dim == output_dim (true for this demo: all == dim).
    D = dim

    def init_linear(k, fin, fout):
        kw, kb = jax.random.split(k)
        w = jax.random.normal(kw, (fin, fout), jnp.float32) * 0.05
        b = jax.random.normal(kb, (1, fout), jnp.float32) * 0.01   # biases (1, D)
        return w, b

    keys = jax.random.split(key, 12)

    gw, gb = [], []
    wr_eff = jnp.eye(D, dtype=jnp.float32)
    br_eff = jnp.zeros((1, D), jnp.float32)
    for i in range(layer_num):
        kw, kr = jax.random.split(keys[i])
        w, b = init_linear(kw, D, D)
        wr, br = init_linear(kr, D, D)
        gw.append(w)
        gb.append(b)
        # fold the purely-linear relation chain: rel @ W0 + b0, @ W1 + b1, ...
        wr_eff = wr_eff @ wr
        br_eff = br_eff @ wr + br
    gnn = dict(w=jnp.stack(gw).astype(jnp.bfloat16), b=jnp.stack(gb),
               wr_eff=wr_eff.astype(jnp.bfloat16), br_eff=br_eff)

    def init_heads(kbase, num_heads, kmix):
        w1s, b1s, w2s, b2s, w3s, b3s = [], [], [], [], [], []
        for hk in jax.random.split(kbase, num_heads):
            k1, k2, k3 = jax.random.split(hk, 3)
            w1, b1 = init_linear(k1, 1, D)
            w2, b2 = init_linear(k2, D, D)
            w3, b3 = init_linear(k3, D, D)
            w1s.append(w1); b1s.append(b1); w2s.append(w2); b2s.append(b2)
            w3s.append(w3); b3s.append(b3)
        wmix, bmix = init_linear(kmix, num_heads * D, D)   # kept flat (H*D, D)
        return dict(
            w1=jnp.stack(w1s), b1=jnp.stack(b1s),
            w2=jnp.stack(w2s).astype(jnp.bfloat16), b2=jnp.stack(b2s),
            w3=jnp.stack(w3s).astype(jnp.bfloat16), b3=jnp.stack(b3s),
            wmix=wmix.astype(jnp.bfloat16), bmix=bmix)

    return dict(
        gnn=gnn,
        node_heads=init_heads(keys[8], 5, keys[9]),    # degree, cen, pgrank, netw, katz
        pair_heads=init_heads(keys[10], 4, keys[11]),  # cn, jaccaard, ra, adamic
    )


if __name__ == "__main__":
    ENT, D, REL, E, P, L = 256, 128, 8, 512, 128, 2   # entities, dim, relations, edges, pairs, layers

    key = jax.random.PRNGKey(0)
    (k_ent, k_rel, k_src, k_dst, k_et, k_feat, k_sub, k_obj, k_params) = jax.random.split(key, 9)

    ent_embeds = jax.random.normal(k_ent, (ENT, D), jnp.float32)
    rel_embeds = jax.random.normal(k_rel, (REL, D), jnp.float32)
    edge_src = jax.random.randint(k_src, (E,), 0, ENT)
    edge_dst = jax.random.randint(k_dst, (E,), 0, ENT)
    edge_type = jax.random.randint(k_et, (E,), 0, REL)   # TODO(synk): unused by the fixed GCN-style G op
    node_wise_feature = jax.random.uniform(k_feat, (ENT, 5), jnp.float32) + 0.1
    sub = jax.random.randint(k_sub, (P,), 0, ENT)
    obj = jax.random.randint(k_obj, (P,), 0, ENT)

    params = build_params(k_params, D, L)

    # Dense row-normalized adjacency (with self loops) for the GCN-style G op,
    # cast once to bf16 (MXU-native, halves the DMA of the largest operand).
    src_np = np.asarray(edge_src)
    dst_np = np.asarray(edge_dst)
    A = np.zeros((ENT, ENT), np.float32)
    A[dst_np, src_np] = 1.0
    A[np.arange(ENT), np.arange(ENT)] = 1.0
    A = A / A.sum(axis=1, keepdims=True)
    adj = jnp.asarray(A).astype(jnp.bfloat16)

    # Host-side graph statistics (CN / Jaccard / RA / Adamic), mirroring the
    # Python-set computation in the PyTorch forward; packed into one (P,4) array.
    s2o = collections.defaultdict(set)
    for s, d in zip(src_np.tolist(), dst_np.tolist()):
        s2o[s].add(d)
    for n in range(ENT):
        if not s2o[n]:
            s2o[n].add(n)
    s2o = {k: list(v) for k, v in s2o.items()}

    pair_rows = []
    for s, o in zip(np.asarray(sub).tolist(), np.asarray(obj).tolist()):
        sn, on = set(s2o.get(s, [])), set(s2o.get(o, []))
        cn = sn & on
        union = sn | on
        cn_num = float(len(cn))
        jac = cn_num / len(union) if union else 0.0
        ra = float(sum(1.0 / len(s2o[x]) for x in cn))
        ad = float(sum((1.0 / np.log(len(s2o[x]))) if len(s2o[x]) > 1 else 0.0 for x in cn))
        pair_rows.append([cn_num, jac, ra, ad])
    pair_feats = jnp.asarray(np.asarray(pair_rows, np.float32))          # (P, 4)

    sub_idx = jnp.asarray(sub, jnp.int32)
    obj_idx = jnp.asarray(obj, jnp.int32)

    fwd = jax.jit(functools.partial(espa_forward, layer_num=L))
    outs = fwd(params, ent_embeds, adj, rel_embeds, sub_idx, obj_idx,
               node_wise_feature, pair_feats)
    outs = jax.block_until_ready(outs)

    sub_gnn_node, obj_gnn_node, optpair_info_embed, rel_out = outs
    assert sub_gnn_node.shape == (P, D)
    assert obj_gnn_node.shape == (P, D)
    assert optpair_info_embed.shape == (P, D)
    assert rel_out.shape == (REL, D)
    assert all(bool(jnp.all(jnp.isfinite(o))) for o in outs)
    print("KERNEL_OK")
</pallas_src>

<mosaic_0001>
module attributes {stable_mosaic.version = 11 : i64} {
  func.func @_espa_fused_kernel(%arg0: memref<256x256xbf16, #tpu.memory_space<vmem>>, %arg1: memref<256x128xf32, #tpu.memory_space<vmem>>, %arg2: memref<8x128xf32, #tpu.memory_space<vmem>>, %arg3: memref<2x128x128xbf16, #tpu.memory_space<vmem>>, %arg4: memref<2x1x128xf32, #tpu.memory_space<vmem>>, %arg5: memref<128x128xbf16, #tpu.memory_space<vmem>>, %arg6: memref<1x128xf32, #tpu.memory_space<vmem>>, %arg7: memref<256x5xf32, #tpu.memory_space<vmem>>, %arg8: memref<5x1x128xf32, #tpu.memory_space<vmem>>, %arg9: memref<5x1x128xf32, #tpu.memory_space<vmem>>, %arg10: memref<5x128x128xbf16, #tpu.memory_space<vmem>>, %arg11: memref<5x1x128xf32, #tpu.memory_space<vmem>>, %arg12: memref<5x128x128xbf16, #tpu.memory_space<vmem>>, %arg13: memref<5x1x128xf32, #tpu.memory_space<vmem>>, %arg14: memref<640x128xbf16, #tpu.memory_space<vmem>>, %arg15: memref<1x128xf32, #tpu.memory_space<vmem>>, %arg16: memref<128x4xf32, #tpu.memory_space<vmem>>, %arg17: memref<4x1x128xf32, #tpu.memory_space<vmem>>, %arg18: memref<4x1x128xf32, #tpu.memory_space<vmem>>, %arg19: memref<4x128x128xbf16, #tpu.memory_space<vmem>>, %arg20: memref<4x1x128xf32, #tpu.memory_space<vmem>>, %arg21: memref<4x128x128xbf16, #tpu.memory_space<vmem>>, %arg22: memref<4x1x128xf32, #tpu.memory_space<vmem>>, %arg23: memref<512x128xbf16, #tpu.memory_space<vmem>>, %arg24: memref<1x128xf32, #tpu.memory_space<vmem>>, %arg25: memref<256x1xi32, #tpu.memory_space<vmem>>, %arg26: memref<128x128xf32, #tpu.memory_space<vmem>>, %arg27: memref<128x128xf32, #tpu.memory_space<vmem>>, %arg28: memref<128x128xf32, #tpu.memory_space<vmem>>, %arg29: memref<8x128xf32, #tpu.memory_space<vmem>>) attributes {dimension_semantics = [], scalar_prefetch = 0 : i64, scratch_operands = 0 : i64, tpu.core_type = #tpu.core_type<tc>} {
    %c0 = arith.constant 0 : index
    %c0_0 = arith.constant 0 : index
    %0 = vector.load %arg0[%c0, %c0_0] : memref<256x256xbf16, #tpu.memory_space<vmem>>, vector<256x256xbf16>
    %c0_1 = arith.constant 0 : index
    %c0_2 = arith.constant 0 : index
    %1 = vector.load %arg1[%c0_1, %c0_2] : memref<256x128xf32, #tpu.memory_space<vmem>>, vector<256x128xf32>
    %2 = arith.truncf %1 : vector<256x128xf32> to vector<256x128xbf16>
    %cst = arith.constant dense<0.000000e+00> : vector<256x128xf32>
    %3 = tpu.matmul %0, %2, %cst {dimension_numbers = #tpu.dot_dimension_numbers<[1], [0], [0], [1], [0, 0, 1, 1], [], []>} : vector<256x256xbf16>, vector<256x128xbf16>, vector<256x128xf32> -> vector<256x128xf32>
    %4 = arith.truncf %3 : vector<256x128xf32> to vector<256x128xbf16>
    %c0_3 = arith.constant 0 : index
    %c0_4 = arith.constant 0 : index
    %c0_5 = arith.constant 0 : index
    %5 = vector.load %arg3[%c0_3, %c0_4, %c0_5] : memref<2x128x128xbf16, #tpu.memory_space<vmem>>, vector<1x128x128xbf16>
    %6 = vector.shape_cast %5 : vector<1x128x128xbf16> to vector<128x128xbf16>
    %cst_6 = arith.constant dense<0.000000e+00> : vector<256x128xf32>
    %7 = tpu.matmul %4, %6, %cst_6 {dimension_numbers = #tpu.dot_dimension_numbers<[1], [0], [0], [1], [0, 0, 1, 1], [], []>} : vector<256x128xbf16>, vector<128x128xbf16>, vector<256x128xf32> -> vector<256x128xf32>
    %c0_7 = arith.constant 0 : index
    %c0_8 = arith.constant 0 : index
    %c0_9 = arith.constant 0 : index
    %8 = vector.load %arg4[%c0_7, %c0_8, %c0_9] : memref<2x1x128xf32, #tpu.memory_space<vmem>>, vector<1x1x128xf32>
    %9 = vector.shape_cast %8 : vector<1x1x128xf32> to vector<1x128xf32>
    %10 = vector.broadcast %9 : vector<1x128xf32> to vector<256x128xf32>
    %11 = arith.addf %7, %10 : vector<256x128xf32>
    %cst_10 = arith.constant 0.000000e+00 : f32
    %12 = vector.broadcast %cst_10 : f32 to vector<256x128xf32>
    %13 = arith.maximumf %11, %12 : vector<256x128xf32>
    %14 = arith.addf %13, %1 : vector<256x128xf32>
    %15 = arith.truncf %14 : vector<256x128xf32> to vector<256x128xbf16>
    %cst_11 = arith.constant dense<0.000000e+00> : vector<256x128xf32>
    %16 = tpu.matmul %0, %15, %cst_11 {dimension_numbers = #tpu.dot_dimension_numbers<[1], [0], [0], [1], [0, 0, 1, 1], [], []>} : vector<256x256xbf16>, vector<256x128xbf16>, vector<256x128xf32> -> vector<256x128xf32>
    %17 = arith.truncf %16 : vector<256x128xf32> to vector<256x128xbf16>
    %c1 = arith.constant 1 : index
    %c0_12 = arith.constant 0 : index
    %c0_13 = arith.constant 0 : index
    %18 = vector.load %arg3[%c1, %c0_12, %c0_13] : memref<2x128x128xbf16, #tpu.memory_space<vmem>>, vector<1x128x128xbf16>
    %19 = vector.shape_cast %18 : vector<1x128x128xbf16> to vector<128x128xbf16>
    %cst_14 = arith.constant dense<0.000000e+00> : vector<256x128xf32>
    %20 = tpu.matmul %17, %19, %cst_14 {dimension_numbers = #tpu.dot_dimension_numbers<[1], [0], [0], [1], [0, 0, 1, 1], [], []>} : vector<256x128xbf16>, vector<128x128xbf16>, vector<256x128xf32> -> vector<256x128xf32>
    %c1_15 = arith.constant 1 : index
    %c0_16 = arith.constant 0 : index
    %c0_17 = arith.constant 0 : index
    %21 = vector.load %arg4[%c1_15, %c0_16, %c0_17] : memref<2x1x128xf32, #tpu.memory_space<vmem>>, vector<1x1x128xf32>
    %22 = vector.shape_cast %21 : vector<1x1x128xf32> to vector<1x128xf32>
    %23 = vector.broadcast %22 : vector<1x128xf32> to vector<256x128xf32>
    %24 = arith.addf %20, %23 : vector<256x128xf32>
    %cst_18 = arith.constant 0.000000e+00 : f32
    %25 = vector.broadcast %cst_18 : f32 to vector<256x128xf32>
    %26 = arith.maximumf %24, %25 : vector<256x128xf32>
    %27 = arith.addf %13, %26 : vector<256x128xf32>
    %c0_19 = arith.constant 0 : index
    %c0_20 = arith.constant 0 : index
    %28 = vector.load %arg2[%c0_19, %c0_20] : memref<8x128xf32, #tpu.memory_space<vmem>>, vector<8x128xf32>
    %29 = arith.truncf %28 : vector<8x128xf32> to vector<8x128xbf16>
    %c0_21 = arith.constant 0 : index
    %c0_22 = arith.constant 0 : index
    %30 = vector.load %arg5[%c0_21, %c0_22] : memref<128x128xbf16, #tpu.memory_space<vmem>>, vector<128x128xbf16>
    %cst_23 = arith.constant dense<0.000000e+00> : vector<8x128xf32>
    %31 = tpu.matmul %29, %30, %cst_23 {dimension_numbers = #tpu.dot_dimension_numbers<[1], [0], [0], [1], [0, 0, 1, 1], [], []>} : vector<8x128xbf16>, vector<128x128xbf16>, vector<8x128xf32> -> vector<8x128xf32>
    %c0_24 = arith.constant 0 : index
    %c0_25 = arith.constant 0 : index
    %32 = vector.load %arg6[%c0_24, %c0_25] : memref<1x128xf32, #tpu.memory_space<vmem>>, vector<1x128xf32>
    %33 = vector.broadcast %32 : vector<1x128xf32> to vector<8x128xf32>
    %34 = arith.addf %31, %33 : vector<8x128xf32>
    %c0_26 = arith.constant 0 : index
    %c0_27 = arith.constant 0 : index
    %35 = vector.load %arg29[%c0_26, %c0_27] : memref<8x128xf32, #tpu.memory_space<vmem>>, vector<8x128xf32>
    tpu.vector_store %arg29[%c0_26, %c0_27], %34 {strides = array<i32>} : memref<8x128xf32, #tpu.memory_space<vmem>>, vector<8x128xf32>,
    %c0_28 = arith.constant 0 : index
    %c0_29 = arith.constant 0 : index
    %36 = vector.load %arg7[%c0_28, %c0_29] : memref<256x5xf32, #tpu.memory_space<vmem>>, vector<256x5xf32>
    %c0_30 = arith.constant 0 : index
    %c0_31 = arith.constant 0 : index
    %37 = vector.load %arg14[%c0_30, %c0_31] : memref<640x128xbf16, #tpu.memory_space<vmem>>, vector<640x128xbf16>
    %c0_32 = arith.constant 0 : index
    %c0_33 = arith.constant 0 : index
    %38 = vector.load %arg15[%c0_32, %c0_33] : memref<1x128xf32, #tpu.memory_space<vmem>>, vector<1x128xf32>
    %39 = vector.extract_strided_slice %36 {offsets = [0, 0], sizes = [256, 1], strides = [1, 1]} : vector<256x5xf32> to vector<256x1xf32>
    %c0_34 = arith.constant 0 : index
    %c0_35 = arith.constant 0 : index
    %c0_36 = arith.constant 0 : index
    %40 = vector.load %arg8[%c0_34, %c0_35, %c0_36] : memref<5x1x128xf32, #tpu.memory_space<vmem>>, vector<1x1x128xf32>
    %41 = vector.shape_cast %40 : vector<1x1x128xf32> to vector<1x128xf32>
    %42 = vector.broadcast %39 : vector<256x1xf32> to vector<256x128xf32>
    %43 = vector.broadcast %41 : vector<1x128xf32> to vector<256x128xf32>
    %44 = arith.mulf %42, %43 : vector<256x128xf32>
    %c0_37 = arith.constant 0 : index
    %c0_38 = arith.constant 0 : index
    %c0_39 = arith.constant 0 : index
    %45 = vector.load %arg9[%c0_37, %c0_38, %c0_39] : memref<5x1x128xf32, #tpu.memory_space<vmem>>, vector<1x1x128xf32>
    %46 = vector.shape_cast %45 : vector<1x1x128xf32> to vector<1x128xf32>
    %47 = vector.broadcast %46 : vector<1x128xf32> to vector<256x128xf32>
    %48 = arith.addf %44, %47 : vector<256x128xf32>
    %cst_40 = arith.constant 0.000000e+00 : f32
    %49 = vector.broadcast %cst_40 : f32 to vector<256x128xf32>
    %50 = arith.maximumf %48, %49 : vector<256x128xf32>
    %51 = arith.truncf %50 : vector<256x128xf32> to vector<256x128xbf16>
    %c0_41 = arith.constant 0 : index
    %c0_42 = arith.constant 0 : index
    %c0_43 = arith.constant 0 : index
    %52 = vector.load %arg10[%c0_41, %c0_42, %c0_43] : memref<5x128x128xbf16, #tpu.memory_space<vmem>>, vector<1x128x128xbf16>
    %53 = vector.shape_cast %52 : vector<1x128x128xbf16> to vector<128x128xbf16>
    %cst_44 = arith.constant dense<0.000000e+00> : vector<256x128xf32>
    %54 = tpu.matmul %51, %53, %cst_44 {dimension_numbers = #tpu.dot_dimension_numbers<[1], [0], [0], [1], [0, 0, 1, 1], [], []>} : vector<256x128xbf16>, vector<128x128xbf16>, vector<256x128xf32> -> vector<256x128xf32>
    %c0_45 = arith.constant 0 : index
    %c0_46 = arith.constant 0 : index
    %c0_47 = arith.constant 0 : index
    %55 = vector.load %arg11[%c0_45, %c0_46, %c0_47] : memref<5x1x128xf32, #tpu.memory_space<vmem>>, vector<1x1x128xf32>
    %56 = vector.shape_cast %55 : vector<1x1x128xf32> to vector<1x128xf32>
    %57 = vector.broadcast %56 : vector<1x128xf32> to vector<256x128xf32>
    %58 = arith.addf %54, %57 : vector<256x128xf32>
    %cst_48 = arith.constant 0.000000e+00 : f32
    %59 = vector.broadcast %cst_48 : f32 to vector<256x128xf32>
    %60 = arith.maximumf %58, %59 : vector<256x128xf32>
    %61 = arith.truncf %60 : vector<256x128xf32> to vector<256x128xbf16>
    %c0_49 = arith.constant 0 : index
    %c0_50 = arith.constant 0 : index
    %c0_51 = arith.constant 0 : index
    %62 = vector.load %arg12[%c0_49, %c0_50, %c0_51] : memref<5x128x128xbf16, #tpu.memory_space<vmem>>, vector<1x128x128xbf16>
    %63 = vector.shape_cast %62 : vector<1x128x128xbf16> to vector<128x128xbf16>
    %cst_52 = arith.constant dense<0.000000e+00> : vector<256x128xf32>
    %64 = tpu.matmul %61, %63, %cst_52 {dimension_numbers = #tpu.dot_dimension_numbers<[1], [0], [0], [1], [0, 0, 1, 1], [], []>} : vector<256x128xbf16>, vector<128x128xbf16>, vector<256x128xf32> -> vector<256x128xf32>
    %c0_53 = arith.constant 0 : index
    %c0_54 = arith.constant 0 : index
    %c0_55 = arith.constant 0 : index
    %65 = vector.load %arg13[%c0_53, %c0_54, %c0_55] : memref<5x1x128xf32, #tpu.memory_space<vmem>>, vector<1x1x128xf32>
    %66 = vector.shape_cast %65 : vector<1x1x128xf32> to vector<1x128xf32>
    %67 = vector.broadcast %66 : vector<1x128xf32> to vector<256x128xf32>
    %68 = arith.addf %64, %67 : vector<256x128xf32>
    %69 = arith.truncf %68 : vector<256x128xf32> to vector<256x128xbf16>
    %70 = vector.extract_strided_slice %36 {offsets = [0, 1], sizes = [256, 1], strides = [1, 1]} : vector<256x5xf32> to vector<256x1xf32>
    %c1_56 = arith.constant 1 : index
    %c0_57 = arith.constant 0 : index
    %c0_58 = arith.constant 0 : index
    %71 = vector.load %arg8[%c1_56, %c0_57, %c0_58] : memref<5x1x128xf32, #tpu.memory_space<vmem>>, vector<1x1x128xf32>
    %72 = vector.shape_cast %71 : vector<1x1x128xf32> to vector<1x128xf32>
    %73 = vector.broadcast %70 : vector<256x1xf32> to vector<256x128xf32>
    %74 = vector.broadcast %72 : vector<1x128xf32> to vector<256x128xf32>
    %75 = arith.mulf %73, %74 : vector<256x128xf32>
    %c1_59 = arith.constant 1 : index
    %c0_60 = arith.constant 0 : index
    %c0_61 = arith.constant 0 : index
    %76 = vector.load %arg9[%c1_59, %c0_60, %c0_61] : memref<5x1x128xf32, #tpu.memory_space<vmem>>, vector<1x1x128xf32>
    %77 = vector.shape_cast %76 : vector<1x1x128xf32> to vector<1x128xf32>
    %78 = vector.broadcast %77 : vector<1x128xf32> to vector<256x128xf32>
    %79 = arith.addf %75, %78 : vector<256x128xf32>
    %cst_62 = arith.constant 0.000000e+00 : f32
    %80 = vector.broadcast %cst_62 : f32 to vector<256x128xf32>
    %81 = arith.maximumf %79, %80 : vector<256x128xf32>
    %82 = arith.truncf %81 : vector<256x128xf32> to vector<256x128xbf16>
    %c1_63 = arith.constant 1 : index
    %c0_64 = arith.constant 0 : index
    %c0_65 = arith.constant 0 : index
    %83 = vector.load %arg10[%c1_63, %c0_64, %c0_65] : memref<5x128x128xbf16, #tpu.memory_space<vmem>>, vector<1x128x128xbf16>
    %84 = vector.shape_cast %83 : vector<1x128x128xbf16> to vector<128x128xbf16>
    %cst_66 = arith.constant dense<0.000000e+00> : vector<256x128xf32>
    %85 = tpu.matmul %82, %84, %cst_66 {dimension_numbers = #tpu.dot_dimension_numbers<[1], [0], [0], [1], [0, 0, 1, 1], [], []>} : vector<256x128xbf16>, vector<128x128xbf16>, vector<256x128xf32> -> vector<256x128xf32>
    %c1_67 = arith.constant 1 : index
    %c0_68 = arith.constant 0 : index
    %c0_69 = arith.constant 0 : index
    %86 = vector.load %arg11[%c1_67, %c0_68, %c0_69] : memref<5x1x128xf32, #tpu.memory_space<vmem>>, vector<1x1x128xf32>
    %87 = vector.shape_cast %86 : vector<1x1x128xf32> to vector<1x128xf32>
    %88 = vector.broadcast %87 : vector<1x128xf32> to vector<256x128xf32>
    %89 = arith.addf %85, %88 : vector<256x128xf32>
    %cst_70 = arith.constant 0.000000e+00 : f32
    %90 = vector.broadcast %cst_70 : f32 to vector<256x128xf32>
    %91 = arith.maximumf %89, %90 : vector<256x128xf32>
    %92 = arith.truncf %91 : vector<256x128xf32> to vector<256x128xbf16>
    %c1_71 = arith.constant 1 : index
    %c0_72 = arith.constant 0 : index
    %c0_73 = arith.constant 0 : index
    %93 = vector.load %arg12[%c1_71, %c0_72, %c0_73] : memref<5x128x128xbf16, #tpu.memory_space<vmem>>, vector<1x128x128xbf16>
    %94 = vector.shape_cast %93 : vector<1x128x128xbf16> to vector<128x128xbf16>
    %cst_74 = arith.constant dense<0.000000e+00> : vector<256x128xf32>
    %95 = tpu.matmul %92, %94, %cst_74 {dimension_numbers = #tpu.dot_dimension_numbers<[1], [0], [0], [1], [0, 0, 1, 1], [], []>} : vector<256x128xbf16>, vector<128x128xbf16>, vector<256x128xf32> -> vector<256x128xf32>
    %c1_75 = arith.constant 1 : index
    %c0_76 = arith.constant 0 : index
    %c0_77 = arith.constant 0 : index
    %96 = vector.load %arg13[%c1_75, %c0_76, %c0_77] : memref<5x1x128xf32, #tpu.memory_space<vmem>>, vector<1x1x128xf32>
    %97 = vector.shape_cast %96 : vector<1x1x128xf32> to vector<1x128xf32>
    %98 = vector.broadcast %97 : vector<1x128xf32> to vector<256x128xf32>
    %99 = arith.addf %95, %98 : vector<256x128xf32>
    %100 = arith.truncf %99 : vector<256x128xf32> to vector<256x128xbf16>
    %101 = vector.extract_strided_slice %36 {offsets = [0, 2], sizes = [256, 1], strides = [1, 1]} : vector<256x5xf32> to vector<256x1xf32>
    %c2 = arith.constant 2 : index
    %c0_78 = arith.constant 0 : index
    %c0_79 = arith.constant 0 : index
    %102 = vector.load %arg8[%c2, %c0_78, %c0_79] : memref<5x1x128xf32, #tpu.memory_space<vmem>>, vector<1x1x128xf32>
    %103 = vector.shape_cast %102 : vector<1x1x128xf32> to vector<1x128xf32>
    %104 = vector.broadcast %101 : vector<256x1xf32> to vector<256x128xf32>
    %105 = vector.broadcast %103 : vector<1x128xf32> to vector<256x128xf32>
    %106 = arith.mulf %104, %105 : vector<256x128xf32>
    %c2_80 = arith.constant 2 : index
    %c0_81 = arith.constant 0 : index
    %c0_82 = arith.constant 0 : index
    %107 = vector.load %arg9[%c2_80, %c0_81, %c0_82] : memref<5x1x128xf32, #tpu.memory_space<vmem>>, vector<1x1x128xf32>
    %108 = vector.shape_cast %107 : vector<1x1x128xf32> to vector<1x128xf32>
    %109 = vector.broadcast %108 : vector<1x128xf32> to vector<256x128xf32>
    %110 = arith.addf %106, %109 : vector<256x128xf32>
    %cst_83 = arith.constant 0.000000e+00 : f32
    %111 = vector.broadcast %cst_83 : f32 to vector<256x128xf32>
    %112 = arith.maximumf %110, %111 : vector<256x128xf32>
    %113 = arith.truncf %112 : vector<256x128xf32> to vector<256x128xbf16>
    %c2_84 = arith.constant 2 : index
    %c0_85 = arith.constant 0 : index
    %c0_86 = arith.constant 0 : index
    %114 = vector.load %arg10[%c2_84, %c0_85, %c0_86] : memref<5x128x128xbf16, #tpu.memory_space<vmem>>, vector<1x128x128xbf16>
    %115 = vector.shape_cast %114 : vector<1x128x128xbf16> to vector<128x128xbf16>
    %cst_87 = arith.constant dense<0.000000e+00> : vector<256x128xf32>
    %116 = tpu.matmul %113, %115, %cst_87 {dimension_numbers = #tpu.dot_dimension_numbers<[1], [0], [0], [1], [0, 0, 1, 1], [], []>} : vector<256x128xbf16>, vector<128x128xbf16>, vector<256x128xf32> -> vector<256x128xf32>
    %c2_88 = arith.constant 2 : index
    %c0_89 = arith.constant 0 : index
    %c0_90 = arith.constant 0 : index
    %117 = vector.load %arg11[%c2_88, %c0_89, %c0_90] : memref<5x1x128xf32, #tpu.memory_space<vmem>>, vector<1x1x128xf32>
    %118 = vector.shape_cast %117 : vector<1x1x128xf32> to vector<1x128xf32>
    %119 = vector.broadcast %118 : vector<1x128xf32> to vector<256x128xf32>
    %120 = arith.addf %116, %119 : vector<256x128xf32>
    %cst_91 = arith.constant 0.000000e+00 : f32
    %121 = vector.broadcast %cst_91 : f32 to vector<256x128xf32>
    %122 = arith.maximumf %120, %121 : vector<256x128xf32>
    %123 = arith.truncf %122 : vector<256x128xf32> to vector<256x128xbf16>
    %c2_92 = arith.constant 2 : index
    %c0_93 = arith.constant 0 : index
    %c0_94 = arith.constant 0 : index
    %124 = vector.load %arg12[%c2_92, %c0_93, %c0_94] : memref<5x128x128xbf16, #tpu.memory_space<vmem>>, vector<1x128x128xbf16>
    %125 = vector.shape_cast %124 : vector<1x128x128xbf16> to vector<128x128xbf16>
    %cst_95 = arith.constant dense<0.000000e+00> : vector<256x128xf32>
    %126 = tpu.matmul %123, %125, %cst_95 {dimension_numbers = #tpu.dot_dimension_numbers<[1], [0], [0], [1], [0, 0, 1, 1], [], []>} : vector<256x128xbf16>, vector<128x128xbf16>, vector<256x128xf32> -> vector<256x128xf32>
    %c2_96 = arith.constant 2 : index
    %c0_97 = arith.constant 0 : index
    %c0_98 = arith.constant 0 : index
    %127 = vector.load %arg13[%c2_96, %c0_97, %c0_98] : memref<5x1x128xf32, #tpu.memory_space<vmem>>, vector<1x1x128xf32>
    %128 = vector.shape_cast %127 : vector<1x1x128xf32> to vector<1x128xf32>
    %129 = vector.broadcast %128 : vector<1x128xf32> to vector<256x128xf32>
    %130 = arith.addf %126, %129 : vector<256x128xf32>
    %131 = arith.truncf %130 : vector<256x128xf32> to vector<256x128xbf16>
    %132 = vector.extract_strided_slice %36 {offsets = [0, 3], sizes = [256, 1], strides = [1, 1]} : vector<256x5xf32> to vector<256x1xf32>
    %c3 = arith.constant 3 : index
    %c0_99 = arith.constant 0 : index
    %c0_100 = arith.constant 0 : index
    %133 = vector.load %arg8[%c3, %c0_99, %c0_100] : memref<5x1x128xf32, #tpu.memory_space<vmem>>, vector<1x1x128xf32>
    %134 = vector.shape_cast %133 : vector<1x1x128xf32> to vector<1x128xf32>
    %135 = vector.broadcast %132 : vector<256x1xf32> to vector<256x128xf32>
    %136 = vector.broadcast %134 : vector<1x128xf32> to vector<256x128xf32>
    %137 = arith.mulf %135, %136 : vector<256x128xf32>
    %c3_101 = arith.constant 3 : index
    %c0_102 = arith.constant 0 : index
    %c0_103 = arith.constant 0 : index
    %138 = vector.load %arg9[%c3_101, %c0_102, %c0_103] : memref<5x1x128xf32, #tpu.memory_space<vmem>>, vector<1x1x128xf32>
    %139 = vector.shape_cast %138 : vector<1x1x128xf32> to vector<1x128xf32>
    %140 = vector.broadcast %139 : vector<1x128xf32> to vector<256x128xf32>
    %141 = arith.addf %137, %140 : vector<256x128xf32>
    %cst_104 = arith.constant 0.000000e+00 : f32
    %142 = vector.broadcast %cst_104 : f32 to vector<256x128xf32>
    %143 = arith.maximumf %141, %142 : vector<256x128xf32>
    %144 = arith.truncf %143 : vector<256x128xf32> to vector<256x128xbf16>
    %c3_105 = arith.constant 3 : index
    %c0_106 = arith.constant 0 : index
    %c0_107 = arith.constant 0 : index
    %145 = vector.load %arg10[%c3_105, %c0_106, %c0_107] : memref<5x128x128xbf16, #tpu.memory_space<vmem>>, vector<1x128x128xbf16>
    %146 = vector.shape_cast %145 : vector<1x128x128xbf16> to vector<128x128xbf16>
    %cst_108 = arith.constant dense<0.000000e+00> : vector<256x128xf32>
    %147 = tpu.matmul %144, %146, %cst_108 {dimension_numbers = #tpu.dot_dimension_numbers<[1], [0], [0], [1], [0, 0, 1, 1], [], []>} : vector<256x128xbf16>, vector<128x128xbf16>, vector<256x128xf32> -> vector<256x128xf32>
    %c3_109 = arith.constant 3 : index
    %c0_110 = arith.constant 0 : index
    %c0_111 = arith.constant 0 : index
    %148 = vector.load %arg11[%c3_109, %c0_110, %c0_111] : memref<5x1x128xf32, #tpu.memory_space<vmem>>, vector<1x1x128xf32>
    %149 = vector.shape_cast %148 : vector<1x1x128xf32> to vector<1x128xf32>
    %150 = vector.broadcast %149 : vector<1x128xf32> to vector<256x128xf32>
    %151 = arith.addf %147, %150 : vector<256x128xf32>
    %cst_112 = arith.constant 0.000000e+00 : f32
    %152 = vector.broadcast %cst_112 : f32 to vector<256x128xf32>
    %153 = arith.maximumf %151, %152 : vector<256x128xf32>
    %154 = arith.truncf %153 : vector<256x128xf32> to vector<256x128xbf16>
    %c3_113 = arith.constant 3 : index
    %c0_114 = arith.constant 0 : index
    %c0_115 = arith.constant 0 : index
    %155 = vector.load %arg12[%c3_113, %c0_114, %c0_115] : memref<5x128x128xbf16, #tpu.memory_space<vmem>>, vector<1x128x128xbf16>
    %156 = vector.shape_cast %155 : vector<1x128x128xbf16> to vector<128x128xbf16>
    %cst_116 = arith.constant dense<0.000000e+00> : vector<256x128xf32>
    %157 = tpu.matmul %154, %156, %cst_116 {dimension_numbers = #tpu.dot_dimension_numbers<[1], [0], [0], [1], [0, 0, 1, 1], [], []>} : vector<256x128xbf16>, vector<128x128xbf16>, vector<256x128xf32> -> vector<256x128xf32>
    %c3_117 = arith.constant 3 : index
    %c0_118 = arith.constant 0 : index
    %c0_119 = arith.constant 0 : index
    %158 = vector.load %arg13[%c3_117, %c0_118, %c0_119] : memref<5x1x128xf32, #tpu.memory_space<vmem>>, vector<1x1x128xf32>
    %159 = vector.shape_cast %158 : vector<1x1x128xf32> to vector<1x128xf32>
    %160 = vector.broadcast %159 : vector<1x128xf32> to vector<256x128xf32>
    %161 = arith.addf %157, %160 : vector<256x128xf32>
    %162 = arith.truncf %161 : vector<256x128xf32> to vector<256x128xbf16>
    %163 = vector.extract_strided_slice %36 {offsets = [0, 4], sizes = [256, 1], strides = [1, 1]} : vector<256x5xf32> to vector<256x1xf32>
    %c4 = arith.constant 4 : index
    %c0_120 = arith.constant 0 : index
    %c0_121 = arith.constant 0 : index
    %164 = vector.load %arg8[%c4, %c0_120, %c0_121] : memref<5x1x128xf32, #tpu.memory_space<vmem>>, vector<1x1x128xf32>
    %165 = vector.shape_cast %164 : vector<1x1x128xf32> to vector<1x128xf32>
    %166 = vector.broadcast %163 : vector<256x1xf32> to vector<256x128xf32>
    %167 = vector.broadcast %165 : vector<1x128xf32> to vector<256x128xf32>
    %168 = arith.mulf %166, %167 : vector<256x128xf32>
    %c4_122 = arith.constant 4 : index
    %c0_123 = arith.constant 0 : index
    %c0_124 = arith.constant 0 : index
    %169 = vector.load %arg9[%c4_122, %c0_123, %c0_124] : memref<5x1x128xf32, #tpu.memory_space<vmem>>, vector<1x1x128xf32>
    %170 = vector.shape_cast %169 : vector<1x1x128xf32> to vector<1x128xf32>
    %171 = vector.broadcast %170 : vector<1x128xf32> to vector<256x128xf32>
    %172 = arith.addf %168, %171 : vector<256x128xf32>
    %cst_125 = arith.constant 0.000000e+00 : f32
    %173 = vector.broadcast %cst_125 : f32 to vector<256x128xf32>
    %174 = arith.maximumf %172, %173 : vector<256x128xf32>
    %175 = arith.truncf %174 : vector<256x128xf32> to vector<256x128xbf16>
    %c4_126 = arith.constant 4 : index
    %c0_127 = arith.constant 0 : index
    %c0_128 = arith.constant 0 : index
    %176 = vector.load %arg10[%c4_126, %c0_127, %c0_128] : memref<5x128x128xbf16, #tpu.memory_space<vmem>>, vector<1x128x128xbf16>
    %177 = vector.shape_cast %176 : vector<1x128x128xbf16> to vector<128x128xbf16>
    %cst_129 = arith.constant dense<0.000000e+00> : vector<256x128xf32>
    %178 = tpu.matmul %175, %177, %cst_129 {dimension_numbers = #tpu.dot_dimension_numbers<[1], [0], [0], [1], [0, 0, 1, 1], [], []>} : vector<256x128xbf16>, vector<128x128xbf16>, vector<256x128xf32> -> vector<256x128xf32>
    %c4_130 = arith.constant 4 : index
    %c0_131 = arith.constant 0 : index
    %c0_132 = arith.constant 0 : index
    %179 = vector.load %arg11[%c4_130, %c0_131, %c0_132] : memref<5x1x128xf32, #tpu.memory_space<vmem>>, vector<1x1x128xf32>
    %180 = vector.shape_cast %179 : vector<1x1x128xf32> to vector<1x128xf32>
    %181 = vector.broadcast %180 : vector<1x128xf32> to vector<256x128xf32>
    %182 = arith.addf %178, %181 : vector<256x128xf32>
    %cst_133 = arith.constant 0.000000e+00 : f32
    %183 = vector.broadcast %cst_133 : f32 to vector<256x128xf32>
    %184 = arith.maximumf %182, %183 : vector<256x128xf32>
    %185 = arith.truncf %184 : vector<256x128xf32> to vector<256x128xbf16>
    %c4_134 = arith.constant 4 : index
    %c0_135 = arith.constant 0 : index
    %c0_136 = arith.constant 0 : index
    %186 = vector.load %arg12[%c4_134, %c0_135, %c0_136] : memref<5x128x128xbf16, #tpu.memory_space<vmem>>, vector<1x128x128xbf16>
    %187 = vector.shape_cast %186 : vector<1x128x128xbf16> to vector<128x128xbf16>
    %cst_137 = arith.constant dense<0.000000e+00> : vector<256x128xf32>
    %188 = tpu.matmul %185, %187, %cst_137 {dimension_numbers = #tpu.dot_dimension_numbers<[1], [0], [0], [1], [0, 0, 1, 1], [], []>} : vector<256x128xbf16>, vector<128x128xbf16>, vector<256x128xf32> -> vector<256x128xf32>
    %c4_138 = arith.constant 4 : index
    %c0_139 = arith.constant 0 : index
    %c0_140 = arith.constant 0 : index
    %189 = vector.load %arg13[%c4_138, %c0_139, %c0_140] : memref<5x1x128xf32, #tpu.memory_space<vmem>>, vector<1x1x128xf32>
    %190 = vector.shape_cast %189 : vector<1x1x128xf32> to vector<1x128xf32>
    %191 = vector.broadcast %190 : vector<1x128xf32> to vector<256x128xf32>
    %192 = arith.addf %188, %191 : vector<256x128xf32>
    %193 = arith.truncf %192 : vector<256x128xf32> to vector<256x128xbf16>
    %194 = tpu.concatenate %69, %100, %131, %162, %193 in 1 : vector<256x128xbf16>, vector<256x128xbf16>, vector<256x128xbf16>, vector<256x128xbf16>, vector<256x128xbf16> -> vector<256x640xbf16>
    %cst_141 = arith.constant dense<0.000000e+00> : vector<256x128xf32>
    %195 = tpu.matmul %194, %37, %cst_141 {dimension_numbers = #tpu.dot_dimension_numbers<[1], [0], [0], [1], [0, 0, 1, 1], [], []>} : vector<256x640xbf16>, vector<640x128xbf16>, vector<256x128xf32> -> vector<256x128xf32>
    %196 = vector.broadcast %38 : vector<1x128xf32> to vector<256x128xf32>
    %197 = arith.addf %195, %196 : vector<256x128xf32>
    %cst_142 = arith.constant 0.000000e+00 : f32
    %198 = vector.broadcast %cst_142 : f32 to vector<256x128xf32>
    %199 = arith.maximumf %197, %198 : vector<256x128xf32>
    %c0_143 = arith.constant 0 : index
    %c0_144 = arith.constant 0 : index
    %200 = vector.load %arg16[%c0_143, %c0_144] : memref<128x4xf32, #tpu.memory_space<vmem>>, vector<128x4xf32>
    %c0_145 = arith.constant 0 : index
    %c0_146 = arith.constant 0 : index
    %201 = vector.load %arg23[%c0_145, %c0_146] : memref<512x128xbf16, #tpu.memory_space<vmem>>, vector<512x128xbf16>
    %c0_147 = arith.constant 0 : index
    %c0_148 = arith.constant 0 : index
    %202 = vector.load %arg24[%c0_147, %c0_148] : memref<1x128xf32, #tpu.memory_space<vmem>>, vector<1x128xf32>
    %203 = vector.extract_strided_slice %200 {offsets = [0, 0], sizes = [128, 1], strides = [1, 1]} : vector<128x4xf32> to vector<128x1xf32>
    %c0_149 = arith.constant 0 : index
    %c0_150 = arith.constant 0 : index
    %c0_151 = arith.constant 0 : index
    %204 = vector.load %arg17[%c0_149, %c0_150, %c0_151] : memref<4x1x128xf32, #tpu.memory_space<vmem>>, vector<1x1x128xf32>
    %205 = vector.shape_cast %204 : vector<1x1x128xf32> to vector<1x128xf32>
    %206 = vector.broadcast %203 : vector<128x1xf32> to vector<128x128xf32>
    %207 = vector.broadcast %205 : vector<1x128xf32> to vector<128x128xf32>
    %208 = arith.mulf %206, %207 : vector<128x128xf32>
    %c0_152 = arith.constant 0 : index
    %c0_153 = arith.constant 0 : index
    %c0_154 = arith.constant 0 : index
    %209 = vector.load %arg18[%c0_152, %c0_153, %c0_154] : memref<4x1x128xf32, #tpu.memory_space<vmem>>, vector<1x1x128xf32>
    %210 = vector.shape_cast %209 : vector<1x1x128xf32> to vector<1x128xf32>
    %211 = vector.broadcast %210 : vector<1x128xf32> to vector<128x128xf32>
    %212 = arith.addf %208, %211 : vector<128x128xf32>
    %cst_155 = arith.constant 0.000000e+00 : f32
    %213 = vector.broadcast %cst_155 : f32 to vector<128x128xf32>
    %214 = arith.maximumf %212, %213 : vector<128x128xf32>
    %215 = arith.truncf %214 : vector<128x128xf32> to vector<128x128xbf16>
    %c0_156 = arith.constant 0 : index
    %c0_157 = arith.constant 0 : index
    %c0_158 = arith.constant 0 : index
    %216 = vector.load %arg19[%c0_156, %c0_157, %c0_158] : memref<4x128x128xbf16, #tpu.memory_space<vmem>>, vector<1x128x128xbf16>
    %217 = vector.shape_cast %216 : vector<1x128x128xbf16> to vector<128x128xbf16>
    %cst_159 = arith.constant dense<0.000000e+00> : vector<128x128xf32>
    %218 = tpu.matmul %215, %217, %cst_159 {dimension_numbers = #tpu.dot_dimension_numbers<[1], [0], [0], [1], [0, 0, 1, 1], [], []>} : vector<128x128xbf16>, vector<128x128xbf16>, vector<128x128xf32> -> vector<128x128xf32>
    %c0_160 = arith.constant 0 : index
    %c0_161 = arith.constant 0 : index
    %c0_162 = arith.constant 0 : index
    %219 = vector.load %arg20[%c0_160, %c0_161, %c0_162] : memref<4x1x128xf32, #tpu.memory_space<vmem>>, vector<1x1x128xf32>
    %220 = vector.shape_cast %219 : vector<1x1x128xf32> to vector<1x128xf32>
    %221 = vector.broadcast %220 : vector<1x128xf32> to vector<128x128xf32>
    %222 = arith.addf %218, %221 : vector<128x128xf32>
    %cst_163 = arith.constant 0.000000e+00 : f32
    %223 = vector.broadcast %cst_163 : f32 to vector<128x128xf32>
    %224 = arith.maximumf %222, %223 : vector<128x128xf32>
    %225 = arith.truncf %224 : vector<128x128xf32> to vector<128x128xbf16>
    %c0_164 = arith.constant 0 : index
    %c0_165 = arith.constant 0 : index
    %c0_166 = arith.constant 0 : index
    %226 = vector.load %arg21[%c0_164, %c0_165, %c0_166] : memref<4x128x128xbf16, #tpu.memory_space<vmem>>, vector<1x128x128xbf16>
    %227 = vector.shape_cast %226 : vector<1x128x128xbf16> to vector<128x128xbf16>
    %cst_167 = arith.constant dense<0.000000e+00> : vector<128x128xf32>
    %228 = tpu.matmul %225, %227, %cst_167 {dimension_numbers = #tpu.dot_dimension_numbers<[1], [0], [0], [1], [0, 0, 1, 1], [], []>} : vector<128x128xbf16>, vector<128x128xbf16>, vector<128x128xf32> -> vector<128x128xf32>
    %c0_168 = arith.constant 0 : index
    %c0_169 = arith.constant 0 : index
    %c0_170 = arith.constant 0 : index
    %229 = vector.load %arg22[%c0_168, %c0_169, %c0_170] : memref<4x1x128xf32, #tpu.memory_space<vmem>>, vector<1x1x128xf32>
    %230 = vector.shape_cast %229 : vector<1x1x128xf32> to vector<1x128xf32>
    %231 = vector.broadcast %230 : vector<1x128xf32> to vector<128x128xf32>
    %232 = arith.addf %228, %231 : vector<128x128xf32>
    %233 = arith.truncf %232 : vector<128x128xf32> to vector<128x128xbf16>
    %234 = vector.extract_strided_slice %200 {offsets = [0, 1], sizes = [128, 1], strides = [1, 1]} : vector<128x4xf32> to vector<128x1xf32>
    %c1_171 = arith.constant 1 : index
    %c0_172 = arith.constant 0 : index
    %c0_173 = arith.constant 0 : index
    %235 = vector.load %arg17[%c1_171, %c0_172, %c0_173] : memref<4x1x128xf32, #tpu.memory_space<vmem>>, vector<1x1x128xf32>
    %236 = vector.shape_cast %235 : vector<1x1x128xf32> to vector<1x128xf32>
    %237 = vector.broadcast %234 : vector<128x1xf32> to vector<128x128xf32>
    %238 = vector.broadcast %236 : vector<1x128xf32> to vector<128x128xf32>
    %239 = arith.mulf %237, %238 : vector<128x128xf32>
    %c1_174 = arith.constant 1 : index
    %c0_175 = arith.constant 0 : index
    %c0_176 = arith.constant 0 : index
    %240 = vector.load %arg18[%c1_174, %c0_175, %c0_176] : memref<4x1x128xf32, #tpu.memory_space<vmem>>, vector<1x1x128xf32>
    %241 = vector.shape_cast %240 : vector<1x1x128xf32> to vector<1x128xf32>
    %242 = vector.broadcast %241 : vector<1x128xf32> to vector<128x128xf32>
    %243 = arith.addf %239, %242 : vector<128x128xf32>
    %cst_177 = arith.constant 0.000000e+00 : f32
    %244 = vector.broadcast %cst_177 : f32 to vector<128x128xf32>
    %245 = arith.maximumf %243, %244 : vector<128x128xf32>
    %246 = arith.truncf %245 : vector<128x128xf32> to vector<128x128xbf16>
    %c1_178 = arith.constant 1 : index
    %c0_179 = arith.constant 0 : index
    %c0_180 = arith.constant 0 : index
    %247 = vector.load %arg19[%c1_178, %c0_179, %c0_180] : memref<4x128x128xbf16, #tpu.memory_space<vmem>>, vector<1x128x128xbf16>
    %248 = vector.shape_cast %247 : vector<1x128x128xbf16> to vector<128x128xbf16>
    %cst_181 = arith.constant dense<0.000000e+00> : vector<128x128xf32>
    %249 = tpu.matmul %246, %248, %cst_181 {dimension_numbers = #tpu.dot_dimension_numbers<[1], [0], [0], [1], [0, 0, 1, 1], [], []>} : vector<128x128xbf16>, vector<128x128xbf16>, vector<128x128xf32> -> vector<128x128xf32>
    %c1_182 = arith.constant 1 : index
    %c0_183 = arith.constant 0 : index
    %c0_184 = arith.constant 0 : index
    %250 = vector.load %arg20[%c1_182, %c0_183, %c0_184] : memref<4x1x128xf32, #tpu.memory_space<vmem>>, vector<1x1x128xf32>
    %251 = vector.shape_cast %250 : vector<1x1x128xf32> to vector<1x128xf32>
    %252 = vector.broadcast %251 : vector<1x128xf32> to vector<128x128xf32>
    %253 = arith.addf %249, %252 : vector<128x128xf32>
    %cst_185 = arith.constant 0.000000e+00 : f32
    %254 = vector.broadcast %cst_185 : f32 to vector<128x128xf32>
    %255 = arith.maximumf %253, %254 : vector<128x128xf32>
    %256 = arith.truncf %255 : vector<128x128xf32> to vector<128x128xbf16>
    %c1_186 = arith.constant 1 : index
    %c0_187 = arith.constant 0 : index
    %c0_188 = arith.constant 0 : index
    %257 = vector.load %arg21[%c1_186, %c0_187, %c0_188] : memref<4x128x128xbf16, #tpu.memory_space<vmem>>, vector<1x128x128xbf16>
    %258 = vector.shape_cast %257 : vector<1x128x128xbf16> to vector<128x128xbf16>
    %cst_189 = arith.constant dense<0.000000e+00> : vector<128x128xf32>
    %259 = tpu.matmul %256, %258, %cst_189 {dimension_numbers = #tpu.dot_dimension_numbers<[1], [0], [0], [1], [0, 0, 1, 1], [], []>} : vector<128x128xbf16>, vector<128x128xbf16>, vector<128x128xf32> -> vector<128x128xf32>
    %c1_190 = arith.constant 1 : index
    %c0_191 = arith.constant 0 : index
    %c0_192 = arith.constant 0 : index
    %260 = vector.load %arg22[%c1_190, %c0_191, %c0_192] : memref<4x1x128xf32, #tpu.memory_space<vmem>>, vector<1x1x128xf32>
    %261 = vector.shape_cast %260 : vector<1x1x128xf32> to vector<1x128xf32>
    %262 = vector.broadcast %261 : vector<1x128xf32> to vector<128x128xf32>
    %263 = arith.addf %259, %262 : vector<128x128xf32>
    %264 = arith.truncf %263 : vector<128x128xf32> to vector<128x128xbf16>
    %265 = vector.extract_strided_slice %200 {offsets = [0, 2], sizes = [128, 1], strides = [1, 1]} : vector<128x4xf32> to vector<128x1xf32>
    %c2_193 = arith.constant 2 : index
    %c0_194 = arith.constant 0 : index
    %c0_195 = arith.constant 0 : index
    %266 = vector.load %arg17[%c2_193, %c0_194, %c0_195] : memref<4x1x128xf32, #tpu.memory_space<vmem>>, vector<1x1x128xf32>
    %267 = vector.shape_cast %266 : vector<1x1x128xf32> to vector<1x128xf32>
    %268 = vector.broadcast %265 : vector<128x1xf32> to vector<128x128xf32>
    %269 = vector.broadcast %267 : vector<1x128xf32> to vector<128x128xf32>
    %270 = arith.mulf %268, %269 : vector<128x128xf32>
    %c2_196 = arith.constant 2 : index
    %c0_197 = arith.constant 0 : index
    %c0_198 = arith.constant 0 : index
    %271 = vector.load %arg18[%c2_196, %c0_197, %c0_198] : memref<4x1x128xf32, #tpu.memory_space<vmem>>, vector<1x1x128xf32>
    %272 = vector.shape_cast %271 : vector<1x1x128xf32> to vector<1x128xf32>
    %273 = vector.broadcast %272 : vector<1x128xf32> to vector<128x128xf32>
    %274 = arith.addf %270, %273 : vector<128x128xf32>
    %cst_199 = arith.constant 0.000000e+00 : f32
    %275 = vector.broadcast %cst_199 : f32 to vector<128x128xf32>
    %276 = arith.maximumf %274, %275 : vector<128x128xf32>
    %277 = arith.truncf %276 : vector<128x128xf32> to vector<128x128xbf16>
    %c2_200 = arith.constant 2 : index
    %c0_201 = arith.constant 0 : index
    %c0_202 = arith.constant 0 : index
    %278 = vector.load %arg19[%c2_200, %c0_201, %c0_202] : memref<4x128x128xbf16, #tpu.memory_space<vmem>>, vector<1x128x128xbf16>
    %279 = vector.shape_cast %278 : vector<1x128x128xbf16> to vector<128x128xbf16>
    %cst_203 = arith.constant dense<0.000000e+00> : vector<128x128xf32>
    %280 = tpu.matmul %277, %279, %cst_203 {dimension_numbers = #tpu.dot_dimension_numbers<[1], [0], [0], [1], [0, 0, 1, 1], [], []>} : vector<128x128xbf16>, vector<128x128xbf16>, vector<128x128xf32> -> vector<128x128xf32>
    %c2_204 = arith.constant 2 : index
    %c0_205 = arith.constant 0 : index
    %c0_206 = arith.constant 0 : index
    %281 = vector.load %arg20[%c2_204, %c0_205, %c0_206] : memref<4x1x128xf32, #tpu.memory_space<vmem>>, vector<1x1x128xf32>
    %282 = vector.shape_cast %281 : vector<1x1x128xf32> to vector<1x128xf32>
    %283 = vector.broadcast %282 : vector<1x128xf32> to vector<128x128xf32>
    %284 = arith.addf %280, %283 : vector<128x128xf32>
    %cst_207 = arith.constant 0.000000e+00 : f32
    %285 = vector.broadcast %cst_207 : f32 to vector<128x128xf32>
    %286 = arith.maximumf %284, %285 : vector<128x128xf32>
    %287 = arith.truncf %286 : vector<128x128xf32> to vector<128x128xbf16>
    %c2_208 = arith.constant 2 : index
    %c0_209 = arith.constant 0 : index
    %c0_210 = arith.constant 0 : index
    %288 = vector.load %arg21[%c2_208, %c0_209, %c0_210] : memref<4x128x128xbf16, #tpu.memory_space<vmem>>, vector<1x128x128xbf16>
    %289 = vector.shape_cast %288 : vector<1x128x128xbf16> to vector<128x128xbf16>
    %cst_211 = arith.constant dense<0.000000e+00> : vector<128x128xf32>
    %290 = tpu.matmul %287, %289, %cst_211 {dimension_numbers = #tpu.dot_dimension_numbers<[1], [0], [0], [1], [0, 0, 1, 1], [], []>} : vector<128x128xbf16>, vector<128x128xbf16>, vector<128x128xf32> -> vector<128x128xf32>
    %c2_212 = arith.constant 2 : index
    %c0_213 = arith.constant 0 : index
    %c0_214 = arith.constant 0 : index
    %291 = vector.load %arg22[%c2_212, %c0_213, %c0_214] : memref<4x1x128xf32, #tpu.memory_space<vmem>>, vector<1x1x128xf32>
    %292 = vector.shape_cast %291 : vector<1x1x128xf32> to vector<1x128xf32>
    %293 = vector.broadcast %292 : vector<1x128xf32> to vector<128x128xf32>
    %294 = arith.addf %290, %293 : vector<128x128xf32>
    %295 = arith.truncf %294 : vector<128x128xf32> to vector<128x128xbf16>
    %296 = vector.extract_strided_slice %200 {offsets = [0, 3], sizes = [128, 1], strides = [1, 1]} : vector<128x4xf32> to vector<128x1xf32>
    %c3_215 = arith.constant 3 : index
    %c0_216 = arith.constant 0 : index
    %c0_217 = arith.constant 0 : index
    %297 = vector.load %arg17[%c3_215, %c0_216, %c0_217] : memref<4x1x128xf32, #tpu.memory_space<vmem>>, vector<1x1x128xf32>
    %298 = vector.shape_cast %297 : vector<1x1x128xf32> to vector<1x128xf32>
    %299 = vector.broadcast %296 : vector<128x1xf32> to vector<128x128xf32>
    %300 = vector.broadcast %298 : vector<1x128xf32> to vector<128x128xf32>
    %301 = arith.mulf %299, %300 : vector<128x128xf32>
    %c3_218 = arith.constant 3 : index
    %c0_219 = arith.constant 0 : index
    %c0_220 = arith.constant 0 : index
    %302 = vector.load %arg18[%c3_218, %c0_219, %c0_220] : memref<4x1x128xf32, #tpu.memory_space<vmem>>, vector<1x1x128xf32>
    %303 = vector.shape_cast %302 : vector<1x1x128xf32> to vector<1x128xf32>
    %304 = vector.broadcast %303 : vector<1x128xf32> to vector<128x128xf32>
    %305 = arith.addf %301, %304 : vector<128x128xf32>
    %cst_221 = arith.constant 0.000000e+00 : f32
    %306 = vector.broadcast %cst_221 : f32 to vector<128x128xf32>
    %307 = arith.maximumf %305, %306 : vector<128x128xf32>
    %308 = arith.truncf %307 : vector<128x128xf32> to vector<128x128xbf16>
    %c3_222 = arith.constant 3 : index
    %c0_223 = arith.constant 0 : index
    %c0_224 = arith.constant 0 : index
    %309 = vector.load %arg19[%c3_222, %c0_223, %c0_224] : memref<4x128x128xbf16, #tpu.memory_space<vmem>>, vector<1x128x128xbf16>
    %310 = vector.shape_cast %309 : vector<1x128x128xbf16> to vector<128x128xbf16>
    %cst_225 = arith.constant dense<0.000000e+00> : vector<128x128xf32>
    %311 = tpu.matmul %308, %310, %cst_225 {dimension_numbers = #tpu.dot_dimension_numbers<[1], [0], [0], [1], [0, 0, 1, 1], [], []>} : vector<128x128xbf16>, vector<128x128xbf16>, vector<128x128xf32> -> vector<128x128xf32>
    %c3_226 = arith.constant 3 : index
    %c0_227 = arith.constant 0 : index
    %c0_228 = arith.constant 0 : index
    %312 = vector.load %arg20[%c3_226, %c0_227, %c0_228] : memref<4x1x128xf32, #tpu.memory_space<vmem>>, vector<1x1x128xf32>
    %313 = vector.shape_cast %312 : vector<1x1x128xf32> to vector<1x128xf32>
    %314 = vector.broadcast %313 : vector<1x128xf32> to vector<128x128xf32>
    %315 = arith.addf %311, %314 : vector<128x128xf32>
    %cst_229 = arith.constant 0.000000e+00 : f32
    %316 = vector.broadcast %cst_229 : f32 to vector<128x128xf32>
    %317 = arith.maximumf %315, %316 : vector<128x128xf32>
    %318 = arith.truncf %317 : vector<128x128xf32> to vector<128x128xbf16>
    %c3_230 = arith.constant 3 : index
    %c0_231 = arith.constant 0 : index
    %c0_232 = arith.constant 0 : index
    %319 = vector.load %arg21[%c3_230, %c0_231, %c0_232] : memref<4x128x128xbf16, #tpu.memory_space<vmem>>, vector<1x128x128xbf16>
    %320 = vector.shape_cast %319 : vector<1x128x128xbf16> to vector<128x128xbf16>
    %cst_233 = arith.constant dense<0.000000e+00> : vector<128x128xf32>
    %321 = tpu.matmul %318, %320, %cst_233 {dimension_numbers = #tpu.dot_dimension_numbers<[1], [0], [0], [1], [0, 0, 1, 1], [], []>} : vector<128x128xbf16>, vector<128x128xbf16>, vector<128x128xf32> -> vector<128x128xf32>
    %c3_234 = arith.constant 3 : index
    %c0_235 = arith.constant 0 : index
    %c0_236 = arith.constant 0 : index
    %322 = vector.load %arg22[%c3_234, %c0_235, %c0_236] : memref<4x1x128xf32, #tpu.memory_space<vmem>>, vector<1x1x128xf32>
    %323 = vector.shape_cast %322 : vector<1x1x128xf32> to vector<1x128xf32>
    %324 = vector.broadcast %323 : vector<1x128xf32> to vector<128x128xf32>
    %325 = arith.addf %321, %324 : vector<128x128xf32>
    %326 = arith.truncf %325 : vector<128x128xf32> to vector<128x128xbf16>
    %327 = tpu.concatenate %233, %264, %295, %326 in 1 : vector<128x128xbf16>, vector<128x128xbf16>, vector<128x128xbf16>, vector<128x128xbf16> -> vector<128x512xbf16>
    %cst_237 = arith.constant dense<0.000000e+00> : vector<128x128xf32>
    %328 = tpu.matmul %327, %201, %cst_237 {dimension_numbers = #tpu.dot_dimension_numbers<[1], [0], [0], [1], [0, 0, 1, 1], [], []>} : vector<128x512xbf16>, vector<512x128xbf16>, vector<128x128xf32> -> vector<128x128xf32>
    %329 = vector.broadcast %202 : vector<1x128xf32> to vector<128x128xf32>
    %330 = arith.addf %328, %329 : vector<128x128xf32>
    %cst_238 = arith.constant 0.000000e+00 : f32
    %331 = vector.broadcast %cst_238 : f32 to vector<128x128xf32>
    %332 = arith.maximumf %330, %331 : vector<128x128xf32>
    %c0_239 = arith.constant 0 : index
    %c0_240 = arith.constant 0 : index
    %333 = vector.load %arg28[%c0_239, %c0_240] : memref<128x128xf32, #tpu.memory_space<vmem>>, vector<128x128xf32>
    tpu.vector_store %arg28[%c0_239, %c0_240], %332 {strides = array<i32>} : memref<128x128xf32, #tpu.memory_space<vmem>>, vector<128x128xf32>,
    %334 = arith.addf %27, %199 : vector<256x128xf32>
    %335 = tpu.iota {dimensions = array<i32: 1>} : vector<256x256xi32>
    %c0_241 = arith.constant 0 : index
    %c0_242 = arith.constant 0 : index
    %336 = vector.load %arg25[%c0_241, %c0_242] : memref<256x1xi32, #tpu.memory_space<vmem>>, vector<256x1xi32>
    %337 = vector.broadcast %336 : vector<256x1xi32> to vector<256x256xi32>
    %338 = arith.cmpi eq, %335, %337 : vector<256x256xi32>
    %339 = arith.extui %338 : vector<256x256xi1> to vector<256x256xi32>
    %340 = arith.sitofp %339 : vector<256x256xi32> to vector<256x256xf32>
    %cst_243 = arith.constant dense<0.000000e+00> : vector<256x128xf32>
    %341 = tpu.matmul %340, %334, %cst_243 {dimension_numbers = #tpu.dot_dimension_numbers<[1], [0], [0], [1], [0, 0, 1, 1], [], []>} : vector<256x256xf32>, vector<256x128xf32>, vector<256x128xf32> -> vector<256x128xf32>
    %342 = vector.extract_strided_slice %341 {offsets = [0, 0], sizes = [128, 128], strides = [1, 1]} : vector<256x128xf32> to vector<128x128xf32>
    %c0_244 = arith.constant 0 : index
    %c0_245 = arith.constant 0 : index
    %343 = vector.load %arg26[%c0_244, %c0_245] : memref<128x128xf32, #tpu.memory_space<vmem>>, vector<128x128xf32>
    tpu.vector_store %arg26[%c0_244, %c0_245], %342 {strides = array<i32>} : memref<128x128xf32, #tpu.memory_space<vmem>>, vector<128x128xf32>,
    %344 = vector.extract_strided_slice %341 {offsets = [128, 0], sizes = [128, 128], strides = [1, 1]} : vector<256x128xf32> to vector<128x128xf32>
    %c0_246 = arith.constant 0 : index
    %c0_247 = arith.constant 0 : index
    %345 = vector.load %arg27[%c0_246, %c0_247] : memref<128x128xf32, #tpu.memory_space<vmem>>, vector<128x128xf32>
    tpu.vector_store %arg27[%c0_246, %c0_247], %344 {strides = array<i32>} : memref<128x128xf32, #tpu.memory_space<vmem>>, vector<128x128xf32>,
    return
  }
}

</mosaic_0001>

<bundles_post_ra>
// kernel: espa_forward.1
= control target key start
LH: loop header
LB: loop body
LE: loop exit
PB: predicated region body
PF: predicated region fallthrough
CT: control target
= control target key end

     0   :  { %s13092_s6 = smov 1   ;;  %s13093_s10 = smov 2   ;;  %s17718_s0 = inlined_call_operand.smem [shape: u32[30], index: -1, kind: input, shape index: {}] }
   0x1   :  { %s13161_s5 = sld [smem:[%s17718_s0]]   ;;  %s13094_s14 = smov 3  }
   0x2   :  { %s13166_s9 = sld [smem:[%s17718_s0 + %s13092_s6]]   ;;  %s13095_s18 = smov 4  }
   0x3   :  { %s13171_s13 = sld [smem:[%s17718_s0 + %s13093_s10]]   ;;  %s13096_s22 = smov 5  }
   0x4   :  { %s13176_s17 = sld [smem:[%s17718_s0 + %s13094_s14]]   ;;  %s13097_s26 = smov 6  }
   0x5   :  { %s13181_s21 = sld [smem:[%s17718_s0 + %s13095_s18]]   ;;  %s13098_s30 = smov 7  }
   0x6   :  { %s13186_s25 = sld [smem:[%s17718_s0 + %s13096_s22]]   ;;  %s13099_s4 = smov 8  }
   0x7   :  { %s13191_s29 = sld [smem:[%s17718_s0 + %s13097_s26]]   ;;  %s13100_s10 = smov 9  }
   0x8   :  { %s13196_s3 = sld [smem:[%s17718_s0 + %s13098_s30]]   ;;  %s13101_s15 = smov 10  }
   0x9   :  { %17817 = sst [smem:[#allocation42_spill]] %s13171_s13  ;;  %s13102_s20 = smov 11  }
   0xa   :  { %s13201_s8 = sld [smem:[%s17718_s0 + %s13099_s4]]   ;;  %s13103_s26 = smov 12  }
   0xb   :  { %s13206_s14 = sld [smem:[%s17718_s0 + %s13100_s10]]   ;;  %s13104_s1 = smov 13  }
   0xc   :  { %s13211_s19 = sld [smem:[%s17718_s0 + %s13101_s15]]   ;;  %s13105_s7 = smov 14  }
   0xd   :  { %s13216_s24 = sld [smem:[%s17718_s0 + %s13102_s20]]   ;;  %s13106_s15 = smov 15  }
   0xe   :  { %17818 = sst [smem:[#allocation43_spill]] %s13196_s3  ;;  %s13107_s22 = smov 16  }
   0xf   :  { %s13221_s30 = sld [smem:[%s17718_s0 + %s13103_s26]]   ;;  %s13108_s28 = smov 17  }
  0x10   :  { %17819 = sst [smem:[#allocation44_spill]] %s13201_s8 }
  0x11   :  { %17820 = sst [smem:[#allocation45_spill]] %s13206_s14 }
  0x12   :  { %17821 = sst [smem:[#allocation46_spill]] %s13211_s19 }
  0x13   :  { %s13226_s6 = sld [smem:[%s17718_s0 + %s13104_s1]]  }
  0x14   :  { %s13231_s12 = sld [smem:[%s17718_s0 + %s13105_s7]]   ;;  %s13109_s7 = smov 18  }
  0x15   :  { %17822 = sst [smem:[#allocation47_spill]] %s13221_s30 }
  0x16   :  { %s13236_s20 = sld [smem:[%s17718_s0 + %s13106_s15]]   ;;  %s13110_s15 = smov 19  }
  0x17   :  { %s13241_s27 = sld [smem:[%s17718_s0 + %s13107_s22]]   ;;  %s13111_s22 = smov 20  }
  0x18   :  { %s13246_s4 = sld [smem:[%s17718_s0 + %s13108_s28]]   ;;  %s13112_s28 = smov 21  }
  0x19   :  { %s13251_s13 = sld [smem:[%s17718_s0 + %s13109_s7]]   ;;  %s13113_s7 = smov 22  }
  0x1a   :  { %s13256_s30 = sld [smem:[%s17718_s0 + %s13110_s15]]   ;;  %s13114_s15 = smov 23  }
  0x1b   :  { %s13276_s14 = sld [smem:[%s17718_s0 + %s13114_s15]]   ;;  %s13118_s15 = smov 27  }
  0x1c   :  { %s13296_s3 = sld [smem:[%s17718_s0 + %s13118_s15]]  }
  0x1d   :  { %17823 = sst [smem:[#allocation48_spill]] %s13241_s27 }
  0x1e   :  { %17824 = sst [smem:[#allocation49_spill]] %s13246_s4 }
  0x1f   :  { %17825 = sst [smem:[#allocation50_spill]] %s13251_s13 }
  0x20   :  { %s13261_s27 = sld [smem:[%s17718_s0 + %s13111_s22]]   ;;  %s13115_s22 = smov 24  }
  0x21   :  { %s13266_s4 = sld [smem:[%s17718_s0 + %s13112_s28]]   ;;  %s13116_s28 = smov 25  }
  0x22   :  { %s13271_s13 = sld [smem:[%s17718_s0 + %s13113_s7]]   ;;  %s13117_s7 = smov 26  }
  0x23   :  { %s13286_s8 = sld [smem:[%s17718_s0 + %s13116_s28]]   ;;  %s13120_s28 = smov 29  }
  0x24   :  { %s13291_s19 = sld [smem:[%s17718_s0 + %s13117_s7]]  }
  0x26   :  { %17826 = sst [smem:[#allocation51_spill]] %s13261_s27 }
  0x27   :  { %s13281_s27 = sld [smem:[%s17718_s0 + %s13115_s22]]   ;;  %s13119_s22 = smov 28  }
  0x29   :  { %17828 = sst [smem:[#allocation53_spill]] %s13286_s8 }
  0x2a   :  { %s13306_s8 = sld [smem:[%s17718_s0 + %s13120_s28]]  }
  0x2d   :  { %17827 = sst [smem:[#allocation52_spill]] %s13281_s27 }
  0x2e   :  { %s13301_s27 = sld [smem:[%s17718_s0 + %s13119_s22]]  }
  0x2f   :  { %65 = vsyncpa [#allocation3], 0 }
  0x30   :  { %66 = vsyncpa [#allocation6], 0 }
  0x31   :  { %67 = vsyncpa [#allocation9], 0 }
  0x32   :  { %68 = vsyncpa [#allocation12], 0 }
  0x33   :  { %69 = vsyncpa [#allocation15], 0 }
  0x34   :  { %70 = vsyncpa [#allocation18], 0 }
  0x35   :  { %71 = vsyncpa [#allocation21], 0 }
  0x36   :  { %72 = vsyncpa [#allocation24], 0 }
  0x37   :  { %73 = vsyncpa [#allocation4], 0 }
  0x38   :  { %74 = vsyncpa [#allocation27], 0 }
  0x39   :  { %75 = vsyncpa [#allocation30], 0  ;;  %s13121_s7 = smov [#allocation5]   ;;  %s13122_s11 = smov [#allocation8]  }
  0x3a   :  { %s93_s10 = sshll.u32 %s13121_s7, 4  ;;  %s119_s15 = sshll.u32 %s13122_s11, 4  ;;  %s94_s10 = int_to_ptr.vmem [resolvable:$true] %s93_s10  ;;  %s120_s15 = int_to_ptr.vmem [resolvable:$true] %s119_s15 }
  0x3b   :  { %s12718_s16 = scalar_lea.vmem %s94_s10, 4096  ;;  %p12723_p1 = scmp.lt.s32.totalorder %s94_s10, %s94_s10 }
  0x3c   :  { %p12719_p0 = scmp.ne.s32.totalorder %s94_s10, %s12718_s16  ;;  %p12724_p2 = scmp.lt.s32.totalorder %s12718_s16, %s12718_s16 }
  0x3e   :  { %p12725_p3 = por %p12724_p2, %p12723_p1 }
  0x40   :  { %p12726_p4 = pnand %p12725_p3, %p12719_p0 }
  0x42   :  { %12729 = shalt.err (!%p12726_p4)
}
  0x43   :  { %s13123_s0 = smov 128   ;;  %s13124_s18 = smov 8  }
  0x44   :  { %99 = dma.hbm_to_vmem [thread:$0]  %s13166_s9, 4096, %s94_s10, [#allocation6], %s13123_s0, %s13123_s0, %s13124_s18  }
  0x45   :  { %s12738_s22 = scalar_lea.vmem %s120_s15, 32  ;;  %p12743_p6 = scmp.lt.s32.totalorder %s120_s15, %s120_s15 }
  0x46   :  { %p12739_p5 = scmp.ne.s32.totalorder %s120_s15, %s12738_s22  ;;  %p12744_p7 = scmp.lt.s32.totalorder %s12738_s22, %s12738_s22 }
  0x48   :  { %p12745_p8 = por %p12744_p7, %p12743_p6 }
  0x4a   :  { %p12746_p9 = pnand %p12745_p8, %p12739_p5 }
  0x4c   :  { %12749 = shalt.err (!%p12746_p9)
}
  0x4d   :  { %s13125_s23 = smov 16   ;;  %s13126_s26 = smov 1  }
  0x4e   :  { %125 = dma.hbm_to_vmem [thread:$0]  %s13181_s21, 32, %s120_s15, [#allocation9], %s13125_s23, %s13125_s23, %s13126_s26  }
  0x4f   :  { %s13127_s28 = smov [#allocation11]   ;;  %s13128_s2 = smov [#allocation14]  }
  0x50   :  { %s144_s1 = sshll.u32 %s13127_s28, 4  ;;  %s175_s7 = sshll.u32 %s13128_s2, 4  ;;  %s145_s1 = int_to_ptr.vmem [resolvable:$true] %s144_s1  ;;  %s176_s7 = int_to_ptr.vmem [resolvable:$true] %s175_s7 }
  0x51   :  { %s12758_s9 = scalar_lea.vmem %s145_s1, 16  ;;  %s12762_s10 = scalar_lea.vmem %s145_s1, 32 }
  0x52   :  { %p12759_p10 = scmp.ne.s32.totalorder %s145_s1, %s12758_s9  ;;  %p12763_p11 = scmp.lt.s32.totalorder %s145_s1, %s145_s1 }
  0x53   :  { %p12764_p12 = scmp.lt.s32.totalorder %s12762_s10, %s12758_s9 }
  0x55   :  { %p12765_p13 = por %p12764_p12, %p12763_p11 }
  0x57   :  { %p12766_p0 = pnand %p12765_p13, %p12759_p10 }
  0x59   :  { %12769 = shalt.err (!%p12766_p0)
}
  0x5a   :  { %147 = dma.hbm_to_vmem [thread:$0]  %s13191_s29, 16, %s145_s1, [#allocation12]  }
  0x5b   :  { %s12778_s11 = scalar_lea.vmem %s176_s7, 80  ;;  %s12782_s16 = scalar_lea.vmem %s176_s7, 96 }
  0x5c   :  { %p12779_p1 = scmp.ne.s32.totalorder %s176_s7, %s12778_s11  ;;  %p12783_p2 = scmp.lt.s32.totalorder %s176_s7, %s176_s7 }
  0x5d   :  { %p12784_p3 = scmp.lt.s32.totalorder %s12782_s16, %s12778_s11 }
  0x5f   :  { %p12785_p4 = por %p12784_p3, %p12783_p2 }
  0x61   :  { %p12786_p5 = pnand %p12785_p4, %p12779_p1 }
  0x63   :  { %12789 = shalt.err (!%p12786_p5)
}
  0x64   :  { %181 = dma.hbm_to_vmem [thread:$0]  %s13226_s6, 80, %s176_s7, [#allocation15], %s13125_s23, %s13125_s23, %s13126_s26  }
  0x65   :  { %s13129_s21 = smov [#allocation17]  }
  0x66   :  { %s200_s15 = sshll.u32 %s13129_s21, 4  ;;  %s201_s15 = int_to_ptr.vmem [resolvable:$true] %s200_s15 }
  0x67   :  { %s12798_s22 = scalar_lea.vmem %s201_s15, 16  ;;  %s12802_s28 = scalar_lea.vmem %s201_s15, 32 }
  0x68   :  { %p12799_p6 = scmp.ne.s32.totalorder %s201_s15, %s12798_s22  ;;  %p12803_p7 = scmp.lt.s32.totalorder %s201_s15, %s201_s15 }
  0x69   :  { %p12804_p8 = scmp.lt.s32.totalorder %s12802_s28, %s12798_s22 }
  0x6b   :  { %p12805_p9 = por %p12804_p8, %p12803_p7 }
  0x6d   :  { %p12806_p10 = pnand %p12805_p9, %p12799_p6 }
  0x6f   :  { %12809 = shalt.err (!%p12806_p10)
}
  0x70   :  { %203 = dma.hbm_to_vmem [thread:$0]  %s13236_s20, 16, %s201_s15, [#allocation18]  }
  0x71   :  { %s13130_s29 = smov [#allocation20]   ;;  %s13131_s2 = smov [#allocation2]  }
  0x72   :  { %s229_s1 = sshll.u32 %s13130_s29, 4  ;;  %s81_s9 = sshll.u32 %s13131_s2, 4  ;;  %s230_s1 = int_to_ptr.vmem [resolvable:$true] %s229_s1  ;;  %s82_s9 = int_to_ptr.vmem [resolvable:$true] %s81_s9 }
  0x73   :  { %s12818_s10 = scalar_lea.vmem %s230_s1, 4096  ;;  %p12823_p12 = scmp.lt.s32.totalorder %s230_s1, %s230_s1 }
  0x74   :  { %p12819_p11 = scmp.ne.s32.totalorder %s230_s1, %s12818_s10  ;;  %p12824_p13 = scmp.lt.s32.totalorder %s12818_s10, %s12818_s10 }
  0x76   :  { %p12825_p0 = por %p12824_p13, %p12823_p12 }
  0x78   :  { %p12826_p1 = pnand %p12825_p0, %p12819_p11 }
  0x7a   :  { %12829 = shalt.err (!%p12826_p1)
}
  0x7b   :  { %s13132_s6 = smov 64   ;;  %s13133_s7 = smov 4  }
  0x7c   :  { %235 = dma.hbm_to_vmem [thread:$0]  %s13266_s4, 4096, %s230_s1, [#allocation21], %s13132_s6, %s13132_s6, %s13133_s7  }
  0x7d   :  { %s12838_s20 = scalar_lea.vmem %s82_s9, 4096  ;;  %p12843_p3 = scmp.lt.s32.totalorder %s82_s9, %s82_s9 }
  0x7e   :  { %p12839_p2 = scmp.ne.s32.totalorder %s82_s9, %s12838_s20  ;;  %p12844_p4 = scmp.lt.s32.totalorder %s12838_s20, %s12838_s20 }
  0x80   :  { %p12845_p5 = por %p12844_p4, %p12843_p3 }
  0x82   :  { %p12846_p6 = pnand %p12845_p5, %p12839_p2 }
  0x84   :  { %12849 = shalt.err (!%p12846_p6)
}
  0x85   :  { %87 = dma.hbm_to_vmem [thread:$0]  %s13161_s5, 4096, %s82_s9, [#allocation3], %s13123_s0, %s13123_s0, %s13124_s18  }
  0x86   :  { %s13134_s11 = smov [#allocation7]   ;;  %s13135_s21 = smov [#allocation10]  }
  0x87   :  { %s107_s16 = sshll.u32 %s13134_s11, 4  ;;  %s131_s15 = sshll.u32 %s13135_s21, 4  ;;  %s108_s16 = int_to_ptr.vmem [resolvable:$true] %s107_s16  ;;  %s132_s15 = int_to_ptr.vmem [resolvable:$true] %s131_s15 }
  0x88   :  { %s12858_s22 = scalar_lea.vmem %s108_s16, 2048  ;;  %p12863_p8 = scmp.lt.s32.totalorder %s108_s16, %s108_s16 }
  0x89   :  { %p12859_p7 = scmp.ne.s32.totalorder %s108_s16, %s12858_s22  ;;  %p12864_p9 = scmp.lt.s32.totalorder %s12858_s22, %s12858_s22 }
  0x8b   :  { %p12865_p10 = por %p12864_p9, %p12863_p8 }
  0x8d   :  { %p12866_p11 = pnand %p12865_p10, %p12859_p7 }
  0x8f   :  { %12869 = shalt.err (!%p12866_p11)
}
  0x90   :  { %113 = dma.hbm_to_vmem [thread:$0]  %s13176_s17, 2048, %s108_s16, [#allocation6], %s13132_s6, %s13132_s6, %s13133_s7  }
  0x91   :  { %s12878_s4 = scalar_lea.vmem %s132_s15, 1024  ;;  %p12883_p13 = scmp.lt.s32.totalorder %s132_s15, %s132_s15 }
  0x92   :  { %p12879_p12 = scmp.ne.s32.totalorder %s132_s15, %s12878_s4  ;;  %p12884_p0 = scmp.lt.s32.totalorder %s12878_s4, %s12878_s4 }
  0x94   :  { %p12885_p1 = por %p12884_p0, %p12883_p13 }
  0x96   :  { %p12886_p2 = pnand %p12885_p1, %p12879_p12 }
  0x98   :  { %12889 = shalt.err (!%p12886_p2)
}
  0x99   :  { %137 = dma.hbm_to_vmem [thread:$0]  %s13186_s25, 1024, %s132_s15, [#allocation9], %s13132_s6, %s13132_s6, %s13133_s7  }
  0x9a   :  { %s13136_s5 = smov [#allocation13]   ;;  %s13137_s29 = smov [#allocation16]  }
  0x9b   :  { %s161_s28 = sshll.u32 %s13136_s5, 4  ;;  %s187_s1 = sshll.u32 %s13137_s29, 4  ;;  %s162_s28 = int_to_ptr.vmem [resolvable:$true] %s161_s28  ;;  %s188_s1 = int_to_ptr.vmem [resolvable:$true] %s187_s1 }
  0x9c   :  { %s12898_s2 = scalar_lea.vmem %s162_s28, 80  ;;  %s12902_s17 = scalar_lea.vmem %s162_s28, 96 }
  0x9d   :  { %p12899_p3 = scmp.ne.s32.totalorder %s162_s28, %s12898_s2  ;;  %p12903_p4 = scmp.lt.s32.totalorder %s162_s28, %s162_s28 }
  0x9e   :  { %p12904_p5 = scmp.lt.s32.totalorder %s12902_s17, %s12898_s2 }
  0xa0   :  { %p12905_p6 = por %p12904_p5, %p12903_p4 }
  0xa2   :  { %p12906_p7 = pnand %p12905_p6, %p12899_p3 }
  0xa4   :  { %12909 = shalt.err (!%p12906_p7)
}
  0xa5   :  { %167 = dma.hbm_to_vmem [thread:$0]  %s13216_s24, 80, %s162_s28, [#allocation12], %s13125_s23, %s13125_s23, %s13126_s26  }
  0xa6   :  { %s12918_s25 = scalar_lea.vmem %s188_s1, 5120  ;;  %p12923_p9 = scmp.lt.s32.totalorder %s188_s1, %s188_s1 }
  0xa7   :  { %p12919_p8 = scmp.ne.s32.totalorder %s188_s1, %s12918_s25  ;;  %p12924_p10 = scmp.lt.s32.totalorder %s12918_s25, %s12918_s25 }
  0xa9   :  { %p12925_p11 = por %p12924_p10, %p12923_p9 }
  0xab   :  { %p12926_p12 = pnand %p12925_p11, %p12919_p8 }
  0xad   :  { %12929 = shalt.err (!%p12926_p12)
}
  0xae   :  { %193 = dma.hbm_to_vmem [thread:$0]  %s13231_s12, 5120, %s188_s1, [#allocation15], %s13132_s6, %s13132_s6, %s13133_s7  }
  0xaf   :  { %s13138_s9 = smov [#allocation19]   ;;  %s13139_s20 = smov [#allocation22]  }
  0xb0   :  { %s215_s10 = sshll.u32 %s13138_s9, 4  ;;  %s241_s11 = sshll.u32 %s13139_s20, 4  ;;  %s216_s10 = int_to_ptr.vmem [resolvable:$true] %s215_s10  ;;  %s242_s11 = int_to_ptr.vmem [resolvable:$true] %s241_s11 }
  0xb1   :  { %s12938_s16 = scalar_lea.vmem %s216_s10, 4096  ;;  %p12943_p0 = scmp.lt.s32.totalorder %s216_s10, %s216_s10 }
  0xb2   :  { %p12939_p13 = scmp.ne.s32.totalorder %s216_s10, %s12938_s16  ;;  %p12944_p1 = scmp.lt.s32.totalorder %s12938_s16, %s12938_s16 }
  0xb4   :  { %p12945_p2 = por %p12944_p1, %p12943_p0 }
  0xb6   :  { %p12946_p3 = pnand %p12945_p2, %p12939_p13 }
  0xb8   :  { %12949 = shalt.err (!%p12946_p3)
}
  0xb9   :  { %221 = dma.hbm_to_vmem [thread:$0]  %s13256_s30, 4096, %s216_s10, [#allocation18], %s13132_s6, %s13132_s6, %s13133_s7  }
  0xba   :  { %s12958_s24 = scalar_lea.vmem %s242_s11, 64  ;;  %p12963_p5 = scmp.lt.s32.totalorder %s242_s11, %s242_s11 }
  0xbb   :  { %p12959_p4 = scmp.ne.s32.totalorder %s242_s11, %s12958_s24  ;;  %p12964_p6 = scmp.lt.s32.totalorder %s12958_s24, %s12958_s24 }
  0xbd   :  { %p12965_p7 = por %p12964_p6, %p12963_p5 }
  0xbf   :  { %p12966_p8 = pnand %p12965_p7, %p12959_p4 }
  0xc1   :  { %12969 = shalt.err (!%p12966_p8)
}
  0xc2   :  { %247 = dma.hbm_to_vmem [thread:$0]  %s13271_s13, 64, %s242_s11, [#allocation21], %s13125_s23, %s13125_s23, %s13126_s26  }
  0xc3   :  { %s13140_s12 = smov [#allocation23]  }
  0xc4   :  { %s253_s21 = sshll.u32 %s13140_s12, 4  ;;  %s254_s21 = int_to_ptr.vmem [resolvable:$true] %s253_s21 }
  0xc5   :  { %s12978_s15 = scalar_lea.vmem %s254_s21, 4096  ;;  %p12983_p10 = scmp.lt.s32.totalorder %s254_s21, %s254_s21 }
  0xc6   :  { %p12979_p9 = scmp.ne.s32.totalorder %s254_s21, %s12978_s15  ;;  %p12984_p11 = scmp.lt.s32.totalorder %s12978_s15, %s12978_s15 }
  0xc8   :  { %p12985_p12 = por %p12984_p11, %p12983_p10 }
  0xca   :  { %p12986_p13 = pnand %p12985_p12, %p12979_p9 }
  0xcc   :  { %12989 = shalt.err (!%p12986_p13)
}
  0xcd   :  { %259 = dma.hbm_to_vmem [thread:$0]  %s13276_s14, 4096, %s254_s21, [#allocation24], %s13132_s6, %s13132_s6, %s13133_s7  }
  0xce   :  { %13070 = dma.done.wait [#allocation3], 4096  }
  0xcf   :  { %13071 = vsyncadd [#allocation3], 4294963200 }
  0xd0   :  { %13072 = dma.done.wait [#allocation6], 6144  }
  0xd1   :  { %13073 = vsyncadd [#allocation6], 4294961152 }
  0xd2   :  { %13074 = dma.done.wait [#allocation9], 1056  }
  0xd3   :  { %13075 = vsyncadd [#allocation9], 4294966240 }
  0xd4   :  { %13076 = dma.done.wait [#allocation12], 96  }
  0xd5   :  { %13077 = vsyncadd [#allocation12], 4294967200 }
  0xd6   :  { %13078 = dma.done.wait [#allocation15], 5200  }
  0xd7   :  { %13079 = vsyncadd [#allocation15], 4294962096 }
  0xd8   :  { %13080 = dma.done.wait [#allocation18], 4112  }
  0xd9   :  { %13081 = vsyncadd [#allocation18], 4294963184 }
  0xda   :  { %13082 = dma.done.wait [#allocation21], 4160  }
  0xdb   :  { %13083 = vsyncadd [#allocation21], 4294963136 }
  0xdc   :  { %13084 = dma.done.wait [#allocation24], 4096  }
  0xdd   :  { %13085 = vsyncadd [#allocation24], 4294963200  ;;  %v369_v0 = vld [vmem:[#allocation5 + $0xf0] sm:$0xff]  ;;  %v370_v1 = vld [vmem:[#allocation5 + $0xf8] sm:$0xff]  ;;  %s17829_s13 = sld [smem:[#allocation43_spill]]  ;;  %vm13147_vm0 = vmmov 0  }
  0xde   :  { %v353_v2 = vld [vmem:[#allocation5 + $0x70] sm:$0xff]  ;;  %v386_v3 = vpack.c.bf16 %v370_v1, %v369_v0  ;;  %v354_v4 = vld [vmem:[#allocation5 + $0x78] sm:$0xff]  ;;  %v367_v5 = vld [vmem:[#allocation5 + $0xe0] sm:$0xff]  ;;  %s17921_s14 = sld [smem:[#allocation46_spill]]  ;;  %s13149_s1 = smov [#allocation29]  }
  0xdf   :  { %v368_v6 = vld [vmem:[#allocation5 + $0xe8] sm:$0xff]  ;;  %v378_v7 = vpack.c.bf16 %v354_v4, %v353_v2  ;;  %v351_v9 = vld [vmem:[#allocation5 + $0x60] sm:$0xff]  ;;  %v365_v11 = vld [vmem:[#allocation5 + $0xd0] sm:$0xff]  ;;  %s17932_s30 = sld [smem:[#allocation44_spill]]  ;;  %s9666_s2 = sshll.u32 %s13149_s1, 4  ;;  %s9667_s2 = int_to_ptr.vmem [resolvable:$true] %s9666_s2 }
  0xe0   :  { %v385_v8 = vpack.c.bf16 %v368_v6, %v367_v5  ;;  %v352_v10 = vld [vmem:[#allocation5 + $0x68] sm:$0xff]  ;;  %10308 = vmatprep.subr.bf16.mxu0 %v386_v3  ;;  %v366_v12 = vld [vmem:[#allocation5 + $0xd8] sm:$0xff]  ;;  %v349_v15 = vld [vmem:[#allocation5 + $0x50] sm:$0xff]  ;;  %s17937_s23 = sld [smem:[#allocation45_spill]]  ;;  %s12990_s17 = scalar_lea.vmem %s9667_s2, 128 }
  0xe1   :  { %10309 = vmatpush3.bf16.msra.mxu0 %v378_v7  ;;  %v377_v13 = vpack.c.bf16 %v352_v10, %v351_v9  ;;  %v384_v14 = vpack.c.bf16 %v366_v12, %v365_v11  ;;  %v350_v16 = vld [vmem:[#allocation5 + $0x58] sm:$0xff]  ;;  %v363_v17 = vld [vmem:[#allocation5 + $0xc0] sm:$0xff]  ;;  %v364_v18 = vld [vmem:[#allocation5 + $0xc8] sm:$0xff]  ;;  %s17973_s26 = sld [smem:[#allocation47_spill]]  ;;  %p12991_p0 = scmp.ne.s32.totalorder %s9667_s2, %s12990_s17 }
  0xe2   :  { %10310 = vmatprep.subr.bf16.mxu0 %v385_v8  ;;  %v376_v19 = vpack.c.bf16 %v350_v16, %v349_v15  ;;  %v383_v20 = vpack.c.bf16 %v364_v18, %v363_v17  ;;  %v347_v21 = vld [vmem:[#allocation5 + $0x40] sm:$0xff]  ;;  %v348_v22 = vld [vmem:[#allocation5 + $0x48] sm:$0xff]  ;;  %v361_v23 = vld [vmem:[#allocation5 + $0xb0] sm:$0xff]  ;;  %s17985_s6 = sld [smem:[#allocation42_spill]]  ;;  %p12995_p1 = scmp.lt.s32.totalorder %s9667_s2, %s9667_s2 }
  0xe3   :  { %v362_v24 = vld [vmem:[#allocation5 + $0xb8] sm:$0xff]  ;;  %v12332_v25 = vld [vmem:[#allocation2 + $0x4] ss:$8 sps:$4 sm:$0xff]   ;;  %v375_v26 = vpack.c.bf16 %v348_v22, %v347_v21  ;;  %v345_v27 = vld [vmem:[#allocation5 + $0x30] sm:$0xff]  ;;  %s18021_s7 = sld [smem:[#allocation48_spill]]  ;;  %p12996_p2 = scmp.lt.s32.totalorder %s12990_s17, %s12990_s17 }
  0xe4   :  { %v382_v28 = vpack.c.bf16 %v362_v24, %v361_v23  ;;  %v346_v29 = vld [vmem:[#allocation5 + $0x38] sm:$0xff]  ;;  %579 = vmatprep.mubr.bf16.mxu0 %v12332_v25  ;;  %v359_v30 = vld [vmem:[#allocation5 + $0xa0] sm:$0xff]  ;;  %v360_v31 = vld [vmem:[#allocation5 + $0xa8] sm:$0xff]  ;;  %s18097_s22 = sld [smem:[#allocation49_spill]] }
  0xe5   :  { %10311 = vmatpush3.bf16.msra.mxu0 %v377_v13  ;;  %v374_v32 = vpack.c.bf16 %v346_v29, %v345_v27  ;;  %v343_v33 = vld [vmem:[#allocation5 + $0x20] sm:$0xff]  ;;  %v381_v34 = vpack.c.bf16 %v360_v31, %v359_v30  ;;  %v344_v35 = vld [vmem:[#allocation5 + $0x28] sm:$0xff]  ;;  %v357_v36 = vld [vmem:[#allocation5 + $0x90] sm:$0xff]  ;;  %s18101_s4 = sld [smem:[#allocation50_spill]]  ;;  %p12997_p3 = por %p12996_p2, %p12995_p1 }
  0xe6   :  { %10312 = vmatprep.subr.bf16.mxu0 %v384_v14  ;;  %v358_v37 = vld [vmem:[#allocation5 + $0x98] sm:$0xff]  ;;  %v373_v38 = vpack.c.bf16 %v344_v35, %v343_v33  ;;  %v341_v39 = vld [vmem:[#allocation5 + $0x10] sm:$0xff]  ;;  %v355_v42 = vld [vmem:[#allocation5 + $0x80] sm:$0xff]  ;;  %s18211_s5 = sld [smem:[#allocation53_spill]] }
  0xe7   :  { %v380_v40 = vpack.c.bf16 %v358_v37, %v357_v36  ;;  %v342_v41 = vld [vmem:[#allocation5 + $0x18] sm:$0xff]  ;;  %v356_v43 = vld [vmem:[#allocation5 + $0x88] sm:$0xff]  ;;  %v339_v45 = vld [vmem:[#allocation5] sm:$0xff]  ;;  %s18215_s28 = sld [smem:[#allocation51_spill]]  ;;  %p12998_p4 = pnand %p12997_p3, %p12991_p0 }
  0xe8   :  { %v372_v44 = vpack.c.bf16 %v342_v41, %v341_v39  ;;  %v379_v46 = vpack.c.bf16 %v356_v43, %v355_v42  ;;  %v340_v47 = vld [vmem:[#allocation5 + $0x8] sm:$0xff]  ;;  %v12333_v50 = vld [vmem:[#allocation2 + $0x14] ss:$8 sps:$4 sm:$0xff]   ;;  %v12335_v54 = vld [vmem:[#allocation2 + $0x10] ss:$8 sps:$4 sm:$0xff]   ;;  %s18230_s29 = sld [smem:[#allocation52_spill]] }
  0xe9   :  { %10313 = vmatpush3.bf16.msra.mxu0 %v376_v19  ;;  %v371_v48 = vpack.c.bf16 %v340_v47, %v339_v45  ;;  %v12330_v49 = vld [vmem:[#allocation2] ss:$8 sps:$4 sm:$0xff]   ;;  %v12378_v51 = vld [vmem:[#allocation7 + $0x38] sm:$0xff]   ;;  %v12379_v52 = vld [vmem:[#allocation7 + $0x30] sm:$0xff]  }
  0xea   :  { %10314 = vmatprep.subr.bf16.mxu0 %v383_v20  ;;  %11333 = vmatprep.subr.bf16.mxu1 %v12378_v51  ;;  %v12380_v53 = vld [vmem:[#allocation7 + $0x28] sm:$0xff]   ;;  %v12381_v56 = vld [vmem:[#allocation7 + $0x20] sm:$0xff]   ;;  %v12339_v58 = vld [vmem:[#allocation2 + $0x34] ss:$8 sps:$4 sm:$0xff]  }
  0xeb   :  { %11334 = vmatpush3.bf16.msra.mxu1 %v12378_v51  ;;  %v12336_v55 = vld [vmem:[#allocation2 + $0x24] ss:$8 sps:$4 sm:$0xff]   ;;  %v12338_v57 = vld [vmem:[#allocation2 + $0x20] ss:$8 sps:$4 sm:$0xff]   ;;  %v12341_v59 = vld [vmem:[#allocation2 + $0x30] ss:$8 sps:$4 sm:$0xff]  }
  0xec   :  { %11335 = vmatprep.subr.bf16.mxu1 %v12379_v52  ;;  %v12342_v60 = vld [vmem:[#allocation2 + $0x44] ss:$8 sps:$4 sm:$0xff]   ;;  %v12344_v61 = vld [vmem:[#allocation2 + $0x40] ss:$8 sps:$4 sm:$0xff]   ;;  %v12345_v62 = vld [vmem:[#allocation2 + $0x54] ss:$8 sps:$4 sm:$0xff]  }
  0xed   :  { %10315 = vmatpush3.bf16.msra.mxu0 %v375_v26  ;;  %v12347_v63 = vld [vmem:[#allocation2 + $0x50] ss:$8 sps:$4 sm:$0xff]   ;;  %v12348_v0 = vld [vmem:[#allocation2 + $0x64] ss:$8 sps:$4 sm:$0xff]   ;;  %v12350_v1 = vld [vmem:[#allocation2 + $0x60] ss:$8 sps:$4 sm:$0xff]  }
  0xee   :  { %10316 = vmatprep.subr.bf16.mxu0 %v382_v28  ;;  %v12351_v2 = vld [vmem:[#allocation2 + $0x74] ss:$8 sps:$4 sm:$0xff]   ;;  %v12353_v3 = vld [vmem:[#allocation2 + $0x70] ss:$8 sps:$4 sm:$0xff]   ;;  %v12354_v4 = vld [vmem:[#allocation2 + $0x84] ss:$8 sps:$4 sm:$0xff]  }
  0xef   :  { %11336 = vmatpush3.bf16.msra.mxu1 %v12379_v52  ;;  %v12356_v5 = vld [vmem:[#allocation2 + $0x80] ss:$8 sps:$4 sm:$0xff]   ;;  %v12357_v6 = vld [vmem:[#allocation2 + $0x94] ss:$8 sps:$4 sm:$0xff]   ;;  %v12359_v8 = vld [vmem:[#allocation2 + $0x90] ss:$8 sps:$4 sm:$0xff]  }
  0xf0   :  { %11337 = vmatprep.subr.bf16.mxu1 %v12380_v53  ;;  %v12382_v7 = vld [vmem:[#allocation7 + $0x18] sm:$0xff]   ;;  %v12360_v9 = vld [vmem:[#allocation2 + $0xa4] ss:$8 sps:$4 sm:$0xff]   ;;  %v12383_v10 = vld [vmem:[#allocation7 + $0x10] sm:$0xff]  }
  0xf1   :  { %10317 = vmatpush3.bf16.msra.mxu0 %v374_v32  ;;  %v12384_v11 = vld [vmem:[#allocation7 + $0x8] sm:$0xff]   ;;  %v12363_v13 = vld [vmem:[#allocation2 + $0xb4] ss:$8 sps:$4 sm:$0xff]   ;;  %v12385_v14 = vld [vmem:[#allocation7] sm:$0xff]  }
  0xf2   :  { %10318 = vmatprep.subr.bf16.mxu0 %v381_v34  ;;  %v12362_v12 = vld [vmem:[#allocation2 + $0xa0] ss:$8 sps:$4 sm:$0xff]   ;;  %v12365_v15 = vld [vmem:[#allocation2 + $0xb0] ss:$8 sps:$4 sm:$0xff]   ;;  %v12366_v16 = vld [vmem:[#allocation2 + $0xc4] ss:$8 sps:$4 sm:$0xff]  }
  0xf3   :  { %11338 = vmatpush3.bf16.msra.mxu1 %v12380_v53  ;;  %v12368_v17 = vld [vmem:[#allocation2 + $0xc0] ss:$8 sps:$4 sm:$0xff]   ;;  %v12369_v18 = vld [vmem:[#allocation2 + $0xd4] ss:$8 sps:$4 sm:$0xff]   ;;  %v12371_v19 = vld [vmem:[#allocation2 + $0xd0] ss:$8 sps:$4 sm:$0xff]  }
  0xf4   :  { %11339 = vmatprep.subr.bf16.mxu1 %v12381_v56  ;;  %v12372_v20 = vld [vmem:[#allocation2 + $0xe4] ss:$8 sps:$4 sm:$0xff]   ;;  %v12374_v21 = vld [vmem:[#allocation2 + $0xe0] ss:$8 sps:$4 sm:$0xff]   ;;  %v12375_v22 = vld [vmem:[#allocation2 + $0xf4] ss:$8 sps:$4 sm:$0xff]  }
  0xf5   :  { %10319 = vmatpush3.bf16.msra.mxu0 %v373_v38  ;;  %v12377_v23 = vld [vmem:[#allocation2 + $0xf0] ss:$8 sps:$4 sm:$0xff]   ;;  %v12618_v24 = vld [vmem:[#allocation2 + $0x4] ss:$8 sps:$4 sm:$0xff]  }
  0xf6   :  { %10320 = vmatprep.subr.bf16.mxu0 %v380_v40 }
  0xf7   :  { %11340 = vmatpush3.bf16.msra.mxu1 %v12381_v56 }
  0xf8   :  { %11341 = vmatprep.subr.bf16.mxu1 %v12382_v7 }
  0xf9   :  { %10321 = vmatpush3.bf16.msra.mxu0 %v372_v44 }
  0xfa   :  { %10322 = vmatprep.subr.bf16.mxu0 %v379_v46 }
  0xfb   :  { %11342 = vmatpush3.bf16.msra.mxu1 %v12382_v7 }
  0xfc   :  { %11343 = vmatprep.subr.bf16.mxu1 %v12383_v10 }
  0xfd   :  { %10323 = vmatpush3.bf16.msra.mxu0 %v371_v48 }
  0xff   :  { %11344 = vmatpush3.bf16.msra.mxu1 %v12383_v10 }
 0x100   :  { %580 = vmatmul.mubr.bf16.vlgmr.msra.gmra.mxu0 %v12330_v49  ;;  %11345 = vmatprep.subr.bf16.mxu1 %v12384_v11 }
 0x101   :  { %587 = vmatprep.mubr.bf16.mxu0 %v12333_v50 }
 0x103   :  { %11346 = vmatpush3.bf16.msra.mxu1 %v12384_v11 }
 0x104   :  { %11347 = vmatprep.subr.bf16.mxu1 %v12385_v14 }
 0x107   :  { %11348 = vmatpush3.bf16.msra.mxu1 %v12385_v14 }
 0x108   :  { %588 = vmatmul.mubr.bf16.gmra.mxu0 %v12335_v54 }
 0x109   :  { %595 = vmatprep.mubr.bf16.mxu0 %v12336_v55 }
 0x110   :  { %596 = vmatmul.mubr.bf16.gmra.mxu0 %v12338_v57 }
 0x111   :  { %603 = vmatprep.mubr.bf16.mxu0 %v12339_v58 }
 0x118   :  { %604 = vmatmul.mubr.bf16.gmra.mxu0 %v12341_v59 }
 0x119   :  { %611 = vmatprep.mubr.bf16.mxu0 %v12342_v60 }
 0x120   :  { %612 = vmatmul.mubr.bf16.gmra.mxu0 %v12344_v61 }
 0x121   :  { %619 = vmatprep.mubr.bf16.mxu0 %v12345_v62 }
 0x128   :  { %620 = vmatmul.mubr.bf16.gmra.mxu0 %v12347_v63 }
 0x129   :  { %627 = vmatprep.mubr.bf16.mxu0 %v12348_v0 }
 0x130   :  { %628 = vmatmul.mubr.bf16.gmra.mxu0 %v12350_v1 }
 0x131   :  { %635 = vmatprep.mubr.bf16.mxu0 %v12351_v2 }
 0x138   :  { %636 = vmatmul.mubr.bf16.gmra.mxu0 %v12353_v3 }
 0x139   :  { %643 = vmatprep.mubr.bf16.mxu0 %v12354_v4 }
 0x140   :  { %644 = vmatmul.mubr.bf16.gmra.mxu0 %v12356_v5 }
 0x141   :  { %651 = vmatprep.mubr.bf16.mxu0 %v12357_v6 }
 0x148   :  { %652 = vmatmul.mubr.bf16.gmra.mxu0 %v12359_v8 }
 0x149   :  { %659 = vmatprep.mubr.bf16.mxu0 %v12360_v9 }
 0x150   :  { %660 = vmatmul.mubr.bf16.gmra.mxu0 %v12362_v12 }
 0x151   :  { %667 = vmatprep.mubr.bf16.mxu0 %v12363_v13 }
 0x158   :  { %668 = vmatmul.mubr.bf16.gmra.mxu0 %v12365_v15 }
 0x159   :  { %675 = vmatprep.mubr.bf16.mxu0 %v12366_v16 }
 0x160   :  { %676 = vmatmul.mubr.bf16.gmra.mxu0 %v12368_v17 }
 0x161   :  { %683 = vmatprep.mubr.bf16.mxu0 %v12369_v18 }
 0x168   :  { %684 = vmatmul.mubr.bf16.gmra.mxu0 %v12371_v19 }
 0x169   :  { %691 = vmatprep.mubr.bf16.mxu0 %v12372_v20 }
 0x170   :  { %692 = vmatmul.mubr.bf16.gmra.mxu0 %v12374_v21 }
 0x171   :  { %699 = vmatprep.mubr.bf16.mxu0 %v12375_v22 }
 0x178   :  { %700 = vmatmul.mubr.bf16.gmra.mxu0 %v12377_v23 }
 0x179   :  { %1068 = vmatprep.mubr.bf16.mxu0 %v12618_v24 }
 0x1c0   :  { %v10324_v25 = vpop.f32.mrf.mxu0 }
 0x1c2   :  { %v10325_v26 = vpop.f32.mrf.mxu0 }
 0x1c3   :  { %v10326_v29 = vadd.f32 %v10325_v26, %v10324_v25 }
 0x1c4   :  { %v10327_v27 = vpop.f32.mrf.mxu0 }
 0x1c6   :  { %v10328_v28 = vpop.f32.mrf.mxu0 }
 0x1c7   :  { %v10329_v30 = vadd.f32 %v10328_v28, %v10327_v27 }
 0x1c8   :  { %v10330_v31 = vpop.f32.mrf.mxu0 }
 0x1c9   :  { %v708_v32 = vpack.c.bf16 %v10329_v30, %v10326_v29 }
 0x1ca   :  { %v10331_v33 = vpop.f32.mrf.mxu0 }
 0x1cb   :  { %11349 = vmatprep.mubr.bf16.mxu1 %v708_v32  ;;  %v10332_v36 = vadd.f32 %v10331_v33, %v10330_v31 }
 0x1cc   :  { %v10333_v34 = vpop.f32.mrf.mxu0 }
 0x1ce   :  { %v10334_v35 = vpop.f32.mrf.mxu0 }
 0x1cf   :  { %v10335_v37 = vadd.f32 %v10334_v35, %v10333_v34 }
 0x1d0   :  { %v10336_v38 = vpop.f32.mrf.mxu0 }
 0x1d1   :  { %v709_v39 = vpack.c.bf16 %v10335_v37, %v10332_v36 }
 0x1d2   :  { %v10337_v40 = vpop.f32.mrf.mxu0 }
 0x1d3   :  { %11350 = vmatmul.mubr.bf16.vlgmr.msra.gmra.mxu1 %v709_v39  ;;  %v10338_v43 = vadd.f32 %v10337_v40, %v10336_v38 }
 0x1d4   :  { %v10339_v41 = vpop.f32.mrf.mxu0 }
 0x1d6   :  { %v10340_v42 = vpop.f32.mrf.mxu0 }
 0x1d7   :  { %v10341_v44 = vadd.f32 %v10340_v42, %v10339_v41 }
 0x1d8   :  { %v10342_v45 = vpop.f32.mrf.mxu0 }
 0x1d9   :  { %v710_v46 = vpack.c.bf16 %v10341_v44, %v10338_v43 }
 0x1da   :  { %v10343_v47 = vpop.f32.mrf.mxu0 }
 0x1db   :  { %11353 = vmatprep.mubr.bf16.mxu1 %v710_v46  ;;  %v10344_v50 = vadd.f32 %v10343_v47, %v10342_v45 }
 0x1dc   :  { %v10345_v48 = vpop.f32.mrf.mxu0 }
 0x1de   :  { %v10346_v49 = vpop.f32.mrf.mxu0 }
 0x1df   :  { %v10347_v51 = vadd.f32 %v10346_v49, %v10345_v48 }
 0x1e0   :  { %v10348_v52 = vpop.f32.mrf.mxu0 }
 0x1e1   :  { %v711_v53 = vpack.c.bf16 %v10347_v51, %v10344_v50 }
 0x1e2   :  { %v10349_v54 = vpop.f32.mrf.mxu0 }
 0x1e3   :  { %11354 = vmatmul.mubr.bf16.gmra.mxu1 %v711_v53  ;;  %v10350_v57 = vadd.f32 %v10349_v54, %v10348_v52 }
 0x1e4   :  { %v10351_v55 = vpop.f32.mrf.mxu0 }
 0x1e6   :  { %v10352_v56 = vpop.f32.mrf.mxu0 }
 0x1e7   :  { %v10353_v58 = vadd.f32 %v10352_v56, %v10351_v55 }
 0x1e8   :  { %v10354_v59 = vpop.f32.mrf.mxu0 }
 0x1e9   :  { %v712_v60 = vpack.c.bf16 %v10353_v58, %v10350_v57 }
 0x1ea   :  { %v10355_v61 = vpop.f32.mrf.mxu0 }
 0x1eb   :  { %11357 = vmatprep.mubr.bf16.mxu1 %v712_v60  ;;  %v10356_v0 = vadd.f32 %v10355_v61, %v10354_v59 }
 0x1ec   :  { %v10357_v62 = vpop.f32.mrf.mxu0 }
 0x1ee   :  { %v10358_v63 = vpop.f32.mrf.mxu0 }
 0x1ef   :  { %v10359_v1 = vadd.f32 %v10358_v63, %v10357_v62 }
 0x1f0   :  { %v10360_v2 = vpop.f32.mrf.mxu0 }
 0x1f1   :  { %v713_v3 = vpack.c.bf16 %v10359_v1, %v10356_v0 }
 0x1f2   :  { %v10361_v4 = vpop.f32.mrf.mxu0 }
 0x1f3   :  { %11358 = vmatmul.mubr.bf16.gmra.mxu1 %v713_v3  ;;  %v10362_v7 = vadd.f32 %v10361_v4, %v10360_v2 }
 0x1f4   :  { %v10363_v5 = vpop.f32.mrf.mxu0 }
 0x1f6   :  { %v10364_v6 = vpop.f32.mrf.mxu0 }
 0x1f7   :  { %v10365_v8 = vadd.f32 %v10364_v6, %v10363_v5 }
 0x1f8   :  { %v10366_v9 = vpop.f32.mrf.mxu0 }
 0x1f9   :  { %v714_v10 = vpack.c.bf16 %v10365_v8, %v10362_v7 }
 0x1fa   :  { %v10367_v11 = vpop.f32.mrf.mxu0 }
 0x1fb   :  { %11361 = vmatprep.mubr.bf16.mxu1 %v714_v10  ;;  %v10368_v14 = vadd.f32 %v10367_v11, %v10366_v9  ;;  %v12619_v9 = vld [vmem:[#allocation2 + $0x64] ss:$8 sps:$4 sm:$0xff]   ;;  %v17733_v10 = vmov 0   ;;  %v13360_v11 = vld [vmem:[%s17829_s13 + $0x10] sm:$0xff] }
 0x1fc   :  { %v10369_v12 = vpop.f32.mrf.mxu0  ;;  %12311 = vset.pattern.permute.xlu1 %v17733_v10  ;;  %12310 = vset.pattern.permute.xlu0 %v17733_v10 }
 0x1fd   :  { %1751 = vperm.xlu1 %12311, %v13360_v11  }
 0x1fe   :  { %v10370_v13 = vpop.f32.mrf.mxu0 }
 0x1ff   :  { %v10371_v15 = vadd.f32 %v10370_v13, %v10369_v12  ;;  %v13365_v12 = vld [vmem:[%s17829_s13 + $0x18] sm:$0xff]  ;;  %v13368_v13 = vld [vmem:[%s17829_s13] sm:$0xff] }
 0x200   :  { %v10372_v16 = vpop.f32.mrf.mxu0  ;;  %1741 = vperm.xlu0 %12310, %v13368_v13  }
 0x201   :  { %v715_v17 = vpack.c.bf16 %v10371_v15, %v10368_v14  ;;  %1756 = vperm.xlu1 %12311, %v13365_v12   ;;  %v13373_v14 = vld [vmem:[%s17829_s13 + $0x28] sm:$0xff] }
 0x202   :  { %v10373_v18 = vpop.f32.mrf.mxu0  ;;  %v13376_v15 = vld [vmem:[%s17829_s13 + $0x8] sm:$0xff] }
 0x203   :  { %11362 = vmatmul.mubr.bf16.gmra.mxu1 %v715_v17  ;;  %v10374_v21 = vadd.f32 %v10373_v18, %v10372_v16  ;;  %v13381_v16 = vld [vmem:[%s17829_s13 + $0x38] sm:$0xff]  ;;  %v13384_v17 = vld [vmem:[%s17829_s13 + $0x20] sm:$0xff]  ;;  %v13389_v18 = vld [vmem:[%s17829_s13 + $0x48] sm:$0xff] }
 0x204   :  { %v10375_v19 = vpop.f32.mrf.mxu0  ;;  %1746 = vperm.xlu0 %12310, %v13376_v15  }
 0x205   :  { %1766 = vperm.xlu1 %12311, %v13373_v14  }
 0x206   :  { %v10376_v20 = vpop.f32.mrf.mxu0 }
 0x207   :  { %v10377_v22 = vadd.f32 %v10376_v20, %v10375_v19  ;;  %v13392_v19 = vld [vmem:[%s17829_s13 + $0x30] sm:$0xff]  ;;  %v13397_v20 = vld [vmem:[%s17829_s13 + $0x58] sm:$0xff] }
 0x208   :  { %v10378_v23 = vpop.f32.mrf.mxu0  ;;  %1761 = vperm.xlu0 %12310, %v13384_v17  }
 0x209   :  { %v716_v24 = vpack.c.bf16 %v10377_v22, %v10374_v21  ;;  %1776 = vperm.xlu1 %12311, %v13381_v16   ;;  %v13400_v21 = vld [vmem:[%s17829_s13 + $0x40] sm:$0xff]  ;;  %v13405_v22 = vld [vmem:[%s17829_s13 + $0x68] sm:$0xff] }
 0x20a   :  { %v10379_v25 = vpop.f32.mrf.mxu0  ;;  %17830 = vst [vmem:[#allocation54_spill] sm:$0xff] %v13405_v22 }
 0x20b   :  { %11365 = vmatprep.mubr.bf16.mxu1 %v716_v24  ;;  %v10380_v28 = vadd.f32 %v10379_v25, %v10378_v23  ;;  %v13408_v23 = vld [vmem:[%s17829_s13 + $0x50] sm:$0xff]  ;;  %v13413_v24 = vld [vmem:[%s17829_s13 + $0x78] sm:$0xff]  ;;  %v13416_v25 = vld [vmem:[%s17829_s13 + $0x60] sm:$0xff] }
 0x20c   :  { %v10381_v26 = vpop.f32.mrf.mxu0  ;;  %1771 = vperm.xlu0 %12310, %v13392_v19   ;;  %17831 = vst [vmem:[#allocation55_spill] sm:$0xff] %v13413_v24  ;;  %17832 = vst [vmem:[#allocation56_spill] sm:$0xff] %v13416_v25 }
 0x20d   :  { %1786 = vperm.xlu1 %12311, %v13389_v18  }
 0x20e   :  { %v10382_v27 = vpop.f32.mrf.mxu0 }
 0x20f   :  { %v10383_v29 = vadd.f32 %v10382_v27, %v10381_v26  ;;  %v13421_v26 = vld [vmem:[%s17829_s13 + $0x88] sm:$0xff]  ;;  %v13424_v27 = vld [vmem:[%s17829_s13 + $0x70] sm:$0xff] }
 0x210   :  { %v10384_v30 = vpop.f32.mrf.mxu0  ;;  %1781 = vperm.xlu0 %12310, %v13400_v21   ;;  %17833 = vst [vmem:[#allocation57_spill] sm:$0xff] %v13421_v26  ;;  %17834 = vst [vmem:[#allocation58_spill] sm:$0xff] %v13424_v27 }
 0x211   :  { %v717_v31 = vpack.c.bf16 %v10383_v29, %v10380_v28  ;;  %1796 = vperm.xlu1 %12311, %v13397_v20   ;;  %v13429_v28 = vld [vmem:[%s17829_s13 + $0x98] sm:$0xff]  ;;  %v13432_v29 = vld [vmem:[%s17829_s13 + $0x80] sm:$0xff] }
 0x212   :  { %v10385_v32 = vpop.f32.mrf.mxu0  ;;  %17835 = vst [vmem:[#allocation59_spill] sm:$0xff] %v13429_v28  ;;  %17836 = vst [vmem:[#allocation60_spill] sm:$0xff] %v13432_v29 }
 0x213   :  { %11366 = vmatmul.mubr.bf16.gmra.mxu1 %v717_v31  ;;  %v10386_v35 = vadd.f32 %v10385_v32, %v10384_v30  ;;  %v13437_v30 = vld [vmem:[%s17829_s13 + $0xa8] sm:$0xff]  ;;  %v13440_v31 = vld [vmem:[%s17829_s13 + $0x90] sm:$0xff]  ;;  %v13445_v32 = vld [vmem:[%s17829_s13 + $0xb8] sm:$0xff] }
 0x214   :  { %v10387_v33 = vpop.f32.mrf.mxu0  ;;  %1791 = vperm.xlu0 %12310, %v13408_v23   ;;  %17837 = vst [vmem:[#allocation61_spill] sm:$0xff] %v13437_v30  ;;  %17838 = vst [vmem:[#allocation62_spill] sm:$0xff] %v13440_v31 }
 0x215   :  { %1806 = vperm.xlu1 %12311, %v13405_v22   ;;  %17839 = vst [vmem:[#allocation63_spill] sm:$0xff] %v13445_v32 }
 0x216   :  { %v10388_v34 = vpop.f32.mrf.mxu0 }
 0x217   :  { %v10389_v36 = vadd.f32 %v10388_v34, %v10387_v33  ;;  %v13448_v33 = vld [vmem:[%s17829_s13 + $0xa0] sm:$0xff]  ;;  %v13453_v34 = vld [vmem:[%s17829_s13 + $0xc8] sm:$0xff] }
 0x218   :  { %v10390_v37 = vpop.f32.mrf.mxu0  ;;  %1801 = vperm.xlu0 %12310, %v13416_v25   ;;  %17840 = vst [vmem:[#allocation64_spill] sm:$0xff] %v13448_v33  ;;  %17841 = vst [vmem:[#allocation65_spill] sm:$0xff] %v13453_v34 }
 0x219   :  { %v718_v38 = vpack.c.bf16 %v10389_v36, %v10386_v35  ;;  %1816 = vperm.xlu1 %12311, %v13413_v24   ;;  %v13456_v35 = vld [vmem:[%s17829_s13 + $0xb0] sm:$0xff]  ;;  %v13461_v36 = vld [vmem:[%s17829_s13 + $0xd8] sm:$0xff] }
 0x21a   :  { %v10391_v39 = vpop.f32.mrf.mxu0  ;;  %17842 = vst [vmem:[#allocation66_spill] sm:$0xff] %v13456_v35 }
 0x21b   :  { %11369 = vmatprep.mubr.bf16.mxu1 %v718_v38  ;;  %v10392_v42 = vadd.f32 %v10391_v39, %v10390_v37  ;;  %v13464_v37 = vld [vmem:[%s17829_s13 + $0xc0] sm:$0xff]  ;;  %v13469_v38 = vld [vmem:[%s17829_s13 + $0xe8] sm:$0xff]  ;;  %v13472_v39 = vld [vmem:[%s17829_s13 + $0xd0] sm:$0xff] }
 0x21c   :  { %v10393_v40 = vpop.f32.mrf.mxu0  ;;  %1811 = vperm.xlu0 %12310, %v13424_v27   ;;  %17843 = vst [vmem:[#allocation67_spill] sm:$0xff] %v13464_v37  ;;  %17844 = vst [vmem:[#allocation68_spill] sm:$0xff] %v13472_v39 }
 0x21d   :  { %1826 = vperm.xlu1 %12311, %v13421_v26  }
 0x21e   :  { %v10394_v41 = vpop.f32.mrf.mxu0 }
 0x21f   :  { %v10395_v43 = vadd.f32 %v10394_v41, %v10393_v40  ;;  %v13477_v40 = vld [vmem:[%s17829_s13 + $0xf8] sm:$0xff]  ;;  %v13480_v41 = vld [vmem:[%s17829_s13 + $0xe0] sm:$0xff] }
 0x220   :  { %v10396_v44 = vpop.f32.mrf.mxu0  ;;  %1821 = vperm.xlu0 %12310, %v13432_v29  }
 0x221   :  { %v719_v45 = vpack.c.bf16 %v10395_v43, %v10392_v42  ;;  %1836 = vperm.xlu1 %12311, %v13429_v28   ;;  %v13485_v42 = vld [vmem:[%s17829_s13 + $0xf0] sm:$0xff]  ;;  %v17731_v43 = vmov 1  }
 0x222   :  { %v10397_v46 = vpop.f32.mrf.mxu0 }
 0x223   :  { %11370 = vmatmul.mubr.bf16.gmra.mxu1 %v719_v45  ;;  %v10398_v49 = vadd.f32 %v10397_v46, %v10396_v44 }
 0x224   :  { %v10399_v47 = vpop.f32.mrf.mxu0  ;;  %1831 = vperm.xlu0 %12310, %v13440_v31  }
 0x225   :  { %1846 = vperm.xlu1 %12311, %v13437_v30  }
 0x226   :  { %v10400_v48 = vpop.f32.mrf.mxu0 }
 0x227   :  { %v10401_v50 = vadd.f32 %v10400_v48, %v10399_v47 }
 0x228   :  { %v10402_v51 = vpop.f32.mrf.mxu0  ;;  %1841 = vperm.xlu0 %12310, %v13448_v33  }
 0x229   :  { %v720_v52 = vpack.c.bf16 %v10401_v50, %v10398_v49  ;;  %1856 = vperm.xlu1 %12311, %v13445_v32  }
 0x22a   :  { %v10403_v53 = vpop.f32.mrf.mxu0 }
 0x22b   :  { %11373 = vmatprep.mubr.bf16.mxu1 %v720_v52  ;;  %v10404_v56 = vadd.f32 %v10403_v53, %v10402_v51 }
 0x22c   :  { %v10405_v54 = vpop.f32.mrf.mxu0  ;;  %1851 = vperm.xlu0 %12310, %v13456_v35  }
 0x22d   :  { %1866 = vperm.xlu1 %12311, %v13453_v34  }
 0x22e   :  { %v10406_v55 = vpop.f32.mrf.mxu0 }
 0x22f   :  { %v10407_v57 = vadd.f32 %v10406_v55, %v10405_v54 }
 0x230   :  { %v10408_v58 = vpop.f32.mrf.mxu0  ;;  %1861 = vperm.xlu0 %12310, %v13464_v37  }
 0x231   :  { %v721_v59 = vpack.c.bf16 %v10407_v57, %v10404_v56  ;;  %1876 = vperm.xlu1 %12311, %v13461_v36  }
 0x232   :  { %v10409_v60 = vpop.f32.mrf.mxu0 }
 0x233   :  { %11374 = vmatmul.mubr.bf16.gmra.mxu1 %v721_v59  ;;  %v10410_v63 = vadd.f32 %v10409_v60, %v10408_v58  ;;  %v17729_v60 = vmov 2  }
 0x234   :  { %v10411_v61 = vpop.f32.mrf.mxu0  ;;  %1871 = vperm.xlu0 %12310, %v13472_v39  }
 0x235   :  { %1886 = vperm.xlu1 %12311, %v13469_v38  }
 0x236   :  { %v10412_v62 = vpop.f32.mrf.mxu0 }
 0x237   :  { %v10413_v0 = vadd.f32 %v10412_v62, %v10411_v61 }
 0x238   :  { %v10414_v1 = vpop.f32.mrf.mxu0  ;;  %1881 = vperm.xlu0 %12310, %v13480_v41  }
 0x239   :  { %v722_v2 = vpack.c.bf16 %v10413_v0, %v10410_v63  ;;  %1896 = vperm.xlu1 %12311, %v13477_v40  }
 0x23a   :  { %v10415_v3 = vpop.f32.mrf.mxu0 }
 0x23b   :  { %11377 = vmatprep.mubr.bf16.mxu1 %v722_v2  ;;  %v10416_v6 = vadd.f32 %v10415_v3, %v10414_v1 }
 0x23c   :  { %v10417_v4 = vpop.f32.mrf.mxu0  ;;  %1891 = vperm.xlu0 %12310, %v13485_v42  }
 0x23d   :  { %12313 = vset.pattern.permute.xlu1 %v17731_v43 }
 0x23e   :  { %v10418_v5 = vpop.f32.mrf.mxu0  ;;  %2559 = vperm.xlu1 %12313, %v13376_v15  }
 0x23f   :  { %v10419_v7 = vadd.f32 %v10418_v5, %v10417_v4 }
 0x240   :  { %12312 = vset.pattern.permute.xlu0 %v17731_v43 }
 0x241   :  { %v723_v8 = vpack.c.bf16 %v10419_v7, %v10416_v6  ;;  %2555 = vperm.xlu0 %12312, %v13368_v13  }
 0x242   :  { %2563 = vperm.xlu1 %12313, %v13360_v11  }
 0x243   :  { %11378 = vmatmul.mubr.bf16.gmra.mxu1 %v723_v8 }
 0x244   :  { %1116 = vmatprep.mubr.bf16.mxu1 %v12619_v9 }
 0x245   :  { %2567 = vperm.xlu0 %12312, %v13365_v12  }
 0x246   :  { %2571 = vperm.xlu1 %12313, %v13384_v17  }
 0x249   :  { %2575 = vperm.xlu0 %12312, %v13373_v14  }
 0x24a   :  { %2579 = vperm.xlu1 %12313, %v13392_v19  }
 0x24d   :  { %2583 = vperm.xlu0 %12312, %v13381_v16  }
 0x24e   :  { %2587 = vperm.xlu1 %12313, %v13400_v21  }
 0x251   :  { %2591 = vperm.xlu0 %12312, %v13389_v18  }
 0x252   :  { %2595 = vperm.xlu1 %12313, %v13408_v23  }
 0x255   :  { %2599 = vperm.xlu0 %12312, %v13397_v20  }
 0x256   :  { %2603 = vperm.xlu1 %12313, %v13416_v25  }
 0x259   :  { %2607 = vperm.xlu0 %12312, %v13405_v22  }
 0x25a   :  { %2611 = vperm.xlu1 %12313, %v13424_v27  }
 0x25d   :  { %2615 = vperm.xlu0 %12312, %v13413_v24  }
 0x25e   :  { %2619 = vperm.xlu1 %12313, %v13432_v29  }
 0x261   :  { %2623 = vperm.xlu0 %12312, %v13421_v26  }
 0x262   :  { %2627 = vperm.xlu1 %12313, %v13440_v31  }
 0x265   :  { %2631 = vperm.xlu0 %12312, %v13429_v28  }
 0x266   :  { %2635 = vperm.xlu1 %12313, %v13448_v33  }
 0x269   :  { %2639 = vperm.xlu0 %12312, %v13437_v30  }
 0x26a   :  { %2643 = vperm.xlu1 %12313, %v13456_v35  }
 0x26d   :  { %2647 = vperm.xlu0 %12312, %v13445_v32  }
 0x26e   :  { %2651 = vperm.xlu1 %12313, %v13464_v37  }
 0x271   :  { %2655 = vperm.xlu0 %12312, %v13453_v34  }
 0x272   :  { %2659 = vperm.xlu1 %12313, %v13472_v39  }
 0x275   :  { %2663 = vperm.xlu0 %12312, %v13461_v36  }
 0x276   :  { %2667 = vperm.xlu1 %12313, %v13480_v41  }
 0x278   :  { %v13548_v58 = vpop.permute.xlu1 %1751 }
 0x279   :  { %17845 = vst [vmem:[#allocation69_spill] sm:$0xff] %v13548_v58  ;;  %2671 = vperm.xlu0 %12312, %v13469_v38  }
 0x27a   :  { %2675 = vperm.xlu1 %12313, %v13485_v42  }
 0x27b   :  { %v13565_v2 = vpop.permute.xlu0 %1741 }
 0x27c   :  { %v13552_v61 = vpop.permute.xlu1 %1756  ;;  %17848 = vst [vmem:[#allocation72_spill] sm:$0xff] %v13565_v2 }
 0x27d   :  { %17846 = vst [vmem:[#allocation70_spill] sm:$0xff] %v13552_v61  ;;  %2679 = vperm.xlu0 %12312, %v13477_v40  }
 0x27e   :  { %12314 = vset.pattern.permute.xlu1 %v17729_v60 }
 0x27f   :  { %3343 = vperm.xlu1 %12314, %v13368_v13   ;;  %v13575_v6 = vpop.permute.xlu0 %1746 }
 0x280   :  { %v13558_v0 = vpop.permute.xlu1 %1766  ;;  %17851 = vst [vmem:[#allocation75_spill] sm:$0xff] %v13575_v6 }
 0x281   :  { %17847 = vst [vmem:[#allocation71_spill] sm:$0xff] %v13558_v0  ;;  %12315 = vset.pattern.permute.xlu0 %v17729_v60 }
 0x282   :  { %3347 = vperm.xlu0 %12315, %v13376_v15  }
 0x283   :  { %3351 = vperm.xlu1 %12314, %v13360_v11   ;;  %v13587_v60 = vpop.permute.xlu0 %1761 }
 0x284   :  { %v13567_v3 = vpop.permute.xlu1 %1776  ;;  %17853 = vst [vmem:[#allocation77_spill] sm:$0xff] %v13587_v60 }
 0x285   :  { %17849 = vst [vmem:[#allocation73_spill] sm:$0xff] %v13567_v3 }
 0x286   :  { %3359 = vperm.xlu0 %12315, %v13384_v17  }
 0x287   :  { %3355 = vperm.xlu1 %12314, %v13365_v12  }
 0x288   :  { %v13573_v5 = vpop.permute.xlu1 %1786 }
 0x289   :  { %17850 = vst [vmem:[#allocation74_spill] sm:$0xff] %v13573_v5 }
 0x28a   :  { %3367 = vperm.xlu0 %12315, %v13392_v19  }
 0x28b   :  { %3363 = vperm.xlu1 %12314, %v13373_v14  }
 0x28c   :  { %v13581_v8 = vpop.permute.xlu1 %1796 }
 0x28d   :  { %17852 = vst [vmem:[#allocation76_spill] sm:$0xff] %v13581_v8  ;;  %v13599_v8 = vpop.permute.xlu0 %1771 }
 0x28e   :  { %3375 = vperm.xlu0 %12315, %v13400_v21   ;;  %17856 = vst [vmem:[#allocation80_spill] sm:$0xff] %v13599_v8 }
 0x28f   :  { %3371 = vperm.xlu1 %12314, %v13381_v16  }
 0x290   :  { %v13589_v43 = vpop.permute.xlu1 %1806 }
 0x291   :  { %17854 = vst [vmem:[#allocation78_spill] sm:$0xff] %v13589_v43  ;;  %v13609_v61 = vpop.permute.xlu0 %1781 }
 0x292   :  { %3383 = vperm.xlu0 %12315, %v13408_v23   ;;  %17858 = vst [vmem:[#allocation82_spill] sm:$0xff] %v13609_v61 }
 0x293   :  { %v13495_v44 = vpop.f32.mrf.mxu1  ;;  %3379 = vperm.xlu1 %12314, %v13389_v18  }
 0x294   :  { %v13595_v5 = vpop.permute.xlu1 %1816 }
 0x295   :  { %v13499_v45 = vpop.f32.mrf.mxu1  ;;  %17855 = vst [vmem:[#allocation79_spill] sm:$0xff] %v13595_v5  ;;  %v13615_v58 = vpop.permute.xlu0 %1791 }
 0x296   :  { %3391 = vperm.xlu0 %12315, %v13416_v25   ;;  %17860 = vst [vmem:[#allocation84_spill] sm:$0xff] %v13615_v58 }
 0x297   :  { %v13503_v46 = vpop.f32.mrf.mxu1  ;;  %3387 = vperm.xlu1 %12314, %v13397_v20  }
 0x298   :  { %v13606_v43 = vpop.permute.xlu1 %1826 }
 0x299   :  { %v13507_v47 = vpop.f32.mrf.mxu1  ;;  %17857 = vst [vmem:[#allocation81_spill] sm:$0xff] %v13606_v43  ;;  %v13623_v2 = vpop.permute.xlu0 %1801 }
 0x29a   :  { %3399 = vperm.xlu0 %12315, %v13424_v27   ;;  %17862 = vst [vmem:[#allocation86_spill] sm:$0xff] %v13623_v2 }
 0x29b   :  { %3395 = vperm.xlu1 %12314, %v13405_v22   ;;  %v12622_v22 = vld [vmem:[#allocation5 + $0xf8] sm:$0xff] }
 0x29c   :  { %v13613_v8 = vpop.permute.xlu1 %1836 }
 0x29d   :  { %17859 = vst [vmem:[#allocation83_spill] sm:$0xff] %v13613_v8 }
 0x29e   :  { %3407 = vperm.xlu0 %12315, %v13432_v29   ;;  %v13625_v29 = vld [vmem:[#allocation8] ss:$0 sm:$0xff] }
 0x29f   :  { %3403 = vperm.xlu1 %12314, %v13413_v24  }
 0x2a0   :  { %v13619_v43 = vpop.permute.xlu1 %1846 }
 0x2a1   :  { %17861 = vst [vmem:[#allocation85_spill] sm:$0xff] %v13619_v43 }
 0x2a2   :  { %3415 = vperm.xlu0 %12315, %v13440_v31  }
 0x2a3   :  { %v13511_v48 = vpop.f32.mrf.mxu1  ;;  %3411 = vperm.xlu1 %12314, %v13421_v26  }
 0x2a5   :  { %v13515_v49 = vpop.f32.mrf.mxu1 }
 0x2a6   :  { %3423 = vperm.xlu0 %12315, %v13448_v33  }
 0x2a7   :  { %v13519_v50 = vpop.f32.mrf.mxu1  ;;  %3419 = vperm.xlu1 %12314, %v13429_v28   ;;  %v13639_v28 = vpop.permute.xlu1 %1856 }
 0x2a8   :  { %17866 = vst [vmem:[#allocation90_spill] sm:$0xff] %v13639_v28 }
 0x2a9   :  { %v13523_v51 = vpop.f32.mrf.mxu1 }
 0x2aa   :  { %3431 = vperm.xlu0 %12315, %v13456_v35   ;;  %v13651_v35 = vpop.permute.xlu0 %1811 }
 0x2ab   :  { %3427 = vperm.xlu1 %12314, %v13437_v30   ;;  %17870 = vst [vmem:[#allocation94_spill] sm:$0xff] %v13651_v35  ;;  %v13680_v27 = vpop.permute.xlu1 %1866 }
 0x2ac   :  { %17877 = vst [vmem:[#allocation100_spill] sm:$0xff] %v13680_v27  ;;  %v12626_v27 = vld [vmem:[#allocation5 + $0x68] sm:$0xff] }
 0x2ae   :  { %3439 = vperm.xlu0 %12315, %v13464_v37  }
 0x2af   :  { %3435 = vperm.xlu1 %12314, %v13445_v32  }
 0x2b2   :  { %3447 = vperm.xlu0 %12315, %v13472_v39  }
 0x2b3   :  { %v13525_v52 = vpop.f32.mrf.mxu1  ;;  %3443 = vperm.xlu1 %12314, %v13453_v34  }
 0x2b5   :  { %v13529_v53 = vpop.f32.mrf.mxu1 }
 0x2b6   :  { %3455 = vperm.xlu0 %12315, %v13480_v41  }
 0x2b7   :  { %v13533_v54 = vpop.f32.mrf.mxu1  ;;  %3451 = vperm.xlu1 %12314, %v13461_v36  }
 0x2b9   :  { %v13537_v55 = vpop.f32.mrf.mxu1 }
 0x2ba   :  { %3463 = vperm.xlu0 %12315, %v13485_v42  }
 0x2bb   :  { %3459 = vperm.xlu1 %12314, %v13469_v38  }
 0x2bf   :  { %3467 = vperm.xlu1 %12314, %v13477_v40  }
 0x2c3   :  { %v13541_v56 = vpop.f32.mrf.mxu1 }
 0x2c4   :  { %v13637_v43 = vadd.f32 %v13541_v56, %v13625_v29 }
 0x2c5   :  { %v13545_v57 = vpop.f32.mrf.mxu1 }
 0x2c6   :  { %17865 = vst [vmem:[#allocation89_spill] sm:$0xff] %v13637_v43 }
 0x2c7   :  { %v11364_v59 = vpop.f32.mrf.mxu1 }
 0x2c8   :  { %v13628_v8 = vadd.f32 %v11364_v59, %v13625_v29 }
 0x2c9   :  { %v880_v62 = vpop.f32.mrf.mxu1 }
 0x2ca   :  { %17863 = vst [vmem:[#allocation87_spill] sm:$0xff] %v13628_v8  ;;  %v13646_v26 = vadd.f32 %v13625_v29, %v880_v62  ;;  %v13662_v62 = vadd.f32 %v13625_v29, %v13545_v57  ;;  %v17876_v37 = vmax.f32 %v13628_v8, 0.0 }
 0x2cc   :  { %17868 = vst [vmem:[#allocation92_spill] sm:$0xff] %v13646_v26  ;;  %17872 = vst [vmem:[#allocation96_spill] sm:$0xff] %v13662_v62 }
 0x2d3   :  { %v13556_v63 = vpop.f32.mrf.mxu1 }
 0x2d5   :  { %v13563_v1 = vpop.f32.mrf.mxu1 }
 0x2d7   :  { %v13571_v4 = vpop.f32.mrf.mxu1 }
 0x2d9   :  { %v13579_v7 = vpop.f32.mrf.mxu1 }
 0x2e3   :  { %v13583_v9 = vpop.f32.mrf.mxu1 }
 0x2e5   :  { %v13591_v10 = vpop.f32.mrf.mxu1 }
 0x2e7   :  { %v13597_v3 = vpop.f32.mrf.mxu1 }
 0x2e9   :  { %v13603_v0 = vpop.f32.mrf.mxu1 }
 0x2f3   :  { %v11375_v60 = vpop.f32.mrf.mxu1 }
 0x2f5   :  { %v925_v5 = vpop.f32.mrf.mxu1 }
 0x2f7   :  { %v11376_v6 = vpop.f32.mrf.mxu1 }
 0x2f9   :  { %v928_v61 = vpop.f32.mrf.mxu1 }
 0x2fa   :  { %v13684_v35 = vadd.f32 %v13625_v29, %v928_v61  ;;  %v17882_v61 = vmax.f32 %v13637_v43, 0.0 }
 0x2fc   :  { %17878 = vst [vmem:[#allocation101_spill] sm:$0xff] %v13684_v35 }
 0x303   :  { %v11379_v58 = vpop.f32.mrf.mxu1 }
 0x304   :  { %v13632_v31 = vadd.f32 %v11379_v58, %v13625_v29  ;;  %v13649_v58 = vadd.f32 %v11376_v6, %v13625_v29  ;;  %v13665_v6 = vadd.f32 %v11375_v60, %v13625_v29  ;;  %v12623_v60 = vld [vmem:[#allocation5 + $0x70] sm:$0xff] }
 0x305   :  { %v941_v33 = vpop.f32.mrf.mxu1  ;;  %v1002_v24 = vadd.f32 %v12623_v60, %v17882_v61  ;;  %v13712_v61 = vadd.f32 %v13625_v29, %v13537_v55 }
 0x306   :  { %17864 = vst [vmem:[#allocation88_spill] sm:$0xff] %v13632_v31  ;;  %v13642_v2 = vadd.f32 %v13625_v29, %v941_v33  ;;  %17869 = vst [vmem:[#allocation93_spill] sm:$0xff] %v13649_v58  ;;  %v12620_v33 = vld [vmem:[#allocation5 + $0x78] sm:$0xff]  ;;  %v17879_v32 = vmax.f32 %v13632_v31, 0.0  ;;  %v12625_v31 = vld [vmem:[#allocation5 + $0xe8] sm:$0xff] }
 0x307   :  { %v11380_v30 = vpop.f32.mrf.mxu1  ;;  %17873 = vst [vmem:[#allocation97_spill] sm:$0xff] %v13665_v6  ;;  %v1003_v57 = vadd.f32 %v12620_v33, %v17876_v37  ;;  %v13694_v33 = vadd.f32 %v13525_v52, %v13625_v29  ;;  %17886 = vst [vmem:[#allocation104_spill] sm:$0xff] %v13712_v61 }
 0x308   :  { %17867 = vst [vmem:[#allocation91_spill] sm:$0xff] %v13642_v2  ;;  %v13656_v28 = vadd.f32 %v11380_v30, %v13625_v29  ;;  %v13674_v30 = vadd.f32 %v13533_v54, %v13625_v29  ;;  %v17884_v37 = vmax.f32 %v13642_v2, 0.0 }
 0x309   :  { %v944_v59 = vpop.f32.mrf.mxu1  ;;  %17881 = vst [vmem:[#allocation102_spill] sm:$0xff] %v13694_v33 }
 0x30a   :  { %17871 = vst [vmem:[#allocation95_spill] sm:$0xff] %v13656_v28  ;;  %v13670_v56 = vadd.f32 %v13625_v29, %v944_v59  ;;  %17875 = vst [vmem:[#allocation99_spill] sm:$0xff] %v13674_v30  ;;  %v12621_v59 = vld [vmem:[#allocation5 + $0xf0] sm:$0xff]  ;;  %v17880_v25 = vmax.f32 %v13656_v28, 0.0  ;;  %v17754_v60 = vmax.f32 %v13674_v30, 0.0 }
 0x30b   :  { %v1018_v54 = vadd.f32 %v12621_v59, %v17879_v32  ;;  %v13700_v59 = vpop.permute.xlu0 %1821  ;;  %v1027_v32 = vpack.c.bf16 %v1003_v57, %v1002_v24  ;;  %v12628_v57 = vld [vmem:[#allocation5 + $0x60] sm:$0xff] }
 0x30c   :  { %17874 = vst [vmem:[#allocation98_spill] sm:$0xff] %v13670_v56  ;;  %v1019_v8 = vadd.f32 %v12622_v22, %v17880_v25  ;;  %v13703_v22 = vadd.f32 %v13625_v29, %v925_v5  ;;  %v12624_v25 = vld [vmem:[#allocation5 + $0xe0] sm:$0xff]  ;;  %v17885_v52 = vmax.f32 %v13670_v56, 0.0  ;;  %v17887_v5 = vmax.f32 %v13646_v26, 0.0 }
 0x30d   :  { %v1016_v28 = vadd.f32 %v12624_v25, %v17884_v37  ;;  %v13719_v37 = vadd.f32 %v13597_v3, %v13625_v29  ;;  %v12627_v25 = vld [vmem:[#allocation5 + $0xd8] sm:$0xff] }
 0x30e   :  { %17883 = vst [vmem:[#allocation103_spill] sm:$0xff] %v13703_v22  ;;  %v1017_v39 = vadd.f32 %v12625_v31, %v17885_v52  ;;  %v1035_v34 = vpack.c.bf16 %v1019_v8, %v1018_v54  ;;  %v1001_v43 = vadd.f32 %v12626_v27, %v17887_v5  ;;  %v17889_v31 = vmax.f32 %v13649_v58, 0.0  ;;  %v13731_v5 = vpop.permute.xlu1 %1876  ;;  %v12640_v58 = vld [vmem:[#allocation5 + $0x30] sm:$0xff] }
 0x30f   :  { %17888 = vst [vmem:[#allocation105_spill] sm:$0xff] %v13719_v37  ;;  %v17755_v54 = vmax.f32 %v13684_v35, 0.0  ;;  %v13727_v27 = vadd.f32 %v13625_v29, %v13529_v53  ;;  %v17891_v52 = vmax.f32 %v13662_v62, 0.0  ;;  %v13742_v53 = vadd.f32 %v13519_v50, %v13625_v29  ;;  %v13747_v24 = vpop.permute.xlu0 %1831  ;;  %v12680_v62 = vld [vmem:[#allocation2 + $0xf4] ss:$8 sps:$4 sm:$0xff]  }
 0x310   :  { %v1015_v8 = vadd.f32 %v12627_v25, %v17889_v31  ;;  %10444 = vmatprep.subr.bf16.mxu0 %v1035_v34  ;;  %12233 = vmatprep.subr.bf16.mxu1 %v1035_v34  ;;  %v1034_v55 = vpack.c.bf16 %v1017_v39, %v1016_v28  ;;  %v13735_v25 = vadd.f32 %v13583_v9, %v13625_v29  ;;  %v12629_v34 = vld [vmem:[#allocation5 + $0xd0] sm:$0xff]  ;;  %v17893_v28 = vmax.f32 %v13665_v6, 0.0 }
 0x311   :  { %17890 = vst [vmem:[#allocation106_spill] sm:$0xff] %v13727_v27  ;;  %v1000_v3 = vadd.f32 %v12628_v57, %v17891_v52  ;;  %10445 = vmatpush3.bf16.msra.mxu0 %v1027_v32  ;;  %12241 = vmatpush3.bf16.msra.mxu1 %v1027_v32  ;;  %17894 = vst [vmem:[#allocation108_spill] sm:$0xff] %v13742_v53  ;;  %v12630_v57 = vld [vmem:[#allocation5 + $0x58] sm:$0xff]  ;;  %v17756_v52 = vmax.f32 %v13712_v61, 0.0  ;;  %v17943_v61 = vld [vmem:[#allocation71_spill] sm:$0xff] }
 0x312   :  { %17892 = vst [vmem:[#allocation107_spill] sm:$0xff] %v13735_v25  ;;  %v1014_v39 = vadd.f32 %v12629_v34, %v17893_v28  ;;  %10446 = vmatprep.subr.bf16.mxu0 %v1034_v55  ;;  %12234 = vmatprep.subr.bf16.mxu1 %v1034_v55  ;;  %v999_v32 = vadd.f32 %v12630_v57, %v17754_v60  ;;  %v12631_v28 = vld [vmem:[#allocation5 + $0xc8] sm:$0xff]  ;;  %v17897_v57 = vmax.f32 %v13694_v33, 0.0  ;;  %v13779_v34 = vpop.permute.xlu1 %1886 }
 0x313   :  { %v1026_v9 = vpack.c.bf16 %v1001_v43, %v1000_v3  ;;  %v13753_v55 = vadd.f32 %v13625_v29, %v13603_v0  ;;  %v1013_v50 = vadd.f32 %v12631_v28, %v17755_v54  ;;  %v13760_v43 = vadd.f32 %v13511_v48, %v13625_v29  ;;  %v12632_v3 = vld [vmem:[#allocation5 + $0x50] sm:$0xff]  ;;  %v13797_v56 = vpop.permute.xlu0 %1841 }
 0x314   :  { %v1033_v31 = vpack.c.bf16 %v1015_v8, %v1014_v39  ;;  %v998_v60 = vadd.f32 %v12632_v3, %v17897_v57  ;;  %v13768_v28 = vadd.f32 %v13625_v29, %v13591_v10  ;;  %v12633_v8 = vld [vmem:[#allocation5 + $0xc0] sm:$0xff]  ;;  %v17899_v39 = vmax.f32 %v13703_v22, 0.0 }
 0x315   :  { %17895 = vst [vmem:[#allocation109_spill] sm:$0xff] %v13753_v55  ;;  %17896 = vst [vmem:[#allocation110_spill] sm:$0xff] %v13760_v43  ;;  %10447 = vmatpush3.bf16.msra.mxu0 %v1026_v9  ;;  %12242 = vmatpush3.bf16.msra.mxu1 %v1026_v9  ;;  %v13775_v3 = vadd.f32 %v13625_v29, %v13523_v51  ;;  %v12634_v9 = vld [vmem:[#allocation5 + $0x48] sm:$0xff]  ;;  %v13784_v10 = vadd.f32 %v13571_v4, %v13625_v29 }
 0x316   :  { %17898 = vst [vmem:[#allocation111_spill] sm:$0xff] %v13768_v28  ;;  %v1012_v54 = vadd.f32 %v12633_v8, %v17899_v39  ;;  %10448 = vmatprep.subr.bf16.mxu0 %v1033_v31  ;;  %12235 = vmatprep.subr.bf16.mxu1 %v1033_v31  ;;  %v1025_v57 = vpack.c.bf16 %v999_v32, %v998_v60  ;;  %v12635_v31 = vld [vmem:[#allocation5 + $0xb8] sm:$0xff]  ;;  %v17902_v8 = vmax.f32 %v13719_v37, 0.0 }
 0x317   :  { %17900 = vst [vmem:[#allocation112_spill] sm:$0xff] %v13775_v3  ;;  %v997_v0 = vadd.f32 %v12634_v9, %v17756_v52  ;;  %17901 = vst [vmem:[#allocation113_spill] sm:$0xff] %v13784_v10  ;;  %v13793_v32 = vadd.f32 %v13625_v29, %v13515_v49  ;;  %v12636_v9 = vld [vmem:[#allocation5 + $0x40] sm:$0xff]  ;;  %v17904_v52 = vmax.f32 %v13727_v27, 0.0  ;;  %v13808_v49 = vadd.f32 %v13503_v46, %v13625_v29  ;;  %v12672_v37 = vld [vmem:[#allocation2 + $0x50] ss:$8 sps:$4 sm:$0xff]  }
 0x318   :  { %v1011_v39 = vadd.f32 %v12635_v31, %v17902_v8  ;;  %v1032_v48 = vpack.c.bf16 %v1013_v50, %v1012_v54  ;;  %v13801_v31 = vadd.f32 %v13556_v63, %v13625_v29  ;;  %v12637_v54 = vld [vmem:[#allocation5 + $0xb0] sm:$0xff]  ;;  %v17906_v50 = vmax.f32 %v13735_v25, 0.0  ;;  %v12406_v27 = vld [vmem:[#allocation7 + $0x58] sm:$0xff]  }
 0x319   :  { %17903 = vst [vmem:[#allocation114_spill] sm:$0xff] %v13793_v32  ;;  %v996_v4 = vadd.f32 %v12636_v9, %v17904_v52  ;;  %10449 = vmatpush3.bf16.msra.mxu0 %v1025_v57  ;;  %12243 = vmatpush3.bf16.msra.mxu1 %v1025_v57  ;;  %17907 = vst [vmem:[#allocation116_spill] sm:$0xff] %v13808_v49  ;;  %v12638_v52 = vld [vmem:[#allocation5 + $0x38] sm:$0xff]  ;;  %v17908_v57 = vmax.f32 %v13742_v53, 0.0  ;;  %v17761_v51 = vmax.f32 %v13775_v3, 0.0  ;;  %v17764_v2 = vmax.f32 %v13784_v10, 0.0 }
 0x31a   :  { %17905 = vst [vmem:[#allocation115_spill] sm:$0xff] %v13801_v31  ;;  %v1010_v8 = vadd.f32 %v12637_v54, %v17906_v50  ;;  %10450 = vmatprep.subr.bf16.mxu0 %v1032_v48  ;;  %12236 = vmatprep.subr.bf16.mxu1 %v1032_v48  ;;  %v13816_v54 = vadd.f32 %v13625_v29, %v13579_v7  ;;  %v12639_v50 = vld [vmem:[#allocation5 + $0xa8] sm:$0xff]  ;;  %v17910_v48 = vmax.f32 %v13753_v55, 0.0  ;;  %v17931_v55 = vld [vmem:[#allocation61_spill] sm:$0xff]  ;;  %v13972_v10 = vld [vmem:[%s17937_s23] ss:$0 sm:$0xff] }
 0x31b   :  { %v995_v9 = vadd.f32 %v12638_v52, %v17908_v57  ;;  %v1024_v63 = vpack.c.bf16 %v997_v0, %v996_v4  ;;  %v13822_v46 = vadd.f32 %v13495_v44, %v13625_v29  ;;  %v17912_v52 = vmax.f32 %v13760_v43, 0.0  ;;  %v13827_v4 = vpop.permute.xlu1 %1896  ;;  %v13843_v0 = vpop.permute.xlu0 %1851  ;;  %v17938_v25 = vld [vmem:[#allocation68_spill] sm:$0xff] }
 0x31c   :  { %17909 = vst [vmem:[#allocation117_spill] sm:$0xff] %v13816_v54  ;;  %v1009_v60 = vadd.f32 %v12639_v50, %v17910_v48  ;;  %v1031_v35 = vpack.c.bf16 %v1011_v39, %v1010_v8  ;;  %v13832_v50 = vadd.f32 %v13625_v29, %v13563_v1  ;;  %v12641_v39 = vld [vmem:[#allocation5 + $0xa0] sm:$0xff]  ;;  %v17914_v44 = vmax.f32 %v13768_v28, 0.0  ;;  %v12681_v53 = vld [vmem:[#allocation2 + $0xf0] ss:$8 sps:$4 sm:$0xff]  }
 0x31d   :  { %17911 = vst [vmem:[#allocation118_spill] sm:$0xff] %v13822_v46  ;;  %v994_v57 = vadd.f32 %v12640_v58, %v17912_v52  ;;  %10451 = vmatpush3.bf16.msra.mxu0 %v1024_v63  ;;  %12244 = vmatpush3.bf16.msra.mxu1 %v1024_v63  ;;  %v17767_v58 = vmax.f32 %v13808_v49, 0.0  ;;  %v13839_v48 = vadd.f32 %v13625_v29, %v13507_v47  ;;  %v12642_v52 = vld [vmem:[#allocation5 + $0x28] sm:$0xff]  ;;  %v17762_v1 = vmov 3  }
 0x31e   :  { %17913 = vst [vmem:[#allocation119_spill] sm:$0xff] %v13832_v50  ;;  %v1008_v8 = vadd.f32 %v12641_v39, %v17914_v44  ;;  %10452 = vmatprep.subr.bf16.mxu0 %v1031_v35  ;;  %12237 = vmatprep.subr.bf16.mxu1 %v1031_v35  ;;  %v993_v7 = vadd.f32 %v12642_v52, %v17761_v51  ;;  %v12643_v39 = vld [vmem:[#allocation5 + $0x98] sm:$0xff]  ;;  %v12644_v52 = vld [vmem:[#allocation5 + $0x20] sm:$0xff]  ;;  %v17917_v51 = vmax.f32 %v13793_v32, 0.0 }
 0x31f   :  { %17915 = vst [vmem:[#allocation120_spill] sm:$0xff] %v13839_v48  ;;  %v1023_v63 = vpack.c.bf16 %v995_v9, %v994_v57  ;;  %12317 = vset.pattern.permute.xlu1 %v17762_v1  ;;  %12316 = vset.pattern.permute.xlu0 %v17762_v1  ;;  %v1007_v35 = vadd.f32 %v12643_v39, %v17764_v2  ;;  %v12645_v39 = vld [vmem:[#allocation5 + $0x90] sm:$0xff]  ;;  %v17918_v2 = vmax.f32 %v13801_v31, 0.0  ;;  %v12646_v44 = vld [vmem:[#allocation5 + $0x18] sm:$0xff]  ;;  %v13865_v22 = vpop.permute.xlu1 %2559  ;;  %v17935_v28 = vld [vmem:[#allocation67_spill] sm:$0xff] }
 0x320   :  { %v1030_v47 = vpack.c.bf16 %v1009_v60, %v1008_v8  ;;  %4135 = vperm.xlu1 %12317, %v13376_v15   ;;  %4131 = vperm.xlu0 %12316, %v13368_v13   ;;  %v13855_v57 = vadd.f32 %v13625_v29, %v13499_v45  ;;  %v992_v1 = vadd.f32 %v12644_v52, %v17917_v51  ;;  %v17769_v8 = vmax.f32 %v13832_v50, 0.0  ;;  %v12647_v51 = vld [vmem:[#allocation5 + $0x88] sm:$0xff] }
 0x321   :  { %10453 = vmatpush3.bf16.msra.mxu0 %v1023_v63  ;;  %12245 = vmatpush3.bf16.msra.mxu1 %v1023_v63  ;;  %v1006_v60 = vadd.f32 %v12645_v39, %v17918_v2  ;;  %v991_v9 = vadd.f32 %v12646_v44, %v17767_v58  ;;  %v17768_v29 = vmax.f32 %v13839_v48, 0.0  ;;  %v17919_v63 = vmax.f32 %v13816_v54, 0.0  ;;  %v12648_v2 = vld [vmem:[#allocation5 + $0x10] sm:$0xff] }
 0x322   :  { %17916 = vst [vmem:[#allocation121_spill] sm:$0xff] %v13855_v57  ;;  %10454 = vmatprep.subr.bf16.mxu0 %v1030_v47  ;;  %12238 = vmatprep.subr.bf16.mxu1 %v1030_v47  ;;  %v1022_v45 = vpack.c.bf16 %v993_v7, %v992_v1  ;;  %v17920_v47 = vmax.f32 %v13822_v46, 0.0  ;;  %v17770_v44 = vmax.f32 %v13855_v57, 0.0  ;;  %v13874_v7 = vpop.permute.xlu0 %1861  ;;  %v12649_v1 = vld [vmem:[#allocation5 + $0x80] sm:$0xff]  ;;  %v12686_v57 = vld [vmem:[%s17829_s13 + $0x50] sm:$0xff]  ;;  %v12689_v46 = vld [vmem:[%s17829_s13 + $0x58] sm:$0xff] }
 0x323   :  { %v1005_v52 = vadd.f32 %v12647_v51, %v17919_v63  ;;  %v1029_v6 = vpack.c.bf16 %v1007_v35, %v1006_v60  ;;  %v1004_v58 = vadd.f32 %v12649_v1, %v17769_v8  ;;  %v12650_v60 = vld [vmem:[#allocation5 + $0x8] sm:$0xff]  ;;  %v12654_v1 = vld [vmem:[#allocation2 + $0x14] ss:$8 sps:$4 sm:$0xff]  }
 0x324   :  { %4139 = vperm.xlu1 %12317, %v13360_v11   ;;  %4143 = vperm.xlu0 %12316, %v13365_v12   ;;  %v990_v39 = vadd.f32 %v12648_v2, %v17920_v47  ;;  %v989_v12 = vadd.f32 %v12650_v60, %v17768_v29  ;;  %v13884_v2 = vpop.permute.xlu1 %2563  ;;  %v12405_v29 = vld [vmem:[#allocation7 + $0x60] sm:$0xff]  }
 0x325   :  { %10455 = vmatpush3.bf16.msra.mxu0 %v1022_v45  ;;  %12246 = vmatpush3.bf16.msra.mxu1 %v1022_v45  ;;  %v1028_v51 = vpack.c.bf16 %v1005_v52, %v1004_v58  ;;  %v12651_v45 = vld [vmem:[#allocation5] sm:$0xff] }
 0x326   :  { %10456 = vmatprep.subr.bf16.mxu0 %v1029_v6  ;;  %12239 = vmatprep.subr.bf16.mxu1 %v1029_v6  ;;  %v1021_v35 = vpack.c.bf16 %v991_v9, %v990_v39  ;;  %v988_v63 = vadd.f32 %v12651_v45, %v17770_v44  ;;  %v12386_v6 = vld [vmem:[%s17921_s14 + $0x38] sm:$0xff]   ;;  %v13887_v47 = vpop.permute.xlu0 %1871  ;;  %v12652_v52 = vld [vmem:[#allocation2] ss:$8 sps:$4 sm:$0xff]   ;;  %v12666_v8 = vld [vmem:[#allocation2 + $0x44] ss:$8 sps:$4 sm:$0xff]  }
 0x327   :  { %v12653_v39 = vld [vmem:[#allocation2 + $0x60] ss:$8 sps:$4 sm:$0xff]  }
 0x328   :  { %4147 = vperm.xlu1 %12317, %v13384_v17   ;;  %4151 = vperm.xlu0 %12316, %v13373_v14   ;;  %v1020_v9 = vpack.c.bf16 %v989_v12, %v988_v63  ;;  %v12387_v14 = vld [vmem:[%s17921_s14 + $0x30] sm:$0xff]   ;;  %v13892_v58 = vpop.permute.xlu1 %2571 }
 0x329   :  { %10457 = vmatpush3.bf16.msra.mxu0 %v1021_v35  ;;  %12247 = vmatpush3.bf16.msra.mxu1 %v1021_v35  ;;  %v12655_v35 = vld [vmem:[#allocation2 + $0x74] ss:$8 sps:$4 sm:$0xff]   ;;  %v12656_v63 = vld [vmem:[#allocation2 + $0x10] ss:$8 sps:$4 sm:$0xff]  }
 0x32a   :  { %10458 = vmatprep.subr.bf16.mxu0 %v1028_v51  ;;  %12240 = vmatprep.subr.bf16.mxu1 %v1028_v51  ;;  %v13894_v60 = vpop.permute.xlu0 %1881  ;;  %v12389_v51 = vld [vmem:[%s17921_s14 + $0x20] sm:$0xff]  }
 0x32c   :  { %4155 = vperm.xlu1 %12317, %v13392_v19   ;;  %4159 = vperm.xlu0 %12316, %v13381_v16   ;;  %v12388_v16 = vld [vmem:[%s17921_s14 + $0x28] sm:$0xff]   ;;  %v13899_v12 = vpop.permute.xlu1 %2579 }
 0x32d   :  { %10459 = vmatpush3.bf16.msra.mxu0 %v1020_v9  ;;  %12248 = vmatpush3.bf16.msra.mxu1 %v1020_v9  ;;  %v12658_v9 = vld [vmem:[#allocation2 + $0x24] ss:$8 sps:$4 sm:$0xff]  }
 0x32e   :  { %11449 = vmatprep.subr.bf16.mxu1 %v12386_v6  ;;  %v13903_v45 = vpop.permute.xlu0 %1891 }
 0x330   :  { %1069 = vmatmul.mubr.bf16.vlgmr.msra.gmra.mxu0 %v12652_v52  ;;  %1117 = vmatmul.mubr.bf16.vlgmr.msra.gmra.mxu1 %v12653_v39  ;;  %v17922_v52 = vld [vmem:[#allocation56_spill] sm:$0xff] }
 0x331   :  { %1076 = vmatprep.mubr.bf16.mxu0 %v12654_v1  ;;  %1124 = vmatprep.mubr.bf16.mxu1 %v12655_v35  ;;  %v12391_v1 = vld [vmem:[%s17921_s14 + $0x10] sm:$0xff]   ;;  %v12660_v35 = vld [vmem:[#allocation2 + $0x20] ss:$8 sps:$4 sm:$0xff]  }
 0x332   :  { %11450 = vmatpush3.bf16.msra.mxu1 %v12386_v6  ;;  %4163 = vperm.xlu1 %12317, %v13400_v21   ;;  %v12657_v6 = vld [vmem:[#allocation2 + $0x70] ss:$8 sps:$4 sm:$0xff]   ;;  %v13911_v39 = vpop.permute.xlu0 %2555 }
 0x333   :  { %11451 = vmatprep.subr.bf16.mxu1 %v12387_v14  ;;  %4167 = vperm.xlu0 %12316, %v13389_v18   ;;  %v12402_v21 = vld [vmem:[#allocation7 + $0x78] sm:$0xff]   ;;  %v12659_v18 = vld [vmem:[#allocation2 + $0x84] ss:$8 sps:$4 sm:$0xff]  }
 0x334   :  { %11381 = vmatprep.subr.bf16.mxu0 %v12402_v21 }
 0x335   :  { %11382 = vmatpush3.bf16.msra.mxu0 %v12402_v21  ;;  %v12663_v21 = vld [vmem:[#allocation2 + $0x94] ss:$8 sps:$4 sm:$0xff]  }
 0x336   :  { %11452 = vmatpush3.bf16.msra.mxu1 %v12387_v14  ;;  %4171 = vperm.xlu1 %12317, %v13408_v23   ;;  %v12390_v23 = vld [vmem:[%s17921_s14 + $0x18] sm:$0xff]   ;;  %v13907_v14 = vpop.permute.xlu1 %2587 }
 0x337   :  { %11453 = vmatprep.subr.bf16.mxu1 %v12388_v16  ;;  %4175 = vperm.xlu0 %12316, %v13397_v20   ;;  %v17923_v20 = vld [vmem:[#allocation54_spill] sm:$0xff] }
 0x338   :  { %1077 = vmatmul.mubr.bf16.gmra.mxu0 %v12656_v63  ;;  %1125 = vmatmul.mubr.bf16.gmra.mxu1 %v12657_v6  ;;  %v12661_v63 = vld [vmem:[#allocation2 + $0x80] ss:$8 sps:$4 sm:$0xff]  }
 0x339   :  { %1084 = vmatprep.mubr.bf16.mxu0 %v12658_v9  ;;  %1132 = vmatprep.mubr.bf16.mxu1 %v12659_v18  ;;  %v12404_v6 = vld [vmem:[#allocation7 + $0x68] sm:$0xff]   ;;  %v12662_v9 = vld [vmem:[#allocation2 + $0x34] ss:$8 sps:$4 sm:$0xff]  }
 0x33a   :  { %11454 = vmatpush3.bf16.msra.mxu1 %v12388_v16  ;;  %4179 = vperm.xlu1 %12317, %v17922_v52   ;;  %v12403_v16 = vld [vmem:[#allocation7 + $0x70] sm:$0xff]   ;;  %v13914_v18 = vpop.permute.xlu1 %2595  ;;  %v13917_v52 = vpop.permute.xlu0 %2567 }
 0x33b   :  { %11455 = vmatprep.subr.bf16.mxu1 %v12389_v51  ;;  %4183 = vperm.xlu0 %12316, %v17923_v20   ;;  %v17924_v20 = vld [vmem:[#allocation58_spill] sm:$0xff] }
 0x33c   :  { %11383 = vmatprep.subr.bf16.mxu0 %v12403_v16 }
 0x33d   :  { %11384 = vmatpush3.bf16.msra.mxu0 %v12403_v16  ;;  %v12667_v16 = vld [vmem:[#allocation2 + $0xa4] ss:$8 sps:$4 sm:$0xff]  }
 0x33e   :  { %11456 = vmatpush3.bf16.msra.mxu1 %v12389_v51  ;;  %v12392_v51 = vld [vmem:[%s17921_s14 + $0x8] sm:$0xff]   ;;  %11385 = vmatprep.subr.bf16.mxu0 %v12404_v6  ;;  %v13924_v44 = vpop.permute.xlu0 %2575 }
 0x33f   :  { %11457 = vmatprep.subr.bf16.mxu1 %v12390_v23  ;;  %4187 = vperm.xlu1 %12317, %v17924_v20   ;;  %v17926_v20 = vld [vmem:[#allocation60_spill] sm:$0xff] }
 0x340   :  { %1085 = vmatmul.mubr.bf16.gmra.mxu0 %v12660_v35  ;;  %1133 = vmatmul.mubr.bf16.gmra.mxu1 %v12661_v63  ;;  %v17925_v35 = vld [vmem:[#allocation55_spill] sm:$0xff] }
 0x341   :  { %1092 = vmatprep.mubr.bf16.mxu0 %v12662_v9  ;;  %1140 = vmatprep.mubr.bf16.mxu1 %v12663_v21  ;;  %v12393_v63 = vld [vmem:[%s17921_s14] sm:$0xff]   ;;  %v13922_v9 = vpop.permute.xlu1 %2603  ;;  %v12664_v21 = vld [vmem:[#allocation2 + $0x30] ss:$8 sps:$4 sm:$0xff]  }
 0x342   :  { %11458 = vmatpush3.bf16.msra.mxu1 %v12390_v23  ;;  %4191 = vperm.xlu0 %12316, %v17925_v35   ;;  %v12665_v23 = vld [vmem:[#allocation2 + $0x90] ss:$8 sps:$4 sm:$0xff]  }
 0x343   :  { %11459 = vmatprep.subr.bf16.mxu1 %v12391_v1  ;;  %11386 = vmatpush3.bf16.msra.mxu0 %v12404_v6  ;;  %v17927_v6 = vld [vmem:[#allocation57_spill] sm:$0xff] }
 0x344   :  { %11387 = vmatprep.subr.bf16.mxu0 %v12405_v29  ;;  %4195 = vperm.xlu1 %12317, %v17926_v20  }
 0x345   :  { %v13931_v35 = vpop.permute.xlu1 %2611 }
 0x346   :  { %11460 = vmatpush3.bf16.msra.mxu1 %v12391_v1  ;;  %v13927_v1 = vld [vmem:[%s17921_s14 + $0x78] sm:$0xff]   ;;  %4199 = vperm.xlu0 %12316, %v17927_v6   ;;  %v17929_v6 = vld [vmem:[#allocation59_spill] sm:$0xff] }
 0x347   :  { %11461 = vmatprep.subr.bf16.mxu1 %v12392_v51  ;;  %11388 = vmatpush3.bf16.msra.mxu0 %v12405_v29  ;;  %v17928_v29 = vld [vmem:[#allocation62_spill] sm:$0xff] }
 0x348   :  { %1093 = vmatmul.mubr.bf16.gmra.mxu0 %v12664_v21  ;;  %1141 = vmatmul.mubr.bf16.gmra.mxu1 %v12665_v23  ;;  %v12668_v21 = vld [vmem:[#allocation2 + $0x40] ss:$8 sps:$4 sm:$0xff]  }
 0x349   :  { %1100 = vmatprep.mubr.bf16.mxu0 %v12666_v8  ;;  %1148 = vmatprep.mubr.bf16.mxu1 %v12667_v16  ;;  %v13934_v8 = vpop.permute.xlu0 %2583  ;;  %v12669_v23 = vld [vmem:[#allocation2 + $0xa0] ss:$8 sps:$4 sm:$0xff]   ;;  %v12671_v16 = vld [vmem:[#allocation2 + $0xb4] ss:$8 sps:$4 sm:$0xff]   ;;  %v13937_v20 = vpop.permute.xlu1 %2619 }
 0x34a   :  { %11462 = vmatpush3.bf16.msra.mxu1 %v12392_v51  ;;  %v12670_v51 = vld [vmem:[#allocation2 + $0x54] ss:$8 sps:$4 sm:$0xff]   ;;  %4203 = vperm.xlu1 %12317, %v17928_v29  }
 0x34b   :  { %11463 = vmatprep.subr.bf16.mxu1 %v12393_v63  ;;  %4207 = vperm.xlu0 %12316, %v17929_v6   ;;  %v17934_v6 = vld [vmem:[#allocation63_spill] sm:$0xff] }
 0x34c   :  { %11389 = vmatprep.subr.bf16.mxu0 %v12406_v27 }
 0x34d   :  { %v13940_v48 = vpop.permute.xlu0 %2591  ;;  %11390 = vmatpush3.bf16.msra.mxu0 %v12406_v27 }
 0x34e   :  { %11464 = vmatpush3.bf16.msra.mxu1 %v12393_v63  ;;  %v17930_v63 = vld [vmem:[#allocation64_spill] sm:$0xff] }
 0x34f   :  { %11545 = vmatprep.subr.bf16.mxu1 %v13927_v1  ;;  %4211 = vperm.xlu1 %12317, %v17930_v63  }
 0x350   :  { %1101 = vmatmul.mubr.bf16.gmra.mxu0 %v12668_v21  ;;  %1149 = vmatmul.mubr.bf16.gmra.mxu1 %v12669_v23  ;;  %v12673_v21 = vld [vmem:[#allocation2 + $0xb0] ss:$8 sps:$4 sm:$0xff]   ;;  %v12674_v23 = vld [vmem:[#allocation2 + $0xc4] ss:$8 sps:$4 sm:$0xff]  }
 0x351   :  { %1108 = vmatprep.mubr.bf16.mxu0 %v12670_v51  ;;  %1156 = vmatprep.mubr.bf16.mxu1 %v12671_v16  ;;  %v13944_v51 = vpop.permute.xlu1 %2627  ;;  %v17933_v16 = vld [vmem:[#allocation66_spill] sm:$0xff]  ;;  %v13947_v29 = vpop.permute.xlu0 %2599 }
 0x352   :  { %4215 = vperm.xlu0 %12316, %v17931_v55   ;;  %v17936_v55 = vld [vmem:[#allocation65_spill] sm:$0xff] }
 0x353   :  { %4219 = vperm.xlu1 %12317, %v17933_v16  }
 0x355   :  { %v13951_v63 = vpop.permute.xlu1 %2635 }
 0x356   :  { %4223 = vperm.xlu0 %12316, %v17934_v6   ;;  %v13961_v6 = vld [vmem:[%s17932_s30] ss:$0 sm:$0xff] }
 0x357   :  { %4227 = vperm.xlu1 %12317, %v17935_v28  }
 0x358   :  { %1109 = vmatmul.mubr.bf16.gmra.mxu0 %v12672_v37  ;;  %1157 = vmatmul.mubr.bf16.gmra.mxu1 %v12673_v21  ;;  %v12675_v37 = vld [vmem:[#allocation2 + $0xc0] ss:$8 sps:$4 sm:$0xff]   ;;  %v12676_v21 = vld [vmem:[#allocation2 + $0xd4] ss:$8 sps:$4 sm:$0xff]  }
 0x359   :  { %1164 = vmatprep.mubr.bf16.mxu1 %v12674_v23  ;;  %v13954_v23 = vpop.permute.xlu0 %2607  ;;  %v13958_v16 = vpop.permute.xlu1 %2643 }
 0x35a   :  { %4231 = vperm.xlu0 %12316, %v17936_v55   ;;  %v12677_v55 = vld [vmem:[#allocation2 + $0xd0] ss:$8 sps:$4 sm:$0xff]  }
 0x35b   :  { %4235 = vperm.xlu1 %12317, %v17938_v25   ;;  %v17940_v25 = vld [vmem:[#allocation75_spill] sm:$0xff] }
 0x35d   :  { %v13964_v28 = vpop.permute.xlu0 %2615  ;;  %v13975_v50 = vpop.permute.xlu1 %2651 }
 0x35e   :  { %4239 = vperm.xlu0 %12316, %v13461_v36   ;;  %v1906_v36 = vmul.f32 %v13961_v6, %v17940_v25  ;;  %v17942_v25 = vld [vmem:[#allocation70_spill] sm:$0xff] }
 0x35f   :  { %4243 = vperm.xlu1 %12317, %v13480_v41   ;;  %v1908_v26 = vmul.f32 %v13961_v6, %v17942_v25 }
 0x360   :  { %1165 = vmatmul.mubr.bf16.gmra.mxu1 %v12675_v37  ;;  %v12678_v37 = vld [vmem:[#allocation2 + $0xe4] ss:$8 sps:$4 sm:$0xff]   ;;  %v1945_v41 = vadd.f32 %v13972_v10, %v1906_v36 }
 0x361   :  { %1172 = vmatprep.mubr.bf16.mxu1 %v12676_v21  ;;  %v17939_v21 = vld [vmem:[#allocation72_spill] sm:$0xff]  ;;  %v13990_v33 = vpop.permute.xlu1 %2659 }
 0x362   :  { %4247 = vperm.xlu0 %12316, %v13469_v38   ;;  %v1905_v54 = vmul.f32 %v13961_v6, %v17939_v21  ;;  %v17941_v21 = vld [vmem:[#allocation69_spill] sm:$0xff]  ;;  %v1977_v30 = vmax.f32 %v1945_v41, 0.0 }
 0x363   :  { %4251 = vperm.xlu1 %12317, %v13485_v42   ;;  %v1907_v31 = vmul.f32 %v13961_v6, %v17941_v21  ;;  %v13145_v21 = vmov 4  }
 0x364   :  { %v1944_v38 = vadd.f32 %v13972_v10, %v1905_v54  ;;  %v17944_v54 = vld [vmem:[#allocation77_spill] sm:$0xff] }
 0x365   :  { %v1909_v36 = vmul.f32 %v13961_v6, %v17944_v54  ;;  %v1946_v25 = vadd.f32 %v13972_v10, %v1907_v31  ;;  %v12407_v54 = vld [vmem:[#allocation7 + $0x50] sm:$0xff]   ;;  %v14000_v3 = vpop.permute.xlu1 %2667 }
 0x366   :  { %4255 = vperm.xlu0 %12316, %v13477_v40   ;;  %v1976_v42 = vmax.f32 %v1944_v38, 0.0  ;;  %v1910_v40 = vmul.f32 %v13961_v6, %v17943_v61  ;;  %11391 = vmatprep.subr.bf16.mxu0 %v12407_v54 }
 0x367   :  { %12318 = vset.pattern.permute.xlu1 %v13145_v21  ;;  %v1948_v38 = vadd.f32 %v13972_v10, %v1909_v36  ;;  %v1978_v31 = vmax.f32 %v1946_v25, 0.0  ;;  %11392 = vmatpush3.bf16.msra.mxu0 %v12407_v54 }
 0x368   :  { %1173 = vmatmul.mubr.bf16.gmra.mxu1 %v12677_v55  ;;  %v13980_v55 = vpop.permute.xlu0 %2623  ;;  %4919 = vperm.xlu1 %12318, %v13368_v13   ;;  %v1949_v61 = vadd.f32 %v13972_v10, %v1910_v40  ;;  %v2008_v41 = vpack.c.bf16 %v1977_v30, %v1976_v42  ;;  %v17946_v13 = vld [vmem:[#allocation80_spill] sm:$0xff]  ;;  %v17947_v30 = vld [vmem:[#allocation74_spill] sm:$0xff] }
 0x369   :  { %1180 = vmatprep.mubr.bf16.mxu1 %v12678_v37  ;;  %v12679_v37 = vld [vmem:[#allocation2 + $0xe0] ss:$8 sps:$4 sm:$0xff]   ;;  %v1911_v40 = vmul.f32 %v13961_v6, %v17946_v13  ;;  %v1914_v42 = vmul.f32 %v13961_v6, %v17947_v30  ;;  %v14018_v30 = vpop.permute.xlu1 %2675 }
 0x36a   :  { %12319 = vset.pattern.permute.xlu0 %v13145_v21  ;;  %v1981_v36 = vmax.f32 %v1949_v61, 0.0  ;;  %v1980_v21 = vmax.f32 %v1948_v38, 0.0  ;;  %v12409_v13 = vld [vmem:[#allocation7 + $0x40] sm:$0xff]  }
 0x36b   :  { %4923 = vperm.xlu0 %12319, %v13376_v15   ;;  %v17948_v15 = vld [vmem:[#allocation82_spill] sm:$0xff]  ;;  %v1950_v54 = vadd.f32 %v13972_v10, %v1911_v40  ;;  %v1953_v38 = vadd.f32 %v13972_v10, %v1914_v42  ;;  %v17950_v40 = vld [vmem:[#allocation84_spill] sm:$0xff] }
 0x36c   :  { %v1913_v43 = vmul.f32 %v13961_v6, %v17948_v15  ;;  %4927 = vperm.xlu1 %12318, %v13360_v11   ;;  %v12682_v15 = vld [vmem:[%s17829_s13 + $0x18] sm:$0xff]  ;;  %v12395_v11 = vld [vmem:[%s17921_s14 + $0x70] sm:$0xff]  }
 0x36d   :  { %v1985_v42 = vmax.f32 %v1953_v38, 0.0  ;;  %v12684_v38 = vld [vmem:[%s17829_s13 + $0x40] sm:$0xff] }
 0x36f   :  { %4935 = vperm.xlu0 %12319, %v13384_v17  }
 0x370   :  { %1181 = vmatmul.mubr.bf16.gmra.mxu1 %v12679_v37  ;;  %v13992_v37 = vpop.permute.xlu0 %2631  ;;  %4931 = vperm.xlu1 %12318, %v12682_v15   ;;  %v17952_v15 = vld [vmem:[#allocation86_spill] sm:$0xff] }
 0x371   :  { %1188 = vmatprep.mubr.bf16.mxu1 %v12680_v62  ;;  %v1947_v62 = vadd.f32 %v13972_v10, %v1908_v26  ;;  %v17945_v26 = vld [vmem:[#allocation73_spill] sm:$0xff]  ;;  %v1917_v49 = vmul.f32 %v13961_v6, %v17952_v15  ;;  %v12397_v15 = vld [vmem:[%s17921_s14 + $0x60] sm:$0xff]  }
 0x372   :  { %v1912_v27 = vmul.f32 %v13961_v6, %v17945_v26  ;;  %v2010_v26 = vpack.c.bf16 %v1981_v36, %v1980_v21  ;;  %v1915_v36 = vmul.f32 %v13961_v6, %v17950_v40  ;;  %v17951_v21 = vld [vmem:[#allocation78_spill] sm:$0xff] }
 0x373   :  { %v1979_v32 = vmax.f32 %v1947_v62, 0.0  ;;  %4943 = vperm.xlu0 %12319, %v13392_v19   ;;  %v1918_v19 = vmul.f32 %v13961_v6, %v17951_v21 }
 0x374   :  { %v14010_v25 = vpop.permute.xlu0 %2639  ;;  %v1951_v61 = vadd.f32 %v13972_v10, %v1912_v27 }
 0x375   :  { %v2009_v62 = vpack.c.bf16 %v1979_v32, %v1978_v31  ;;  %v17949_v31 = vld [vmem:[#allocation76_spill] sm:$0xff] }
 0x376   :  { %v1983_v32 = vmax.f32 %v1951_v61, 0.0  ;;  %v1916_v27 = vmul.f32 %v13961_v6, %v17949_v31  ;;  %v12396_v61 = vld [vmem:[%s17921_s14 + $0x68] sm:$0xff]   ;;  %v1957_v31 = vadd.f32 %v13972_v10, %v1918_v19 }
 0x377   :  { %4951 = vperm.xlu0 %12319, %v12684_v38   ;;  %v17953_v38 = vld [vmem:[#allocation79_spill] sm:$0xff] }
 0x378   :  { %1189 = vmatmul.mubr.bf16.gmra.mxu1 %v12681_v53  ;;  %v12408_v53 = vld [vmem:[#allocation7 + $0x48] sm:$0xff]   ;;  %v14023_v17 = vpop.permute.xlu0 %2647 }
 0x379   :  { %11465 = vmatprep.mubr.bf16.mxu1 %v2008_v41  ;;  %11393 = vmatprep.subr.bf16.mxu0 %v12408_v53  ;;  %v1952_v41 = vadd.f32 %v13972_v10, %v1913_v43  ;;  %v1982_v43 = vmax.f32 %v1950_v54, 0.0  ;;  %v14036_v54 = vpop.permute.xlu1 %3343 }
 0x37a   :  { %11394 = vmatpush3.bf16.msra.mxu0 %v12408_v53 }
 0x37b   :  { %11395 = vmatprep.subr.bf16.mxu0 %v12409_v13  ;;  %v1984_v53 = vmax.f32 %v1952_v41, 0.0  ;;  %v1954_v41 = vadd.f32 %v13972_v10, %v1915_v36  ;;  %4959 = vperm.xlu0 %12319, %v12686_v57   ;;  %v1989_v36 = vmax.f32 %v1957_v31, 0.0  ;;  %v12688_v31 = vld [vmem:[%s17829_s13 + $0x60] sm:$0xff] }
 0x37c   :  { %v14043_v21 = vpop.permute.xlu0 %2655 }
 0x37d   :  { %v2012_v40 = vpack.c.bf16 %v1985_v42, %v1984_v53  ;;  %v17955_v42 = vld [vmem:[#allocation81_spill] sm:$0xff]  ;;  %v14056_v57 = vpop.permute.xlu1 %3351 }
 0x37e   :  { %11396 = vmatpush3.bf16.msra.mxu0 %v12409_v13  ;;  %v1955_v13 = vadd.f32 %v13972_v10, %v1916_v27  ;;  %v1922_v19 = vmul.f32 %v13961_v6, %v17955_v42  ;;  %v12399_v42 = vld [vmem:[%s17921_s14 + $0x50] sm:$0xff]  }
 0x37f   :  { %4967 = vperm.xlu0 %12319, %v12688_v31   ;;  %v12690_v31 = vld [vmem:[%s17829_s13 + $0x70] sm:$0xff] }
 0x380   :  { %11466 = vmatmul.mubr.bf16.vlgmr.msra.gmra.mxu1 %v2009_v62  ;;  %v12683_v62 = vld [vmem:[%s17829_s13 + $0x28] sm:$0xff]  ;;  %v1987_v27 = vmax.f32 %v1955_v13, 0.0  ;;  %v12398_v13 = vld [vmem:[%s17921_s14 + $0x58] sm:$0xff]  }
 0x381   :  { %11469 = vmatprep.mubr.bf16.mxu1 %v2010_v26  ;;  %11546 = vmatpush3.bf16.msra.mxu1 %v13927_v1  ;;  %v2011_v26 = vpack.c.bf16 %v1983_v32, %v1982_v43  ;;  %v1956_v1 = vadd.f32 %v13972_v10, %v1917_v49  ;;  %v1920_v32 = vmul.f32 %v13961_v6, %v17953_v38  ;;  %v1986_v43 = vmax.f32 %v1954_v41, 0.0  ;;  %v17954_v49 = vld [vmem:[#allocation94_spill] sm:$0xff]  ;;  %v12687_v41 = vld [vmem:[%s17829_s13 + $0x48] sm:$0xff] }
 0x382   :  { %11547 = vmatprep.subr.bf16.mxu1 %v12395_v11  ;;  %4939 = vperm.xlu1 %12318, %v12683_v62   ;;  %v12685_v62 = vld [vmem:[%s17829_s13 + $0x38] sm:$0xff] }
 0x383   :  { %v1988_v53 = vmax.f32 %v1956_v1, 0.0  ;;  %v1959_v1 = vadd.f32 %v13972_v10, %v1920_v32  ;;  %v2013_v38 = vpack.c.bf16 %v1987_v27, %v1986_v43  ;;  %4975 = vperm.xlu0 %12319, %v12690_v31  }
 0x385   :  { %11548 = vmatpush3.bf16.msra.mxu1 %v12395_v11  ;;  %v1919_v11 = vmul.f32 %v13961_v6, %v17954_v49  ;;  %v2014_v49 = vpack.c.bf16 %v1989_v36, %v1988_v53  ;;  %v1991_v32 = vmax.f32 %v1959_v1, 0.0  ;;  %v12400_v53 = vld [vmem:[%s17921_s14 + $0x48] sm:$0xff]   ;;  %v17957_v1 = vld [vmem:[#allocation85_spill] sm:$0xff] }
 0x386   :  { %11549 = vmatprep.subr.bf16.mxu1 %v12396_v61  ;;  %4947 = vperm.xlu1 %12318, %v12685_v62   ;;  %v1921_v62 = vmul.f32 %v13961_v6, %v13700_v59  ;;  %v1961_v59 = vadd.f32 %v13972_v10, %v1922_v19 }
 0x388   :  { %11470 = vmatmul.mubr.bf16.gmra.mxu1 %v2011_v26  ;;  %v14060_v26 = vpop.permute.xlu0 %2663  ;;  %v1993_v27 = vmax.f32 %v1961_v59, 0.0 }
 0x389   :  { %11473 = vmatprep.mubr.bf16.mxu1 %v2012_v40  ;;  %11550 = vmatpush3.bf16.msra.mxu1 %v12396_v61  ;;  %v1958_v40 = vadd.f32 %v13972_v10, %v1919_v11  ;;  %v1960_v61 = vadd.f32 %v13972_v10, %v1921_v62  ;;  %v12691_v62 = vld [vmem:[%s17829_s13 + $0x68] sm:$0xff] }
 0x38a   :  { %11551 = vmatprep.subr.bf16.mxu1 %v12397_v15  ;;  %4955 = vperm.xlu1 %12318, %v12687_v41   ;;  %v14069_v41 = vpop.permute.xlu1 %3355 }
 0x38b   :  { %v1990_v11 = vmax.f32 %v1958_v40, 0.0  ;;  %v1992_v43 = vmax.f32 %v1960_v61, 0.0  ;;  %v1926_v40 = vmul.f32 %v13961_v6, %v17957_v1 }
 0x38c   :  { %v14072_v36 = vpop.permute.xlu0 %2671 }
 0x38d   :  { %11552 = vmatpush3.bf16.msra.mxu1 %v12397_v15  ;;  %v17956_v15 = vld [vmem:[#allocation83_spill] sm:$0xff]  ;;  %v2015_v59 = vpack.c.bf16 %v1991_v32, %v1990_v11  ;;  %v2016_v61 = vpack.c.bf16 %v1993_v27, %v1992_v43  ;;  %v12694_v32 = vld [vmem:[%s17829_s13 + $0x90] sm:$0xff]  ;;  %v17959_v11 = vld [vmem:[#allocation90_spill] sm:$0xff] }
 0x38e   :  { %11553 = vmatprep.subr.bf16.mxu1 %v12398_v13  ;;  %4963 = vperm.xlu1 %12318, %v12689_v46   ;;  %v1924_v19 = vmul.f32 %v13961_v6, %v17956_v15  ;;  %v1923_v46 = vmul.f32 %v13961_v6, %v13747_v24  ;;  %v12401_v15 = vld [vmem:[%s17921_s14 + $0x40] sm:$0xff]   ;;  %v1928_v27 = vmul.f32 %v13961_v6, %v17959_v11 }
 0x390   :  { %11474 = vmatmul.mubr.bf16.gmra.mxu1 %v2013_v38  ;;  %v12692_v38 = vld [vmem:[%s17829_s13 + $0x80] sm:$0xff]  ;;  %v1963_v24 = vadd.f32 %v13972_v10, %v1924_v19  ;;  %v1962_v31 = vadd.f32 %v13972_v10, %v1923_v46  ;;  %v1927_v19 = vmul.f32 %v13961_v6, %v13843_v0  ;;  %v14101_v46 = vld [vmem:[%s17921_s14 + $0xb8] sm:$0xff]  }
 0x391   :  { %11477 = vmatprep.mubr.bf16.mxu1 %v2014_v49  ;;  %11554 = vmatpush3.bf16.msra.mxu1 %v12398_v13  ;;  %v1925_v13 = vmul.f32 %v13961_v6, %v13797_v56  ;;  %v14085_v49 = vpop.permute.xlu1 %3363  ;;  %v1965_v56 = vadd.f32 %v13972_v10, %v1926_v40  ;;  %v12695_v40 = vld [vmem:[%s17829_s13 + $0x88] sm:$0xff]  ;;  %v12696_v0 = vld [vmem:[%s17829_s13 + $0xa0] sm:$0xff] }
 0x392   :  { %11555 = vmatprep.subr.bf16.mxu1 %v12399_v42  ;;  %4971 = vperm.xlu1 %12318, %v12691_v62   ;;  %17958 = vst [vmem:[#allocation56_spill] sm:$0xff] %v14085_v49  ;;  %v12693_v62 = vld [vmem:[%s17829_s13 + $0x78] sm:$0xff]  ;;  %v1994_v43 = vmax.f32 %v1962_v31, 0.0  ;;  %v1966_v11 = vadd.f32 %v13972_v10, %v1927_v19  ;;  %v12698_v49 = vld [vmem:[%s17829_s13 + $0xb0] sm:$0xff] }
 0x393   :  { %4983 = vperm.xlu0 %12319, %v12692_v38   ;;  %v1964_v1 = vadd.f32 %v13972_v10, %v1925_v13  ;;  %v14093_v38 = vpop.permute.xlu0 %2679  ;;  %v1997_v13 = vmax.f32 %v1965_v56, 0.0 }
 0x394   :  { %v1998_v19 = vmax.f32 %v1966_v11, 0.0 }
 0x395   :  { %11556 = vmatpush3.bf16.msra.mxu1 %v12399_v42  ;;  %v1995_v42 = vmax.f32 %v1963_v24, 0.0  ;;  %v14110_v31 = vpop.permute.xlu1 %3371 }
 0x396   :  { %11557 = vmatprep.subr.bf16.mxu1 %v12400_v53  ;;  %4979 = vperm.xlu1 %12318, %v12693_v62   ;;  %v17960_v62 = vld [vmem:[#allocation100_spill] sm:$0xff] }
 0x397   :  { %4991 = vperm.xlu0 %12319, %v12694_v32   ;;  %v14108_v24 = vpop.permute.xlu0 %3347  ;;  %v1967_v32 = vadd.f32 %v13972_v10, %v1928_v27  ;;  %v2017_v56 = vpack.c.bf16 %v1995_v42, %v1994_v43  ;;  %v1932_v43 = vmul.f32 %v13961_v6, %v13731_v5 }
 0x398   :  { %11478 = vmatmul.mubr.bf16.gmra.mxu1 %v2015_v59  ;;  %v1930_v59 = vmul.f32 %v13961_v6, %v17960_v62 }
 0x399   :  { %11481 = vmatprep.mubr.bf16.mxu1 %v2016_v61  ;;  %11558 = vmatpush3.bf16.msra.mxu1 %v12400_v53  ;;  %v1996_v61 = vmax.f32 %v1964_v1, 0.0  ;;  %v1929_v53 = vmul.f32 %v13961_v6, %v13874_v7  ;;  %v12697_v1 = vld [vmem:[%s17829_s13 + $0x98] sm:$0xff]  ;;  %v14122_v27 = vpop.permute.xlu1 %3379  ;;  %v1999_v42 = vmax.f32 %v1967_v32, 0.0  ;;  %v12700_v32 = vld [vmem:[%s17829_s13 + $0xc0] sm:$0xff] }
 0x39a   :  { %11559 = vmatprep.subr.bf16.mxu1 %v12401_v15  ;;  %4987 = vperm.xlu1 %12318, %v12695_v40   ;;  %v1969_v40 = vadd.f32 %v13972_v10, %v1930_v59  ;;  %v1931_v59 = vmul.f32 %v13961_v6, %v13887_v47  ;;  %v12701_v47 = vld [vmem:[%s17829_s13 + $0xb8] sm:$0xff] }
 0x39b   :  { %4999 = vperm.xlu0 %12319, %v12696_v0   ;;  %v1968_v7 = vadd.f32 %v13972_v10, %v1929_v53  ;;  %v2018_v62 = vpack.c.bf16 %v1997_v13, %v1996_v61  ;;  %v12699_v13 = vld [vmem:[%s17829_s13 + $0xa8] sm:$0xff]  ;;  %v1933_v0 = vmul.f32 %v13961_v6, %v13894_v60  ;;  %v2019_v11 = vpack.c.bf16 %v1999_v42, %v1998_v19 }
 0x39c   :  { %v2001_v61 = vmax.f32 %v1969_v40, 0.0  ;;  %v1970_v5 = vadd.f32 %v13972_v10, %v1931_v59 }
 0x39d   :  { %11560 = vmatpush3.bf16.msra.mxu1 %v12401_v15  ;;  %v14120_v15 = vpop.permute.xlu0 %3359  ;;  %v2000_v53 = vmax.f32 %v1968_v7, 0.0  ;;  %v14144_v60 = vpop.permute.xlu1 %3387 }
 0x39e   :  { %11641 = vmatprep.subr.bf16.mxu1 %v14101_v46  ;;  %4995 = vperm.xlu1 %12318, %v12697_v1   ;;  %v14137_v1 = vld [vmem:[%s17932_s30 + $0x1] ss:$0 sm:$0xff] }
 0x39f   :  { %5007 = vperm.xlu0 %12319, %v12698_v49   ;;  %v1934_v49 = vmul.f32 %v13961_v6, %v13779_v34  ;;  %v1972_v34 = vadd.f32 %v13972_v10, %v1933_v0  ;;  %v2020_v7 = vpack.c.bf16 %v2001_v61, %v2000_v53  ;;  %v2689_v42 = vmul.f32 %v14137_v1, %v13865_v22  ;;  %v12703_v0 = vld [vmem:[%s17829_s13 + $0xc8] sm:$0xff] }
 0x3a0   :  { %11482 = vmatmul.mubr.bf16.gmra.mxu1 %v2017_v56  ;;  %v1971_v56 = vadd.f32 %v13972_v10, %v1932_v43  ;;  %v12702_v43 = vld [vmem:[%s17829_s13 + $0xd0] sm:$0xff]  ;;  %v2688_v19 = vmul.f32 %v14137_v1, %v13911_v39  ;;  %v2002_v61 = vmax.f32 %v1970_v5, 0.0  ;;  %v1935_v53 = vmul.f32 %v13961_v6, %v13903_v45 }
 0x3a1   :  { %11485 = vmatprep.mubr.bf16.mxu1 %v2018_v62  ;;  %v1973_v40 = vadd.f32 %v13972_v10, %v1934_v49  ;;  %v14142_v62 = vpop.permute.xlu0 %3367  ;;  %v14154_v49 = vld [vmem:[%s17937_s23 + $0x1] ss:$0 sm:$0xff]  ;;  %v2004_v22 = vmax.f32 %v1972_v34, 0.0  ;;  %v17794_v5 = vmov 0.0   ;;  %v12705_v34 = vld [vmem:[%s17829_s13 + $0xd8] sm:$0xff] }
 0x3a2   :  { %5003 = vperm.xlu1 %12318, %v12699_v13   ;;  %v2003_v59 = vmax.f32 %v1971_v56, 0.0  ;;  %v1936_v13 = vmul.f32 %v13961_v6, %v13827_v4  ;;  %v2729_v39 = vadd.f32 %v14154_v49, %v2689_v42  ;;  %v2728_v56 = vadd.f32 %v14154_v49, %v2688_v19  ;;  %v14164_v4 = vpop.permute.xlu1 %3395  ;;  %11429 = vmatprep.subr.bf16.mxu0 %v17794_v5 }
 0x3a3   :  { %5015 = vperm.xlu0 %12319, %v12700_v32   ;;  %v2005_v32 = vmax.f32 %v1973_v40, 0.0  ;;  %v1974_v6 = vadd.f32 %v13972_v10, %v1935_v53  ;;  %v2690_v42 = vmul.f32 %v14137_v1, %v13884_v2  ;;  %v2691_v19 = vmul.f32 %v14137_v1, %v13917_v52  ;;  %v12707_v53 = vld [vmem:[%s17829_s13 + $0xe8] sm:$0xff] }
 0x3a4   :  { %v1975_v45 = vadd.f32 %v13972_v10, %v1936_v13  ;;  %v2021_v40 = vpack.c.bf16 %v2003_v59, %v2002_v61  ;;  %v2692_v13 = vmul.f32 %v14137_v1, %v13892_v58  ;;  %v2693_v10 = vmul.f32 %v14137_v1, %v13924_v44 }
 0x3a5   :  { %v2006_v61 = vmax.f32 %v1974_v6, 0.0  ;;  %v2730_v52 = vadd.f32 %v14154_v49, %v2690_v42  ;;  %v2731_v58 = vadd.f32 %v14154_v49, %v2691_v19  ;;  %v2696_v19 = vmul.f32 %v14137_v1, %v13907_v14 }
 0x3a6   :  { %5011 = vperm.xlu1 %12318, %v12701_v47   ;;  %v14162_v47 = vpop.permute.xlu0 %3375  ;;  %v2007_v59 = vmax.f32 %v1975_v45, 0.0  ;;  %v14182_v2 = vpop.permute.xlu1 %3403  ;;  %v12708_v45 = vld [vmem:[%s17829_s13 + $0xf8] sm:$0xff] }
 0x3a7   :  { %5023 = vperm.xlu0 %12319, %v12702_v43   ;;  %v12706_v43 = vld [vmem:[%s17829_s13 + $0xf0] sm:$0xff]  ;;  %v2762_v6 = vmax.f32 %v2730_v52, 0.0 }
 0x3a8   :  { %11486 = vmatmul.mubr.bf16.gmra.mxu1 %v2019_v11  ;;  %v12704_v11 = vld [vmem:[%s17829_s13 + $0xe0] sm:$0xff]  ;;  %v2023_v44 = vpack.c.bf16 %v2007_v59, %v2006_v61  ;;  %v2736_v61 = vadd.f32 %v14154_v49, %v2696_v19  ;;  %v12411_v52 = vld [vmem:[%s17921_s14 + $0xb0] sm:$0xff]  }
 0x3a9   :  { %11489 = vmatprep.mubr.bf16.mxu1 %v2020_v7  ;;  %v2022_v7 = vpack.c.bf16 %v2005_v32, %v2004_v22  ;;  %v17961_v22 = vmov 0  }
 0x3aa   :  { %5019 = vperm.xlu1 %12318, %v12703_v0   ;;  %v2761_v0 = vmax.f32 %v2729_v39, 0.0  ;;  %v14180_v32 = vpop.permute.xlu0 %3383  ;;  %v2732_v39 = vadd.f32 %v14154_v49, %v2692_v13 }
 0x3ab   :  { %5031 = vperm.xlu0 %12319, %v12704_v11   ;;  %v2760_v11 = vmax.f32 %v2728_v56, 0.0  ;;  %v2733_v56 = vadd.f32 %v14154_v49, %v2693_v10  ;;  %v14200_v10 = vpop.permute.xlu1 %3411 }
 0x3ac   :  { %v2764_v42 = vmax.f32 %v2732_v39, 0.0 }
 0x3ad   :  { %v2765_v13 = vmax.f32 %v2733_v56, 0.0  ;;  %v2698_v56 = vmul.f32 %v14137_v1, %v13914_v18 }
 0x3ae   :  { %5027 = vperm.xlu1 %12318, %v12705_v34   ;;  %v2694_v34 = vmul.f32 %v14137_v1, %v13899_v12 }
 0x3af   :  { %5039 = vperm.xlu0 %12319, %v12706_v43   ;;  %v2695_v43 = vmul.f32 %v14137_v1, %v13934_v8  ;;  %v2738_v18 = vadd.f32 %v14154_v49, %v2698_v56  ;;  %v12414_v56 = vld [vmem:[%s17921_s14 + $0x98] sm:$0xff]  }
 0x3b0   :  { %11490 = vmatmul.mubr.bf16.gmra.mxu1 %v2021_v40  ;;  %v2792_v40 = vpack.c.bf16 %v2761_v0, %v2760_v11  ;;  %v2697_v0 = vmul.f32 %v14137_v1, %v13940_v48  ;;  %v14198_v11 = vpop.permute.xlu0 %3391  ;;  %v2734_v12 = vadd.f32 %v14154_v49, %v2694_v34  ;;  %v14210_v48 = vpop.permute.xlu1 %3419 }
 0x3b1   :  { %11493 = vmatprep.mubr.bf16.mxu1 %v2022_v7  ;;  %v2763_v7 = vmax.f32 %v2731_v58, 0.0  ;;  %v2735_v8 = vadd.f32 %v14154_v49, %v2695_v43  ;;  %v12412_v43 = vld [vmem:[%s17921_s14 + $0xa8] sm:$0xff]  }
 0x3b2   :  { %5035 = vperm.xlu1 %12318, %v12707_v53   ;;  %v2737_v14 = vadd.f32 %v14154_v49, %v2697_v0  ;;  %v2794_v53 = vpack.c.bf16 %v2765_v13, %v2764_v42  ;;  %v2766_v39 = vmax.f32 %v2734_v12, 0.0 }
 0x3b3   :  { %12320 = vset.pattern.permute.xlu0 %v17961_v22  ;;  %v2793_v59 = vpack.c.bf16 %v2763_v7, %v2762_v6  ;;  %v2700_v6 = vmul.f32 %v14137_v1, %v13922_v9  ;;  %v2701_v7 = vmul.f32 %v14137_v1, %v13954_v23  ;;  %v12413_v23 = vld [vmem:[%s17921_s14 + $0xa0] sm:$0xff]  }
 0x3b4   :  { %v14208_v58 = vpop.permute.xlu0 %3399  ;;  %v2769_v34 = vmax.f32 %v2737_v14, 0.0  ;;  %v14228_v12 = vpop.permute.xlu1 %3427 }
 0x3b5   :  { %v2741_v13 = vadd.f32 %v14154_v49, %v2701_v7 }
 0x3b6   :  { %5043 = vperm.xlu1 %12318, %v12708_v45   ;;  %v2768_v45 = vmax.f32 %v2736_v61, 0.0  ;;  %v2703_v61 = vmul.f32 %v14137_v1, %v13964_v28 }
 0x3b8   :  { %11494 = vmatmul.mubr.bf16.gmra.mxu1 %v2023_v44  ;;  %v2699_v44 = vmul.f32 %v14137_v1, %v13947_v29  ;;  %v2740_v29 = vadd.f32 %v14154_v49, %v2700_v6  ;;  %v2796_v9 = vpack.c.bf16 %v2769_v34, %v2768_v45  ;;  %v14226_v0 = vpop.permute.xlu0 %3407  ;;  %v2743_v45 = vadd.f32 %v14154_v49, %v2703_v61 }
 0x3b9   :  { %11561 = vmatprep.mubr.bf16.mxu1 %v2792_v40  ;;  %v2767_v40 = vmax.f32 %v2735_v8, 0.0 }
 0x3ba   :  { %12321 = vset.pattern.permute.xlu1 %v17961_v22  ;;  %v2739_v42 = vadd.f32 %v14154_v49, %v2699_v44  ;;  %v2772_v14 = vmax.f32 %v2740_v29, 0.0 }
 0x3bb   :  { %v2795_v19 = vpack.c.bf16 %v2767_v40, %v2766_v39  ;;  %v2705_v39 = vmul.f32 %v14137_v1, %v13980_v55  ;;  %v12415_v55 = vld [vmem:[%s17921_s14 + $0x90] sm:$0xff]  }
 0x3bc   :  { %v2771_v8 = vmax.f32 %v2739_v42, 0.0  ;;  %v14240_v40 = vpop.permute.xlu0 %3415 }
 0x3bd   :  { %v2745_v6 = vadd.f32 %v14154_v49, %v2705_v39 }
 0x3bf   :  { %v2777_v42 = vmax.f32 %v2745_v6, 0.0  ;;  %v2712_v6 = vmul.f32 %v14137_v1, %v13975_v50 }
 0x3c0   :  { %11562 = vmatmul.mubr.bf16.vlgmr.msra.gmra.mxu1 %v2793_v59  ;;  %v2702_v59 = vmul.f32 %v14137_v1, %v13931_v35  ;;  %v14242_v35 = vpop.permute.xlu1 %3435 }
 0x3c1   :  { %11565 = vmatprep.mubr.bf16.mxu1 %v2794_v53  ;;  %11642 = vmatpush3.bf16.msra.mxu1 %v14101_v46  ;;  %v2770_v46 = vmax.f32 %v2738_v18, 0.0  ;;  %v2704_v53 = vmul.f32 %v14137_v1, %v13937_v20 }
 0x3c2   :  { %11643 = vmatprep.subr.bf16.mxu1 %v12411_v52  ;;  %v2742_v44 = vadd.f32 %v14154_v49, %v2702_v59  ;;  %v2709_v59 = vmul.f32 %v14137_v1, %v14010_v25 }
 0x3c3   :  { %v2797_v28 = vpack.c.bf16 %v2771_v8, %v2770_v46  ;;  %v2744_v20 = vadd.f32 %v14154_v49, %v2704_v53  ;;  %v2708_v46 = vmul.f32 %v14137_v1, %v13951_v63 }
 0x3c4   :  { %v2774_v7 = vmax.f32 %v2742_v44, 0.0  ;;  %v14251_v29 = vpop.permute.xlu1 %3443 }
 0x3c5   :  { %11644 = vmatpush3.bf16.msra.mxu1 %v12411_v52  ;;  %v2773_v52 = vmax.f32 %v2741_v13, 0.0  ;;  %v2776_v18 = vmax.f32 %v2744_v20, 0.0  ;;  %v2706_v13 = vmul.f32 %v14137_v1, %v13944_v51  ;;  %v12417_v51 = vld [vmem:[%s17921_s14 + $0x80] sm:$0xff]  }
 0x3c6   :  { %11645 = vmatprep.subr.bf16.mxu1 %v12412_v43 }
 0x3c7   :  { %v2798_v34 = vpack.c.bf16 %v2773_v52, %v2772_v14  ;;  %v2800_v61 = vpack.c.bf16 %v2777_v42, %v2776_v18  ;;  %v2746_v14 = vadd.f32 %v14154_v49, %v2706_v13  ;;  %v2749_v52 = vadd.f32 %v14154_v49, %v2709_v59 }
 0x3c8   :  { %11566 = vmatmul.mubr.bf16.gmra.mxu1 %v2795_v19  ;;  %v14249_v19 = vpop.permute.xlu0 %3423  ;;  %v14269_v63 = vpop.permute.xlu1 %3451  ;;  %v2752_v42 = vadd.f32 %v14154_v49, %v2712_v6 }
 0x3c9   :  { %11569 = vmatprep.mubr.bf16.mxu1 %v2796_v9  ;;  %11646 = vmatpush3.bf16.msra.mxu1 %v12412_v43  ;;  %v2775_v43 = vmax.f32 %v2743_v45, 0.0  ;;  %v2707_v9 = vmul.f32 %v14137_v1, %v13992_v37  ;;  %v2748_v37 = vadd.f32 %v14154_v49, %v2708_v46  ;;  %v2778_v25 = vmax.f32 %v2746_v14, 0.0  ;;  %v14276_v45 = vld [vmem:[%s17921_s14 + $0xf8] sm:$0xff]  }
 0x3ca   :  { %11647 = vmatprep.subr.bf16.mxu1 %v12413_v23  ;;  %v2715_v46 = vmul.f32 %v14137_v1, %v14060_v26  ;;  %v2784_v59 = vmax.f32 %v2752_v42, 0.0  ;;  %v2717_v14 = vmul.f32 %v14137_v1, %v14072_v36 }
 0x3cb   :  { %v2799_v8 = vpack.c.bf16 %v2775_v43, %v2774_v7  ;;  %v2747_v53 = vadd.f32 %v14154_v49, %v2707_v9  ;;  %v2780_v20 = vmax.f32 %v2748_v37, 0.0  ;;  %v2714_v9 = vmul.f32 %v14137_v1, %v13990_v33 }
 0x3cc   :  { %v14267_v39 = vpop.permute.xlu0 %3431  ;;  %v14284_v43 = vpop.permute.xlu1 %3459 }
 0x3cd   :  { %11648 = vmatpush3.bf16.msra.mxu1 %v12413_v23  ;;  %v12416_v23 = vld [vmem:[%s17921_s14 + $0x88] sm:$0xff]   ;;  %v2779_v44 = vmax.f32 %v2747_v53, 0.0  ;;  %v2754_v37 = vadd.f32 %v14154_v49, %v2714_v9 }
 0x3ce   :  { %11649 = vmatprep.subr.bf16.mxu1 %v12414_v56 }
 0x3cf   :  { %v2801_v18 = vpack.c.bf16 %v2779_v44, %v2778_v25  ;;  %v14306_v25 = vld [vmem:[%s17932_s30 + $0x2] ss:$0 sm:$0xff]  ;;  %v2786_v6 = vmax.f32 %v2754_v37, 0.0 }
 0x3d0   :  { %11570 = vmatmul.mubr.bf16.gmra.mxu1 %v2797_v28  ;;  %v2711_v28 = vmul.f32 %v14137_v1, %v14023_v17  ;;  %v14282_v7 = vpop.permute.xlu0 %3439  ;;  %v3476_v36 = vmul.f32 %v14306_v25, %v14036_v54 }
 0x3d1   :  { %11573 = vmatprep.mubr.bf16.mxu1 %v2798_v34  ;;  %11650 = vmatpush3.bf16.msra.mxu1 %v12414_v56  ;;  %v2710_v56 = vmul.f32 %v14137_v1, %v13958_v16  ;;  %v2781_v34 = vmax.f32 %v2749_v52, 0.0  ;;  %v2755_v52 = vadd.f32 %v14154_v49, %v2715_v46 }
 0x3d2   :  { %11651 = vmatprep.subr.bf16.mxu1 %v12415_v55  ;;  %v2751_v17 = vadd.f32 %v14154_v49, %v2711_v28  ;;  %v3477_v28 = vmul.f32 %v14306_v25, %v14108_v24 }
 0x3d3   :  { %v2750_v16 = vadd.f32 %v14154_v49, %v2710_v56  ;;  %v2802_v13 = vpack.c.bf16 %v2781_v34, %v2780_v20  ;;  %v2718_v34 = vmul.f32 %v14137_v1, %v14018_v30  ;;  %v3478_v30 = vmul.f32 %v14306_v25, %v14056_v57 }
 0x3d4   :  { %v14299_v53 = vpop.permute.xlu0 %3447 }
 0x3d5   :  { %11652 = vmatpush3.bf16.msra.mxu1 %v12415_v55  ;;  %v2713_v55 = vmul.f32 %v14137_v1, %v14043_v21  ;;  %v2782_v21 = vmax.f32 %v2750_v16, 0.0  ;;  %v14321_v16 = vld [vmem:[%s17937_s23 + $0x2] ss:$0 sm:$0xff]  ;;  %v2758_v24 = vadd.f32 %v14154_v49, %v2718_v34 }
 0x3d6   :  { %11653 = vmatprep.subr.bf16.mxu1 %v12416_v23  ;;  %v3516_v54 = vadd.f32 %v14321_v16, %v3476_v36 }
 0x3d7   :  { %v2753_v50 = vadd.f32 %v14154_v49, %v2713_v55  ;;  %v2787_v55 = vmax.f32 %v2755_v52, 0.0  ;;  %v2790_v52 = vmax.f32 %v2758_v24, 0.0 }
 0x3d8   :  { %11574 = vmatmul.mubr.bf16.gmra.mxu1 %v2799_v8  ;;  %v2716_v8 = vmul.f32 %v14137_v1, %v14000_v3  ;;  %v2757_v3 = vadd.f32 %v14154_v49, %v2717_v14  ;;  %v14316_v20 = vpop.permute.xlu0 %3455  ;;  %v3548_v14 = vmax.f32 %v3516_v54, 0.0 }
 0x3d9   :  { %11577 = vmatprep.mubr.bf16.mxu1 %v2800_v61  ;;  %11654 = vmatpush3.bf16.msra.mxu1 %v12416_v23  ;;  %v2783_v23 = vmax.f32 %v2751_v17, 0.0  ;;  %v2785_v61 = vmax.f32 %v2753_v50, 0.0  ;;  %v3517_v50 = vadd.f32 %v14321_v16, %v3477_v28 }
 0x3da   :  { %11655 = vmatprep.subr.bf16.mxu1 %v12417_v51  ;;  %v2756_v26 = vadd.f32 %v14154_v49, %v2716_v8  ;;  %v2789_v42 = vmax.f32 %v2757_v3, 0.0  ;;  %v17962_v8 = vld [vmem:[#allocation56_spill] sm:$0xff]  ;;  %v3518_v3 = vadd.f32 %v14321_v16, %v3478_v30 }
 0x3db   :  { %v2803_v33 = vpack.c.bf16 %v2783_v23, %v2782_v21  ;;  %v2804_v56 = vpack.c.bf16 %v2785_v61, %v2784_v59  ;;  %v2805_v21 = vpack.c.bf16 %v2787_v55, %v2786_v6  ;;  %v3479_v59 = vmul.f32 %v14306_v25, %v14069_v41 }
 0x3dc   :  { %v2788_v17 = vmax.f32 %v2756_v26, 0.0  ;;  %v14333_v46 = vpop.permute.xlu0 %3463  ;;  %v3481_v61 = vmul.f32 %v14306_v25, %v17962_v8  ;;  %v3549_v37 = vmax.f32 %v3517_v50, 0.0  ;;  %v3550_v24 = vmax.f32 %v3518_v3, 0.0 }
 0x3dd   :  { %11656 = vmatpush3.bf16.msra.mxu1 %v12417_v51  ;;  %v14301_v51 = vpop.permute.xlu1 %3467  ;;  %v3519_v6 = vadd.f32 %v14321_v16, %v3479_v59  ;;  %v3483_v59 = vmul.f32 %v14306_v25, %v14110_v31  ;;  %v3482_v8 = vmul.f32 %v14306_v25, %v14142_v62 }
 0x3de   :  { %11737 = vmatprep.subr.bf16.mxu1 %v14276_v45  ;;  %v2806_v23 = vpack.c.bf16 %v2789_v42, %v2788_v17  ;;  %v3521_v34 = vadd.f32 %v14321_v16, %v3481_v61  ;;  %v3580_v55 = vpack.c.bf16 %v3549_v37, %v3548_v14  ;;  %v3485_v37 = vmul.f32 %v14306_v25, %v14122_v27 }
 0x3df   :  { %v3551_v30 = vmax.f32 %v3519_v6, 0.0  ;;  %v3522_v27 = vadd.f32 %v14321_v16, %v3482_v8 }
 0x3e0   :  { %11578 = vmatmul.mubr.bf16.gmra.mxu1 %v2801_v18  ;;  %v2719_v18 = vmul.f32 %v14137_v1, %v14093_v38  ;;  %v3525_v6 = vadd.f32 %v14321_v16, %v3485_v37 }
 0x3e1   :  { %11581 = vmatprep.mubr.bf16.mxu1 %v2802_v13  ;;  %v14310_v44 = vpop.permute.xlu1 %4135  ;;  %v3581_v3 = vpack.c.bf16 %v3551_v30, %v3550_v24  ;;  %v3554_v37 = vmax.f32 %v3522_v27, 0.0 }
 0x3e2   :  { %v2759_v9 = vadd.f32 %v14154_v49, %v2719_v18  ;;  %v3480_v49 = vmul.f32 %v14306_v25, %v14120_v15 }
 0x3e4   :  { %v2791_v26 = vmax.f32 %v2759_v9, 0.0  ;;  %v3520_v15 = vadd.f32 %v14321_v16, %v3480_v49 }
 0x3e5   :  { %v14327_v13 = vpop.permute.xlu1 %4139 }
 0x3e6   :  { %v2807_v42 = vpack.c.bf16 %v2791_v26, %v2790_v52  ;;  %v3552_v14 = vmax.f32 %v3520_v15, 0.0 }
 0x3e8   :  { %11582 = vmatmul.mubr.bf16.gmra.mxu1 %v2803_v33 }
 0x3e9   :  { %11585 = vmatprep.mubr.bf16.mxu1 %v2804_v56  ;;  %v14346_v56 = vpop.permute.xlu0 %4131  ;;  %v14348_v36 = vpop.permute.xlu1 %4147 }
 0x3ed   :  { %v14367_v49 = vpop.permute.xlu0 %4143 }
 0x3f0   :  { %v10460_v38 = vpop.f32.mrf.mxu0  ;;  %v14335_v1 = vpop.f32.mrf.mxu1  ;;  %11586 = vmatmul.mubr.bf16.gmra.mxu1 %v2805_v21 }
 0x3f1   :  { %11589 = vmatprep.mubr.bf16.mxu1 %v2806_v23  ;;  %v3553_v23 = vmax.f32 %v3521_v34, 0.0 }
 0x3f2   :  { %v10461_v57 = vpop.f32.mrf.mxu0  ;;  %v14343_v33 = vpop.f32.mrf.mxu1 }
 0x3f3   :  { %v10462_v54 = vadd.f32 %v10461_v57, %v10460_v38  ;;  %v3484_v38 = vmul.f32 %v14306_v25, %v14162_v47  ;;  %v14369_v57 = vpop.permute.xlu1 %4155  ;;  %v3582_v34 = vpack.c.bf16 %v3553_v23, %v3552_v14  ;;  %v3489_v23 = vmul.f32 %v14306_v25, %v14164_v4  ;;  %v12418_v14 = vld [vmem:[#allocation10 + $0x38] sm:$0xff]  }
 0x3f4   :  { %v10463_v41 = vpop.f32.mrf.mxu0  ;;  %v14350_v28 = vpop.f32.mrf.mxu1 }
 0x3f5   :  { %v3524_v47 = vadd.f32 %v14321_v16, %v3484_v38 }
 0x3f6   :  { %v10464_v18 = vpop.f32.mrf.mxu0  ;;  %v14355_v17 = vpop.f32.mrf.mxu1 }
 0x3f7   :  { %v10465_v50 = vadd.f32 %v10464_v18, %v10463_v41  ;;  %v3523_v41 = vadd.f32 %v14321_v16, %v3483_v59  ;;  %v12425_v18 = vld [vmem:[%s17921_s14 + $0xf0] sm:$0xff]   ;;  %v14386_v24 = vpop.permute.xlu1 %4163 }
 0x3f8   :  { %v10466_v21 = vpop.f32.mrf.mxu0  ;;  %v14357_v9 = vpop.f32.mrf.mxu1  ;;  %11590 = vmatmul.mubr.bf16.gmra.mxu1 %v2807_v42  ;;  %17963 = vst [vmem:[#allocation54_spill] sm:$0xff] %v14386_v24 }
 0x3f9   :  { %v1197_v61 = vpack.c.bf16 %v10465_v50, %v10462_v54  ;;  %11657 = vmatprep.mubr.bf16.mxu1 %v3580_v55  ;;  %v3487_v50 = vmul.f32 %v14306_v25, %v14144_v60  ;;  %v3555_v8 = vmax.f32 %v3523_v41, 0.0  ;;  %v3557_v60 = vmax.f32 %v3525_v6, 0.0 }
 0x3fa   :  { %v10467_v52 = vpop.f32.mrf.mxu0  ;;  %v14371_v26 = vpop.f32.mrf.mxu1  ;;  %v3529_v6 = vadd.f32 %v14321_v16, %v3489_v23 }
 0x3fb   :  { %11397 = vmatprep.mubr.bf16.mxu0 %v1197_v61  ;;  %v10468_v42 = vadd.f32 %v10467_v52, %v10466_v21  ;;  %v14384_v61 = vpop.permute.xlu0 %4151  ;;  %v3486_v21 = vmul.f32 %v14306_v25, %v14180_v32  ;;  %v3556_v52 = vmax.f32 %v3524_v47, 0.0  ;;  %v3527_v4 = vadd.f32 %v14321_v16, %v3487_v50  ;;  %v14409_v50 = vpop.permute.xlu1 %4171 }
 0x3fc   :  { %v10469_v31 = vpop.f32.mrf.mxu0  ;;  %v14373_v62 = vpop.f32.mrf.mxu1  ;;  %17965 = vst [vmem:[#allocation55_spill] sm:$0xff] %v14409_v50 }
 0x3fd   :  { %v3526_v47 = vadd.f32 %v14321_v16, %v3486_v21  ;;  %v3559_v23 = vmax.f32 %v3527_v4, 0.0  ;;  %v12429_v21 = vld [vmem:[%s17921_s14 + $0xe0] sm:$0xff]   ;;  %v3492_v4 = vmul.f32 %v14306_v25, %v14226_v0 }
 0x3fe   :  { %v10470_v15 = vpop.f32.mrf.mxu0  ;;  %v14379_v55 = vpop.f32.mrf.mxu1 }
 0x3ff   :  { %v10471_v54 = vadd.f32 %v10470_v15, %v10469_v31  ;;  %v3488_v31 = vmul.f32 %v14306_v25, %v14198_v11  ;;  %v12419_v11 = vld [vmem:[#allocation10 + $0x30] sm:$0xff]  }
 0x400   :  { %v10472_v30 = vpop.f32.mrf.mxu0  ;;  %v14388_v59 = vpop.f32.mrf.mxu1  ;;  %11658 = vmatmul.mubr.bf16.vlgmr.msra.gmra.mxu1 %v3581_v3  ;;  %v12427_v3 = vld [vmem:[%s17921_s14 + $0xe8] sm:$0xff]  }
 0x401   :  { %v1198_v38 = vpack.c.bf16 %v10471_v54, %v10468_v42  ;;  %11661 = vmatprep.mubr.bf16.mxu1 %v3582_v34  ;;  %11738 = vmatpush3.bf16.msra.mxu1 %v14276_v45  ;;  %v3583_v42 = vpack.c.bf16 %v3555_v8, %v3554_v37  ;;  %v3528_v45 = vadd.f32 %v14321_v16, %v3488_v31  ;;  %v14407_v54 = vpop.permute.xlu0 %4159  ;;  %v3561_v31 = vmax.f32 %v3529_v6, 0.0 }
 0x402   :  { %v10473_v15 = vpop.f32.mrf.mxu0  ;;  %v14397_v41 = vpop.f32.mrf.mxu1  ;;  %11739 = vmatprep.subr.bf16.mxu1 %v12425_v18  ;;  %v3584_v34 = vpack.c.bf16 %v3557_v60, %v3556_v52  ;;  %17964 = vst [vmem:[#allocation58_spill] sm:$0xff] %v14407_v54  ;;  %v3558_v60 = vmax.f32 %v3526_v47, 0.0  ;;  %v3490_v52 = vmul.f32 %v14306_v25, %v14208_v58 }
 0x403   :  { %11398 = vmatmul.mubr.bf16.vlgmr.msra.gmra.mxu0 %v1198_v38  ;;  %v10474_v8 = vadd.f32 %v10473_v15, %v10472_v30  ;;  %v3560_v30 = vmax.f32 %v3528_v45, 0.0  ;;  %v3493_v15 = vmul.f32 %v14306_v25, %v14200_v10  ;;  %v14430_v47 = vpop.permute.xlu1 %4179 }
 0x404   :  { %v10475_v27 = vpop.f32.mrf.mxu0  ;;  %v14401_v32 = vpop.f32.mrf.mxu1  ;;  %11430 = vmatpush3.bf16.msra.mxu0 %v12418_v14  ;;  %17968 = vst [vmem:[#allocation57_spill] sm:$0xff] %v14430_v47  ;;  %v3585_v10 = vpack.c.bf16 %v3559_v23, %v3558_v60  ;;  %v12433_v23 = vld [vmem:[%s17921_s14 + $0xd0] sm:$0xff]  }
 0x405   :  { %11431 = vmatprep.subr.bf16.mxu0 %v17794_v5  ;;  %11740 = vmatpush3.bf16.msra.mxu1 %v12425_v18  ;;  %v3491_v18 = vmul.f32 %v14306_v25, %v14182_v2  ;;  %v12420_v5 = vld [vmem:[#allocation10 + $0x28] sm:$0xff]   ;;  %v12431_v2 = vld [vmem:[%s17921_s14 + $0xd8] sm:$0xff]   ;;  %v14428_v58 = vpop.permute.xlu0 %4167 }
 0x406   :  { %v10476_v38 = vpop.f32.mrf.mxu0  ;;  %v14411_v22 = vpop.f32.mrf.mxu1  ;;  %11741 = vmatprep.subr.bf16.mxu1 %v12427_v3  ;;  %17967 = vst [vmem:[#allocation60_spill] sm:$0xff] %v14428_v58 }
 0x407   :  { %v10477_v37 = vadd.f32 %v10476_v38, %v10475_v27  ;;  %v17966_v27 = vmov 0.0   ;;  %v3531_v0 = vadd.f32 %v14321_v16, %v3491_v18  ;;  %v12421_v38 = vld [vmem:[#allocation10 + $0x20] sm:$0xff]  }
 0x408   :  { %v10478_v14 = vpop.f32.mrf.mxu0  ;;  %v14414_v24 = vpop.f32.mrf.mxu1  ;;  %11662 = vmatmul.mubr.bf16.gmra.mxu1 %v3583_v42  ;;  %11432 = vmatpush3.bf16.msra.mxu0 %v12419_v11 }
 0x409   :  { %v1199_v50 = vpack.c.bf16 %v10477_v37, %v10474_v8  ;;  %11665 = vmatprep.mubr.bf16.mxu1 %v3584_v34  ;;  %11433 = vmatprep.subr.bf16.mxu0 %v17966_v27  ;;  %v3530_v34 = vadd.f32 %v14321_v16, %v3490_v52  ;;  %v3586_v8 = vpack.c.bf16 %v3561_v31, %v3560_v30 }
 0x40a   :  { %v10479_v42 = vpop.f32.mrf.mxu0  ;;  %v14425_v6 = vpop.f32.mrf.mxu1  ;;  %11742 = vmatpush3.bf16.msra.mxu1 %v12427_v3  ;;  %v3533_v3 = vadd.f32 %v14321_v16, %v3493_v15  ;;  %v12422_v15 = vld [vmem:[#allocation10 + $0x18] sm:$0xff]  }
 0x40b   :  { %11401 = vmatprep.mubr.bf16.mxu0 %v1199_v50  ;;  %11743 = vmatprep.subr.bf16.mxu1 %v12429_v21  ;;  %v3532_v50 = vadd.f32 %v14321_v16, %v3492_v4  ;;  %v10480_v58 = vadd.f32 %v10479_v42, %v10478_v14  ;;  %v3562_v52 = vmax.f32 %v3530_v34, 0.0  ;;  %v14447_v14 = vpop.permute.xlu1 %4187  ;;  %v12435_v34 = vld [vmem:[%s17921_s14 + $0xc8] sm:$0xff]  }
 0x40c   :  { %v10481_v11 = vpop.f32.mrf.mxu0  ;;  %v14432_v45 = vpop.f32.mrf.mxu1  ;;  %11434 = vmatpush3.bf16.msra.mxu0 %v12420_v5  ;;  %v3563_v5 = vmax.f32 %v3531_v0, 0.0  ;;  %v3565_v31 = vmax.f32 %v3533_v3, 0.0  ;;  %17970 = vst [vmem:[#allocation59_spill] sm:$0xff] %v14447_v14  ;;  %v3495_v0 = vmul.f32 %v14306_v25, %v14210_v48  ;;  %v12424_v48 = vld [vmem:[#allocation10 + $0x10] sm:$0xff]  }
 0x40d   :  { %11435 = vmatprep.subr.bf16.mxu0 %v17966_v27  ;;  %v3564_v30 = vmax.f32 %v3532_v50, 0.0 }
 0x40e   :  { %v10482_v37 = vpop.f32.mrf.mxu0  ;;  %v14439_v47 = vpop.f32.mrf.mxu1  ;;  %11744 = vmatpush3.bf16.msra.mxu1 %v12429_v21  ;;  %v3587_v50 = vpack.c.bf16 %v3563_v5, %v3562_v52  ;;  %v12437_v5 = vld [vmem:[%s17921_s14 + $0xc0] sm:$0xff]  }
 0x40f   :  { %v10483_v54 = vadd.f32 %v10482_v37, %v10481_v11  ;;  %11745 = vmatprep.subr.bf16.mxu1 %v12431_v2  ;;  %v14445_v21 = vpop.permute.xlu0 %4175 }
 0x410   :  { %v10484_v60 = vpop.f32.mrf.mxu0  ;;  %v14442_v18 = vpop.f32.mrf.mxu1  ;;  %11666 = vmatmul.mubr.bf16.gmra.mxu1 %v3585_v10  ;;  %11436 = vmatpush3.bf16.msra.mxu0 %v12421_v38  ;;  %17969 = vst [vmem:[#allocation62_spill] sm:$0xff] %v14445_v21  ;;  %v3494_v10 = vmul.f32 %v14306_v25, %v14240_v40 }
 0x411   :  { %v1200_v4 = vpack.c.bf16 %v10483_v54, %v10480_v58  ;;  %11669 = vmatprep.mubr.bf16.mxu1 %v3586_v8  ;;  %11437 = vmatprep.subr.bf16.mxu0 %v17966_v27  ;;  %v3497_v54 = vmul.f32 %v14306_v25, %v14228_v12  ;;  %v3496_v58 = vmul.f32 %v14306_v25, %v14249_v19 }
 0x412   :  { %v10485_v42 = vpop.f32.mrf.mxu0  ;;  %v14449_v11 = vpop.f32.mrf.mxu1  ;;  %11746 = vmatpush3.bf16.msra.mxu1 %v12431_v2  ;;  %v3588_v8 = vpack.c.bf16 %v3565_v31, %v3564_v30  ;;  %v3535_v12 = vadd.f32 %v14321_v16, %v3495_v0  ;;  %v3534_v37 = vadd.f32 %v14321_v16, %v3494_v10  ;;  %v12426_v0 = vld [vmem:[#allocation10 + $0x8] sm:$0xff]  }
 0x413   :  { %11402 = vmatmul.mubr.bf16.gmra.mxu0 %v1200_v4  ;;  %11747 = vmatprep.subr.bf16.mxu1 %v12433_v23  ;;  %v10486_v19 = vadd.f32 %v10485_v42, %v10484_v60  ;;  %v3537_v14 = vadd.f32 %v14321_v16, %v3497_v54  ;;  %v3536_v21 = vadd.f32 %v14321_v16, %v3496_v58  ;;  %v14470_v52 = vpop.permute.xlu0 %4183 }
 0x414   :  { %v10487_v38 = vpop.f32.mrf.mxu0  ;;  %v14460_v3 = vpop.f32.mrf.mxu1  ;;  %11438 = vmatpush3.bf16.msra.mxu0 %v12422_v15  ;;  %17971 = vst [vmem:[#allocation64_spill] sm:$0xff] %v14470_v52  ;;  %v3501_v60 = vmul.f32 %v14306_v25, %v14251_v29  ;;  %v3567_v58 = vmax.f32 %v3535_v12, 0.0  ;;  %v14488_v29 = vld [vmem:[%s17921_s14 + $0x138] sm:$0xff]   ;;  %v12428_v12 = vld [vmem:[#allocation10] sm:$0xff]  }
 0x415   :  { %11439 = vmatprep.subr.bf16.mxu0 %v17966_v27  ;;  %v14472_v15 = vpop.permute.xlu1 %4195 }
 0x416   :  { %v10488_v40 = vpop.f32.mrf.mxu0  ;;  %v14463_v2 = vpop.f32.mrf.mxu1  ;;  %11748 = vmatpush3.bf16.msra.mxu1 %v12433_v23  ;;  %17972 = vst [vmem:[#allocation61_spill] sm:$0xff] %v14472_v15  ;;  %v3499_v23 = vmul.f32 %v14306_v25, %v14242_v35  ;;  %v3500_v35 = vmul.f32 %v14306_v25, %v14282_v7  ;;  %v10498_v7 = vadd.f32 %v14343_v33, %v14335_v1 }
 0x417   :  { %v10489_v4 = vadd.f32 %v10488_v40, %v10487_v38  ;;  %11749 = vmatprep.subr.bf16.mxu1 %v12435_v34  ;;  %v3566_v38 = vmax.f32 %v3534_v37, 0.0  ;;  %v3568_v40 = vmax.f32 %v3536_v21, 0.0  ;;  %v14498_v21 = vpop.permute.xlu0 %4191  ;;  %v3503_v33 = vmul.f32 %v14306_v25, %v14269_v63 }
 0x418   :  { %v10490_v31 = vpop.f32.mrf.mxu0  ;;  %v14474_v30 = vpop.f32.mrf.mxu1  ;;  %11670 = vmatmul.mubr.bf16.gmra.mxu1 %v3587_v50  ;;  %11440 = vmatpush3.bf16.msra.mxu0 %v12424_v48  ;;  %v3498_v50 = vmul.f32 %v14306_v25, %v14267_v39  ;;  %v3569_v48 = vmax.f32 %v3537_v14, 0.0  ;;  %v3539_v37 = vadd.f32 %v14321_v16, %v3499_v23  ;;  %v14496_v39 = vld [vmem:[%s17973_s26 + $0x38] sm:$0xff]   ;;  %17974 = vst [vmem:[#allocation66_spill] sm:$0xff] %v14498_v21 }
 0x419   :  { %v1201_v10 = vpack.c.bf16 %v10489_v4, %v10486_v19  ;;  %11673 = vmatprep.mubr.bf16.mxu1 %v3588_v8  ;;  %11441 = vmatprep.subr.bf16.mxu0 %v17966_v27  ;;  %v3541_v4 = vadd.f32 %v14321_v16, %v3501_v60  ;;  %v14500_v14 = vpop.permute.xlu1 %4203  ;;  %v3589_v23 = vpack.c.bf16 %v3567_v58, %v3566_v38 }
 0x41a   :  { %v10491_v42 = vpop.f32.mrf.mxu0  ;;  %v14481_v54 = vpop.f32.mrf.mxu1  ;;  %11750 = vmatpush3.bf16.msra.mxu1 %v12435_v34  ;;  %17975 = vst [vmem:[#allocation63_spill] sm:$0xff] %v14500_v14  ;;  %v10501_v34 = vadd.f32 %v14355_v17, %v14350_v28  ;;  %v3538_v60 = vadd.f32 %v14321_v16, %v3498_v50  ;;  %v3540_v52 = vadd.f32 %v14321_v16, %v3500_v35 }
 0x41b   :  { %11405 = vmatprep.mubr.bf16.mxu0 %v1201_v10  ;;  %11751 = vmatprep.subr.bf16.mxu1 %v12437_v5  ;;  %v3590_v21 = vpack.c.bf16 %v3569_v48, %v3568_v40  ;;  %v3573_v58 = vmax.f32 %v3541_v4, 0.0  ;;  %v3504_v63 = vmul.f32 %v14306_v25, %v14316_v20  ;;  %v10507_v40 = vadd.f32 %v14379_v55, %v14373_v62 }
 0x41c   :  { %v10493_v8 = vpop.f32.mrf.mxu0  ;;  %v14490_v19 = vpop.f32.mrf.mxu1  ;;  %11442 = vmatpush3.bf16.msra.mxu0 %v12426_v0  ;;  %v1203_v28 = vpack.c.bf16 %v10501_v34, %v10498_v7  ;;  %v3572_v38 = vmax.f32 %v3540_v52, 0.0  ;;  %v3543_v52 = vadd.f32 %v14321_v16, %v3503_v33  ;;  %v10513_v20 = vadd.f32 %v14411_v22, %v14401_v32 }
 0x41d   :  { %11443 = vmatprep.subr.bf16.mxu0 %v17966_v27  ;;  %v10492_v27 = vadd.f32 %v10491_v42, %v10490_v31  ;;  %v3570_v31 = vmax.f32 %v3538_v60, 0.0  ;;  %v3502_v42 = vmul.f32 %v14306_v25, %v14299_v53  ;;  %v14526_v50 = vpop.permute.xlu1 %4211  ;;  %v10504_v53 = vadd.f32 %v14371_v26, %v14357_v9  ;;  %v14562_v60 = vld [vmem:[%s17937_s23 + $0x3] ss:$0 sm:$0xff] }
 0x41e   :  { %v10494_v0 = vpop.f32.mrf.mxu0  ;;  %v14506_v10 = vpop.f32.mrf.mxu1  ;;  %11752 = vmatpush3.bf16.msra.mxu1 %v12437_v5  ;;  %v3571_v5 = vmax.f32 %v3539_v37, 0.0  ;;  %v14543_v37 = vld [vmem:[%s17932_s30 + $0x3] ss:$0 sm:$0xff]  ;;  %v3544_v26 = vadd.f32 %v14321_v16, %v3504_v63  ;;  %v3592_v62 = vpack.c.bf16 %v3573_v58, %v3572_v38 }
 0x41f   :  { %v10495_v15 = vadd.f32 %v10494_v0, %v10493_v8  ;;  %11833 = vmatprep.subr.bf16.mxu1 %v14488_v29  ;;  %v1204_v22 = vpack.c.bf16 %v10507_v40, %v10504_v53  ;;  %v4264_v32 = vmul.f32 %v14543_v37, %v14346_v56  ;;  %v3575_v0 = vmax.f32 %v3543_v52, 0.0 }
 0x420   :  { %v14511_v14 = vpop.f32.mrf.mxu1  ;;  %11674 = vmatmul.mubr.bf16.gmra.mxu1 %v3589_v23  ;;  %11444 = vmatpush3.bf16.msra.mxu0 %v12428_v12  ;;  %v3591_v8 = vpack.c.bf16 %v3571_v5, %v3570_v31  ;;  %v3542_v12 = vadd.f32 %v14321_v16, %v3502_v42  ;;  %v10519_v5 = vadd.f32 %v14439_v47, %v14432_v45 }
 0x421   :  { %v1202_v1 = vpack.c.bf16 %v10495_v15, %v10492_v27  ;;  %11677 = vmatprep.mubr.bf16.mxu1 %v3590_v21  ;;  %11497 = vmatprep.subr.bf16.mxu0 %v14496_v39  ;;  %v3505_v27 = vmul.f32 %v14306_v25, %v14284_v43  ;;  %v14524_v15 = vpop.permute.xlu0 %4199  ;;  %v10510_v43 = vadd.f32 %v14397_v41, %v14388_v59  ;;  %v14557_v21 = vpop.permute.xlu1 %4219 }
 0x422   :  { %v14516_v17 = vpop.f32.mrf.mxu1  ;;  %v3507_v59 = vmul.f32 %v14306_v25, %v14301_v51  ;;  %v4265_v41 = vmul.f32 %v14543_v37, %v14310_v44  ;;  %v3574_v23 = vmax.f32 %v3542_v12, 0.0  ;;  %v3506_v51 = vmul.f32 %v14306_v25, %v14333_v46 }
 0x423   :  { %11406 = vmatmul.mubr.bf16.gmra.mxu0 %v1202_v1  ;;  %v3545_v9 = vadd.f32 %v14321_v16, %v3505_v27  ;;  %v1205_v7 = vpack.c.bf16 %v10513_v20, %v10510_v43  ;;  %v3576_v1 = vmax.f32 %v3544_v26, 0.0  ;;  %v4304_v42 = vadd.f32 %v14562_v60, %v4264_v32 }
 0x424   :  { %11409 = vmatprep.mubr.bf16.mxu0 %v1203_v28  ;;  %v14528_v48 = vpop.f32.mrf.mxu1  ;;  %v3547_v56 = vadd.f32 %v14321_v16, %v3507_v59  ;;  %v10516_v28 = vadd.f32 %v14425_v6, %v14414_v24  ;;  %v4305_v31 = vadd.f32 %v14562_v60, %v4265_v41  ;;  %v10522_v25 = vadd.f32 %v14449_v11, %v14442_v18 }
 0x425   :  { %v14555_v4 = vpop.permute.xlu0 %4207  ;;  %v3577_v44 = vmax.f32 %v3545_v9, 0.0  ;;  %v10525_v46 = vadd.f32 %v14463_v2, %v14460_v3  ;;  %v3593_v38 = vpack.c.bf16 %v3575_v0, %v3574_v23  ;;  %v3546_v27 = vadd.f32 %v14321_v16, %v3506_v51  ;;  %v14586_v63 = vpop.permute.xlu1 %4227 }
 0x426   :  { %v14539_v35 = vpop.f32.mrf.mxu1  ;;  %v4266_v24 = vmul.f32 %v14543_v37, %v14327_v13  ;;  %v4267_v6 = vmul.f32 %v14543_v37, %v14367_v49  ;;  %v4268_v18 = vmul.f32 %v14543_v37, %v14348_v36  ;;  %v4269_v11 = vmul.f32 %v14543_v37, %v14384_v61 }
 0x427   :  { %v3594_v47 = vpack.c.bf16 %v3577_v44, %v3576_v1  ;;  %v1206_v16 = vpack.c.bf16 %v10519_v5, %v10516_v28  ;;  %v4337_v3 = vmax.f32 %v4305_v31, 0.0  ;;  %v4336_v2 = vmax.f32 %v4304_v42, 0.0 }
 0x428   :  { %v14547_v55 = vpop.f32.mrf.mxu1  ;;  %11678 = vmatmul.mubr.bf16.gmra.mxu1 %v3591_v8  ;;  %v1207_v13 = vpack.c.bf16 %v10525_v46, %v10522_v25  ;;  %v3579_v49 = vmax.f32 %v3547_v56, 0.0  ;;  %v3578_v52 = vmax.f32 %v3546_v27, 0.0  ;;  %v4306_v43 = vadd.f32 %v14562_v60, %v4266_v24  ;;  %v17977_v56 = vld [vmem:[#allocation54_spill] sm:$0xff] }
 0x429   :  { %11681 = vmatprep.mubr.bf16.mxu1 %v3592_v62  ;;  %v14584_v45 = vpop.permute.xlu0 %4215  ;;  %v4307_v20 = vadd.f32 %v14562_v60, %v4267_v6  ;;  %v4308_v36 = vadd.f32 %v14562_v60, %v4268_v18  ;;  %v4309_v12 = vadd.f32 %v14562_v60, %v4269_v11  ;;  %v10528_v61 = vadd.f32 %v14481_v54, %v14474_v30  ;;  %v14602_v59 = vpop.permute.xlu1 %4235 }
 0x42a   :  { %v14559_v34 = vpop.f32.mrf.mxu1  ;;  %v10531_v9 = vadd.f32 %v14506_v10, %v14490_v19  ;;  %v4368_v26 = vpack.c.bf16 %v4337_v3, %v4336_v2  ;;  %v10537_v41 = vadd.f32 %v14539_v35, %v14528_v48  ;;  %v4338_v0 = vmax.f32 %v4306_v43, 0.0  ;;  %v17976_v10 = vld [vmem:[#allocation58_spill] sm:$0xff]  ;;  %v12443_v3 = vld [vmem:[%s17921_s14 + $0x130] sm:$0xff]   ;;  %v17979_v2 = vld [vmem:[#allocation55_spill] sm:$0xff] }
 0x42b   :  { %11410 = vmatmul.mubr.bf16.gmra.mxu0 %v1204_v22  ;;  %v10534_v22 = vadd.f32 %v14516_v17, %v14511_v14  ;;  %v4339_v23 = vmax.f32 %v4307_v20, 0.0  ;;  %v4340_v30 = vmax.f32 %v4308_v36, 0.0  ;;  %v4270_v54 = vmul.f32 %v14543_v37, %v14369_v57  ;;  %v17978_v17 = vld [vmem:[#allocation60_spill] sm:$0xff] }
 0x42c   :  { %11413 = vmatprep.mubr.bf16.mxu0 %v1205_v7  ;;  %v14566_v33 = vpop.f32.mrf.mxu1  ;;  %v3595_v7 = vpack.c.bf16 %v3579_v49, %v3578_v52  ;;  %v4341_v19 = vmax.f32 %v4309_v12, 0.0  ;;  %v4271_v44 = vmul.f32 %v14543_v37, %v17976_v10  ;;  %v1208_v1 = vpack.c.bf16 %v10531_v9, %v10528_v61  ;;  %v17980_v49 = vld [vmem:[#allocation62_spill] sm:$0xff] }
 0x42d   :  { %v14600_v62 = vpop.permute.xlu0 %4223  ;;  %v4272_v14 = vmul.f32 %v14543_v37, %v17977_v56  ;;  %v4273_v48 = vmul.f32 %v14543_v37, %v17978_v17  ;;  %v1209_v35 = vpack.c.bf16 %v10537_v41, %v10534_v22  ;;  %v14618_v31 = vpop.permute.xlu1 %4243  ;;  %v4369_v42 = vpack.c.bf16 %v4339_v23, %v4338_v0  ;;  %v12444_v22 = vld [vmem:[%s17921_s14 + $0x128] sm:$0xff]   ;;  %v12445_v56 = vld [vmem:[%s17921_s14 + $0x120] sm:$0xff]  }
 0x42e   :  { %v10542_v58 = vpop.f32.mrf.mxu1  ;;  %v4310_v25 = vadd.f32 %v14562_v60, %v4270_v54  ;;  %v4311_v46 = vadd.f32 %v14562_v60, %v4271_v44  ;;  %v10540_v27 = vadd.f32 %v14559_v34, %v14547_v55  ;;  %v4275_v52 = vmul.f32 %v14543_v37, %v17980_v49  ;;  %v17981_v34 = vld [vmem:[#allocation57_spill] sm:$0xff]  ;;  %v14649_v54 = vld [vmem:[#allocation13] ss:$0 sm:$0xff] }
 0x42f   :  { %v10543_v24 = vadd.f32 %v10542_v58, %v14566_v33  ;;  %v4312_v6 = vadd.f32 %v14562_v60, %v4272_v14  ;;  %v4276_v33 = vmul.f32 %v14543_v37, %v17981_v34  ;;  %v1511_v49 = vld [vmem:[%s17985_s6] sm:$0xff] }
 0x430   :  { %v10544_v53 = vpop.f32.mrf.mxu1  ;;  %11682 = vmatmul.mubr.bf16.gmra.mxu1 %v3593_v38  ;;  %v4370_v38 = vpack.c.bf16 %v4341_v19, %v4340_v30  ;;  %v4342_v43 = vmax.f32 %v4310_v25, 0.0  ;;  %v4343_v20 = vmax.f32 %v4311_v46, 0.0  ;;  %v17984_v46 = vld [vmem:[#allocation66_spill] sm:$0xff] }
 0x431   :  { %11685 = vmatprep.mubr.bf16.mxu1 %v3594_v47  ;;  %v14616_v5 = vpop.permute.xlu0 %4231  ;;  %v4313_v47 = vadd.f32 %v14562_v60, %v4273_v48  ;;  %v1210_v58 = vpack.c.bf16 %v10543_v24, %v10540_v27  ;;  %v14641_v61 = vpop.permute.xlu1 %4251  ;;  %v17983_v48 = vld [vmem:[#allocation59_spill] sm:$0xff] }
 0x432   :  { %v10545_v40 = vpop.f32.mrf.mxu1 }
 0x433   :  { %11414 = vmatmul.mubr.bf16.gmra.mxu0 %v1206_v16  ;;  %v10546_v18 = vadd.f32 %v10545_v40, %v10544_v53  ;;  %v4344_v53 = vmax.f32 %v4312_v6, 0.0  ;;  %v4345_v40 = vmax.f32 %v4313_v47, 0.0  ;;  %v17986_v6 = vld [vmem:[#allocation61_spill] sm:$0xff] }
 0x434   :  { %11417 = vmatprep.mubr.bf16.mxu0 %v1207_v13  ;;  %v10547_v8 = vpop.f32.mrf.mxu1  ;;  %v4274_v13 = vmul.f32 %v14543_v37, %v17979_v2  ;;  %v4280_v47 = vmul.f32 %v14543_v37, %v17986_v6  ;;  %v12453_v6 = vld [vmem:[%s17921_s14 + $0x100] sm:$0xff]  }
 0x435   :  { %v14639_v12 = vpop.permute.xlu0 %4239  ;;  %v4372_v10 = vpack.c.bf16 %v4345_v40, %v4344_v53  ;;  %v14652_v44 = vpop.permute.xlu1 %4919 }
 0x436   :  { %v10548_v32 = vpop.f32.mrf.mxu1  ;;  %v4314_v41 = vadd.f32 %v14562_v60, %v4274_v13  ;;  %v17987_v13 = vmov 0.0  }
 0x437   :  { %v10549_v11 = vadd.f32 %v10548_v32, %v10547_v8  ;;  %v17982_v8 = vld [vmem:[#allocation64_spill] sm:$0xff]  ;;  %v4315_v32 = vadd.f32 %v14562_v60, %v4275_v52 }
 0x438   :  { %v10550_v51 = vpop.f32.mrf.mxu1  ;;  %11686 = vmatmul.mubr.bf16.gmra.mxu1 %v3595_v7  ;;  %v4277_v36 = vmul.f32 %v14543_v37, %v17982_v8  ;;  %v4371_v7 = vpack.c.bf16 %v4343_v20, %v4342_v43  ;;  %v4346_v14 = vmax.f32 %v4314_v41, 0.0 }
 0x439   :  { %11753 = vmatprep.mubr.bf16.mxu1 %v4368_v26  ;;  %v1211_v9 = vpack.c.bf16 %v10549_v11, %v10546_v18  ;;  %v4347_v17 = vmax.f32 %v4315_v32, 0.0  ;;  %v4281_v18 = vmul.f32 %v14543_v37, %v14524_v15  ;;  %v14673_v2 = vpop.permute.xlu1 %4927 }
 0x43a   :  { %v10551_v28 = vpop.f32.mrf.mxu1  ;;  %v4317_v19 = vadd.f32 %v14562_v60, %v4277_v36  ;;  %v12449_v36 = vld [vmem:[%s17921_s14 + $0x110] sm:$0xff]  }
 0x43b   :  { %11418 = vmatmul.mubr.bf16.gmra.mxu0 %v1208_v1  ;;  %v10552_v23 = vadd.f32 %v10551_v28, %v10550_v51  ;;  %v4373_v20 = vpack.c.bf16 %v4347_v17, %v4346_v14 }
 0x43c   :  { %11421 = vmatprep.mubr.bf16.mxu0 %v1209_v35  ;;  %v10553_v57 = vpop.f32.mrf.mxu1  ;;  %v4278_v35 = vmul.f32 %v14543_v37, %v17983_v48  ;;  %v4349_v24 = vmax.f32 %v4317_v19, 0.0 }
 0x43d   :  { %v14700_v17 = vpop.permute.xlu1 %4931 }
 0x43e   :  { %v10554_v16 = vpop.f32.mrf.mxu1 }
 0x43f   :  { %v10555_v30 = vadd.f32 %v10554_v16, %v10553_v57  ;;  %v12447_v16 = vld [vmem:[%s17921_s14 + $0x118] sm:$0xff]  }
 0x440   :  { %v14632_v55 = vpop.f32.mrf.mxu1  ;;  %11754 = vmatmul.mubr.bf16.vlgmr.msra.gmra.mxu1 %v4369_v42  ;;  %v14657_v42 = vpop.permute.xlu0 %4247 }
 0x441   :  { %11757 = vmatprep.mubr.bf16.mxu1 %v4370_v38  ;;  %11834 = vmatpush3.bf16.msra.mxu1 %v14488_v29  ;;  %v4316_v29 = vadd.f32 %v14562_v60, %v4276_v33  ;;  %v4279_v38 = vmul.f32 %v14543_v37, %v17984_v46  ;;  %v1212_v27 = vpack.c.bf16 %v10555_v30, %v10552_v23  ;;  %v12432_v30 = vld [vmem:[%s17973_s26 + $0x30] sm:$0xff]  }
 0x442   :  { %v2129_v26 = vpop.f32.mrf.mxu1  ;;  %11835 = vmatprep.subr.bf16.mxu1 %v12443_v3  ;;  %v4320_v33 = vadd.f32 %v14562_v60, %v4280_v47  ;;  %v4283_v23 = vmul.f32 %v14543_v37, %v14555_v4  ;;  %v12451_v4 = vld [vmem:[%s17921_s14 + $0x108] sm:$0xff]  }
 0x443   :  { %11422 = vmatmul.mubr.bf16.gmra.mxu0 %v1210_v58  ;;  %v2130_v51 = vadd.f32 %v14649_v54, %v2129_v26  ;;  %v4348_v57 = vmax.f32 %v4316_v29, 0.0  ;;  %v4319_v15 = vadd.f32 %v14562_v60, %v4279_v38  ;;  %v4321_v58 = vadd.f32 %v14562_v60, %v4281_v18 }
 0x444   :  { %11425 = vmatprep.mubr.bf16.mxu0 %v1211_v9  ;;  %v14646_v0 = vpop.f32.mrf.mxu1  ;;  %v14682_v40 = vpop.permute.xlu0 %4255  ;;  %v1512_v9 = vpack.c.bf16 %v1511_v49, %v1511_v49  ;;  %v4352_v19 = vmax.f32 %v4320_v33, 0.0  ;;  %v4288_v33 = vmul.f32 %v14543_v37, %v14586_v63 }
 0x445   :  { %11836 = vmatpush3.bf16.msra.mxu1 %v12443_v3  ;;  %v4318_v3 = vadd.f32 %v14562_v60, %v4278_v35  ;;  %v2256_v52 = vmax.f32 %v2130_v51, 0.0  ;;  %v4374_v53 = vpack.c.bf16 %v4349_v24, %v4348_v57  ;;  %v4351_v41 = vmax.f32 %v4319_v15, 0.0 }
 0x446   :  { %v2132_v1 = vpop.f32.mrf.mxu1  ;;  %11837 = vmatprep.subr.bf16.mxu1 %v12444_v22  ;;  %v4287_v15 = vmul.f32 %v14543_v37, %v14600_v62 }
 0x447   :  { %v2133_v28 = vadd.f32 %v14649_v54, %v2132_v1  ;;  %v4350_v26 = vmax.f32 %v4318_v3, 0.0  ;;  %v4284_v1 = vmul.f32 %v14543_v37, %v14526_v50  ;;  %v12436_v3 = vld [vmem:[%s17973_s26 + $0x20] sm:$0xff]  }
 0x448   :  { %v14661_v25 = vpop.f32.mrf.mxu1  ;;  %11758 = vmatmul.mubr.bf16.gmra.mxu1 %v4371_v7  ;;  %v17988_v7 = vld [vmem:[#allocation63_spill] sm:$0xff]  ;;  %v14698_v14 = vpop.permute.xlu0 %4923  ;;  %v4327_v63 = vadd.f32 %v14562_v60, %v4287_v15  ;;  %v2138_v15 = vadd.f32 %v14632_v55, %v14649_v54 }
 0x449   :  { %11761 = vmatprep.mubr.bf16.mxu1 %v4372_v10  ;;  %11838 = vmatpush3.bf16.msra.mxu1 %v12444_v22  ;;  %v2257_v43 = vmax.f32 %v2133_v28, 0.0  ;;  %v4282_v29 = vmul.f32 %v14543_v37, %v17988_v7  ;;  %v4353_v10 = vmax.f32 %v4321_v58, 0.0  ;;  %v4375_v50 = vpack.c.bf16 %v4351_v41, %v4350_v26  ;;  %v12434_v28 = vld [vmem:[%s17973_s26 + $0x28] sm:$0xff]  }
 0x44a   :  { %v14669_v11 = vpop.f32.mrf.mxu1  ;;  %11839 = vmatprep.subr.bf16.mxu1 %v12445_v56  ;;  %v4324_v57 = vadd.f32 %v14562_v60, %v4284_v1  ;;  %v4289_v58 = vmul.f32 %v14543_v37, %v14616_v5  ;;  %v4328_v5 = vadd.f32 %v14562_v60, %v4288_v33  ;;  %v2141_v33 = vadd.f32 %v14646_v0, %v14649_v54 }
 0x44b   :  { %11426 = vmatmul.mubr.bf16.gmra.mxu0 %v1212_v27  ;;  %v2288_v22 = vpack.c.bf16 %v2257_v43, %v2256_v52  ;;  %v4322_v35 = vadd.f32 %v14562_v60, %v4282_v29  ;;  %v4376_v38 = vpack.c.bf16 %v4353_v10, %v4352_v19  ;;  %v4359_v10 = vmax.f32 %v4327_v63, 0.0 }
 0x44c   :  { %11445 = vmatprep.mubr.msk.bf16.mxu0 %vm13147_vm0, %v17987_v13  ;;  %v14677_v34 = vpop.f32.mrf.mxu1  ;;  %v14717_v24 = vpop.permute.xlu0 %4935  ;;  %v4356_v49 = vmax.f32 %v4324_v57, 0.0  ;;  %v4329_v7 = vadd.f32 %v14562_v60, %v4289_v58  ;;  %v12441_v58 = vld [vmem:[%s17973_s26] sm:$0xff]   ;;  %v2146_v55 = vadd.f32 %v14649_v54, %v14669_v11  ;;  %v2259_v11 = vmax.f32 %v2141_v33, 0.0  ;;  %v12448_v33 = vld [vmem:[%s17973_s26 + $0x70] sm:$0xff]  }
 0x44d   :  { %11840 = vmatpush3.bf16.msra.mxu1 %v12445_v56  ;;  %v4285_v56 = vmul.f32 %v14543_v37, %v14584_v45  ;;  %v4323_v45 = vadd.f32 %v14562_v60, %v4283_v23  ;;  %v4354_v47 = vmax.f32 %v4322_v35, 0.0  ;;  %v12439_v23 = vld [vmem:[%s17973_s26 + $0x10] sm:$0xff]   ;;  %v4292_v35 = vmul.f32 %v14543_v37, %v14618_v31 }
 0x44e   :  { %v14684_v8 = vpop.f32.mrf.mxu1  ;;  %11841 = vmatprep.subr.bf16.mxu1 %v12447_v16 }
 0x44f   :  { %v4325_v46 = vadd.f32 %v14562_v60, %v4285_v56  ;;  %v4355_v18 = vmax.f32 %v4323_v45, 0.0  ;;  %v4291_v56 = vmul.f32 %v14543_v37, %v14639_v12  ;;  %v4293_v45 = vmul.f32 %v14543_v37, %v14657_v42  ;;  %v14768_v12 = vld [vmem:[%s17932_s30 + $0x4] ss:$0 sm:$0xff] }
 0x450   :  { %v14687_v32 = vpop.f32.mrf.mxu1  ;;  %11762 = vmatmul.mubr.bf16.gmra.mxu1 %v4373_v20  ;;  %v4286_v20 = vmul.f32 %v14543_v37, %v14557_v21  ;;  %v2149_v0 = vadd.f32 %v14649_v54, %v14684_v8 }
 0x451   :  { %11765 = vmatprep.mubr.bf16.mxu1 %v4374_v53  ;;  %11842 = vmatpush3.bf16.msra.mxu1 %v12447_v16  ;;  %v4357_v52 = vmax.f32 %v4325_v46, 0.0  ;;  %v4377_v53 = vpack.c.bf16 %v4355_v18, %v4354_v47  ;;  %v12440_v46 = vld [vmem:[%s17973_s26 + $0x8] sm:$0xff]   ;;  %v4331_v42 = vadd.f32 %v14562_v60, %v4291_v56  ;;  %v4332_v47 = vadd.f32 %v14562_v60, %v4292_v35  ;;  %v12446_v56 = vld [vmem:[%s17973_s26 + $0x78] sm:$0xff]  }
 0x452   :  { %v14702_v48 = vpop.f32.mrf.mxu1  ;;  %11843 = vmatprep.subr.bf16.mxu1 %v12449_v36  ;;  %v4326_v62 = vadd.f32 %v14562_v60, %v4286_v20  ;;  %v4294_v18 = vmul.f32 %v14543_v37, %v14641_v61  ;;  %v5052_v20 = vmul.f32 %v14768_v12, %v14652_v44  ;;  %v14787_v61 = vld [vmem:[%s17937_s23 + $0x4] ss:$0 sm:$0xff] }
 0x453   :  { %11446 = vmatmul.mubr.bf16.vlgmr.msra.gmra.mxu0 %v1512_v9  ;;  %v12438_v9 = vld [vmem:[%s17973_s26 + $0x18] sm:$0xff]   ;;  %v4378_v26 = vpack.c.bf16 %v4357_v52, %v4356_v49  ;;  %v4363_v44 = vmax.f32 %v4331_v42, 0.0 }
 0x454   :  { %11498 = vmatpush3.bf16.msra.mxu0 %v14496_v39  ;;  %11513 = vmatprep.mubr.bf16.mxu0 %v2288_v22  ;;  %v14707_v51 = vpop.f32.mrf.mxu1  ;;  %v14715_v39 = vpop.permute.xlu1 %4939  ;;  %v4358_v19 = vmax.f32 %v4326_v62, 0.0 }
 0x455   :  { %11499 = vmatprep.subr.bf16.mxu0 %v12432_v30  ;;  %11844 = vmatpush3.bf16.msra.mxu1 %v12449_v36  ;;  %v14738_v22 = vpop.permute.xlu0 %4943 }
 0x456   :  { %v14713_v27 = vpop.f32.mrf.mxu1  ;;  %11845 = vmatprep.subr.bf16.mxu1 %v12451_v4 }
 0x458   :  { %11500 = vmatpush3.bf16.msra.mxu0 %v12432_v30  ;;  %v14720_v16 = vpop.f32.mrf.mxu1  ;;  %11766 = vmatmul.mubr.bf16.gmra.mxu1 %v4375_v50  ;;  %v14736_v21 = vpop.permute.xlu1 %4947  ;;  %v4290_v30 = vmul.f32 %v14543_v37, %v14602_v59  ;;  %v4361_v50 = vmax.f32 %v4329_v7, 0.0  ;;  %v4364_v7 = vmax.f32 %v4332_v47, 0.0 }
 0x459   :  { %11501 = vmatprep.subr.bf16.mxu0 %v12434_v28  ;;  %11769 = vmatprep.mubr.bf16.mxu1 %v4376_v38  ;;  %v14761_v59 = vpop.permute.xlu0 %4951 }
 0x45a   :  { %v14723_v43 = vpop.f32.mrf.mxu1  ;;  %11846 = vmatpush3.bf16.msra.mxu1 %v12451_v4  ;;  %v4360_v4 = vmax.f32 %v4328_v5, 0.0  ;;  %v4330_v38 = vadd.f32 %v14562_v60, %v4290_v30  ;;  %v4295_v5 = vmul.f32 %v14543_v37, %v14682_v40 }
 0x45b   :  { %11847 = vmatprep.subr.bf16.mxu1 %v12453_v6 }
 0x45c   :  { %11502 = vmatpush3.bf16.msra.mxu0 %v12434_v28  ;;  %v14733_v36 = vpop.f32.mrf.mxu1  ;;  %v14759_v28 = vpop.permute.xlu1 %4955  ;;  %v4380_v49 = vpack.c.bf16 %v4361_v50, %v4360_v4  ;;  %v2260_v4 = vmax.f32 %v2146_v55, 0.0  ;;  %v2261_v50 = vmax.f32 %v2149_v0, 0.0  ;;  %v4335_v37 = vadd.f32 %v14562_v60, %v4295_v5  ;;  %v12450_v5 = vld [vmem:[%s17973_s26 + $0x68] sm:$0xff]  }
 0x45d   :  { %11503 = vmatprep.subr.bf16.mxu0 %v12436_v3  ;;  %v14793_v62 = vpop.permute.xlu0 %4959 }
 0x45e   :  { %v14741_v41 = vpop.f32.mrf.mxu1  ;;  %11848 = vmatpush3.bf16.msra.mxu1 %v12453_v6  ;;  %v4379_v6 = vpack.c.bf16 %v4359_v10, %v4358_v19  ;;  %v5092_v19 = vadd.f32 %v14787_v61, %v5052_v20  ;;  %v2258_v10 = vmax.f32 %v2138_v15, 0.0  ;;  %v2154_v20 = vadd.f32 %v14661_v25, %v14649_v54 }
 0x45f   :  { %v2157_v15 = vadd.f32 %v14677_v34, %v14649_v54 }
 0x460   :  { %11504 = vmatpush3.bf16.msra.mxu0 %v12436_v3  ;;  %v14746_v29 = vpop.f32.mrf.mxu1  ;;  %11770 = vmatmul.mubr.bf16.gmra.mxu1 %v4377_v53  ;;  %v4333_v3 = vadd.f32 %v14562_v60, %v4293_v45  ;;  %v4362_v53 = vmax.f32 %v4330_v38, 0.0  ;;  %v5124_v47 = vmax.f32 %v5092_v19, 0.0 }
 0x461   :  { %11505 = vmatprep.subr.bf16.mxu0 %v12438_v9  ;;  %11773 = vmatprep.mubr.bf16.mxu1 %v4378_v26  ;;  %v14791_v26 = vpop.permute.xlu1 %4963  ;;  %v14816_v42 = vpop.permute.xlu0 %4967 }
 0x462   :  { %v14751_v1 = vpop.f32.mrf.mxu1  ;;  %v4381_v35 = vpack.c.bf16 %v4363_v44, %v4362_v53  ;;  %v2290_v53 = vpack.c.bf16 %v2261_v50, %v2260_v4  ;;  %v2262_v44 = vmax.f32 %v2154_v20, 0.0  ;;  %v5059_v4 = vmul.f32 %v14768_v12, %v14736_v21 }
 0x463   :  { %v5058_v50 = vmul.f32 %v14768_v12, %v14738_v22  ;;  %v2173_v21 = vadd.f32 %v14707_v51, %v14649_v54  ;;  %v12452_v22 = vld [vmem:[%s17973_s26 + $0x60] sm:$0xff]   ;;  %v2178_v51 = vadd.f32 %v14649_v54, %v14723_v43 }
 0x464   :  { %11506 = vmatpush3.bf16.msra.mxu0 %v12438_v9  ;;  %v14763_v57 = vpop.f32.mrf.mxu1  ;;  %v5053_v9 = vmul.f32 %v14768_v12, %v14698_v14  ;;  %v4334_v14 = vadd.f32 %v14562_v60, %v4294_v18  ;;  %v5057_v60 = vmul.f32 %v14768_v12, %v14715_v39  ;;  %v2165_v39 = vadd.f32 %v14649_v54, %v14713_v27 }
 0x465   :  { %11507 = vmatprep.subr.bf16.mxu0 %v12439_v23  ;;  %v5098_v20 = vadd.f32 %v14787_v61, %v5058_v50 }
 0x466   :  { %v14770_v31 = vpop.f32.mrf.mxu1  ;;  %v5093_v8 = vadd.f32 %v14787_v61, %v5053_v9  ;;  %v4366_v40 = vmax.f32 %v4334_v14, 0.0  ;;  %v5097_v0 = vadd.f32 %v14787_v61, %v5057_v60 }
 0x467   :  { %v5130_v43 = vmax.f32 %v5098_v20, 0.0 }
 0x468   :  { %11508 = vmatpush3.bf16.msra.mxu0 %v12439_v23  ;;  %v14777_v52 = vpop.f32.mrf.mxu1  ;;  %11774 = vmatmul.mubr.bf16.gmra.mxu1 %v4379_v6  ;;  %v4365_v23 = vmax.f32 %v4333_v3, 0.0  ;;  %v14814_v6 = vpop.permute.xlu1 %4971  ;;  %v5055_v3 = vmul.f32 %v14768_v12, %v14700_v17  ;;  %v2162_v17 = vadd.f32 %v14649_v54, %v14702_v48  ;;  %v2263_v48 = vmax.f32 %v2157_v15, 0.0 }
 0x469   :  { %11509 = vmatprep.subr.bf16.mxu0 %v12440_v46  ;;  %11777 = vmatprep.mubr.bf16.mxu1 %v4380_v49  ;;  %v5056_v49 = vmul.f32 %v14768_v12, %v14717_v24  ;;  %v4367_v24 = vmax.f32 %v4335_v37, 0.0 }
 0x46a   :  { %v14799_v63 = vpop.f32.mrf.mxu1  ;;  %v4382_v38 = vpack.c.bf16 %v4365_v23, %v4364_v7  ;;  %v5095_v55 = vadd.f32 %v14787_v61, %v5055_v3  ;;  %v14846_v23 = vpop.permute.xlu0 %4975  ;;  %v2264_v19 = vmax.f32 %v2162_v17, 0.0  ;;  %v2170_v3 = vadd.f32 %v14687_v32, %v14649_v54 }
 0x46b   :  { %v5096_v27 = vadd.f32 %v14787_v61, %v5056_v49 }
 0x46c   :  { %11510 = vmatpush3.bf16.msra.mxu0 %v12440_v46  ;;  %v14804_v30 = vpop.f32.mrf.mxu1  ;;  %v5054_v46 = vmul.f32 %v14768_v12, %v14673_v2  ;;  %v2289_v2 = vpack.c.bf16 %v2259_v11, %v2258_v10  ;;  %v14844_v14 = vpop.permute.xlu1 %4979  ;;  %v2265_v10 = vmax.f32 %v2165_v39, 0.0  ;;  %v4383_v11 = vpack.c.bf16 %v4367_v24, %v4366_v40  ;;  %v12454_v39 = vld [vmem:[%s17973_s26 + $0x58] sm:$0xff]  }
 0x46d   :  { %11511 = vmatprep.subr.bf16.mxu0 %v12441_v58  ;;  %v5060_v40 = vmul.f32 %v14768_v12, %v14761_v59  ;;  %v5128_v60 = vmax.f32 %v5096_v27, 0.0  ;;  %v5099_v59 = vadd.f32 %v14787_v61, %v5059_v4  ;;  %v2266_v17 = vmax.f32 %v2170_v3, 0.0  ;;  %v12455_v4 = vld [vmem:[%s17973_s26 + $0x50] sm:$0xff]  }
 0x46e   :  { %v14809_v45 = vpop.f32.mrf.mxu1  ;;  %v5094_v25 = vadd.f32 %v14787_v61, %v5054_v46  ;;  %v5129_v46 = vmax.f32 %v5097_v0, 0.0  ;;  %v2292_v49 = vpack.c.bf16 %v2265_v10, %v2264_v19  ;;  %v14873_v15 = vpop.permute.xlu0 %4983  ;;  %v5062_v19 = vmul.f32 %v14768_v12, %v14793_v62 }
 0x46f   :  { %v5100_v24 = vadd.f32 %v14787_v61, %v5060_v40  ;;  %v5065_v10 = vmul.f32 %v14768_v12, %v14814_v6  ;;  %v2197_v6 = vadd.f32 %v14649_v54, %v14770_v31 }
 0x470   :  { %11512 = vmatpush3.bf16.msra.mxu0 %v12441_v58  ;;  %v14818_v18 = vpop.f32.mrf.mxu1  ;;  %11778 = vmatmul.mubr.bf16.gmra.mxu1 %v4381_v35  ;;  %v5125_v58 = vmax.f32 %v5093_v8, 0.0  ;;  %v5126_v8 = vmax.f32 %v5094_v25, 0.0  ;;  %v5127_v35 = vmax.f32 %v5095_v55, 0.0  ;;  %v14871_v32 = vpop.permute.xlu1 %4987  ;;  %v5158_v25 = vpack.c.bf16 %v5129_v46, %v5128_v60  ;;  %v12456_v60 = vld [vmem:[%s17973_s26 + $0x48] sm:$0xff]  }
 0x471   :  { %11593 = vmatprep.subr.bf16.mxu0 %v12446_v56  ;;  %11781 = vmatprep.mubr.bf16.mxu1 %v4382_v38  ;;  %v5061_v38 = vmul.f32 %v14768_v12, %v14759_v28  ;;  %v5132_v50 = vmax.f32 %v5100_v24, 0.0  ;;  %v5105_v31 = vadd.f32 %v14787_v61, %v5065_v10 }
 0x472   :  { %v14835_v9 = vpop.f32.mrf.mxu1  ;;  %v5156_v7 = vpack.c.bf16 %v5125_v58, %v5124_v47  ;;  %v2291_v47 = vpack.c.bf16 %v2263_v48, %v2262_v44  ;;  %v5131_v44 = vmax.f32 %v5099_v59, 0.0  ;;  %v5063_v48 = vmul.f32 %v14768_v12, %v14791_v26  ;;  %v14899_v46 = vpop.permute.xlu0 %4991 }
 0x473   :  { %11514 = vmatmul.mubr.bf16.vlgmr.msra.gmra.mxu0 %v2289_v2  ;;  %v2181_v2 = vadd.f32 %v14649_v54, %v14741_v41  ;;  %v5101_v41 = vadd.f32 %v14787_v61, %v5061_v38  ;;  %v5064_v26 = vmul.f32 %v14768_v12, %v14816_v42  ;;  %v2194_v42 = vadd.f32 %v14649_v54, %v14751_v1 }
 0x474   :  { %11517 = vmatprep.mubr.bf16.mxu0 %v2290_v53  ;;  %11594 = vmatpush3.bf16.msra.mxu0 %v12446_v56  ;;  %v14838_v34 = vpop.f32.mrf.mxu1  ;;  %v2267_v53 = vmax.f32 %v2173_v21, 0.0  ;;  %v5159_v40 = vpack.c.bf16 %v5131_v44, %v5130_v43  ;;  %v5102_v21 = vadd.f32 %v14787_v61, %v5062_v19  ;;  %v2205_v43 = vadd.f32 %v14763_v57, %v14649_v54 }
 0x475   :  { %11595 = vmatprep.subr.bf16.mxu0 %v12448_v33  ;;  %v2269_v55 = vmax.f32 %v2181_v2, 0.0  ;;  %v2273_v2 = vmax.f32 %v2197_v6, 0.0  ;;  %v14946_v6 = vld [vmem:[%s17973_s26 + $0xb8] sm:$0xff]  }
 0x476   :  { %v14848_v56 = vpop.f32.mrf.mxu1 }
 0x478   :  { %11596 = vmatpush3.bf16.msra.mxu0 %v12448_v33  ;;  %v14854_v37 = vpop.f32.mrf.mxu1  ;;  %11782 = vmatmul.mubr.bf16.gmra.mxu1 %v4383_v11  ;;  %v5157_v33 = vpack.c.bf16 %v5127_v35, %v5126_v8  ;;  %v2293_v11 = vpack.c.bf16 %v2267_v53, %v2266_v17  ;;  %v2189_v8 = vadd.f32 %v14733_v36, %v14649_v54  ;;  %v14897_v35 = vpop.permute.xlu1 %4995  ;;  %v2272_v53 = vmax.f32 %v2194_v42, 0.0 }
 0x479   :  { %11597 = vmatprep.subr.bf16.mxu0 %v12450_v5  ;;  %11849 = vmatprep.mubr.bf16.mxu1 %v5156_v7  ;;  %v5133_v7 = vmax.f32 %v5101_v41, 0.0  ;;  %v2186_v36 = vadd.f32 %v14720_v16, %v14649_v54  ;;  %v5104_v16 = vadd.f32 %v14787_v61, %v5064_v26  ;;  %v5000_v17 = vpop.permute.xlu0 %4999 }
 0x47a   :  { %v14867_v28 = vpop.f32.mrf.mxu1 }
 0x47b   :  { %11518 = vmatmul.mubr.bf16.gmra.mxu0 %v2291_v47  ;;  %v5103_v47 = vadd.f32 %v14787_v61, %v5063_v48  ;;  %v2270_v20 = vmax.f32 %v2186_v36, 0.0  ;;  %v5136_v48 = vmax.f32 %v5104_v16, 0.0  ;;  %v5070_v16 = vmul.f32 %v14768_v12, %v14899_v46 }
 0x47c   :  { %11521 = vmatprep.mubr.bf16.mxu0 %v2292_v49  ;;  %11598 = vmatpush3.bf16.msra.mxu0 %v12450_v5  ;;  %v14877_v58 = vpop.f32.mrf.mxu1  ;;  %v2268_v5 = vmax.f32 %v2178_v51, 0.0  ;;  %v5160_v49 = vpack.c.bf16 %v5133_v7, %v5132_v50  ;;  %v5067_v51 = vmul.f32 %v14768_v12, %v14844_v14  ;;  %v5004_v41 = vpop.permute.xlu1 %5003  ;;  %v12457_v14 = vld [vmem:[%s17973_s26 + $0x40] sm:$0xff]   ;;  %v2213_v7 = vadd.f32 %v14649_v54, %v14809_v45 }
 0x47d   :  { %11599 = vmatprep.subr.bf16.mxu0 %v12452_v22  ;;  %v5135_v1 = vmax.f32 %v5103_v47, 0.0  ;;  %v2218_v46 = vadd.f32 %v14777_v52, %v14649_v54 }
 0x47e   :  { %v14882_v0 = vpop.f32.mrf.mxu1  ;;  %v2294_v62 = vpack.c.bf16 %v2269_v55, %v2268_v5  ;;  %v5069_v55 = vmul.f32 %v14768_v12, %v14871_v32  ;;  %v2296_v5 = vpack.c.bf16 %v2273_v2, %v2272_v53  ;;  %v2202_v32 = vadd.f32 %v14746_v29, %v14649_v54 }
 0x47f   :  { %v5107_v57 = vadd.f32 %v14787_v61, %v5067_v51  ;;  %v2277_v36 = vmax.f32 %v2213_v7, 0.0  ;;  %v5072_v51 = vmul.f32 %v14768_v12, %v5000_v17 }
 0x480   :  { %11600 = vmatpush3.bf16.msra.mxu0 %v12452_v22  ;;  %v14886_v27 = vpop.f32.mrf.mxu1  ;;  %11850 = vmatmul.mubr.bf16.vlgmr.msra.gmra.mxu1 %v5157_v33  ;;  %v2271_v22 = vmax.f32 %v2189_v8, 0.0  ;;  %v5066_v33 = vmul.f32 %v14768_v12, %v14846_v23  ;;  %v5068_v23 = vmul.f32 %v14768_v12, %v14873_v15  ;;  %v5109_v45 = vadd.f32 %v14787_v61, %v5069_v55  ;;  %v5012_v26 = vpop.permute.xlu1 %5011 }
 0x481   :  { %11601 = vmatprep.subr.bf16.mxu0 %v12454_v39  ;;  %11853 = vmatprep.mubr.bf16.mxu1 %v5158_v25  ;;  %v5137_v25 = vmax.f32 %v5105_v31, 0.0  ;;  %v5139_v47 = vmax.f32 %v5107_v57, 0.0 }
 0x482   :  { %v14903_v38 = vpop.f32.mrf.mxu1  ;;  %v2295_v44 = vpack.c.bf16 %v2271_v22, %v2270_v20  ;;  %v5106_v10 = vadd.f32 %v14787_v61, %v5066_v33  ;;  %v5108_v29 = vadd.f32 %v14787_v61, %v5068_v23  ;;  %v2221_v20 = vadd.f32 %v14804_v30, %v14649_v54 }
 0x483   :  { %11522 = vmatmul.mubr.bf16.gmra.mxu0 %v2293_v11  ;;  %v2210_v11 = vadd.f32 %v14649_v54, %v14799_v63  ;;  %v5162_v50 = vpack.c.bf16 %v5137_v25, %v5136_v48  ;;  %v2274_v63 = vmax.f32 %v2202_v32, 0.0  ;;  %v2229_v33 = vadd.f32 %v14649_v54, %v14848_v56 }
 0x484   :  { %11525 = vmatprep.mubr.bf16.mxu0 %v2294_v62  ;;  %11602 = vmatpush3.bf16.msra.mxu0 %v12454_v39  ;;  %v14910_v3 = vpop.f32.mrf.mxu1  ;;  %v5134_v39 = vmax.f32 %v5102_v21, 0.0  ;;  %v5008_v62 = vpop.permute.xlu0 %5007  ;;  %v5138_v42 = vmax.f32 %v5106_v10, 0.0  ;;  %v5071_v21 = vmul.f32 %v14768_v12, %v14897_v35  ;;  %v2226_v25 = vadd.f32 %v14649_v54, %v14835_v9 }
 0x485   :  { %11603 = vmatprep.subr.bf16.mxu0 %v12455_v4  ;;  %v2276_v31 = vmax.f32 %v2210_v11, 0.0  ;;  %v2281_v48 = vmax.f32 %v2229_v33, 0.0  ;;  %v5075_v32 = vmul.f32 %v14768_v12, %v5012_v26  ;;  %v5074_v9 = vmul.f32 %v14768_v12, %v5008_v62  ;;  %v15001_v33 = vld [vmem:[#allocation13 + $0x1] ss:$0 sm:$0xff] }
 0x486   :  { %v14916_v59 = vpop.f32.mrf.mxu1  ;;  %v5161_v15 = vpack.c.bf16 %v5135_v1, %v5134_v39  ;;  %v5140_v1 = vmax.f32 %v5108_v29, 0.0  ;;  %v5020_v39 = vpop.permute.xlu1 %5019  ;;  %v5163_v17 = vpack.c.bf16 %v5139_v47, %v5138_v42  ;;  %v2280_v57 = vmax.f32 %v2226_v25, 0.0 }
 0x487   :  { %v2298_v35 = vpack.c.bf16 %v2277_v36, %v2276_v31  ;;  %v2237_v29 = vadd.f32 %v14838_v34, %v14649_v54  ;;  %v2245_v62 = vadd.f32 %v14649_v54, %v14882_v0  ;;  %v5115_v31 = vadd.f32 %v14787_v61, %v5075_v32 }
 0x488   :  { %11604 = vmatpush3.bf16.msra.mxu0 %v12455_v4  ;;  %v14922_v24 = vpop.f32.mrf.mxu1  ;;  %11854 = vmatmul.mubr.bf16.gmra.mxu1 %v5159_v40  ;;  %v2275_v4 = vmax.f32 %v2205_v43, 0.0  ;;  %v5016_v30 = vpop.permute.xlu0 %5015  ;;  %v2279_v43 = vmax.f32 %v2221_v20, 0.0  ;;  %v2300_v47 = vpack.c.bf16 %v2281_v48, %v2280_v57  ;;  %v5114_v34 = vadd.f32 %v14787_v61, %v5074_v9 }
 0x489   :  { %11605 = vmatprep.subr.bf16.mxu0 %v12456_v60  ;;  %11857 = vmatprep.mubr.bf16.mxu1 %v5160_v49  ;;  %v5073_v49 = vmul.f32 %v14768_v12, %v5004_v41  ;;  %v5111_v41 = vadd.f32 %v14787_v61, %v5071_v21  ;;  %v5076_v36 = vmul.f32 %v14768_v12, %v5016_v30  ;;  %v2283_v0 = vmax.f32 %v2237_v29, 0.0 }
 0x48a   :  { %v14933_v19 = vpop.f32.mrf.mxu1  ;;  %v2297_v2 = vpack.c.bf16 %v2275_v4, %v2274_v63  ;;  %v5028_v63 = vpop.permute.xlu1 %5027  ;;  %v2234_v21 = vadd.f32 %v14818_v18, %v14649_v54  ;;  %v2919_v9 = vadd.f32 %v15001_v33, %v14916_v59 }
 0x48b   :  { %11526 = vmatmul.mubr.bf16.gmra.mxu0 %v2295_v44  ;;  %v5110_v44 = vadd.f32 %v14787_v61, %v5070_v16  ;;  %v5113_v56 = vadd.f32 %v14787_v61, %v5073_v49  ;;  %v5143_v7 = vmax.f32 %v5111_v41, 0.0  ;;  %v5116_v20 = vadd.f32 %v14787_v61, %v5076_v36 }
 0x48c   :  { %11529 = vmatprep.mubr.bf16.mxu0 %v2296_v5  ;;  %11606 = vmatpush3.bf16.msra.mxu0 %v12456_v60  ;;  %v14941_v8 = vpop.f32.mrf.mxu1  ;;  %v5141_v60 = vmax.f32 %v5109_v45, 0.0  ;;  %v2278_v5 = vmax.f32 %v2218_v46, 0.0  ;;  %v5077_v45 = vmul.f32 %v14768_v12, %v5020_v39  ;;  %v5024_v26 = vpop.permute.xlu0 %5023  ;;  %v5147_v46 = vmax.f32 %v5115_v31, 0.0 }
 0x48d   :  { %11607 = vmatprep.subr.bf16.mxu0 %v12457_v14  ;;  %v5142_v10 = vmax.f32 %v5110_v44, 0.0  ;;  %v5146_v41 = vmax.f32 %v5114_v34, 0.0  ;;  %v5148_v48 = vmax.f32 %v5116_v20, 0.0  ;;  %v2927_v20 = vadd.f32 %v14910_v3, %v15001_v33 }
 0x48e   :  { %v14948_v40 = vpop.f32.mrf.mxu1  ;;  %v5164_v52 = vpack.c.bf16 %v5141_v60, %v5140_v1  ;;  %v2299_v4 = vpack.c.bf16 %v2279_v43, %v2278_v5  ;;  %v2242_v60 = vadd.f32 %v14649_v54, %v14867_v28  ;;  %v5079_v28 = vmul.f32 %v14768_v12, %v5028_v63  ;;  %v5036_v39 = vpop.permute.xlu1 %5035 }
 0x48f   :  { %v5165_v16 = vpack.c.bf16 %v5143_v7, %v5142_v10  ;;  %v5081_v43 = vmul.f32 %v14768_v12, %v5036_v39  ;;  %v2916_v7 = vadd.f32 %v15001_v33, %v14903_v38  ;;  %v2250_v10 = vadd.f32 %v14854_v37, %v14649_v54 }
 0x490   :  { %11608 = vmatpush3.bf16.msra.mxu0 %v12457_v14  ;;  %v14952_v22 = vpop.f32.mrf.mxu1  ;;  %11858 = vmatmul.mubr.bf16.gmra.mxu1 %v5161_v15  ;;  %v5112_v14 = vadd.f32 %v14787_v61, %v5072_v51  ;;  %v5145_v15 = vmax.f32 %v5113_v56, 0.0  ;;  %v2285_v51 = vmax.f32 %v2245_v62, 0.0  ;;  %v5032_v30 = vpop.permute.xlu0 %5031  ;;  %v2284_v25 = vmax.f32 %v2242_v60, 0.0 }
 0x491   :  { %11861 = vmatprep.mubr.bf16.mxu1 %v5162_v50  ;;  %11689 = vmatprep.subr.bf16.mxu0 %v14946_v6  ;;  %v5078_v56 = vmul.f32 %v14768_v12, %v5024_v26  ;;  %v5080_v5 = vmul.f32 %v14768_v12, %v5032_v30  ;;  %v5121_v38 = vadd.f32 %v14787_v61, %v5081_v43  ;;  %v3042_v26 = vmax.f32 %v2916_v7, 0.0 }
 0x492   :  { %v14963_v53 = vpop.f32.mrf.mxu1  ;;  %v5144_v50 = vmax.f32 %v5112_v14, 0.0  ;;  %v2302_v32 = vpack.c.bf16 %v2285_v51, %v2284_v25  ;;  %v5044_v59 = vpop.permute.xlu1 %5043  ;;  %v2286_v37 = vmax.f32 %v2250_v10, 0.0  ;;  %v2932_v51 = vadd.f32 %v15001_v33, %v14933_v19 }
 0x493   :  { %11530 = vmatmul.mubr.bf16.gmra.mxu0 %v2297_v2  ;;  %v5117_v2 = vadd.f32 %v14787_v61, %v5077_v45  ;;  %v5153_v34 = vmax.f32 %v5121_v38, 0.0  ;;  %v5083_v60 = vmul.f32 %v14768_v12, %v5044_v59  ;;  %v3045_v30 = vmax.f32 %v2927_v20, 0.0 }
 0x494   :  { %11533 = vmatprep.mubr.bf16.mxu0 %v2298_v35  ;;  %v14970_v55 = vpop.f32.mrf.mxu1  ;;  %v5166_v1 = vpack.c.bf16 %v5145_v15, %v5144_v50  ;;  %v2282_v35 = vmax.f32 %v2234_v21, 0.0  ;;  %v5119_v15 = vadd.f32 %v14787_v61, %v5079_v28  ;;  %v5120_v50 = vadd.f32 %v14787_v61, %v5080_v5  ;;  %v5040_v36 = vpop.permute.xlu0 %5039  ;;  %v12459_v5 = vld [vmem:[%s17973_s26 + $0xb0] sm:$0xff]  }
 0x495   :  { %v5149_v44 = vmax.f32 %v5117_v2, 0.0  ;;  %v3046_v19 = vmax.f32 %v2932_v51, 0.0  ;;  %v2948_v7 = vadd.f32 %v15001_v33, %v14963_v53  ;;  %v2959_v59 = vadd.f32 %v14970_v55, %v15001_v33  ;;  %v12462_v55 = vld [vmem:[%s17973_s26 + $0x98] sm:$0xff]  }
 0x496   :  { %v14975_v23 = vpop.f32.mrf.mxu1  ;;  %v2301_v14 = vpack.c.bf16 %v2283_v0, %v2282_v35  ;;  %v5151_v62 = vmax.f32 %v5119_v15, 0.0  ;;  %v2924_v0 = vadd.f32 %v14886_v27, %v15001_v33  ;;  %v5123_v27 = vadd.f32 %v14787_v61, %v5083_v60 }
 0x497   :  { %v5168_v63 = vpack.c.bf16 %v5149_v44, %v5148_v48  ;;  %v2940_v48 = vadd.f32 %v14922_v24, %v15001_v33  ;;  %v3050_v38 = vmax.f32 %v2948_v7, 0.0 }
 0x498   :  { %v14979_v11 = vpop.f32.mrf.mxu1  ;;  %11862 = vmatmul.mubr.bf16.gmra.mxu1 %v5163_v17  ;;  %v3044_v39 = vmax.f32 %v2924_v0, 0.0  ;;  %v12463_v0 = vld [vmem:[%s17973_s26 + $0x90] sm:$0xff]  }
 0x499   :  { %11865 = vmatprep.mubr.bf16.mxu1 %v5164_v52  ;;  %v2253_v52 = vadd.f32 %v14877_v58, %v14649_v54  ;;  %v5167_v58 = vpack.c.bf16 %v5147_v46, %v5146_v41  ;;  %v2935_v46 = vadd.f32 %v15001_v33, %v14948_v40  ;;  %v5155_v40 = vmax.f32 %v5123_v27, 0.0  ;;  %v12464_v27 = vld [vmem:[%s17973_s26 + $0x88] sm:$0xff]  }
 0x49a   :  { %v14987_v42 = vpop.f32.mrf.mxu1 }
 0x49b   :  { %11534 = vmatmul.mubr.bf16.gmra.mxu0 %v2299_v4  ;;  %v5118_v4 = vadd.f32 %v14787_v61, %v5078_v56  ;;  %v2287_v29 = vmax.f32 %v2253_v52, 0.0  ;;  %v3047_v44 = vmax.f32 %v2935_v46, 0.0  ;;  %v3075_v52 = vpack.c.bf16 %v3045_v30, %v3044_v39 }
 0x49c   :  { %11537 = vmatprep.mubr.bf16.mxu0 %v2300_v47  ;;  %v14995_v49 = vpop.f32.mrf.mxu1  ;;  %v3043_v47 = vmax.f32 %v2919_v9, 0.0  ;;  %v2951_v9 = vadd.f32 %v15001_v33, %v14975_v23 }
 0x49d   :  { %v5150_v21 = vmax.f32 %v5118_v4, 0.0  ;;  %v2303_v2 = vpack.c.bf16 %v2287_v29, %v2286_v37  ;;  %v12460_v4 = vld [vmem:[%s17973_s26 + $0xa8] sm:$0xff]   ;;  %v2964_v37 = vadd.f32 %v15001_v33, %v14987_v42  ;;  %v2975_v42 = vadd.f32 %v14995_v49, %v15001_v33 }
 0x49e   :  { %v14999_v18 = vpop.f32.mrf.mxu1  ;;  %v3074_v35 = vpack.c.bf16 %v3043_v47, %v3042_v26  ;;  %v3051_v53 = vmax.f32 %v2951_v9, 0.0 }
 0x49f   :  { %v2967_v26 = vadd.f32 %v15001_v33, %v14999_v18  ;;  %v3057_v49 = vmax.f32 %v2975_v42, 0.0 }
 0x4a0   :  { %v15004_v17 = vpop.f32.mrf.mxu1  ;;  %11866 = vmatmul.mubr.bf16.gmra.mxu1 %v5165_v16  ;;  %v5082_v16 = vmul.f32 %v14768_v12, %v5040_v36  ;;  %v5169_v12 = vpack.c.bf16 %v5151_v62, %v5150_v21  ;;  %v12461_v36 = vld [vmem:[%s17973_s26 + $0xa0] sm:$0xff]   ;;  %v3053_v21 = vmax.f32 %v2959_v59, 0.0 }
 0x4a1   :  { %11869 = vmatprep.mubr.bf16.mxu1 %v5166_v1  ;;  %v5152_v1 = vmax.f32 %v5120_v50, 0.0 }
 0x4a2   :  { %v15015_v57 = vpop.f32.mrf.mxu1  ;;  %v5122_v3 = vadd.f32 %v14787_v61, %v5082_v16  ;;  %v2943_v61 = vadd.f32 %v14941_v8, %v15001_v33  ;;  %v3048_v8 = vmax.f32 %v2940_v48, 0.0  ;;  %v3054_v16 = vmax.f32 %v2964_v37, 0.0 }
 0x4a3   :  { %11538 = vmatmul.mubr.bf16.gmra.mxu0 %v2301_v14  ;;  %v5170_v25 = vpack.c.bf16 %v5153_v34, %v5152_v1  ;;  %v3055_v34 = vmax.f32 %v2967_v26, 0.0  ;;  %v2980_v46 = vadd.f32 %v15001_v33, %v15015_v57  ;;  %v2988_v48 = vadd.f32 %v15004_v17, %v15001_v33 }
 0x4a4   :  { %11541 = vmatprep.mubr.bf16.mxu0 %v2302_v32  ;;  %v15020_v45 = vpop.f32.mrf.mxu1  ;;  %v5154_v43 = vmax.f32 %v5122_v3, 0.0  ;;  %v3076_v32 = vpack.c.bf16 %v3047_v44, %v3046_v19  ;;  %v12465_v44 = vld [vmem:[%s17973_s26 + $0x80] sm:$0xff]  }
 0x4a5   :  { %v3080_v20 = vpack.c.bf16 %v3055_v34, %v3054_v16  ;;  %v2991_v57 = vadd.f32 %v15020_v45, %v15001_v33 }
 0x4a6   :  { %v15025_v54 = vpop.f32.mrf.mxu1  ;;  %v5171_v15 = vpack.c.bf16 %v5155_v40, %v5154_v43 }
 0x4a7   :  { %v2983_v1 = vadd.f32 %v15001_v33, %v15025_v54  ;;  %v3061_v7 = vmax.f32 %v2991_v57, 0.0 }
 0x4a8   :  { %v15027_v31 = vpop.f32.mrf.mxu1  ;;  %11870 = vmatmul.mubr.bf16.gmra.mxu1 %v5167_v58  ;;  %v3049_v58 = vmax.f32 %v2943_v61, 0.0 }
 0x4a9   :  { %11873 = vmatprep.mubr.bf16.mxu1 %v5168_v63  ;;  %v3078_v63 = vpack.c.bf16 %v3051_v53, %v3050_v38  ;;  %v3059_v3 = vmax.f32 %v2983_v1, 0.0  ;;  %v3004_v59 = vadd.f32 %v15027_v31, %v15001_v33 }
 0x4aa   :  { %v15039_v41 = vpop.f32.mrf.mxu1  ;;  %v3077_v50 = vpack.c.bf16 %v3049_v58, %v3048_v8 }
 0x4ab   :  { %11542 = vmatmul.mubr.bf16.gmra.mxu0 %v2303_v2 }
 0x4ac   :  { %11609 = vmatprep.mubr.bf16.mxu0 %v3074_v35  ;;  %v15041_v28 = vpop.f32.mrf.mxu1  ;;  %v2972_v35 = vadd.f32 %v14979_v11, %v15001_v33 }
 0x4ae   :  { %v15045_v56 = vpop.f32.mrf.mxu1  ;;  %v3056_v54 = vmax.f32 %v2972_v35, 0.0 }
 0x4af   :  { %v2999_v43 = vadd.f32 %v15001_v33, %v15045_v56 }
 0x4b0   :  { %v15047_v14 = vpop.f32.mrf.mxu1  ;;  %11874 = vmatmul.mubr.bf16.gmra.mxu1 %v5169_v12  ;;  %v3081_v19 = vpack.c.bf16 %v3057_v49, %v3056_v54  ;;  %v15169_v54 = vld [vmem:[#allocation13 + $0x2] ss:$0 sm:$0xff] }
 0x4b1   :  { %11877 = vmatprep.mubr.bf16.mxu1 %v5170_v25  ;;  %v3058_v25 = vmax.f32 %v2980_v46, 0.0  ;;  %v3063_v56 = vmax.f32 %v2999_v43, 0.0 }
 0x4b2   :  { %v15058_v10 = vpop.f32.mrf.mxu1 }
 0x4b3   :  { %11610 = vmatmul.mubr.bf16.vlgmr.msra.gmra.mxu0 %v3075_v52  ;;  %v3082_v40 = vpack.c.bf16 %v3059_v3, %v3058_v25 }
 0x4b4   :  { %11613 = vmatprep.mubr.bf16.mxu0 %v3076_v32  ;;  %11690 = vmatpush3.bf16.msra.mxu0 %v14946_v6  ;;  %v15061_v24 = vpop.f32.mrf.mxu1  ;;  %v2956_v6 = vadd.f32 %v14952_v22, %v15001_v33  ;;  %v15122_v32 = vld [vmem:[%s17973_s26 + $0xf8] sm:$0xff]  }
 0x4b5   :  { %11691 = vmatprep.subr.bf16.mxu0 %v12459_v5  ;;  %v3023_v31 = vadd.f32 %v15061_v24, %v15001_v33  ;;  %v12478_v24 = vld [vmem:[#allocation16 + $0x78] sm:$0xff]  }
 0x4b6   :  { %v15064_v29 = vpop.f32.mrf.mxu1  ;;  %v3052_v22 = vmax.f32 %v2956_v6, 0.0  ;;  %10829 = vmatprep.subr.bf16.mxu1 %v12478_v24 }
 0x4b7   :  { %v3015_v53 = vadd.f32 %v15001_v33, %v15064_v29  ;;  %v3064_v29 = vmax.f32 %v3004_v59, 0.0  ;;  %v3069_v46 = vmax.f32 %v3023_v31, 0.0 }
 0x4b8   :  { %11692 = vmatpush3.bf16.msra.mxu0 %v12459_v5  ;;  %v15066_v23 = vpop.f32.mrf.mxu1  ;;  %11878 = vmatmul.mubr.bf16.gmra.mxu1 %v5171_v15  ;;  %v3079_v2 = vpack.c.bf16 %v3053_v21, %v3052_v22  ;;  %v2996_v5 = vadd.f32 %v15001_v33, %v15039_v41  ;;  %v3060_v15 = vmax.f32 %v2988_v48, 0.0  ;;  %v3007_v41 = vadd.f32 %v15041_v28, %v15001_v33 }
 0x4b9   :  { %11693 = vmatprep.subr.bf16.mxu0 %v12460_v4  ;;  %v3067_v37 = vmax.f32 %v3015_v53, 0.0  ;;  %v12485_v53 = vld [vmem:[#allocation16 + $0x28] sm:$0xff]  }
 0x4ba   :  { %v15075_v47 = vpop.f32.mrf.mxu1  ;;  %v3062_v17 = vmax.f32 %v2996_v5, 0.0  ;;  %v3065_v28 = vmax.f32 %v3007_v41, 0.0 }
 0x4bb   :  { %11614 = vmatmul.mubr.bf16.gmra.mxu0 %v3077_v50 }
 0x4bc   :  { %11617 = vmatprep.mubr.bf16.mxu0 %v3078_v63  ;;  %11694 = vmatpush3.bf16.msra.mxu0 %v12460_v4  ;;  %v15079_v62 = vpop.f32.mrf.mxu1  ;;  %v3083_v4 = vpack.c.bf16 %v3061_v7, %v3060_v15  ;;  %v3084_v38 = vpack.c.bf16 %v3063_v56, %v3062_v17  ;;  %v3085_v34 = vpack.c.bf16 %v3065_v28, %v3064_v29  ;;  %v12482_v7 = vld [vmem:[#allocation16 + $0x30] sm:$0xff]  }
 0x4bd   :  { %11695 = vmatprep.subr.bf16.mxu0 %v12461_v36  ;;  %v3039_v57 = vadd.f32 %v15079_v62, %v15001_v33  ;;  %v3036_v56 = vadd.f32 %v15066_v23, %v15001_v33 }
 0x4be   :  { %v15082_v60 = vpop.f32.mrf.mxu1 }
 0x4bf   :  { %v3073_v17 = vmax.f32 %v3039_v57, 0.0  ;;  %v3072_v59 = vmax.f32 %v3036_v56, 0.0 }
 0x4c0   :  { %11696 = vmatpush3.bf16.msra.mxu0 %v12461_v36  ;;  %v15084_v18 = vpop.f32.mrf.mxu1  ;;  %v3012_v36 = vadd.f32 %v15001_v33, %v15058_v10 }
 0x4c1   :  { %11697 = vmatprep.subr.bf16.mxu0 %v12462_v55  ;;  %v3089_v23 = vpack.c.bf16 %v3073_v17, %v3072_v59  ;;  %v3712_v28 = vadd.f32 %v15084_v18, %v15169_v54 }
 0x4c2   :  { %v15091_v51 = vpop.f32.mrf.mxu1  ;;  %v3066_v21 = vmax.f32 %v3012_v36, 0.0 }
 0x4c3   :  { %11618 = vmatmul.mubr.bf16.gmra.mxu0 %v3079_v2  ;;  %v15102_v30 = vpop.f32.mrf.mxu0  ;;  %v3031_v2 = vadd.f32 %v15001_v33, %v15082_v60  ;;  %v12479_v60 = vld [vmem:[#allocation16 + $0x38] sm:$0xff]  }
 0x4c4   :  { %11621 = vmatprep.mubr.bf16.mxu0 %v3080_v20  ;;  %11698 = vmatpush3.bf16.msra.mxu0 %v12462_v55  ;;  %v15097_v12 = vpop.f32.mrf.mxu1  ;;  %17989 = vst [vmem:[#allocation67_spill] sm:$0xff] %v15102_v30  ;;  %v3086_v10 = vpack.c.bf16 %v3067_v37, %v3066_v21  ;;  %v3028_v20 = vadd.f32 %v15001_v33, %v15075_v47  ;;  %v12487_v21 = vld [vmem:[#allocation16 + $0x60] sm:$0xff]  }
 0x4c5   :  { %11699 = vmatprep.subr.bf16.mxu0 %v12463_v0  ;;  %v15115_v61 = vpop.f32.mrf.mxu0  ;;  %v3071_v49 = vmax.f32 %v3031_v2, 0.0  ;;  %10830 = vmatpush3.bf16.msra.mxu1 %v12479_v60  ;;  %v3715_v37 = vadd.f32 %v15097_v12, %v15169_v54  ;;  %v3832_v12 = vmax.f32 %v3712_v28, 0.0 }
 0x4c6   :  { %v15100_v39 = vpop.f32.mrf.mxu1  ;;  %17990 = vst [vmem:[#allocation65_spill] sm:$0xff] %v15115_v61 }
 0x4c7   :  { %v15126_v8 = vpop.f32.mrf.mxu0  ;;  %v3707_v48 = vadd.f32 %v15169_v54, %v15100_v39 }
 0x4c8   :  { %11700 = vmatpush3.bf16.msra.mxu0 %v12463_v0  ;;  %v15104_v11 = vpop.f32.mrf.mxu1  ;;  %17991 = vst [vmem:[#allocation68_spill] sm:$0xff] %v15126_v8  ;;  %v3020_v0 = vadd.f32 %v15047_v14, %v15001_v33  ;;  %v3070_v14 = vmax.f32 %v3028_v20, 0.0 }
 0x4c9   :  { %11701 = vmatprep.subr.bf16.mxu0 %v12464_v27  ;;  %v15137_v6 = vpop.f32.mrf.mxu0  ;;  %v3831_v39 = vmax.f32 %v3707_v48, 0.0  ;;  %v12467_v48 = vld [vmem:[%s17973_s26 + $0xf0] sm:$0xff]  }
 0x4ca   :  { %v15111_v52 = vpop.f32.mrf.mxu1  ;;  %17992 = vst [vmem:[#allocation72_spill] sm:$0xff] %v15137_v6  ;;  %v3068_v3 = vmax.f32 %v3020_v0, 0.0  ;;  %v3088_v43 = vpack.c.bf16 %v3071_v49, %v3070_v14  ;;  %v12488_v0 = vld [vmem:[#allocation16 + $0x20] sm:$0xff]  }
 0x4cb   :  { %11622 = vmatmul.mubr.bf16.gmra.mxu0 %v3081_v19 }
 0x4cc   :  { %11625 = vmatprep.mubr.bf16.mxu0 %v3082_v40  ;;  %11702 = vmatpush3.bf16.msra.mxu0 %v12464_v27  ;;  %v15119_v45 = vpop.f32.mrf.mxu1  ;;  %v3087_v47 = vpack.c.bf16 %v3069_v46, %v3068_v3  ;;  %v3704_v40 = vadd.f32 %v15169_v54, %v15091_v51  ;;  %v3833_v46 = vmax.f32 %v3715_v37, 0.0  ;;  %v12491_v3 = vld [vmem:[#allocation16 + $0x18] sm:$0xff]  }
 0x4cd   :  { %11703 = vmatprep.subr.bf16.mxu0 %v12465_v44 }
 0x4ce   :  { %v15124_v9 = vpop.f32.mrf.mxu1  ;;  %v3830_v41 = vmax.f32 %v3704_v40, 0.0  ;;  %v3863_v57 = vpack.c.bf16 %v3833_v46, %v3832_v12  ;;  %v3731_v40 = vadd.f32 %v15119_v45, %v15169_v54 }
 0x4d0   :  { %11704 = vmatpush3.bf16.msra.mxu0 %v12465_v44  ;;  %v15128_v58 = vpop.f32.mrf.mxu1  ;;  %v12481_v44 = vld [vmem:[#allocation16 + $0x70] sm:$0xff]   ;;  %v3862_v31 = vpack.c.bf16 %v3831_v39, %v3830_v41  ;;  %v3837_v59 = vmax.f32 %v3731_v40, 0.0 }
 0x4d1   :  { %11785 = vmatprep.subr.bf16.mxu0 %v15122_v32  ;;  %10831 = vmatprep.subr.bf16.mxu1 %v12481_v44  ;;  %v3728_v44 = vadd.f32 %v15104_v11, %v15169_v54  ;;  %v12493_v39 = vld [vmem:[#allocation16 + $0x10] sm:$0xff]  }
 0x4d2   :  { %v15135_v50 = vpop.f32.mrf.mxu1  ;;  %10832 = vmatpush3.bf16.msra.mxu1 %v12482_v7  ;;  %v12492_v7 = vld [vmem:[#allocation16 + $0x50] sm:$0xff]  }
 0x4d3   :  { %11626 = vmatmul.mubr.bf16.gmra.mxu0 %v3083_v4  ;;  %v15145_v26 = vpop.f32.mrf.mxu0  ;;  %v12484_v4 = vld [vmem:[#allocation16 + $0x68] sm:$0xff]   ;;  %v3736_v56 = vadd.f32 %v15169_v54, %v15135_v50  ;;  %v12468_v50 = vld [vmem:[%s17973_s26 + $0xe8] sm:$0xff]  }
 0x4d4   :  { %11629 = vmatprep.mubr.bf16.mxu0 %v3084_v38  ;;  %v15143_v63 = vpop.f32.mrf.mxu1  ;;  %17993 = vst [vmem:[#allocation75_spill] sm:$0xff] %v15145_v26  ;;  %10833 = vmatprep.subr.bf16.mxu1 %v12484_v4 }
 0x4d5   :  { %v15151_v16 = vpop.f32.mrf.mxu0  ;;  %v3838_v28 = vmax.f32 %v3736_v56, 0.0  ;;  %v3747_v12 = vadd.f32 %v15143_v63, %v15169_v54 }
 0x4d6   :  { %v15147_v22 = vpop.f32.mrf.mxu1  ;;  %17994 = vst [vmem:[#allocation69_spill] sm:$0xff] %v15151_v16  ;;  %10834 = vmatpush3.bf16.msra.mxu1 %v12485_v53  ;;  %v3836_v53 = vmax.f32 %v3728_v44, 0.0  ;;  %v12497_v44 = vld [vmem:[#allocation16] sm:$0xff]  }
 0x4d7   :  { %v15165_v35 = vpop.f32.mrf.mxu0  ;;  %10835 = vmatprep.subr.bf16.mxu1 %v12487_v21  ;;  %v3739_v4 = vadd.f32 %v15169_v54, %v15147_v22  ;;  %v12494_v22 = vld [vmem:[#allocation16 + $0x48] sm:$0xff]  }
 0x4d8   :  { %v15149_v55 = vpop.f32.mrf.mxu1  ;;  %17995 = vst [vmem:[#allocation70_spill] sm:$0xff] %v15165_v35  ;;  %v12498_v35 = vld [vmem:[#allocation16 + $0xf8] sm:$0xff]  }
 0x4d9   :  { %v15173_v19 = vpop.f32.mrf.mxu0  ;;  %v3839_v37 = vmax.f32 %v3739_v4, 0.0 }
 0x4da   :  { %v15157_v42 = vpop.f32.mrf.mxu1  ;;  %17996 = vst [vmem:[#allocation71_spill] sm:$0xff] %v15173_v19  ;;  %10836 = vmatpush3.bf16.msra.mxu1 %v12488_v0  ;;  %v3744_v0 = vadd.f32 %v15128_v58, %v15169_v54 }
 0x4db   :  { %11630 = vmatmul.mubr.bf16.gmra.mxu0 %v3085_v34  ;;  %v3720_v34 = vadd.f32 %v15169_v54, %v15111_v52  ;;  %v12490_v52 = vld [vmem:[#allocation16 + $0x58] sm:$0xff]   ;;  %v3752_v58 = vadd.f32 %v15169_v54, %v15157_v42 }
 0x4dc   :  { %11633 = vmatprep.mubr.bf16.mxu0 %v3086_v10  ;;  %v15163_v1 = vpop.f32.mrf.mxu1  ;;  %v3723_v10 = vadd.f32 %v15169_v54, %v15124_v9  ;;  %10837 = vmatprep.subr.bf16.mxu1 %v12490_v52  ;;  %v12469_v52 = vld [vmem:[%s17973_s26 + $0xe0] sm:$0xff]  }
 0x4dd   :  { %v3834_v49 = vmax.f32 %v3720_v34, 0.0  ;;  %v12495_v34 = vld [vmem:[#allocation16 + $0x8] sm:$0xff]  }
 0x4de   :  { %v15167_v27 = vpop.f32.mrf.mxu1  ;;  %v3835_v60 = vmax.f32 %v3723_v10, 0.0  ;;  %10838 = vmatpush3.bf16.msra.mxu1 %v12491_v3  ;;  %v3865_v10 = vpack.c.bf16 %v3837_v59, %v3836_v53  ;;  %v3842_v53 = vmax.f32 %v3752_v58, 0.0 }
 0x4df   :  { %10839 = vmatprep.subr.bf16.mxu1 %v12492_v7  ;;  %v3755_v3 = vadd.f32 %v15169_v54, %v15167_v27  ;;  %v3841_v7 = vmax.f32 %v3747_v12, 0.0  ;;  %v12470_v27 = vld [vmem:[%s17973_s26 + $0xd8] sm:$0xff]  }
 0x4e0   :  { %v15171_v25 = vpop.f32.mrf.mxu1  ;;  %v3864_v17 = vpack.c.bf16 %v3835_v60, %v3834_v49  ;;  %v12496_v49 = vld [vmem:[#allocation16 + $0x40] sm:$0xff]   ;;  %v3866_v60 = vpack.c.bf16 %v3839_v37, %v3838_v28 }
 0x4e1   :  { %v12471_v37 = vld [vmem:[%s17973_s26 + $0xd0] sm:$0xff]  }
 0x4e2   :  { %v15181_v5 = vpop.f32.mrf.mxu1  ;;  %10840 = vmatpush3.bf16.msra.mxu1 %v12493_v39 }
 0x4e3   :  { %11634 = vmatmul.mubr.bf16.gmra.mxu0 %v3087_v47  ;;  %v15185_v15 = vpop.f32.mrf.mxu0  ;;  %10841 = vmatprep.subr.bf16.mxu1 %v12494_v22  ;;  %v3763_v22 = vadd.f32 %v15163_v1, %v15169_v54 }
 0x4e4   :  { %17997 = vst [vmem:[#allocation77_spill] sm:$0xff] %v15185_v15  ;;  %11637 = vmatprep.mubr.bf16.mxu0 %v3088_v43  ;;  %v15187_v62 = vpop.f32.mrf.mxu1 }
 0x4e5   :  { %v15189_v51 = vpop.f32.mrf.mxu0 }
 0x4e6   :  { %17998 = vst [vmem:[#allocation73_spill] sm:$0xff] %v15189_v51  ;;  %v15191_v38 = vpop.f32.mrf.mxu1  ;;  %10842 = vmatpush3.bf16.msra.mxu1 %v12495_v34  ;;  %v15575_v51 = vld [vmem:[%s18021_s7 + $0x18] sm:$0xff] }
 0x4e7   :  { %v15193_v36 = vpop.f32.mrf.mxu0  ;;  %10843 = vmatprep.subr.bf16.mxu1 %v12496_v49  ;;  %v3845_v49 = vmax.f32 %v3763_v22, 0.0 }
 0x4e8   :  { %17999 = vst [vmem:[#allocation80_spill] sm:$0xff] %v15193_v36  ;;  %v15195_v33 = vpop.f32.mrf.mxu1  ;;  %v15572_v36 = vld [vmem:[%s18021_s7 + $0x20] sm:$0xff] }
 0x4e9   :  { %v15201_v29 = vpop.f32.mrf.mxu0 }
 0x4ea   :  { %18000 = vst [vmem:[#allocation74_spill] sm:$0xff] %v15201_v29  ;;  %v15207_v2 = vpop.f32.mrf.mxu1  ;;  %10844 = vmatpush3.bf16.msra.mxu1 %v12497_v44 }
 0x4eb   :  { %11638 = vmatmul.mubr.bf16.gmra.mxu0 %v3089_v23  ;;  %v15209_v20 = vpop.f32.mrf.mxu0 }
 0x4ec   :  { %18001 = vst [vmem:[#allocation82_spill] sm:$0xff] %v15209_v20  ;;  %11705 = vmatprep.mubr.bf16.mxu0 %v3862_v31  ;;  %v15211_v18 = vpop.f32.mrf.mxu1 }
 0x4ed   :  { %v15213_v24 = vpop.f32.mrf.mxu0 }
 0x4ee   :  { %18002 = vst [vmem:[#allocation76_spill] sm:$0xff] %v15213_v24  ;;  %v15215_v9 = vpop.f32.mrf.mxu1 }
 0x4ef   :  { %v15217_v14 = vpop.f32.mrf.mxu0 }
 0x4f0   :  { %18003 = vst [vmem:[#allocation84_spill] sm:$0xff] %v15217_v14  ;;  %v15219_v47 = vpop.f32.mrf.mxu1  ;;  %v15552_v14 = vld [vmem:[%s18021_s7 + $0x10] sm:$0xff] }
 0x4f1   :  { %v15225_v43 = vpop.f32.mrf.mxu0 }
 0x4f2   :  { %18004 = vst [vmem:[#allocation78_spill] sm:$0xff] %v15225_v43  ;;  %v15232_v41 = vpop.f32.mrf.mxu1 }
 0x4f3   :  { %11706 = vmatmul.mubr.bf16.vlgmr.msra.gmra.mxu0 %v3863_v57  ;;  %v15234_v11 = vpop.f32.mrf.mxu0 }
 0x4f4   :  { %18005 = vst [vmem:[#allocation86_spill] sm:$0xff] %v15234_v11  ;;  %11709 = vmatprep.mubr.bf16.mxu0 %v3864_v17  ;;  %11786 = vmatpush3.bf16.msra.mxu0 %v15122_v32  ;;  %v15237_v45 = vpop.f32.mrf.mxu1  ;;  %v3843_v17 = vmax.f32 %v3755_v3, 0.0  ;;  %v12472_v3 = vld [vmem:[%s17973_s26 + $0xc8] sm:$0xff]  }
 0x4f5   :  { %v15239_v23 = vpop.f32.mrf.mxu0  ;;  %11787 = vmatprep.subr.bf16.mxu0 %v12467_v48 }
 0x4f6   :  { %18006 = vst [vmem:[#allocation79_spill] sm:$0xff] %v15239_v23  ;;  %v15242_v21 = vpop.f32.mrf.mxu1  ;;  %v3868_v34 = vpack.c.bf16 %v3843_v17, %v3842_v53  ;;  %v12473_v53 = vld [vmem:[%s17973_s26 + $0xc0] sm:$0xff]  }
 0x4f7   :  { %v15244_v31 = vpop.f32.mrf.mxu0 }
 0x4f8   :  { %18007 = vst [vmem:[#allocation94_spill] sm:$0xff] %v15244_v31  ;;  %11788 = vmatpush3.bf16.msra.mxu0 %v12467_v48  ;;  %v15246_v32 = vpop.f32.mrf.mxu1  ;;  %v3840_v48 = vmax.f32 %v3744_v0, 0.0 }
 0x4f9   :  { %v15252_v46 = vpop.f32.mrf.mxu0  ;;  %11789 = vmatprep.subr.bf16.mxu0 %v12468_v50 }
 0x4fa   :  { %18008 = vst [vmem:[#allocation81_spill] sm:$0xff] %v15252_v46  ;;  %v15257_v57 = vpop.f32.mrf.mxu1  ;;  %v3867_v59 = vpack.c.bf16 %v3841_v7, %v3840_v48  ;;  %v12489_v46 = vld [vmem:[%s17973_s26 + $0x100] sm:$0xff]  }
 0x4fb   :  { %11710 = vmatmul.mubr.bf16.gmra.mxu0 %v3865_v10  ;;  %v15259_v40 = vpop.f32.mrf.mxu0  ;;  %v3771_v10 = vadd.f32 %v15169_v54, %v15191_v38 }
 0x4fc   :  { %18009 = vst [vmem:[#allocation83_spill] sm:$0xff] %v15259_v40  ;;  %11713 = vmatprep.mubr.bf16.mxu0 %v3866_v60  ;;  %11790 = vmatpush3.bf16.msra.mxu0 %v12468_v50  ;;  %v15263_v63 = vpop.f32.mrf.mxu1  ;;  %v3760_v50 = vadd.f32 %v15149_v55, %v15169_v54  ;;  %v3768_v55 = vadd.f32 %v15169_v54, %v15181_v5 }
 0x4fd   :  { %v15265_v56 = vpop.f32.mrf.mxu0  ;;  %11791 = vmatprep.subr.bf16.mxu0 %v12469_v52  ;;  %v3847_v38 = vmax.f32 %v3771_v10, 0.0 }
 0x4fe   :  { %18010 = vst [vmem:[#allocation85_spill] sm:$0xff] %v15265_v56  ;;  %v15268_v4 = vpop.f32.mrf.mxu1  ;;  %v3846_v48 = vmax.f32 %v3768_v55, 0.0 }
 0x4ff   :  { %v15270_v39 = vpop.f32.mrf.mxu0 }
 0x500   :  { %18011 = vst [vmem:[#allocation90_spill] sm:$0xff] %v15270_v39  ;;  %11792 = vmatpush3.bf16.msra.mxu0 %v12469_v52  ;;  %v15272_v42 = vpop.f32.mrf.mxu1  ;;  %v3844_v52 = vmax.f32 %v3760_v50, 0.0  ;;  %v3787_v50 = vadd.f32 %v15169_v54, %v15215_v9  ;;  %v15320_v9 = vld [vmem:[%s17973_s26 + $0x138] sm:$0xff]  }
 0x501   :  { %v15278_v28 = vpop.f32.mrf.mxu0  ;;  %11793 = vmatprep.subr.bf16.mxu0 %v12470_v27 }
 0x502   :  { %18012 = vst [vmem:[#allocation100_spill] sm:$0xff] %v15278_v28  ;;  %v15283_v0 = vpop.f32.mrf.mxu1  ;;  %v3869_v5 = vpack.c.bf16 %v3845_v49, %v3844_v52  ;;  %v3851_v49 = vmax.f32 %v3787_v50, 0.0  ;;  %v3803_v50 = vadd.f32 %v15169_v54, %v15242_v21 }
 0x503   :  { %11714 = vmatmul.mubr.bf16.gmra.mxu0 %v3867_v59  ;;  %v15285_v12 = vpop.f32.mrf.mxu0  ;;  %v3870_v59 = vpack.c.bf16 %v3847_v38, %v3846_v48 }
 0x504   :  { %18013 = vst [vmem:[#allocation56_spill] sm:$0xff] %v15285_v12  ;;  %11717 = vmatprep.mubr.bf16.mxu0 %v3868_v34  ;;  %11794 = vmatpush3.bf16.msra.mxu0 %v12470_v27  ;;  %v15289_v1 = vpop.f32.mrf.mxu1  ;;  %v3779_v27 = vadd.f32 %v15187_v62, %v15169_v54  ;;  %v3784_v62 = vadd.f32 %v15169_v54, %v15207_v2 }
 0x505   :  { %v15291_v60 = vpop.f32.mrf.mxu0  ;;  %11795 = vmatprep.subr.bf16.mxu0 %v12471_v37 }
 0x506   :  { %18014 = vst [vmem:[#allocation58_spill] sm:$0xff] %v15291_v60  ;;  %v15294_v44 = vpop.f32.mrf.mxu1  ;;  %v3849_v55 = vmax.f32 %v3779_v27, 0.0 }
 0x507   :  { %v15296_v58 = vpop.f32.mrf.mxu0 }
 0x508   :  { %18015 = vst [vmem:[#allocation54_spill] sm:$0xff] %v15296_v58  ;;  %11796 = vmatpush3.bf16.msra.mxu0 %v12471_v37  ;;  %v15298_v7 = vpop.f32.mrf.mxu1  ;;  %v3776_v37 = vadd.f32 %v15171_v25, %v15169_v54 }
 0x509   :  { %v15302_v17 = vpop.f32.mrf.mxu0  ;;  %11797 = vmatprep.subr.bf16.mxu0 %v12472_v3 }
 0x50a   :  { %18016 = vst [vmem:[#allocation60_spill] sm:$0xff] %v15302_v17  ;;  %v15307_v22 = vpop.f32.mrf.mxu1  ;;  %v3848_v25 = vmax.f32 %v3776_v37, 0.0 }
 0x50b   :  { %11718 = vmatmul.mubr.bf16.gmra.mxu0 %v3869_v5  ;;  %v15311_v34 = vpop.f32.mrf.mxu0  ;;  %v3850_v5 = vmax.f32 %v3784_v62, 0.0 }
 0x50c   :  { %18017 = vst [vmem:[#allocation55_spill] sm:$0xff] %v15311_v34  ;;  %11721 = vmatprep.mubr.bf16.mxu0 %v3870_v59  ;;  %11798 = vmatpush3.bf16.msra.mxu0 %v12472_v3  ;;  %v15315_v10 = vpop.f32.mrf.mxu1  ;;  %v3871_v2 = vpack.c.bf16 %v3849_v55, %v3848_v25  ;;  %v3795_v3 = vadd.f32 %v15211_v18, %v15169_v54  ;;  %v9772_v59 = vld [vmem:[#allocation11] ss:$0 sm:$0xff] }
 0x50d   :  { %v15317_v52 = vpop.f32.mrf.mxu0  ;;  %11799 = vmatprep.subr.bf16.mxu0 %v12473_v53  ;;  %v3872_v13 = vpack.c.bf16 %v3851_v49, %v3850_v5  ;;  %v3800_v55 = vadd.f32 %v15169_v54, %v15232_v41  ;;  %v3855_v49 = vmax.f32 %v3803_v50, 0.0 }
 0x50e   :  { %18018 = vst [vmem:[#allocation62_spill] sm:$0xff] %v15317_v52  ;;  %v15322_v38 = vpop.f32.mrf.mxu1 }
 0x50f   :  { %v15324_v48 = vpop.f32.mrf.mxu0  ;;  %v3854_v52 = vmax.f32 %v3800_v55, 0.0 }
 0x510   :  { %18019 = vst [vmem:[#allocation57_spill] sm:$0xff] %v15324_v48  ;;  %11800 = vmatpush3.bf16.msra.mxu0 %v12473_v53  ;;  %v15326_v6 = vpop.f32.mrf.mxu1  ;;  %v3792_v53 = vadd.f32 %v15195_v33, %v15169_v54  ;;  %v3853_v48 = vmax.f32 %v3795_v3, 0.0  ;;  %v3808_v3 = vadd.f32 %v15219_v47, %v15169_v54  ;;  %v3827_v47 = vadd.f32 %v15263_v63, %v15169_v54 }
 0x511   :  { %v15330_v27 = vpop.f32.mrf.mxu0  ;;  %11881 = vmatprep.subr.bf16.mxu0 %v15320_v9  ;;  %v3874_v41 = vpack.c.bf16 %v3855_v49, %v3854_v52  ;;  %v15359_v52 = vld [vmem:[#allocation13 + $0x3] ss:$0 sm:$0xff] }
 0x512   :  { %18020 = vst [vmem:[#allocation64_spill] sm:$0xff] %v15330_v27  ;;  %v15335_v37 = vpop.f32.mrf.mxu1  ;;  %v3852_v21 = vmax.f32 %v3792_v53, 0.0 }
 0x513   :  { %11722 = vmatmul.mubr.bf16.gmra.mxu0 %v3871_v2  ;;  %v1618_v62 = vpop.f32.mrf.mxu0  ;;  %v3811_v2 = vadd.f32 %v15237_v45, %v15169_v54 }
 0x514   :  { %11725 = vmatprep.mubr.bf16.mxu0 %v3872_v13  ;;  %v1619_v18 = vadd.f32 %v9772_v59, %v1618_v62  ;;  %v15341_v25 = vpop.f32.mrf.mxu1  ;;  %v3873_v33 = vpack.c.bf16 %v3853_v48, %v3852_v21  ;;  %v3819_v13 = vadd.f32 %v15169_v54, %v15268_v4  ;;  %v3824_v21 = vadd.f32 %v15246_v32, %v15169_v54 }
 0x515   :  { %v11447_v27 = vpop.f32.mrf.mxu0  ;;  %v3857_v48 = vmax.f32 %v3811_v2, 0.0  ;;  %v3861_v2 = vmax.f32 %v3827_v47, 0.0 }
 0x516   :  { %1624 = vst [vmem:[#allocation29] sm:$0xff] %v1619_v18  ;;  %v4526_v5 = vpop.f32.mrf.mxu1  ;;  %v3859_v50 = vmax.f32 %v3819_v13, 0.0  ;;  %v4495_v18 = vadd.f32 %v15359_v52, %v15294_v44  ;;  %v4500_v44 = vadd.f32 %v15272_v42, %v15359_v52 }
 0x517   :  { %v1621_v34 = vpop.f32.mrf.mxu0 }
 0x518   :  { %v15343_v17 = vpop.f32.mrf.mxu1  ;;  %v3816_v34 = vadd.f32 %v15169_v54, %v15257_v57  ;;  %v4492_v57 = vadd.f32 %v15359_v52, %v15283_v0  ;;  %v4619_v13 = vmax.f32 %v4495_v18, 0.0  ;;  %v4508_v54 = vadd.f32 %v15359_v52, %v15307_v22 }
 0x519   :  { %v11448_v58 = vpop.f32.mrf.mxu0  ;;  %v4519_v22 = vadd.f32 %v15315_v10, %v15359_v52 }
 0x51a   :  { %v15349_v59 = vpop.f32.mrf.mxu1  ;;  %v3856_v58 = vmax.f32 %v3808_v3, 0.0  ;;  %v3858_v4 = vmax.f32 %v3816_v34, 0.0  ;;  %v3860_v3 = vmax.f32 %v3824_v21, 0.0  ;;  %v4622_v42 = vmax.f32 %v4508_v54, 0.0 }
 0x51b   :  { %11726 = vmatmul.mubr.bf16.gmra.mxu0 %v3873_v33  ;;  %v4524_v21 = vadd.f32 %v15359_v52, %v15335_v37 }
 0x51c   :  { %11729 = vmatprep.mubr.bf16.mxu0 %v3874_v41  ;;  %v15355_v27 = vpop.f32.mrf.mxu1  ;;  %v3875_v62 = vpack.c.bf16 %v3857_v48, %v3856_v58  ;;  %v3876_v55 = vpack.c.bf16 %v3859_v50, %v3858_v4  ;;  %v4618_v41 = vmax.f32 %v4492_v57, 0.0  ;;  %v3877_v34 = vpack.c.bf16 %v3861_v2, %v3860_v3 }
 0x51d   :  { %v4503_v48 = vadd.f32 %v15289_v1, %v15359_v52  ;;  %v4511_v50 = vadd.f32 %v15359_v52, %v15322_v38  ;;  %v4516_v1 = vadd.f32 %v15298_v7, %v15359_v52  ;;  %v4527_v2 = vadd.f32 %v15359_v52, %v4526_v5  ;;  %v12476_v5 = vld [vmem:[%s17973_s26 + $0x128] sm:$0xff]  }
 0x51e   :  { %v15357_v45 = vpop.f32.mrf.mxu1  ;;  %v4650_v32 = vpack.c.bf16 %v4619_v13, %v4618_v41  ;;  %v12475_v41 = vld [vmem:[%s17973_s26 + $0x130] sm:$0xff]   ;;  %v4625_v7 = vmax.f32 %v4519_v22, 0.0  ;;  %v4626_v37 = vmax.f32 %v4524_v21, 0.0  ;;  %v4540_v21 = vadd.f32 %v15359_v52, %v15349_v59 }
 0x51f   :  { %v4621_v47 = vmax.f32 %v4503_v48, 0.0  ;;  %v4623_v57 = vmax.f32 %v4511_v50, 0.0  ;;  %v15408_v48 = vld [vmem:[#allocation14] ss:$0 sm:$0xff] }
 0x520   :  { %v15361_v53 = vpop.f32.mrf.mxu1 }
 0x521   :  { %v4652_v13 = vpack.c.bf16 %v4623_v57, %v4622_v42 }
 0x522   :  { %v15369_v49 = vpop.f32.mrf.mxu1 }
 0x523   :  { %11730 = vmatmul.mubr.bf16.gmra.mxu0 %v3875_v62  ;;  %v4620_v62 = vmax.f32 %v4500_v44, 0.0  ;;  %v4624_v44 = vmax.f32 %v4516_v1, 0.0  ;;  %v4532_v1 = vadd.f32 %v15326_v6, %v15359_v52  ;;  %v4543_v6 = vadd.f32 %v15359_v52, %v15357_v45 }
 0x524   :  { %11733 = vmatprep.mubr.bf16.mxu0 %v3876_v55  ;;  %v15373_v33 = vpop.f32.mrf.mxu1 }
 0x525   :  { %v4651_v18 = vpack.c.bf16 %v4621_v47, %v4620_v62  ;;  %v4653_v47 = vpack.c.bf16 %v4625_v7, %v4624_v44  ;;  %v4631_v60 = vmax.f32 %v4543_v6, 0.0 }
 0x526   :  { %v15375_v63 = vpop.f32.mrf.mxu1 }
 0x527   :  { %v4559_v6 = vadd.f32 %v15359_v52, %v15375_v63 }
 0x528   :  { %v15377_v0 = vpop.f32.mrf.mxu1 }
 0x52a   :  { %v15387_v58 = vpop.f32.mrf.mxu1 }
 0x52b   :  { %11734 = vmatmul.mubr.bf16.gmra.mxu0 %v3877_v34 }
 0x52c   :  { %11801 = vmatprep.mubr.bf16.mxu0 %v4650_v32  ;;  %v15389_v4 = vpop.f32.mrf.mxu1  ;;  %v4627_v32 = vmax.f32 %v4527_v2, 0.0 }
 0x52d   :  { %v4583_v11 = vadd.f32 %v15389_v4, %v15359_v52  ;;  %v4580_v4 = vadd.f32 %v15377_v0, %v15359_v52  ;;  %v15555_v0 = vld [vmem:[%s18021_s7] sm:$0xff] }
 0x52e   :  { %v15391_v55 = vpop.f32.mrf.mxu1  ;;  %v4654_v2 = vpack.c.bf16 %v4627_v32, %v4626_v37  ;;  %v4628_v37 = vmax.f32 %v4532_v1, 0.0  ;;  %6549 = vperm.xlu0 %12320, %v15555_v0  }
 0x530   :  { %v15397_v38 = vpop.f32.mrf.mxu1 }
 0x532   :  { %v15403_v3 = vpop.f32.mrf.mxu1  ;;  %6564 = vperm.xlu0 %12320, %v15575_v51  }
 0x533   :  { %v11515_v34 = vpop.f32.mrf.mxu0  ;;  %11802 = vmatmul.mubr.bf16.vlgmr.msra.gmra.mxu0 %v4651_v18  ;;  %v4535_v18 = vadd.f32 %v15341_v25, %v15359_v52 }
 0x534   :  { %11805 = vmatprep.mubr.bf16.mxu0 %v4652_v13  ;;  %11882 = vmatpush3.bf16.msra.mxu0 %v15320_v9  ;;  %v15406_v10 = vpop.f32.mrf.mxu1  ;;  %v15414_v42 = vadd.f32 %v11515_v34, %v15408_v48  ;;  %v12477_v13 = vld [vmem:[%s17973_s26 + $0x120] sm:$0xff]  }
 0x535   :  { %v2409_v54 = vpop.f32.mrf.mxu0  ;;  %11883 = vmatprep.subr.bf16.mxu0 %v12475_v41  ;;  %v4629_v32 = vmax.f32 %v4535_v18, 0.0  ;;  %v4548_v18 = vadd.f32 %v15343_v17, %v15359_v52 }
 0x536   :  { %v15411_v50 = vpop.f32.mrf.mxu1  ;;  %v15429_v34 = vadd.f32 %v15408_v48, %v2409_v54 }
 0x537   :  { %v11516_v62 = vpop.f32.mrf.mxu0  ;;  %v4655_v1 = vpack.c.bf16 %v4629_v32, %v4628_v37 }
 0x538   :  { %v15417_v57 = vadd.f32 %v11516_v62, %v15408_v48  ;;  %11884 = vmatpush3.bf16.msra.mxu0 %v12475_v41  ;;  %v15419_v9 = vpop.f32.mrf.mxu1  ;;  %v4630_v41 = vmax.f32 %v4540_v21, 0.0  ;;  %v4551_v21 = vadd.f32 %v15355_v27, %v15359_v52  ;;  %v4556_v27 = vadd.f32 %v15359_v52, %v15369_v49 }
 0x539   :  { %v2412_v22 = vpop.f32.mrf.mxu0  ;;  %11885 = vmatprep.subr.bf16.mxu0 %v12476_v5 }
 0x53a   :  { %v15434_v44 = vadd.f32 %v15408_v48, %v2412_v22  ;;  %v15438_v25 = vpop.f32.mrf.mxu1  ;;  %v12480_v22 = vld [vmem:[%s17973_s26 + $0x118] sm:$0xff]   ;;  %v4656_v17 = vpack.c.bf16 %v4631_v60, %v4630_v41  ;;  %v4633_v39 = vmax.f32 %v4551_v21, 0.0  ;;  %v12486_v60 = vld [vmem:[%s17973_s26 + $0x108] sm:$0xff]   ;;  %v4634_v40 = vmax.f32 %v4556_v27, 0.0 }
 0x53b   :  { %v11519_v7 = vpop.f32.mrf.mxu0  ;;  %11806 = vmatmul.mubr.bf16.gmra.mxu0 %v4653_v47 }
 0x53c   :  { %11809 = vmatprep.mubr.bf16.mxu0 %v4654_v2  ;;  %11886 = vmatpush3.bf16.msra.mxu0 %v12476_v5  ;;  %v15442_v54 = vpop.f32.mrf.mxu1  ;;  %v15448_v47 = vadd.f32 %v11519_v7, %v15408_v48  ;;  %v12483_v7 = vld [vmem:[%s17973_s26 + $0x110] sm:$0xff]  }
 0x53d   :  { %v2425_v62 = vpop.f32.mrf.mxu0  ;;  %11887 = vmatprep.subr.bf16.mxu0 %v12477_v13 }
 0x53e   :  { %v15445_v45 = vpop.f32.mrf.mxu1  ;;  %v15463_v28 = vadd.f32 %v15408_v48, %v2425_v62 }
 0x53f   :  { %v11520_v12 = vpop.f32.mrf.mxu0 }
 0x540   :  { %v15451_v59 = vadd.f32 %v11520_v12, %v15408_v48  ;;  %11888 = vmatpush3.bf16.msra.mxu0 %v12477_v13  ;;  %v15453_v5 = vpop.f32.mrf.mxu1  ;;  %v4632_v12 = vmax.f32 %v4548_v18, 0.0 }
 0x541   :  { %v2428_v2 = vpop.f32.mrf.mxu0  ;;  %11889 = vmatprep.subr.bf16.mxu0 %v12480_v22 }
 0x542   :  { %v15468_v13 = vadd.f32 %v15408_v48, %v2428_v2  ;;  %v15470_v37 = vpop.f32.mrf.mxu1  ;;  %v4635_v2 = vmax.f32 %v4559_v6, 0.0  ;;  %v4657_v18 = vpack.c.bf16 %v4633_v39, %v4632_v12  ;;  %v4567_v6 = vadd.f32 %v15373_v33, %v15359_v52 }
 0x543   :  { %v11523_v32 = vpop.f32.mrf.mxu0  ;;  %11810 = vmatmul.mubr.bf16.gmra.mxu0 %v4655_v1  ;;  %v4564_v33 = vadd.f32 %v15361_v53, %v15359_v52  ;;  %v4572_v12 = vadd.f32 %v15359_v52, %v15387_v58 }
 0x544   :  { %11813 = vmatprep.mubr.bf16.mxu0 %v4656_v17  ;;  %11890 = vmatpush3.bf16.msra.mxu0 %v12480_v22  ;;  %v15476_v62 = vpop.f32.mrf.mxu1  ;;  %v15482_v49 = vadd.f32 %v11523_v32, %v15408_v48  ;;  %v4658_v17 = vpack.c.bf16 %v4635_v2, %v4634_v40 }
 0x545   :  { %v2441_v56 = vpop.f32.mrf.mxu0  ;;  %11891 = vmatprep.subr.bf16.mxu0 %v12483_v7  ;;  %v4636_v53 = vmax.f32 %v4564_v33, 0.0  ;;  %v4638_v58 = vmax.f32 %v4572_v12, 0.0  ;;  %v15527_v33 = vld [vmem:[%s18021_s7 + $0x8] sm:$0xff] }
 0x546   :  { %v15479_v41 = vpop.f32.mrf.mxu1  ;;  %v15493_v31 = vadd.f32 %v15408_v48, %v2441_v56  ;;  %6554 = vperm.xlu1 %12321, %v15527_v33  }
 0x547   :  { %v11524_v1 = vpop.f32.mrf.mxu0 }
 0x548   :  { %v15485_v63 = vadd.f32 %v11524_v1, %v15408_v48  ;;  %11892 = vmatpush3.bf16.msra.mxu0 %v12483_v7  ;;  %v15487_v22 = vpop.f32.mrf.mxu1  ;;  %v4575_v7 = vadd.f32 %v15359_v52, %v15391_v55  ;;  %v4637_v1 = vmax.f32 %v4567_v6, 0.0 }
 0x549   :  { %v2444_v21 = vpop.f32.mrf.mxu0  ;;  %11893 = vmatprep.subr.bf16.mxu0 %v12486_v60 }
 0x54a   :  { %v15498_v27 = vadd.f32 %v15408_v48, %v2444_v21  ;;  %v15502_v39 = vpop.f32.mrf.mxu1  ;;  %v4639_v21 = vmax.f32 %v4575_v7, 0.0  ;;  %v4591_v7 = vadd.f32 %v15359_v52, %v15411_v50  ;;  %6559 = vperm.xlu1 %12321, %v15552_v14  }
 0x54b   :  { %v11527_v40 = vpop.f32.mrf.mxu0  ;;  %11814 = vmatmul.mubr.bf16.gmra.mxu0 %v4657_v18 }
 0x54c   :  { %11817 = vmatprep.mubr.bf16.mxu0 %v4658_v17  ;;  %11894 = vmatpush3.bf16.msra.mxu0 %v12486_v60  ;;  %v15510_v2 = vpop.f32.mrf.mxu1  ;;  %v15515_v18 = vadd.f32 %v11527_v40, %v15408_v48  ;;  %v4659_v17 = vpack.c.bf16 %v4637_v1, %v4636_v53  ;;  %v4660_v12 = vpack.c.bf16 %v4639_v21, %v4638_v58  ;;  %v4641_v58 = vmax.f32 %v4583_v11, 0.0 }
 0x54d   :  { %v2457_v55 = vpop.f32.mrf.mxu0  ;;  %11895 = vmatprep.subr.bf16.mxu0 %v12489_v46  ;;  %v4643_v43 = vmax.f32 %v4591_v7, 0.0 }
 0x54e   :  { %v15512_v32 = vpop.f32.mrf.mxu1  ;;  %18022 = vst [vmem:[#allocation59_spill] sm:$0xff] %v15515_v18  ;;  %v15530_v40 = vadd.f32 %v15408_v48, %v2457_v55  ;;  %v4588_v55 = vadd.f32 %v15359_v52, %v15403_v3  ;;  %6569 = vperm.xlu1 %12321, %v15572_v36  }
 0x54f   :  { %v11528_v23 = vpop.f32.mrf.mxu0 }
 0x550   :  { %v15518_v56 = vadd.f32 %v11528_v23, %v15408_v48  ;;  %11896 = vmatpush3.bf16.msra.mxu0 %v12489_v46  ;;  %v15520_v60 = vpop.f32.mrf.mxu1  ;;  %18024 = vst [vmem:[#allocation61_spill] sm:$0xff] %v15530_v40  ;;  %v4642_v11 = vmax.f32 %v4588_v55, 0.0 }
 0x551   :  { %v2460_v6 = vpop.f32.mrf.mxu0  ;;  %10941 = vmatprep.subr.bf16.mxu0 %v12498_v35  ;;  %v15629_v35 = vld [vmem:[%s18021_s7 + $0x38] sm:$0xff] }
 0x552   :  { %18023 = vst [vmem:[#allocation66_spill] sm:$0xff] %v15518_v56  ;;  %v15535_v46 = vadd.f32 %v15408_v48, %v2460_v6  ;;  %v15537_v1 = vpop.f32.mrf.mxu1  ;;  %v4662_v29 = vpack.c.bf16 %v4643_v43, %v4642_v11  ;;  %v4596_v43 = vadd.f32 %v15397_v38, %v15359_v52  ;;  %v15597_v11 = vld [vmem:[#allocation13 + $0x4] ss:$0 sm:$0xff]  ;;  %v15602_v38 = vld [vmem:[%s18021_s7 + $0x30] sm:$0xff] }
 0x553   :  { %v11531_v50 = vpop.f32.mrf.mxu0  ;;  %11818 = vmatmul.mubr.bf16.gmra.mxu0 %v4659_v17  ;;  %6579 = vperm.xlu1 %12321, %v15602_v38  }
 0x554   :  { %18025 = vst [vmem:[#allocation63_spill] sm:$0xff] %v15535_v46  ;;  %v15547_v6 = vadd.f32 %v11531_v50, %v15408_v48  ;;  %11821 = vmatprep.mubr.bf16.mxu0 %v4660_v12  ;;  %v15549_v21 = vpop.f32.mrf.mxu1  ;;  %v4640_v12 = vmax.f32 %v4580_v4, 0.0 }
 0x555   :  { %v2473_v23 = vpop.f32.mrf.mxu0 }
 0x556   :  { %18026 = vst [vmem:[#allocation122_spill] sm:$0xff] %v15547_v6  ;;  %v15558_v3 = vadd.f32 %v15408_v48, %v2473_v23  ;;  %v15560_v17 = vpop.f32.mrf.mxu1  ;;  %v4661_v24 = vpack.c.bf16 %v4641_v58, %v4640_v12  ;;  %v4599_v23 = vadd.f32 %v15406_v10, %v15359_v52  ;;  %v4615_v6 = vadd.f32 %v15442_v54, %v15359_v52 }
 0x557   :  { %v11532_v50 = vpop.f32.mrf.mxu0 }
 0x558   :  { %18027 = vst [vmem:[#allocation123_spill] sm:$0xff] %v15558_v3  ;;  %v15565_v7 = vadd.f32 %v11532_v50, %v15408_v48  ;;  %v15567_v53 = vpop.f32.mrf.mxu1  ;;  %v4607_v50 = vadd.f32 %v15359_v52, %v15445_v45  ;;  %v4604_v45 = vadd.f32 %v15359_v52, %v15438_v25  ;;  %v4645_v15 = vmax.f32 %v4599_v23, 0.0  ;;  %v15653_v3 = vld [vmem:[%s18021_s7 + $0x48] sm:$0xff] }
 0x559   :  { %v2476_v20 = vpop.f32.mrf.mxu0 }
 0x55a   :  { %18028 = vst [vmem:[#allocation124_spill] sm:$0xff] %v15565_v7  ;;  %v15580_v55 = vadd.f32 %v15408_v48, %v2476_v20  ;;  %v15584_v58 = vpop.f32.mrf.mxu1  ;;  %v4646_v26 = vmax.f32 %v4604_v45, 0.0  ;;  %v15650_v7 = vld [vmem:[%s18021_s7 + $0x50] sm:$0xff] }
 0x55b   :  { %v11535_v10 = vpop.f32.mrf.mxu0  ;;  %11822 = vmatmul.mubr.bf16.gmra.mxu0 %v4661_v24  ;;  %v15605_v24 = vld [vmem:[%s18021_s7 + $0x28] sm:$0xff] }
 0x55c   :  { %18029 = vst [vmem:[#allocation125_spill] sm:$0xff] %v15580_v55  ;;  %v15593_v12 = vadd.f32 %v11535_v10, %v15408_v48  ;;  %11825 = vmatprep.mubr.bf16.mxu0 %v4662_v29  ;;  %v15599_v4 = vpop.f32.mrf.mxu1  ;;  %v4647_v10 = vmax.f32 %v4607_v50, 0.0  ;;  %6574 = vperm.xlu0 %12320, %v15605_v24   ;;  %v4644_v29 = vmax.f32 %v4596_v43, 0.0  ;;  %v5283_v50 = vadd.f32 %v15597_v11, %v15479_v41  ;;  %v15626_v43 = vld [vmem:[%s18021_s7 + $0x40] sm:$0xff]  ;;  %v15697_v55 = vld [vmem:[%s18021_s7 + $0x68] sm:$0xff] }
 0x55d   :  { %v2489_v19 = vpop.f32.mrf.mxu0  ;;  %6589 = vperm.xlu1 %12321, %v15626_v43  }
 0x55e   :  { %18030 = vst [vmem:[#allocation126_spill] sm:$0xff] %v15593_v12  ;;  %v15608_v20 = vadd.f32 %v15408_v48, %v2489_v19  ;;  %v15610_v16 = vpop.f32.mrf.mxu1  ;;  %v5280_v19 = vadd.f32 %v15597_v11, %v15470_v37  ;;  %v4663_v61 = vpack.c.bf16 %v4645_v15, %v4644_v29  ;;  %v4664_v37 = vpack.c.bf16 %v4647_v10, %v4646_v26 }
 0x55f   :  { %v11536_v25 = vpop.f32.mrf.mxu0  ;;  %v4612_v15 = vadd.f32 %v15419_v9, %v15359_v52  ;;  %v5407_v26 = vmax.f32 %v5283_v50, 0.0  ;;  %v4649_v12 = vmax.f32 %v4615_v6, 0.0  ;;  %v5288_v9 = vadd.f32 %v15453_v5, %v15597_v11  ;;  %v15677_v5 = vld [vmem:[%s18021_s7 + $0x58] sm:$0xff] }
 0x560   :  { %18031 = vst [vmem:[#allocation127_spill] sm:$0xff] %v15608_v20  ;;  %v15615_v23 = vadd.f32 %v11536_v25, %v15408_v48  ;;  %v15621_v8 = vpop.f32.mrf.mxu1  ;;  %6584 = vperm.xlu0 %12320, %v15629_v35   ;;  %v5406_v45 = vmax.f32 %v5280_v19, 0.0  ;;  %v5291_v6 = vadd.f32 %v15476_v62, %v15597_v11  ;;  %v5299_v29 = vadd.f32 %v15597_v11, %v15512_v32 }
 0x561   :  { %v2492_v30 = vpop.f32.mrf.mxu0  ;;  %6599 = vperm.xlu1 %12321, %v15650_v7   ;;  %v4648_v52 = vmax.f32 %v4612_v15, 0.0 }
 0x562   :  { %18032 = vst [vmem:[#allocation128_spill] sm:$0xff] %v15615_v23  ;;  %v15634_v25 = vadd.f32 %v15408_v48, %v2492_v30  ;;  %v15636_v41 = vpop.f32.mrf.mxu1  ;;  %v5409_v32 = vmax.f32 %v5291_v6, 0.0 }
 0x563   :  { %v11539_v54 = vpop.f32.mrf.mxu0  ;;  %11826 = vmatmul.mubr.bf16.gmra.mxu0 %v4663_v61  ;;  %v4665_v15 = vpack.c.bf16 %v4649_v12, %v4648_v52 }
 0x564   :  { %18033 = vst [vmem:[#allocation129_spill] sm:$0xff] %v15634_v25  ;;  %v15645_v30 = vadd.f32 %v11539_v54, %v15408_v48  ;;  %11829 = vmatprep.mubr.bf16.mxu0 %v4664_v37  ;;  %v15647_v10 = vpop.f32.mrf.mxu1  ;;  %6594 = vperm.xlu0 %12320, %v15653_v3   ;;  %v5438_v54 = vpack.c.bf16 %v5407_v26, %v5406_v45  ;;  %v15674_v25 = vld [vmem:[%s18021_s7 + $0x60] sm:$0xff] }
 0x565   :  { %v2505_v23 = vpop.f32.mrf.mxu0  ;;  %6609 = vperm.xlu1 %12321, %v15674_v25  }
 0x566   :  { %18034 = vst [vmem:[#allocation130_spill] sm:$0xff] %v15645_v30  ;;  %v15656_v61 = vadd.f32 %v15408_v48, %v2505_v23  ;;  %v15664_v50 = vpop.f32.mrf.mxu1  ;;  %v5296_v23 = vadd.f32 %v15597_v11, %v15502_v39  ;;  %v5408_v39 = vmax.f32 %v5288_v9, 0.0 }
 0x567   :  { %v11540_v19 = vpop.f32.mrf.mxu0 }
 0x568   :  { %18035 = vst [vmem:[#allocation131_spill] sm:$0xff] %v15656_v61  ;;  %v15667_v37 = vadd.f32 %v11540_v19, %v15408_v48  ;;  %6604 = vperm.xlu0 %12320, %v15677_v5   ;;  %v15686_v45 = vpop.f32.mrf.mxu1  ;;  %v5410_v62 = vmax.f32 %v5296_v23, 0.0  ;;  %v5439_v6 = vpack.c.bf16 %v5409_v32, %v5408_v39  ;;  %v5315_v61 = vadd.f32 %v15597_v11, %v15560_v17  ;;  %v12499_v39 = vld [vmem:[#allocation16 + $0xb8] sm:$0xff]  }
 0x569   :  { %v2508_v20 = vpop.f32.mrf.mxu0 }
 0x56a   :  { %18036 = vst [vmem:[#allocation132_spill] sm:$0xff] %v15667_v37  ;;  %v15682_v19 = vadd.f32 %v15408_v48, %v2508_v20  ;;  %v5411_v20 = vmax.f32 %v5299_v29, 0.0  ;;  %v15694_v37 = vld [vmem:[%s18021_s7 + $0x70] sm:$0xff]  ;;  %v5307_v29 = vadd.f32 %v15510_v2, %v15597_v11  ;;  %v5415_v2 = vmax.f32 %v5315_v61, 0.0 }
 0x56b   :  { %v11543_v12 = vpop.f32.mrf.mxu0  ;;  %11830 = vmatmul.mubr.bf16.gmra.mxu0 %v4665_v15  ;;  %6619 = vperm.xlu1 %12321, %v15694_v37   ;;  %v5304_v15 = vadd.f32 %v15487_v22, %v15597_v11  ;;  %v15718_v22 = vld [vmem:[%s18021_s7 + $0x78] sm:$0xff]  ;;  %v5328_v61 = vadd.f32 %v15597_v11, %v15584_v58 }
 0x56c   :  { %18037 = vst [vmem:[#allocation133_spill] sm:$0xff] %v15682_v19  ;;  %v15691_v52 = vadd.f32 %v11543_v12, %v15408_v48  ;;  %11897 = vmatprep.mubr.bf16.mxu0 %v5438_v54  ;;  %6614 = vperm.xlu0 %12320, %v15697_v55   ;;  %v15708_v54 = vpop.f32.mrf.mxu1  ;;  %v5440_v26 = vpack.c.bf16 %v5411_v20, %v5410_v62  ;;  %v12500_v19 = vld [vmem:[#allocation16 + $0xf0] sm:$0xff]   ;;  %v5413_v62 = vmax.f32 %v5307_v29, 0.0 }
 0x56d   :  { %v2521_v30 = vpop.f32.mrf.mxu0 }
 0x56e   :  { %18038 = vst [vmem:[#allocation134_spill] sm:$0xff] %v15691_v52  ;;  %v15700_v9 = vadd.f32 %v15408_v48, %v2521_v30  ;;  %v5312_v30 = vadd.f32 %v15597_v11, %v15537_v1  ;;  %v5412_v1 = vmax.f32 %v5304_v15, 0.0  ;;  %v15727_v17 = vpop.f32.mrf.mxu1  ;;  %v12502_v52 = vld [vmem:[#allocation16 + $0xe8] sm:$0xff]  }
 0x56f   :  { %v11544_v23 = vpop.f32.mrf.mxu0 }
 0x570   :  { %18039 = vst [vmem:[#allocation135_spill] sm:$0xff] %v15700_v9  ;;  %v15711_v12 = vadd.f32 %v11544_v23, %v15408_v48  ;;  %v18042_v23 = vmov 1   ;;  %6624 = vperm.xlu0 %12320, %v15718_v22   ;;  %v5414_v40 = vmax.f32 %v5312_v30, 0.0  ;;  %v5441_v15 = vpack.c.bf16 %v5413_v62, %v5412_v1  ;;  %v15737_v46 = vpop.f32.mrf.mxu1  ;;  %v12503_v30 = vld [vmem:[#allocation16 + $0xa8] sm:$0xff]  }
 0x571   :  { %v2524_v32 = vpop.f32.mrf.mxu0  ;;  %12322 = vset.pattern.permute.xlu1 %v18042_v23 }
 0x572   :  { %18040 = vst [vmem:[#allocation136_spill] sm:$0xff] %v15711_v12  ;;  %v15723_v18 = vadd.f32 %v15408_v48, %v2524_v32  ;;  %7067 = vperm.xlu1 %12322, %v15555_v0   ;;  %v12501_v48 = vld [vmem:[#allocation16 + $0xb0] sm:$0xff]   ;;  %v5323_v12 = vadd.f32 %v15549_v21, %v15597_v11  ;;  %v12504_v21 = vld [vmem:[#allocation16 + $0xe0] sm:$0xff]  }
 0x573   :  { %v11611_v20 = vpop.f32.mrf.mxu0  ;;  %11898 = vmatmul.mubr.bf16.vlgmr.msra.gmra.mxu0 %v5439_v6  ;;  %v5320_v6 = vadd.f32 %v15520_v60, %v15597_v11  ;;  %v15745_v60 = vld [vmem:[#allocation14 + $0x1] ss:$0 sm:$0xff] }
 0x574   :  { %18041 = vst [vmem:[#allocation137_spill] sm:$0xff] %v15723_v18  ;;  %11901 = vmatprep.mubr.bf16.mxu0 %v5440_v26  ;;  %10942 = vmatpush3.bf16.msra.mxu0 %v12499_v39  ;;  %v5331_v26 = vadd.f32 %v15597_v11, %v15610_v16  ;;  %v5417_v9 = vmax.f32 %v5323_v12, 0.0  ;;  %v3206_v16 = vadd.f32 %v11611_v20, %v15745_v60 }
 0x575   :  { %v3197_v32 = vpop.f32.mrf.mxu0  ;;  %10943 = vmatprep.subr.bf16.mxu0 %v12500_v19  ;;  %12323 = vset.pattern.permute.xlu0 %v18042_v23  ;;  %v5442_v19 = vpack.c.bf16 %v5415_v2, %v5414_v40  ;;  %v5416_v56 = vmax.f32 %v5320_v6, 0.0  ;;  %v15752_v40 = vpop.f32.mrf.mxu1  ;;  %v18043_v18 = vpack.c.bf16 %v15434_v44, %v15429_v34  ;;  %v5344_v44 = vadd.f32 %v15597_v11, %v15636_v41  ;;  %v12510_v41 = vld [vmem:[#allocation16 + $0xc8] sm:$0xff]  }
 0x576   :  { %7075 = vperm.xlu1 %12322, %v15552_v14   ;;  %7071 = vperm.xlu0 %12323, %v15527_v33   ;;  %v3198_v23 = vadd.f32 %v15745_v60, %v3197_v32  ;;  %v12505_v32 = vld [vmem:[#allocation16 + $0xa0] sm:$0xff]  }
 0x577   :  { %v11612_v29 = vpop.f32.mrf.mxu0  ;;  %v15760_v20 = vpop.f32.mrf.mxu1 }
 0x578   :  { %10944 = vmatpush3.bf16.msra.mxu0 %v12501_v48  ;;  %v3209_v1 = vadd.f32 %v11612_v29, %v15745_v60  ;;  %v5419_v48 = vmax.f32 %v5331_v26, 0.0  ;;  %v5336_v26 = vadd.f32 %v15567_v53, %v15597_v11 }
 0x579   :  { %v3200_v39 = vpop.f32.mrf.mxu0  ;;  %10945 = vmatprep.subr.bf16.mxu0 %v12502_v52  ;;  %v5418_v52 = vmax.f32 %v5328_v61, 0.0  ;;  %v15775_v53 = vpop.f32.mrf.mxu1 }
 0x57a   :  { %v3201_v62 = vadd.f32 %v15745_v60, %v3200_v39  ;;  %7079 = vperm.xlu1 %12322, %v15575_v51   ;;  %v12506_v39 = vld [vmem:[#allocation16 + $0xd8] sm:$0xff]   ;;  %7083 = vperm.xlu0 %12323, %v15572_v36   ;;  %v3325_v12 = vpack.c.bf16 %v3209_v1, %v3206_v16  ;;  %v5420_v1 = vmax.f32 %v5336_v26, 0.0  ;;  %v12512_v26 = vld [vmem:[#allocation16 + $0xc0] sm:$0xff]  }
 0x57b   :  { %v15750_v58 = vpop.f32.mrf.mxu0  ;;  %11902 = vmatmul.mubr.bf16.gmra.mxu0 %v5441_v15  ;;  %v5443_v15 = vpack.c.bf16 %v5417_v9, %v5416_v56  ;;  %v5444_v61 = vpack.c.bf16 %v5419_v48, %v5418_v52  ;;  %v5339_v56 = vadd.f32 %v15599_v4, %v15597_v11  ;;  %v12508_v9 = vld [vmem:[#allocation16 + $0xd0] sm:$0xff]  }
 0x57c   :  { %v3324_v2 = vpack.c.bf16 %v3201_v62, %v3198_v23  ;;  %11905 = vmatprep.mubr.bf16.mxu0 %v5442_v19  ;;  %10946 = vmatpush3.bf16.msra.mxu0 %v12503_v30  ;;  %v12507_v19 = vld [vmem:[#allocation16 + $0x98] sm:$0xff]   ;;  %v12509_v23 = vld [vmem:[#allocation16 + $0x90] sm:$0xff]  }
 0x57d   :  { %v3213_v29 = vpop.f32.mrf.mxu0  ;;  %10947 = vmatprep.subr.bf16.mxu0 %v12504_v21  ;;  %v5421_v62 = vmax.f32 %v5339_v56, 0.0  ;;  %v5363_v56 = vadd.f32 %v15597_v11, %v15737_v46 }
 0x57e   :  { %5982 = vmatprep.mubr.bf16.mxu1 %v3324_v2  ;;  %7087 = vperm.xlu1 %12322, %v15605_v24   ;;  %v3214_v4 = vadd.f32 %v15745_v60, %v3213_v29  ;;  %v5422_v2 = vmax.f32 %v5344_v44, 0.0  ;;  %v5378_v29 = vpop.f32.mrf.mxu1 }
 0x57f   :  { %v11616_v6 = vpop.f32.mrf.mxu0  ;;  %5983 = vmatmul.mubr.bf16.vlgmr.msra.gmra.mxu1 %v18043_v18  ;;  %7091 = vperm.xlu0 %12323, %v15602_v38   ;;  %v5347_v18 = vadd.f32 %v15597_v11, %v15664_v50 }
 0x580   :  { %5990 = vmatprep.mubr.bf16.mxu1 %v3325_v12  ;;  %10948 = vmatpush3.bf16.msra.mxu0 %v12505_v32  ;;  %v18044_v32 = vpack.c.bf16 %v15417_v57, %v15414_v42  ;;  %v5445_v12 = vpack.c.bf16 %v5421_v62, %v5420_v1  ;;  %v3225_v42 = vadd.f32 %v11616_v6, %v15745_v60  ;;  %v12513_v6 = vld [vmem:[#allocation16 + $0x80] sm:$0xff]  }
 0x581   :  { %v3216_v30 = vpop.f32.mrf.mxu0  ;;  %10949 = vmatprep.subr.bf16.mxu0 %v12506_v39  ;;  %v5423_v52 = vmax.f32 %v5347_v18, 0.0  ;;  %v12511_v39 = vld [vmem:[#allocation16 + $0x88] sm:$0xff]   ;;  %v5360_v57 = vadd.f32 %v15597_v11, %v15708_v54  ;;  %v18045_v1 = vpack.c.bf16 %v15468_v13, %v15463_v28  ;;  %v5376_v28 = vadd.f32 %v15597_v11, %v15760_v20 }
 0x582   :  { %v3217_v34 = vadd.f32 %v15745_v60, %v3216_v30  ;;  %7095 = vperm.xlu1 %12322, %v15629_v35  }
 0x583   :  { %v15773_v21 = vpop.f32.mrf.mxu0  ;;  %11906 = vmatmul.mubr.bf16.gmra.mxu0 %v5443_v15  ;;  %7099 = vperm.xlu0 %12323, %v15626_v43   ;;  %v5352_v15 = vadd.f32 %v15621_v8, %v15597_v11  ;;  %v5446_v30 = vpack.c.bf16 %v5423_v52, %v5422_v2  ;;  %v15798_v8 = vpop.f32.mrf.mxu1  ;;  %v5426_v18 = vmax.f32 %v5360_v57, 0.0  ;;  %v5371_v2 = vadd.f32 %v15727_v17, %v15597_v11 }
 0x584   :  { %11909 = vmatprep.mubr.bf16.mxu0 %v5444_v61  ;;  %10950 = vmatpush3.bf16.msra.mxu0 %v12507_v19  ;;  %v3326_v50 = vpack.c.bf16 %v3217_v34, %v3214_v4  ;;  %v5355_v19 = vadd.f32 %v15647_v10, %v15597_v11  ;;  %v3222_v10 = vadd.f32 %v15750_v58, %v15745_v60  ;;  %v5427_v4 = vmax.f32 %v5363_v56, 0.0 }
 0x585   :  { %v3229_v16 = vpop.f32.mrf.mxu0  ;;  %10951 = vmatprep.subr.bf16.mxu0 %v12508_v9  ;;  %v5424_v34 = vmax.f32 %v5352_v15, 0.0  ;;  %v5391_v58 = vpop.f32.mrf.mxu1  ;;  %v5429_v15 = vmax.f32 %v5371_v2, 0.0  ;;  %v5430_v20 = vmax.f32 %v5376_v28, 0.0  ;;  %v18047_v57 = vpack.c.bf16 %v15451_v59, %v15448_v47 }
 0x586   :  { %7103 = vperm.xlu1 %12322, %v15653_v3   ;;  %v5425_v44 = vmax.f32 %v5355_v19, 0.0  ;;  %v3327_v46 = vpack.c.bf16 %v3225_v42, %v3222_v10  ;;  %v5448_v13 = vpack.c.bf16 %v5427_v4, %v5426_v18  ;;  %v5384_v56 = vadd.f32 %v15752_v40, %v15597_v11 }
 0x587   :  { %v15780_v48 = vpop.f32.mrf.mxu0  ;;  %5991 = vmatmul.mubr.bf16.gmra.mxu1 %v18044_v32  ;;  %7107 = vperm.xlu0 %12323, %v15650_v7   ;;  %v5379_v32 = vadd.f32 %v15597_v11, %v5378_v29  ;;  %v5392_v40 = vadd.f32 %v15597_v11, %v5391_v58  ;;  %v18048_v2 = vpack.c.bf16 %v15498_v27, %v15493_v31 }
 0x588   :  { %5998 = vmatprep.mubr.bf16.mxu1 %v3326_v50  ;;  %10952 = vmatpush3.bf16.msra.mxu0 %v12509_v23  ;;  %v5447_v62 = vpack.c.bf16 %v5425_v44, %v5424_v34  ;;  %v3241_v34 = vadd.f32 %v15780_v48, %v15745_v60  ;;  %v12514_v48 = vld [vmem:[#allocation16 + $0x138] sm:$0xff]  }
 0x589   :  { %v3232_v61 = vpop.f32.mrf.mxu0  ;;  %10953 = vmatprep.subr.bf16.mxu0 %v12510_v41  ;;  %v5368_v41 = vadd.f32 %v15686_v45, %v15597_v11  ;;  %v3230_v45 = vadd.f32 %v15745_v60, %v3229_v16  ;;  %v5431_v42 = vmax.f32 %v5379_v32, 0.0  ;;  %11929 = vmatprep.subr.bf16.mxu1 %v12514_v48  ;;  %v12515_v32 = vld [vmem:[#allocation16 + $0x130] sm:$0xff]  }
 0x58a   :  { %7111 = vperm.xlu1 %12322, %v15677_v5   ;;  %v3233_v52 = vadd.f32 %v15745_v60, %v3232_v61  ;;  %v18046_v61 = vmov 2   ;;  %11930 = vmatpush3.bf16.msra.mxu1 %v12514_v48 }
 0x58b   :  { %v15796_v9 = vpop.f32.mrf.mxu0  ;;  %11910 = vmatmul.mubr.bf16.gmra.mxu0 %v5445_v12  ;;  %7115 = vperm.xlu0 %12323, %v15674_v25   ;;  %v11880_v12 = vpop.f32.mrf.mxu1  ;;  %v5428_v17 = vmax.f32 %v5368_v41, 0.0  ;;  %v5450_v59 = vpack.c.bf16 %v5431_v42, %v5430_v20  ;;  %v12517_v42 = vld [vmem:[#allocation16 + $0x120] sm:$0xff]  }
 0x58c   :  { %11913 = vmatprep.mubr.bf16.mxu0 %v5446_v30  ;;  %10954 = vmatpush3.bf16.msra.mxu0 %v12511_v39 }
 0x58d   :  { %v15803_v54 = vpop.f32.mrf.mxu0  ;;  %10955 = vmatprep.subr.bf16.mxu0 %v12512_v26  ;;  %v3328_v26 = vpack.c.bf16 %v3233_v52, %v3230_v45  ;;  %v5394_v30 = vpop.f32.mrf.mxu1  ;;  %v5449_v16 = vpack.c.bf16 %v5429_v15, %v5428_v17  ;;  %v5400_v52 = vadd.f32 %v15798_v8, %v15597_v11  ;;  %11931 = vmatprep.subr.bf16.mxu1 %v12515_v32 }
 0x58e   :  { %7119 = vperm.xlu1 %12322, %v15697_v55   ;;  %v5395_v47 = vadd.f32 %v15597_v11, %v5394_v30  ;;  %v3246_v27 = vadd.f32 %v15745_v60, %v15803_v54  ;;  %11932 = vmatpush3.bf16.msra.mxu1 %v12515_v32  ;;  %v18055_v32 = vld [vmem:[#allocation59_spill] sm:$0xff] }
 0x58f   :  { %v15806_v23 = vpop.f32.mrf.mxu0  ;;  %5999 = vmatmul.mubr.bf16.gmra.mxu1 %v18045_v1  ;;  %7123 = vperm.xlu0 %12323, %v15694_v37   ;;  %v5436_v8 = vmax.f32 %v5400_v52, 0.0 }
 0x590   :  { %6006 = vmatprep.mubr.bf16.mxu1 %v3327_v46  ;;  %10956 = vmatpush3.bf16.msra.mxu0 %v12513_v6  ;;  %v5387_v6 = vadd.f32 %v15775_v53, %v15597_v11  ;;  %v3238_v46 = vadd.f32 %v15773_v21, %v15745_v60  ;;  %v5432_v53 = vmax.f32 %v5384_v56, 0.0  ;;  %v5434_v21 = vmax.f32 %v5392_v40, 0.0  ;;  %v12518_v56 = vld [vmem:[#allocation16 + $0x118] sm:$0xff]   ;;  %v12519_v40 = vld [vmem:[#allocation16 + $0x110] sm:$0xff]  }
 0x591   :  { %v3248_v50 = vpop.f32.mrf.mxu0 }
 0x592   :  { %7127 = vperm.xlu1 %12322, %v15718_v22   ;;  %v5433_v18 = vmax.f32 %v5387_v6, 0.0  ;;  %v3329_v1 = vpack.c.bf16 %v3241_v34, %v3238_v46  ;;  %v3249_v45 = vadd.f32 %v15745_v60, %v3248_v50  ;;  %v18050_v34 = vld [vmem:[#allocation63_spill] sm:$0xff] }
 0x593   :  { %v15821_v39 = vpop.f32.mrf.mxu0  ;;  %11914 = vmatmul.mubr.bf16.gmra.mxu0 %v5447_v62  ;;  %12324 = vset.pattern.permute.xlu0 %v18046_v61  ;;  %v5435_v62 = vmax.f32 %v5395_v47, 0.0 }
 0x594   :  { %11917 = vmatprep.mubr.bf16.mxu0 %v5448_v13  ;;  %7575 = vperm.xlu0 %12324, %v15555_v0   ;;  %v5451_v58 = vpack.c.bf16 %v5433_v18, %v5432_v53  ;;  %v5403_v13 = vadd.f32 %v11880_v12, %v15597_v11  ;;  %v12516_v12 = vld [vmem:[#allocation16 + $0x128] sm:$0xff]   ;;  %v3330_v50 = vpack.c.bf16 %v3249_v45, %v3246_v27 }
 0x595   :  { %v15825_v19 = vpop.f32.mrf.mxu0  ;;  %v5452_v17 = vpack.c.bf16 %v5435_v62, %v5434_v21  ;;  %11933 = vmatprep.subr.bf16.mxu1 %v12516_v12  ;;  %v15912_v62 = vld [vmem:[#allocation14 + $0x2] ss:$0 sm:$0xff]  ;;  %v12520_v21 = vld [vmem:[#allocation16 + $0x108] sm:$0xff]  }
 0x596   :  { %12325 = vset.pattern.permute.xlu1 %v18046_v61  ;;  %v5437_v15 = vmax.f32 %v5403_v13, 0.0  ;;  %11934 = vmatpush3.bf16.msra.mxu1 %v12516_v12  ;;  %v18054_v13 = vld [vmem:[#allocation66_spill] sm:$0xff] }
 0x597   :  { %v15829_v29 = vpop.f32.mrf.mxu0  ;;  %6007 = vmatmul.mubr.bf16.gmra.mxu1 %v18047_v57  ;;  %7579 = vperm.xlu1 %12325, %v15527_v33   ;;  %v3257_v57 = vadd.f32 %v15806_v23, %v15745_v60  ;;  %v18056_v45 = vpack.c.bf16 %v18054_v13, %v18055_v32 }
 0x598   :  { %6014 = vmatprep.mubr.bf16.mxu1 %v3328_v26  ;;  %7587 = vperm.xlu0 %12324, %v15575_v51   ;;  %v18049_v26 = vpack.c.bf16 %v15485_v63, %v15482_v49  ;;  %v5453_v54 = vpack.c.bf16 %v5437_v15, %v5436_v8  ;;  %v3254_v63 = vadd.f32 %v15796_v9, %v15745_v60  ;;  %v12521_v8 = vld [vmem:[#allocation16 + $0x100] sm:$0xff]  }
 0x599   :  { %v15838_v10 = vpop.f32.mrf.mxu0  ;;  %11935 = vmatprep.subr.bf16.mxu1 %v12517_v42  ;;  %v3273_v15 = vadd.f32 %v15829_v29, %v15745_v60  ;;  %v18057_v29 = vld [vmem:[#allocation125_spill] sm:$0xff] }
 0x59a   :  { %11936 = vmatpush3.bf16.msra.mxu1 %v12517_v42  ;;  %v3331_v6 = vpack.c.bf16 %v3257_v57, %v3254_v63  ;;  %v3265_v53 = vadd.f32 %v15745_v60, %v15838_v10  ;;  %v18053_v10 = vmov 3   ;;  %v18058_v57 = vld [vmem:[#allocation123_spill] sm:$0xff] }
 0x59b   :  { %v15846_v44 = vpop.f32.mrf.mxu0  ;;  %11918 = vmatmul.mubr.bf16.gmra.mxu0 %v5449_v16  ;;  %7583 = vperm.xlu1 %12325, %v15552_v14  }
 0x59c   :  { %11921 = vmatprep.mubr.bf16.mxu0 %v5450_v59  ;;  %7595 = vperm.xlu0 %12324, %v15605_v24   ;;  %v18051_v59 = vld [vmem:[#allocation61_spill] sm:$0xff] }
 0x59d   :  { %v15852_v4 = vpop.f32.mrf.mxu0  ;;  %v18052_v47 = vpack.c.bf16 %v18050_v34, %v18051_v59  ;;  %11937 = vmatprep.subr.bf16.mxu1 %v12518_v56  ;;  %v18060_v59 = vld [vmem:[#allocation124_spill] sm:$0xff] }
 0x59e   :  { %11938 = vmatpush3.bf16.msra.mxu1 %v12518_v56 }
 0x59f   :  { %v15855_v41 = vpop.f32.mrf.mxu0  ;;  %6015 = vmatmul.mubr.bf16.gmra.mxu1 %v18048_v2  ;;  %7591 = vperm.xlu1 %12325, %v15572_v36  }
 0x5a0   :  { %6022 = vmatprep.mubr.bf16.mxu1 %v3329_v1  ;;  %7603 = vperm.xlu0 %12324, %v15629_v35   ;;  %v3262_v1 = vadd.f32 %v15745_v60, %v15825_v19 }
 0x5a1   :  { %v15862_v28 = vpop.f32.mrf.mxu0  ;;  %11939 = vmatprep.subr.bf16.mxu1 %v12519_v40 }
 0x5a2   :  { %11940 = vmatpush3.bf16.msra.mxu1 %v12519_v40 }
 0x5a3   :  { %v15868_v31 = vpop.f32.mrf.mxu0  ;;  %11922 = vmatmul.mubr.bf16.gmra.mxu0 %v5451_v58  ;;  %7599 = vperm.xlu1 %12325, %v15602_v38   ;;  %v3332_v58 = vpack.c.bf16 %v3265_v53, %v3262_v1 }
 0x5a4   :  { %11925 = vmatprep.mubr.bf16.mxu0 %v5452_v17  ;;  %7611 = vperm.xlu0 %12324, %v15653_v3  }
 0x5a5   :  { %v15872_v11 = vpop.f32.mrf.mxu0  ;;  %11941 = vmatprep.subr.bf16.mxu1 %v12520_v21 }
 0x5a6   :  { %11942 = vmatpush3.bf16.msra.mxu1 %v12520_v21  ;;  %v3294_v32 = vadd.f32 %v15745_v60, %v15872_v11 }
 0x5a7   :  { %v15876_v61 = vpop.f32.mrf.mxu0  ;;  %6023 = vmatmul.mubr.bf16.gmra.mxu1 %v18049_v26  ;;  %7607 = vperm.xlu1 %12325, %v15626_v43   ;;  %v3270_v26 = vadd.f32 %v15821_v39, %v15745_v60 }
 0x5a8   :  { %6030 = vmatprep.mubr.bf16.mxu1 %v3330_v50  ;;  %7619 = vperm.xlu0 %12324, %v15677_v5  }
 0x5a9   :  { %v15881_v20 = vpop.f32.mrf.mxu0  ;;  %11943 = vmatprep.subr.bf16.mxu1 %v12521_v8  ;;  %v3333_v42 = vpack.c.bf16 %v3273_v15, %v3270_v26  ;;  %v18066_v15 = vmov 0   ;;  %v18067_v26 = vld [vmem:[#allocation128_spill] sm:$0xff] }
 0x5aa   :  { %11944 = vmatpush3.bf16.msra.mxu1 %v12521_v8 }
 0x5ab   :  { %v11639_v30 = vpop.f32.mrf.mxu0  ;;  %11926 = vmatmul.mubr.bf16.gmra.mxu0 %v5453_v54  ;;  %7615 = vperm.xlu1 %12325, %v15650_v7  }
 0x5ac   :  { %v15890_v49 = vadd.f32 %v11639_v30, %v15745_v60  ;;  %7627 = vperm.xlu0 %12324, %v15697_v55   ;;  %v18059_v30 = vpack.c.bf16 %v18057_v29, %v18058_v57  ;;  %v3305_v29 = vadd.f32 %v15876_v61, %v15745_v60  ;;  %v16036_v61 = vld [vmem:[#allocation19 + $0x38] sm:$0xff]  }
 0x5ad   :  { %v15892_v16 = vpop.f32.mrf.mxu0  ;;  %11977 = vmatprep.subr.bf16.mxu0 %v16036_v61 }
 0x5af   :  { %v11640_v23 = vpop.f32.mrf.mxu0  ;;  %6031 = vmatmul.mubr.bf16.gmra.mxu1 %v18052_v47  ;;  %7623 = vperm.xlu1 %12325, %v15674_v25   ;;  %v18061_v47 = vld [vmem:[#allocation122_spill] sm:$0xff] }
 0x5b0   :  { %v15900_v9 = vadd.f32 %v11640_v23, %v15745_v60  ;;  %6038 = vmatprep.mubr.bf16.mxu1 %v3331_v6  ;;  %7635 = vperm.xlu0 %12324, %v15718_v22   ;;  %v3278_v6 = vadd.f32 %v15745_v60, %v15852_v4 }
 0x5b1   :  { %v15902_v46 = vpop.f32.mrf.mxu0 }
 0x5b2   :  { %v3339_v18 = vpack.c.bf16 %v15900_v9, %v15890_v49  ;;  %v16109_v9 = vld [vmem:[#allocation14 + $0x3] ss:$0 sm:$0xff] }
 0x5b3   :  { %v11707_v48 = vpop.f32.mrf.mxu0  ;;  %7631 = vperm.xlu1 %12325, %v15694_v37  }
 0x5b4   :  { %12327 = vset.pattern.permute.xlu0 %v18053_v10  ;;  %v15922_v17 = vadd.f32 %v11707_v48, %v15912_v62  ;;  %v3286_v48 = vadd.f32 %v15846_v44, %v15745_v60 }
 0x5b5   :  { %v15914_v2 = vpop.f32.mrf.mxu0  ;;  %8087 = vperm.xlu0 %12327, %v15527_v33  }
 0x5b7   :  { %v11708_v52 = vpop.f32.mrf.mxu0  ;;  %6039 = vmatmul.mubr.bf16.gmra.mxu1 %v18056_v45  ;;  %12326 = vset.pattern.permute.xlu1 %v18053_v10  ;;  %v18064_v10 = vld [vmem:[#allocation127_spill] sm:$0xff] }
 0x5b8   :  { %v15925_v19 = vadd.f32 %v11708_v52, %v15912_v62  ;;  %6046 = vmatprep.mubr.bf16.mxu1 %v3332_v58  ;;  %8083 = vperm.xlu1 %12326, %v15555_v0   ;;  %v18063_v58 = vld [vmem:[#allocation129_spill] sm:$0xff] }
 0x5b9   :  { %v15927_v27 = vpop.f32.mrf.mxu0  ;;  %8099 = vperm.xlu0 %12327, %v15572_v36   ;;  %v3281_v36 = vadd.f32 %v15745_v60, %v15862_v28  ;;  %v18062_v28 = vpack.c.bf16 %v18060_v59, %v18061_v47 }
 0x5ba   :  { %v4113_v12 = vpack.c.bf16 %v15925_v19, %v15922_v17  ;;  %v3989_v49 = vadd.f32 %v15912_v62, %v15927_v27 }
 0x5bb   :  { %v11711_v50 = vpop.f32.mrf.mxu0  ;;  %v3334_v34 = vpack.c.bf16 %v3281_v36, %v3278_v6  ;;  %v3302_v36 = vadd.f32 %v15868_v31, %v15745_v60  ;;  %v18071_v31 = vld [vmem:[#allocation131_spill] sm:$0xff] }
 0x5bc   :  { %8091 = vperm.xlu1 %12326, %v15552_v14   ;;  %v15946_v0 = vadd.f32 %v11711_v50, %v15912_v62 }
 0x5bd   :  { %v15938_v54 = vpop.f32.mrf.mxu0  ;;  %8107 = vperm.xlu0 %12327, %v15602_v38   ;;  %v3337_v59 = vpack.c.bf16 %v3305_v29, %v3302_v36 }
 0x5bf   :  { %v11712_v33 = vpop.f32.mrf.mxu0  ;;  %6047 = vmatmul.mubr.bf16.gmra.mxu1 %v18059_v30 }
 0x5c0   :  { %v15949_v63 = vadd.f32 %v11712_v33, %v15912_v62  ;;  %6054 = vmatprep.mubr.bf16.mxu1 %v3333_v42  ;;  %8095 = vperm.xlu1 %12326, %v15575_v51   ;;  %v18068_v42 = vld [vmem:[#allocation126_spill] sm:$0xff] }
 0x5c1   :  { %v15951_v39 = vpop.f32.mrf.mxu0  ;;  %8115 = vperm.xlu0 %12327, %v15626_v43   ;;  %v3289_v43 = vadd.f32 %v15855_v41, %v15745_v60  ;;  %v18065_v41 = vpack.c.bf16 %v18063_v58, %v18064_v10 }
 0x5c2   :  { %v4115_v14 = vpack.c.bf16 %v15949_v63, %v15946_v0 }
 0x5c3   :  { %v11715_v56 = vpop.f32.mrf.mxu0  ;;  %v3335_v21 = vpack.c.bf16 %v3289_v43, %v3286_v48 }
 0x5c4   :  { %8103 = vperm.xlu1 %12326, %v15605_v24   ;;  %v15969_v40 = vadd.f32 %v11715_v56, %v15912_v62 }
 0x5c5   :  { %v15961_v23 = vpop.f32.mrf.mxu0  ;;  %8123 = vperm.xlu0 %12327, %v15650_v7  }
 0x5c7   :  { %v11716_v38 = vpop.f32.mrf.mxu0  ;;  %6055 = vmatmul.mubr.bf16.gmra.mxu1 %v18062_v28  ;;  %v18070_v28 = vld [vmem:[#allocation133_spill] sm:$0xff] }
 0x5c8   :  { %v15972_v51 = vadd.f32 %v11716_v38, %v15912_v62  ;;  %6062 = vmatprep.mubr.bf16.mxu1 %v3334_v34  ;;  %8111 = vperm.xlu1 %12326, %v15629_v35   ;;  %v16038_v38 = vld [vmem:[#allocation19 + $0x78] sm:$0xff]   ;;  %v18072_v43 = vpack.c.bf16 %v18070_v28, %v18071_v31 }
 0x5c9   :  { %v15974_v4 = vpop.f32.mrf.mxu0  ;;  %8131 = vperm.xlu0 %12327, %v15674_v25   ;;  %v3297_v25 = vadd.f32 %v15745_v60, %v15881_v20  ;;  %12041 = vmatprep.subr.bf16.mxu1 %v16038_v38  ;;  %v18077_v28 = vld [vmem:[#allocation135_spill] sm:$0xff] }
 0x5ca   :  { %v4117_v24 = vpack.c.bf16 %v15972_v51, %v15969_v40 }
 0x5cb   :  { %v11719_v53 = vpop.f32.mrf.mxu0  ;;  %v3336_v50 = vpack.c.bf16 %v3297_v25, %v3294_v32 }
 0x5cc   :  { %8119 = vperm.xlu1 %12326, %v15653_v3   ;;  %v15992_v52 = vadd.f32 %v11719_v53, %v15912_v62 }
 0x5cd   :  { %v15984_v1 = vpop.f32.mrf.mxu0  ;;  %8139 = vperm.xlu0 %12327, %v15694_v37  }
 0x5cf   :  { %v11720_v7 = vpop.f32.mrf.mxu0  ;;  %6063 = vmatmul.mubr.bf16.gmra.mxu1 %v18065_v41  ;;  %v3310_v41 = vadd.f32 %v15745_v60, %v15892_v16 }
 0x5d0   :  { %v15995_v35 = vadd.f32 %v11720_v7, %v15912_v62  ;;  %6070 = vmatprep.mubr.bf16.mxu1 %v3335_v21  ;;  %8127 = vperm.xlu1 %12326, %v15677_v5   ;;  %v18069_v5 = vpack.c.bf16 %v18067_v26, %v18068_v42  ;;  %v3313_v21 = vadd.f32 %v15745_v60, %v15902_v46 }
 0x5d1   :  { %v15997_v44 = vpop.f32.mrf.mxu0  ;;  %12328 = vset.pattern.permute.xlu0 %v18066_v15 }
 0x5d2   :  { %v4119_v3 = vpack.c.bf16 %v15995_v35, %v15992_v52 }
 0x5d3   :  { %v11723_v13 = vpop.f32.mrf.mxu0 }
 0x5d4   :  { %v16008_v45 = vadd.f32 %v11723_v13, %v15912_v62  ;;  %8135 = vperm.xlu1 %12326, %v15697_v55  }
 0x5d5   :  { %v4049_v8 = vpop.f32.mrf.mxu0 }
 0x5d6   :  { %v16012_v37 = vadd.f32 %v15912_v62, %v4049_v8  ;;  %v3338_v8 = vpack.c.bf16 %v3313_v21, %v3310_v41 }
 0x5d7   :  { %v11724_v20 = vpop.f32.mrf.mxu0  ;;  %6071 = vmatmul.mubr.bf16.gmra.mxu1 %v18069_v5 }
 0x5d8   :  { %v16019_v33 = vadd.f32 %v11724_v20, %v15912_v62  ;;  %6078 = vmatprep.mubr.bf16.mxu1 %v3336_v50  ;;  %8143 = vperm.xlu1 %12326, %v15718_v22   ;;  %v18073_v50 = vld [vmem:[#allocation132_spill] sm:$0xff]  ;;  %v18074_v20 = vld [vmem:[#allocation130_spill] sm:$0xff] }
 0x5d9   :  { %v4052_v11 = vpop.f32.mrf.mxu0  ;;  %v18075_v26 = vpack.c.bf16 %v18073_v50, %v18074_v20  ;;  %v18079_v50 = vld [vmem:[#allocation136_spill] sm:$0xff]  ;;  %v18080_v20 = vld [vmem:[#allocation134_spill] sm:$0xff] }
 0x5da   :  { %v16026_v30 = vadd.f32 %v15912_v62, %v4052_v11 }
 0x5db   :  { %v11727_v55 = vpop.f32.mrf.mxu0 }
 0x5dc   :  { %v16034_v6 = vadd.f32 %v11727_v55, %v15912_v62  ;;  %12329 = vset.pattern.permute.xlu1 %v18066_v15 }
 0x5dd   :  { %v4065_v34 = vpop.f32.mrf.mxu0 }
 0x5de   :  { %v16041_v47 = vadd.f32 %v15912_v62, %v4065_v34 }
 0x5df   :  { %v11728_v22 = vpop.f32.mrf.mxu0  ;;  %6079 = vmatmul.mubr.bf16.gmra.mxu1 %v18072_v43 }
 0x5e0   :  { %v16049_v53 = vadd.f32 %v11728_v22, %v15912_v62  ;;  %6086 = vmatprep.mubr.bf16.mxu1 %v3337_v59  ;;  %v18076_v22 = vld [vmem:[#allocation137_spill] sm:$0xff] }
 0x5e1   :  { %v4068_v48 = vpop.f32.mrf.mxu0  ;;  %v18078_v31 = vpack.c.bf16 %v18076_v22, %v18077_v28 }
 0x5e2   :  { %v16057_v58 = vadd.f32 %v15912_v62, %v4068_v48 }
 0x5e3   :  { %v11731_v10 = vpop.f32.mrf.mxu0 }
 0x5e4   :  { %v16064_v13 = vadd.f32 %v11731_v10, %v15912_v62 }
 0x5e5   :  { %v4081_v32 = vpop.f32.mrf.mxu0 }
 0x5e6   :  { %v16067_v46 = vadd.f32 %v15912_v62, %v4081_v32 }
 0x5e7   :  { %v11732_v15 = vpop.f32.mrf.mxu0  ;;  %6087 = vmatmul.mubr.bf16.gmra.mxu1 %v18075_v26  ;;  %v18081_v26 = vpack.c.bf16 %v18079_v50, %v18080_v20  ;;  %v12523_v20 = vld [vmem:[#allocation19 + $0x30] sm:$0xff]  }
 0x5e8   :  { %v16073_v42 = vadd.f32 %v11732_v15, %v15912_v62  ;;  %6094 = vmatprep.mubr.bf16.mxu1 %v3338_v8 }
 0x5e9   :  { %v4084_v60 = vpop.f32.mrf.mxu0 }
 0x5ea   :  { %v16078_v5 = vadd.f32 %v15912_v62, %v4084_v60 }
 0x5eb   :  { %v11735_v11 = vpop.f32.mrf.mxu0 }
 0x5ec   :  { %v16083_v55 = vadd.f32 %v11735_v11, %v15912_v62 }
 0x5ed   :  { %v4097_v36 = vpop.f32.mrf.mxu0 }
 0x5ee   :  { %v16086_v34 = vadd.f32 %v15912_v62, %v4097_v36 }
 0x5ef   :  { %v11736_v59 = vpop.f32.mrf.mxu0  ;;  %6095 = vmatmul.mubr.bf16.gmra.mxu1 %v18078_v31 }
 0x5f0   :  { %v16092_v43 = vadd.f32 %v11736_v59, %v15912_v62  ;;  %6102 = vmatprep.mubr.bf16.mxu1 %v3339_v18  ;;  %v3986_v59 = vadd.f32 %v15912_v62, %v15914_v2 }
 0x5f1   :  { %v4100_v48 = vpop.f32.mrf.mxu0 }
 0x5f2   :  { %v16100_v10 = vadd.f32 %v15912_v62, %v4100_v48  ;;  %v4112_v48 = vpack.c.bf16 %v3989_v49, %v3986_v59 }
 0x5f3   :  { %v11803_v41 = vpop.f32.mrf.mxu0 }
 0x5f4   :  { %v4782_v28 = vadd.f32 %v11803_v41, %v16109_v9  ;;  %v16120_v41 = vpop.permute.xlu1 %6554 }
 0x5f5   :  { %v4773_v8 = vpop.f32.mrf.mxu0 }
 0x5f6   :  { %v4774_v60 = vadd.f32 %v16109_v9, %v4773_v8 }
 0x5f7   :  { %v11804_v15 = vpop.f32.mrf.mxu0  ;;  %6103 = vmatmul.mubr.bf16.gmra.mxu1 %v18081_v26 }
 0x5f8   :  { %v4785_v11 = vadd.f32 %v11804_v15, %v16109_v9  ;;  %v12524_v15 = vld [vmem:[#allocation19 + $0x28] sm:$0xff]  }
 0x5f9   :  { %v4776_v18 = vpop.f32.mrf.mxu0 }
 0x5fa   :  { %v4777_v36 = vadd.f32 %v16109_v9, %v4776_v18  ;;  %v4901_v27 = vpack.c.bf16 %v4785_v11, %v4782_v28  ;;  %v12526_v28 = vld [vmem:[#allocation19 + $0x18] sm:$0xff]  }
 0x5fb   :  { %v11807_v22 = vpop.f32.mrf.mxu0 }
 0x5fc   :  { %v4900_v31 = vpack.c.bf16 %v4777_v36, %v4774_v60  ;;  %v12525_v60 = vld [vmem:[#allocation19 + $0x20] sm:$0xff]  }
 0x5fd   :  { %v4789_v50 = vpop.f32.mrf.mxu0 }
 0x5fe   :  { %6143 = vmatprep.mubr.bf16.mxu0 %v4900_v31  ;;  %v4790_v21 = vadd.f32 %v16109_v9, %v4789_v50 }
 0x5ff   :  { %v11808_v26 = vpop.f32.mrf.mxu0  ;;  %6144 = vmatmul.mubr.bf16.vlgmr.msra.gmra.mxu0 %v4112_v48  ;;  %v16128_v48 = vpop.permute.xlu1 %6559 }
 0x600   :  { %6151 = vmatprep.mubr.bf16.mxu0 %v4901_v27  ;;  %11978 = vmatpush3.bf16.msra.mxu0 %v16036_v61  ;;  %v4005_v61 = vadd.f32 %v15912_v62, %v15951_v39  ;;  %v4801_v31 = vadd.f32 %v11808_v26, %v16109_v9 }
 0x601   :  { %v4792_v8 = vpop.f32.mrf.mxu0  ;;  %11979 = vmatprep.subr.bf16.mxu0 %v12523_v20 }
 0x602   :  { %v4793_v18 = vadd.f32 %v16109_v9, %v4792_v8 }
 0x603   :  { %v11811_v2 = vpop.f32.mrf.mxu0  ;;  %v16133_v8 = vpop.permute.xlu1 %6569 }
 0x604   :  { %11980 = vmatpush3.bf16.msra.mxu0 %v12523_v20  ;;  %v4902_v11 = vpack.c.bf16 %v4793_v18, %v4790_v21  ;;  %v4002_v21 = vadd.f32 %v15912_v62, %v15938_v54  ;;  %v4798_v20 = vadd.f32 %v11807_v22, %v16109_v9 }
 0x605   :  { %v4805_v49 = vpop.f32.mrf.mxu0  ;;  %11981 = vmatprep.subr.bf16.mxu0 %v12524_v15 }
 0x606   :  { %v4114_v17 = vpack.c.bf16 %v4005_v61, %v4002_v21  ;;  %v4903_v27 = vpack.c.bf16 %v4801_v31, %v4798_v20  ;;  %v4806_v22 = vadd.f32 %v16109_v9, %v4805_v49  ;;  %v4018_v20 = vadd.f32 %v15912_v62, %v15961_v23 }
 0x607   :  { %v11812_v36 = vpop.f32.mrf.mxu0  ;;  %6152 = vmatmul.mubr.bf16.gmra.mxu0 %v4113_v12  ;;  %v12527_v12 = vld [vmem:[#allocation19 + $0x10] sm:$0xff]   ;;  %v16139_v31 = vpop.permute.xlu1 %6579 }
 0x608   :  { %6159 = vmatprep.mubr.bf16.mxu0 %v4902_v11  ;;  %11982 = vmatpush3.bf16.msra.mxu0 %v12524_v15  ;;  %v12528_v15 = vld [vmem:[#allocation19 + $0x8] sm:$0xff]   ;;  %v12529_v11 = vld [vmem:[#allocation19] sm:$0xff]   ;;  %v4817_v49 = vadd.f32 %v11812_v36, %v16109_v9 }
 0x609   :  { %v4808_v59 = vpop.f32.mrf.mxu0  ;;  %11983 = vmatprep.subr.bf16.mxu0 %v12525_v60 }
 0x60a   :  { %v4809_v54 = vadd.f32 %v16109_v9, %v4808_v59  ;;  %v4021_v59 = vadd.f32 %v15912_v62, %v15974_v4  ;;  %v16160_v4 = vpop.permute.xlu0 %6549 }
 0x60b   :  { %v11815_v50 = vpop.f32.mrf.mxu0 }
 0x60c   :  { %11984 = vmatpush3.bf16.msra.mxu0 %v12525_v60  ;;  %v4904_v61 = vpack.c.bf16 %v4809_v54, %v4806_v22  ;;  %v4116_v0 = vpack.c.bf16 %v4021_v59, %v4018_v20 }
 0x60d   :  { %v4821_v19 = vpop.f32.mrf.mxu0  ;;  %11985 = vmatprep.subr.bf16.mxu0 %v12526_v28 }
 0x60e   :  { %v4822_v22 = vadd.f32 %v16109_v9, %v4821_v19  ;;  %v16172_v59 = vpop.permute.xlu0 %6564 }
 0x60f   :  { %v11816_v39 = vpop.f32.mrf.mxu0  ;;  %6160 = vmatmul.mubr.bf16.gmra.mxu0 %v4114_v17 }
 0x610   :  { %6167 = vmatprep.mubr.bf16.mxu0 %v4903_v27  ;;  %11986 = vmatpush3.bf16.msra.mxu0 %v12526_v28  ;;  %v16154_v27 = vpop.permute.xlu1 %6589  ;;  %v4833_v19 = vadd.f32 %v11816_v39, %v16109_v9 }
 0x611   :  { %v4824_v26 = vpop.f32.mrf.mxu0  ;;  %11987 = vmatprep.subr.bf16.mxu0 %v12527_v12 }
 0x612   :  { %v4825_v23 = vadd.f32 %v16109_v9, %v4824_v26  ;;  %v4037_v26 = vadd.f32 %v15912_v62, %v15997_v44  ;;  %v16192_v40 = vpop.permute.xlu0 %6574 }
 0x613   :  { %v16136_v18 = vpop.f32.mrf.mxu0 }
 0x614   :  { %11988 = vmatpush3.bf16.msra.mxu0 %v12527_v12  ;;  %v4814_v12 = vadd.f32 %v11811_v2, %v16109_v9  ;;  %v16165_v54 = vpop.permute.xlu1 %6599  ;;  %v4846_v52 = vadd.f32 %v16136_v18, %v16109_v9 }
 0x615   :  { %v4837_v60 = vpop.f32.mrf.mxu0  ;;  %11989 = vmatprep.subr.bf16.mxu0 %v12528_v15 }
 0x617   :  { %v16141_v21 = vpop.f32.mrf.mxu0  ;;  %6168 = vmatmul.mubr.bf16.gmra.mxu0 %v4115_v14  ;;  %v4905_v14 = vpack.c.bf16 %v4817_v49, %v4814_v12 }
 0x618   :  { %6175 = vmatprep.mubr.bf16.mxu0 %v4904_v61  ;;  %11990 = vmatpush3.bf16.msra.mxu0 %v12528_v15  ;;  %v4906_v61 = vpack.c.bf16 %v4825_v23, %v4822_v22  ;;  %v16179_v20 = vpop.permute.xlu1 %6609  ;;  %v4830_v23 = vadd.f32 %v11815_v50, %v16109_v9  ;;  %v4849_v7 = vadd.f32 %v16141_v21, %v16109_v9 }
 0x619   :  { %v4840_v28 = vpop.f32.mrf.mxu0  ;;  %11991 = vmatprep.subr.bf16.mxu0 %v12529_v11 }
 0x61b   :  { %v16151_v17 = vpop.f32.mrf.mxu0 }
 0x61c   :  { %11992 = vmatpush3.bf16.msra.mxu0 %v12529_v11  ;;  %v16196_v44 = vpop.permute.xlu1 %6619 }
 0x61d   :  { %v16156_v63 = vpop.f32.mrf.mxu0  ;;  %18082 = vst [vmem:[#allocation63_spill] sm:$0xff] %v16196_v44 }
 0x61f   :  { %v16158_v15 = vpop.f32.mrf.mxu0  ;;  %6176 = vmatmul.mubr.bf16.gmra.mxu0 %v4116_v0  ;;  %v4034_v0 = vadd.f32 %v15912_v62, %v15984_v1  ;;  %v4841_v1 = vadd.f32 %v16109_v9, %v4840_v28 }
 0x620   :  { %6183 = vmatprep.mubr.bf16.mxu0 %v4905_v14 }
 0x621   :  { %v16162_v36 = vpop.f32.mrf.mxu0  ;;  %v4118_v51 = vpack.c.bf16 %v4037_v26, %v4034_v0  ;;  %v16209_v0 = vld [vmem:[#allocation14 + $0x4] ss:$0 sm:$0xff] }
 0x623   :  { %v16167_v2 = vpop.f32.mrf.mxu0 }
 0x625   :  { %v16170_v11 = vpop.f32.mrf.mxu0 }
 0x627   :  { %v16174_v49 = vpop.f32.mrf.mxu0  ;;  %6184 = vmatmul.mubr.bf16.gmra.mxu0 %v4117_v24 }
 0x628   :  { %6191 = vmatprep.mubr.bf16.mxu0 %v4906_v61  ;;  %v4907_v61 = vpack.c.bf16 %v4833_v19, %v4830_v23  ;;  %v4838_v19 = vadd.f32 %v16109_v9, %v4837_v60  ;;  %v16211_v23 = vpop.permute.xlu1 %7067 }
 0x629   :  { %v16183_v12 = vpop.f32.mrf.mxu0 }
 0x62b   :  { %v11831_v14 = vpop.f32.mrf.mxu0 }
 0x62c   :  { %v16190_v22 = vadd.f32 %v11831_v14, %v16109_v9  ;;  %v16206_v14 = vpop.permute.xlu0 %6584 }
 0x62d   :  { %v16194_v24 = vpop.f32.mrf.mxu0 }
 0x62f   :  { %v11832_v32 = vpop.f32.mrf.mxu0  ;;  %6192 = vmatmul.mubr.bf16.gmra.mxu0 %v4118_v51 }
 0x630   :  { %v16199_v39 = vadd.f32 %v11832_v32, %v16109_v9  ;;  %6199 = vmatprep.mubr.bf16.mxu0 %v4907_v61  ;;  %v4908_v32 = vpack.c.bf16 %v4841_v1, %v4838_v19  ;;  %v16219_v29 = vpop.permute.xlu0 %6594  ;;  %v16224_v19 = vpop.permute.xlu1 %7075 }
 0x631   :  { %v16201_v62 = vpop.f32.mrf.mxu0 }
 0x633   :  { %v11899_v26 = vpop.f32.mrf.mxu0 }
 0x634   :  { %v5570_v61 = vadd.f32 %v11899_v26, %v16209_v0 }
 0x635   :  { %v5561_v51 = vpop.f32.mrf.mxu0 }
 0x636   :  { %v5562_v28 = vadd.f32 %v16209_v0, %v5561_v51  ;;  %v12531_v51 = vld [vmem:[#allocation19 + $0x70] sm:$0xff]  }
 0x637   :  { %v11900_v16 = vpop.f32.mrf.mxu0  ;;  %6200 = vmatmul.mubr.bf16.gmra.mxu0 %v4119_v3 }
 0x638   :  { %v5573_v50 = vadd.f32 %v11900_v16, %v16209_v0  ;;  %6207 = vmatprep.mubr.bf16.mxu0 %v4908_v32  ;;  %v4909_v16 = vpack.c.bf16 %v4849_v7, %v4846_v52  ;;  %v16228_v32 = vpop.permute.xlu0 %6604  ;;  %v16237_v7 = vpop.permute.xlu1 %7079 }
 0x639   :  { %v5564_v60 = vpop.f32.mrf.mxu0 }
 0x63a   :  { %v5565_v1 = vadd.f32 %v16209_v0, %v5564_v60  ;;  %v5689_v26 = vpack.c.bf16 %v5573_v50, %v5570_v61  ;;  %v18083_v60 = vpack.c.bf16 %v16026_v30, %v16012_v37 }
 0x63b   :  { %v11903_v25 = vpop.f32.mrf.mxu0 }
 0x63c   :  { %v5688_v35 = vpack.c.bf16 %v5565_v1, %v5562_v28  ;;  %v5586_v57 = vadd.f32 %v11903_v25, %v16209_v0  ;;  %v12532_v25 = vld [vmem:[#allocation19 + $0x68] sm:$0xff]   ;;  %v4857_v1 = vadd.f32 %v16109_v9, %v16162_v36  ;;  %v12533_v36 = vld [vmem:[#allocation19 + $0x60] sm:$0xff]  }
 0x63d   :  { %v5577_v3 = vpop.f32.mrf.mxu0 }
 0x63e   :  { %11945 = vmatprep.mubr.bf16.mxu1 %v5688_v35  ;;  %v5578_v50 = vadd.f32 %v16209_v0, %v5577_v3  ;;  %v16248_v3 = vpop.permute.xlu0 %6614 }
 0x63f   :  { %v11904_v56 = vpop.f32.mrf.mxu0  ;;  %v10845_v21 = vpop.f32.mrf.mxu1  ;;  %6208 = vmatmul.mubr.bf16.gmra.mxu0 %v18083_v60  ;;  %11946 = vmatmul.mubr.bf16.vlgmr.msra.gmra.mxu1 %v5689_v26 }
 0x640   :  { %v5589_v18 = vadd.f32 %v11904_v56, %v16209_v0  ;;  %6215 = vmatprep.mubr.bf16.mxu0 %v4909_v16  ;;  %12042 = vmatpush3.bf16.msra.mxu1 %v16038_v38  ;;  %v4854_v56 = vadd.f32 %v16109_v9, %v16156_v63 }
 0x641   :  { %v5580_v61 = vpop.f32.mrf.mxu0  ;;  %v10846_v28 = vpop.f32.mrf.mxu1  ;;  %12043 = vmatprep.subr.bf16.mxu1 %v12531_v51 }
 0x642   :  { %v5581_v37 = vadd.f32 %v16209_v0, %v5580_v61  ;;  %v16242_v30 = vadd.f32 %v10846_v28, %v10845_v21  ;;  %v5691_v26 = vpack.c.bf16 %v5589_v18, %v5586_v57  ;;  %v4910_v44 = vpack.c.bf16 %v4857_v1, %v4854_v56  ;;  %v16252_v21 = vpop.permute.xlu1 %7087  ;;  %v12534_v28 = vld [vmem:[#allocation19 + $0x58] sm:$0xff]  }
 0x643   :  { %v11907_v52 = vpop.f32.mrf.mxu0  ;;  %v16244_v35 = vpop.f32.mrf.mxu1  ;;  %v18085_v61 = vpack.c.bf16 %v16019_v33, %v16008_v45  ;;  %v4865_v1 = vadd.f32 %v16158_v15, %v16109_v9 }
 0x644   :  { %v5690_v38 = vpack.c.bf16 %v5581_v37, %v5578_v50  ;;  %12044 = vmatpush3.bf16.msra.mxu1 %v12531_v51  ;;  %v16264_v45 = vpop.permute.xlu0 %6624  ;;  %v5602_v33 = vadd.f32 %v11907_v52, %v16209_v0 }
 0x645   :  { %v5593_v16 = vpop.f32.mrf.mxu0  ;;  %v16250_v60 = vpop.f32.mrf.mxu1  ;;  %12045 = vmatprep.subr.bf16.mxu1 %v12532_v25 }
 0x646   :  { %18084 = vst [vmem:[#allocation61_spill] sm:$0xff] %v16250_v60  ;;  %11949 = vmatprep.mubr.bf16.mxu1 %v5690_v38  ;;  %v5594_v37 = vadd.f32 %v16209_v0, %v5593_v16 }
 0x647   :  { %v11908_v57 = vpop.f32.mrf.mxu0  ;;  %v10851_v18 = vpop.f32.mrf.mxu1  ;;  %6216 = vmatmul.mubr.bf16.gmra.mxu0 %v18085_v61  ;;  %11950 = vmatmul.mubr.bf16.gmra.mxu1 %v5691_v26  ;;  %v4862_v26 = vadd.f32 %v16151_v17, %v16109_v9 }
 0x648   :  { %6223 = vmatprep.mubr.bf16.mxu0 %v4910_v44  ;;  %12046 = vmatpush3.bf16.msra.mxu1 %v12532_v25  ;;  %v5605_v63 = vadd.f32 %v11908_v57, %v16209_v0  ;;  %v16271_v61 = vpop.permute.xlu1 %7095 }
 0x649   :  { %v5596_v51 = vpop.f32.mrf.mxu0  ;;  %v10852_v50 = vpop.f32.mrf.mxu1  ;;  %12047 = vmatprep.subr.bf16.mxu1 %v12533_v36 }
 0x64a   :  { %v5597_v56 = vadd.f32 %v16209_v0, %v5596_v51  ;;  %v16262_v38 = vadd.f32 %v10852_v50, %v10851_v18  ;;  %v5693_v15 = vpack.c.bf16 %v5605_v63, %v5602_v33  ;;  %v12535_v18 = vld [vmem:[#allocation19 + $0x50] sm:$0xff]   ;;  %v4911_v51 = vpack.c.bf16 %v4865_v1, %v4862_v26  ;;  %v16275_v50 = vpop.permute.xlu0 %7071 }
 0x64b   :  { %v11911_v44 = vpop.f32.mrf.mxu0  ;;  %v16267_v25 = vpop.f32.mrf.mxu1  ;;  %v4873_v1 = vadd.f32 %v16109_v9, %v16183_v12 }
 0x64c   :  { %18086 = vst [vmem:[#allocation66_spill] sm:$0xff] %v16262_v38  ;;  %18087 = vst [vmem:[#allocation59_spill] sm:$0xff] %v16267_v25  ;;  %v5692_v57 = vpack.c.bf16 %v5597_v56, %v5594_v37  ;;  %12048 = vmatpush3.bf16.msra.mxu1 %v12533_v36  ;;  %v18088_v25 = vpack.c.bf16 %v16057_v58, %v16041_v47  ;;  %v12536_v37 = vld [vmem:[#allocation19 + $0x48] sm:$0xff]   ;;  %v16287_v47 = vpop.permute.xlu1 %7103  ;;  %v5618_v58 = vadd.f32 %v11911_v44, %v16209_v0 }
 0x64d   :  { %v5609_v16 = vpop.f32.mrf.mxu0  ;;  %v16273_v60 = vpop.f32.mrf.mxu1  ;;  %12049 = vmatprep.subr.bf16.mxu1 %v12534_v28 }
 0x64e   :  { %11953 = vmatprep.mubr.bf16.mxu1 %v5692_v57  ;;  %v5610_v56 = vadd.f32 %v16209_v0, %v5609_v16  ;;  %v4870_v57 = vadd.f32 %v16109_v9, %v16170_v11 }
 0x64f   :  { %v11912_v52 = vpop.f32.mrf.mxu0  ;;  %v10857_v38 = vpop.f32.mrf.mxu1  ;;  %6224 = vmatmul.mubr.bf16.gmra.mxu0 %v18088_v25  ;;  %11954 = vmatmul.mubr.bf16.gmra.mxu1 %v5693_v15 }
 0x650   :  { %6231 = vmatprep.mubr.bf16.mxu0 %v4911_v51  ;;  %12050 = vmatpush3.bf16.msra.mxu1 %v12534_v28  ;;  %v5621_v17 = vadd.f32 %v11912_v52, %v16209_v0  ;;  %v16294_v51 = vpop.permute.xlu0 %7083  ;;  %v16301_v11 = vpop.permute.xlu1 %7111 }
 0x651   :  { %v5612_v36 = vpop.f32.mrf.mxu0  ;;  %v10858_v63 = vpop.f32.mrf.mxu1  ;;  %12051 = vmatprep.subr.bf16.mxu1 %v12535_v18 }
 0x652   :  { %v5613_v33 = vadd.f32 %v16209_v0, %v5612_v36  ;;  %v16285_v26 = vadd.f32 %v10858_v63, %v10857_v38  ;;  %v5695_v12 = vpack.c.bf16 %v5621_v17, %v5618_v58  ;;  %v12537_v38 = vld [vmem:[#allocation19 + $0x40] sm:$0xff]   ;;  %v4912_v36 = vpack.c.bf16 %v4873_v1, %v4870_v57 }
 0x653   :  { %v11915_v28 = vpop.f32.mrf.mxu0  ;;  %v16290_v25 = vpop.f32.mrf.mxu1  ;;  %v4881_v1 = vadd.f32 %v16174_v49, %v16109_v9 }
 0x654   :  { %18089 = vst [vmem:[#allocation125_spill] sm:$0xff] %v16285_v26  ;;  %18090 = vst [vmem:[#allocation123_spill] sm:$0xff] %v16290_v25  ;;  %v5694_v15 = vpack.c.bf16 %v5613_v33, %v5610_v56  ;;  %12052 = vmatpush3.bf16.msra.mxu1 %v12535_v18  ;;  %v18092_v25 = vpack.c.bf16 %v16049_v53, %v16034_v6  ;;  %v16304_v33 = vld [vmem:[#allocation19 + $0xb8] sm:$0xff]  }
 0x655   :  { %v5625_v16 = vpop.f32.mrf.mxu0  ;;  %v16296_v52 = vpop.f32.mrf.mxu1  ;;  %12053 = vmatprep.subr.bf16.mxu1 %v12536_v37 }
 0x656   :  { %18091 = vst [vmem:[#allocation124_spill] sm:$0xff] %v16296_v52  ;;  %11957 = vmatprep.mubr.bf16.mxu1 %v5694_v15  ;;  %v5626_v58 = vadd.f32 %v16209_v0, %v5625_v16 }
 0x657   :  { %v11916_v63 = vpop.f32.mrf.mxu0  ;;  %v10863_v44 = vpop.f32.mrf.mxu1  ;;  %6232 = vmatmul.mubr.bf16.gmra.mxu0 %v18092_v25  ;;  %11958 = vmatmul.mubr.bf16.gmra.mxu1 %v5695_v12  ;;  %v4878_v12 = vadd.f32 %v16167_v2, %v16109_v9 }
 0x658   :  { %6239 = vmatprep.mubr.bf16.mxu0 %v4912_v36  ;;  %12054 = vmatpush3.bf16.msra.mxu1 %v12536_v37  ;;  %v5637_v18 = vadd.f32 %v11916_v63, %v16209_v0  ;;  %v16312_v25 = vpop.permute.xlu0 %7091  ;;  %v5634_v37 = vadd.f32 %v11915_v28, %v16209_v0 }
 0x659   :  { %v5628_v17 = vpop.f32.mrf.mxu0  ;;  %v10864_v56 = vpop.f32.mrf.mxu1  ;;  %12055 = vmatprep.subr.bf16.mxu1 %v12537_v38  ;;  %v4913_v16 = vpack.c.bf16 %v4881_v1, %v4878_v12  ;;  %v4889_v1 = vadd.f32 %v16109_v9, %v16201_v62 }
 0x65a   :  { %v5629_v6 = vadd.f32 %v16209_v0, %v5628_v17  ;;  %v16310_v53 = vadd.f32 %v10864_v56, %v10863_v44  ;;  %v5697_v63 = vpack.c.bf16 %v5637_v18, %v5634_v37  ;;  %v16322_v44 = vpop.permute.xlu1 %7119  ;;  %v18096_v56 = vpack.c.bf16 %v16078_v5, %v16067_v46 }
 0x65b   :  { %v11919_v57 = vpop.f32.mrf.mxu0  ;;  %v16315_v15 = vpop.f32.mrf.mxu1 }
 0x65c   :  { %18093 = vst [vmem:[#allocation122_spill] sm:$0xff] %v16310_v53  ;;  %18094 = vst [vmem:[#allocation129_spill] sm:$0xff] %v16315_v15  ;;  %v5696_v36 = vpack.c.bf16 %v5629_v6, %v5626_v58  ;;  %12056 = vmatpush3.bf16.msra.mxu1 %v12537_v38  ;;  %v16327_v2 = vpop.permute.xlu0 %7099  ;;  %v5650_v46 = vadd.f32 %v11919_v57, %v16209_v0 }
 0x65d   :  { %v5641_v49 = vpop.f32.mrf.mxu0  ;;  %v16319_v52 = vpop.f32.mrf.mxu1  ;;  %12105 = vmatprep.subr.bf16.mxu1 %v16304_v33 }
 0x65e   :  { %18095 = vst [vmem:[#allocation127_spill] sm:$0xff] %v16319_v52  ;;  %11961 = vmatprep.mubr.bf16.mxu1 %v5696_v36  ;;  %v5642_v6 = vadd.f32 %v16209_v0, %v5641_v49  ;;  %v16346_v49 = vld [vmem:[%s18097_s22] ss:$0 sm:$0xff] }
 0x65f   :  { %v11920_v17 = vpop.f32.mrf.mxu0  ;;  %v10869_v28 = vpop.f32.mrf.mxu1  ;;  %6240 = vmatmul.mubr.bf16.gmra.mxu0 %v18096_v56  ;;  %11962 = vmatmul.mubr.bf16.gmra.mxu1 %v5697_v63  ;;  %v4886_v63 = vadd.f32 %v16109_v9, %v16194_v24  ;;  %v18102_v9 = vpack.c.bf16 %v16073_v42, %v16064_v13  ;;  %v6634_v24 = vmul.f32 %v16346_v49, %v16120_v41  ;;  %v16371_v42 = vld [vmem:[%s18101_s4 + $0x1] ss:$0 sm:$0xff] }
 0x660   :  { %6247 = vmatprep.mubr.bf16.mxu0 %v4913_v16  ;;  %v5653_v38 = vadd.f32 %v11920_v17, %v16209_v0  ;;  %v16341_v17 = vpop.permute.xlu1 %7127  ;;  %v16351_v57 = vpop.permute.xlu0 %7107  ;;  %v6633_v13 = vmul.f32 %v16346_v49, %v16160_v4 }
 0x661   :  { %v5644_v18 = vpop.f32.mrf.mxu0  ;;  %v10870_v58 = vpop.f32.mrf.mxu1 }
 0x662   :  { %v5645_v37 = vadd.f32 %v16209_v0, %v5644_v18  ;;  %v16334_v12 = vadd.f32 %v10870_v58, %v10869_v28  ;;  %v5699_v56 = vpack.c.bf16 %v5653_v38, %v5650_v46  ;;  %v16349_v18 = vld [vmem:[%s18097_s22 + $0x1] ss:$0 sm:$0xff]  ;;  %v4914_v28 = vpack.c.bf16 %v4889_v1, %v4886_v63 }
 0x663   :  { %v11923_v5 = vpop.f32.mrf.mxu0  ;;  %v16337_v36 = vpop.f32.mrf.mxu1  ;;  %v7136_v38 = vmul.f32 %v16349_v18, %v16211_v23  ;;  %v7137_v1 = vmul.f32 %v16349_v18, %v16275_v50 }
 0x664   :  { %18098 = vst [vmem:[#allocation128_spill] sm:$0xff] %v16334_v12  ;;  %18099 = vst [vmem:[#allocation126_spill] sm:$0xff] %v16337_v36  ;;  %v5698_v16 = vpack.c.bf16 %v5645_v37, %v5642_v6  ;;  %v16362_v6 = vpop.permute.xlu1 %7579  ;;  %v5666_v50 = vadd.f32 %v11923_v5, %v16209_v0  ;;  %v16383_v15 = vpop.permute.xlu0 %7115  ;;  %v6635_v5 = vmul.f32 %v16346_v49, %v16128_v48 }
 0x665   :  { %v5657_v52 = vpop.f32.mrf.mxu0  ;;  %v16343_v62 = vpop.f32.mrf.mxu1  ;;  %v7160_v12 = vadd.f32 %v16371_v42, %v7136_v38  ;;  %v7161_v4 = vadd.f32 %v16371_v42, %v7137_v1  ;;  %v18103_v38 = vpack.c.bf16 %v16100_v10, %v16086_v34  ;;  %v6637_v1 = vmul.f32 %v16346_v49, %v16133_v8 }
 0x666   :  { %18100 = vst [vmem:[#allocation133_spill] sm:$0xff] %v16343_v62  ;;  %11965 = vmatprep.mubr.bf16.mxu1 %v5698_v16  ;;  %v16366_v16 = vld [vmem:[%s18101_s4] ss:$0 sm:$0xff]  ;;  %v5658_v41 = vadd.f32 %v16209_v0, %v5657_v52 }
 0x667   :  { %v11924_v58 = vpop.f32.mrf.mxu0  ;;  %v10875_v36 = vpop.f32.mrf.mxu1  ;;  %6248 = vmatmul.mubr.bf16.gmra.mxu0 %v18102_v9  ;;  %11966 = vmatmul.mubr.bf16.gmra.mxu1 %v5699_v56  ;;  %v6657_v62 = vadd.f32 %v16366_v16, %v6634_v24  ;;  %v7176_v34 = vmax.f32 %v7160_v12, 0.0  ;;  %v7177_v10 = vmax.f32 %v7161_v4, 0.0 }
 0x668   :  { %6255 = vmatprep.mubr.bf16.mxu0 %v4914_v28  ;;  %v5669_v37 = vadd.f32 %v11924_v58, %v16209_v0  ;;  %v16417_v12 = vpop.permute.xlu0 %7123 }
 0x669   :  { %v5660_v46 = vpop.f32.mrf.mxu0  ;;  %v10876_v63 = vpop.f32.mrf.mxu1  ;;  %v6673_v48 = vmax.f32 %v6657_v62, 0.0 }
 0x66a   :  { %v5661_v23 = vadd.f32 %v16209_v0, %v5660_v46  ;;  %v16375_v56 = vadd.f32 %v10876_v63, %v10875_v36  ;;  %v5701_v53 = vpack.c.bf16 %v5669_v37, %v5666_v50  ;;  %v6656_v36 = vadd.f32 %v16366_v16, %v6633_v13  ;;  %v16390_v46 = vpop.permute.xlu1 %7583 }
 0x66b   :  { %v11927_v28 = vpop.f32.mrf.mxu0  ;;  %v16378_v9 = vpop.f32.mrf.mxu1  ;;  %v7138_v37 = vmul.f32 %v16349_v18, %v16224_v19  ;;  %v7139_v13 = vmul.f32 %v16349_v18, %v16237_v7  ;;  %v7141_v19 = vmul.f32 %v16349_v18, %v16252_v21  ;;  %v7140_v7 = vmul.f32 %v16349_v18, %v16294_v51 }
 0x66c   :  { %v5700_v58 = vpack.c.bf16 %v5661_v23, %v5658_v41  ;;  %v18104_v41 = vpack.c.bf16 %v16199_v39, %v16190_v22  ;;  %v6636_v23 = vmul.f32 %v16346_v49, %v16172_v59  ;;  %v6638_v59 = vmul.f32 %v16346_v49, %v16192_v40 }
 0x66d   :  { %v5673_v52 = vpop.f32.mrf.mxu0  ;;  %v16385_v26 = vpop.f32.mrf.mxu1  ;;  %v5682_v4 = vadd.f32 %v11927_v28, %v16209_v0  ;;  %v6639_v21 = vmul.f32 %v16346_v49, %v16139_v31  ;;  %v7162_v51 = vadd.f32 %v16371_v42, %v7138_v37  ;;  %v7164_v28 = vadd.f32 %v16371_v42, %v7140_v7 }
 0x66e   :  { %11969 = vmatprep.mubr.bf16.mxu1 %v5700_v58  ;;  %v6672_v58 = vmax.f32 %v6656_v36, 0.0  ;;  %v5674_v62 = vadd.f32 %v16209_v0, %v5673_v52  ;;  %v7163_v52 = vadd.f32 %v16371_v42, %v7139_v13  ;;  %v16428_v40 = vpop.permute.xlu1 %7591  ;;  %v6660_v31 = vadd.f32 %v16366_v16, %v6637_v1 }
 0x66f   :  { %v11928_v63 = vpop.f32.mrf.mxu0  ;;  %v10881_v24 = vpop.f32.mrf.mxu1  ;;  %6256 = vmatmul.mubr.bf16.gmra.mxu0 %v18103_v38  ;;  %11970 = vmatmul.mubr.bf16.gmra.mxu1 %v5701_v53  ;;  %v6659_v38 = vadd.f32 %v16366_v16, %v6636_v23  ;;  %v6641_v37 = vmul.f32 %v16346_v49, %v16154_v27  ;;  %v7143_v1 = vmul.f32 %v16349_v18, %v16271_v61 }
 0x670   :  { %6263 = vmatprep.mubr.bf16.mxu0 %v18104_v41  ;;  %v5685_v53 = vadd.f32 %v11928_v63, %v16209_v0  ;;  %v6658_v63 = vadd.f32 %v16366_v16, %v6635_v5  ;;  %v7192_v41 = vpack.c.bf16 %v7177_v10, %v7176_v34  ;;  %v6661_v5 = vadd.f32 %v16366_v16, %v6638_v59  ;;  %v16438_v23 = vpop.permute.xlu0 %7575 }
 0x671   :  { %v5676_v50 = vpop.f32.mrf.mxu0  ;;  %v10882_v8 = vpop.f32.mrf.mxu1  ;;  %v6688_v13 = vpack.c.bf16 %v6673_v48, %v6672_v58  ;;  %v18105_v10 = vpack.c.bf16 %v16092_v43, %v16083_v55  ;;  %v7142_v7 = vmul.f32 %v16349_v18, %v16312_v25  ;;  %v6675_v48 = vmax.f32 %v6659_v38, 0.0 }
 0x672   :  { %v5677_v22 = vadd.f32 %v16209_v0, %v5676_v50  ;;  %v16413_v39 = vadd.f32 %v10882_v8, %v10881_v24  ;;  %v5703_v50 = vpack.c.bf16 %v5685_v53, %v5682_v4  ;;  %v7165_v0 = vadd.f32 %v16371_v42, %v7141_v19 }
 0x673   :  { %v16420_v36 = vpop.f32.mrf.mxu1  ;;  %v7178_v53 = vmax.f32 %v7162_v51, 0.0  ;;  %v7179_v19 = vmax.f32 %v7163_v52, 0.0  ;;  %v6674_v27 = vmax.f32 %v6658_v63, 0.0  ;;  %v6640_v58 = vmul.f32 %v16346_v49, %v16206_v14  ;;  %v16460_v52 = vpop.permute.xlu1 %7599 }
 0x674   :  { %v5702_v24 = vpack.c.bf16 %v5677_v22, %v5674_v62  ;;  %v16448_v62 = vadd.f32 %v16366_v16, %v6639_v21  ;;  %v7181_v43 = vmax.f32 %v7165_v0, 0.0  ;;  %v7180_v22 = vmax.f32 %v7164_v28, 0.0 }
 0x675   :  { %v16430_v8 = vpop.f32.mrf.mxu1  ;;  %v7145_v59 = vmul.f32 %v16349_v18, %v16287_v47  ;;  %v7144_v61 = vmul.f32 %v16349_v18, %v16327_v2  ;;  %v6676_v25 = vmax.f32 %v6660_v31, 0.0  ;;  %v6677_v21 = vmax.f32 %v6661_v5, 0.0  ;;  %v12539_v31 = vld [vmem:[#allocation19 + $0xb0] sm:$0xff]  }
 0x676   :  { %11973 = vmatprep.mubr.bf16.mxu1 %v5702_v24  ;;  %v6642_v51 = vmul.f32 %v16346_v49, %v16219_v29  ;;  %v7193_v63 = vpack.c.bf16 %v7179_v19, %v7178_v53  ;;  %v7167_v24 = vadd.f32 %v16371_v42, %v7143_v1  ;;  %v7166_v38 = vadd.f32 %v16371_v42, %v7142_v7 }
 0x677   :  { %v10887_v34 = vpop.f32.mrf.mxu1  ;;  %6264 = vmatmul.mubr.bf16.gmra.mxu0 %v18105_v10  ;;  %11974 = vmatmul.mubr.bf16.gmra.mxu1 %v5703_v50  ;;  %v6664_v47 = vadd.f32 %v16366_v16, %v6641_v37  ;;  %v6663_v2 = vadd.f32 %v16366_v16, %v6640_v58  ;;  %v6689_v50 = vpack.c.bf16 %v6675_v48, %v6674_v27 }
 0x678   :  { %11993 = vmatprep.mubr.bf16.mxu0 %v6688_v13  ;;  %12057 = vmatprep.mubr.bf16.mxu1 %v7192_v41  ;;  %v16468_v41 = vpop.permute.xlu0 %7587  ;;  %v7169_v29 = vadd.f32 %v16371_v42, %v7145_v59  ;;  %v7168_v28 = vadd.f32 %v16371_v42, %v7144_v61  ;;  %v7194_v5 = vpack.c.bf16 %v7181_v43, %v7180_v22  ;;  %v6678_v13 = vmax.f32 %v16448_v62, 0.0 }
 0x679   :  { %v10888_v55 = vpop.f32.mrf.mxu1  ;;  %v6690_v10 = vpack.c.bf16 %v6677_v21, %v6676_v25  ;;  %v7183_v37 = vmax.f32 %v7167_v24, 0.0  ;;  %v7182_v19 = vmax.f32 %v7166_v38, 0.0  ;;  %v7147_v1 = vmul.f32 %v16349_v18, %v16301_v11 }
 0x67a   :  { %v16456_v4 = vadd.f32 %v10888_v55, %v10887_v34  ;;  %v6665_v34 = vadd.f32 %v16366_v16, %v6642_v51  ;;  %v7146_v7 = vmul.f32 %v16349_v18, %v16351_v57  ;;  %v6680_v27 = vmax.f32 %v6664_v47, 0.0  ;;  %v16485_v55 = vpop.permute.xlu1 %7607  ;;  %v12540_v57 = vld [vmem:[#allocation19 + $0xa8] sm:$0xff]  }
 0x67b   :  { %v16462_v14 = vpop.f32.mrf.mxu1  ;;  %v6643_v48 = vmul.f32 %v16346_v49, %v16165_v54  ;;  %v6679_v58 = vmax.f32 %v6663_v2, 0.0  ;;  %v6644_v62 = vmul.f32 %v16346_v49, %v16228_v32  ;;  %v7185_v22 = vmax.f32 %v7169_v29, 0.0  ;;  %v16510_v29 = vld [vmem:[%s18097_s22 + $0x2] ss:$0 sm:$0xff] }
 0x67c   :  { %v7184_v59 = vmax.f32 %v7168_v28, 0.0  ;;  %v7149_v11 = vmul.f32 %v16349_v18, %v16322_v44  ;;  %v7148_v54 = vmul.f32 %v16349_v18, %v16383_v15  ;;  %v6645_v32 = vmul.f32 %v16346_v49, %v16179_v20  ;;  %v16497_v21 = vpop.permute.xlu0 %7595 }
 0x67d   :  { %v16470_v0 = vpop.f32.mrf.mxu1  ;;  %v6646_v25 = vmul.f32 %v16346_v49, %v16248_v3  ;;  %v7195_v44 = vpack.c.bf16 %v7183_v37, %v7182_v19  ;;  %v7170_v24 = vadd.f32 %v16371_v42, %v7146_v7  ;;  %v6666_v15 = vadd.f32 %v16366_v16, %v6643_v48  ;;  %v18106_v48 = vld [vmem:[#allocation63_spill] sm:$0xff] }
 0x67e   :  { %v6667_v38 = vadd.f32 %v16366_v16, %v6644_v62  ;;  %v6691_v20 = vpack.c.bf16 %v6679_v58, %v6678_v13  ;;  %v7173_v2 = vadd.f32 %v16371_v42, %v7149_v11  ;;  %v7172_v3 = vadd.f32 %v16371_v42, %v7148_v54  ;;  %v16531_v11 = vld [vmem:[%s18101_s4 + $0x2] ss:$0 sm:$0xff] }
 0x67f   :  { %v10893_v53 = vpop.f32.mrf.mxu1  ;;  %11994 = vmatmul.mubr.bf16.vlgmr.msra.gmra.mxu0 %v6689_v50  ;;  %12058 = vmatmul.mubr.bf16.vlgmr.msra.gmra.mxu1 %v7193_v63  ;;  %v7171_v63 = vadd.f32 %v16371_v42, %v7147_v1  ;;  %v12541_v50 = vld [vmem:[#allocation19 + $0xa0] sm:$0xff]   ;;  %v7196_v28 = vpack.c.bf16 %v7185_v22, %v7184_v59  ;;  %v7186_v37 = vmax.f32 %v7170_v24, 0.0  ;;  %v7151_v19 = vmul.f32 %v16349_v18, %v16341_v17 }
 0x680   :  { %11997 = vmatprep.mubr.bf16.mxu0 %v6690_v10  ;;  %12106 = vmatpush3.bf16.msra.mxu1 %v16304_v33  ;;  %v6681_v33 = vmax.f32 %v6665_v34, 0.0  ;;  %v6669_v34 = vadd.f32 %v16366_v16, %v6646_v25  ;;  %v7150_v1 = vmul.f32 %v16349_v18, %v16417_v12  ;;  %v6682_v7 = vmax.f32 %v6666_v15, 0.0 }
 0x681   :  { %v10894_v43 = vpop.f32.mrf.mxu1  ;;  %12107 = vmatprep.subr.bf16.mxu1 %v12539_v31  ;;  %12061 = vmatprep.mubr.bf16.mxu1 %v7194_v5  ;;  %v6668_v5 = vadd.f32 %v16366_v16, %v6645_v32  ;;  %v7187_v13 = vmax.f32 %v7171_v63, 0.0  ;;  %v6647_v58 = vmul.f32 %v16346_v49, %v18106_v48  ;;  %v7644_v62 = vmul.f32 %v16510_v29, %v16438_v23 }
 0x682   :  { %v16491_v61 = vadd.f32 %v10894_v43, %v10893_v53  ;;  %v6692_v10 = vpack.c.bf16 %v6681_v33, %v6680_v27  ;;  %v16514_v53 = vpop.permute.xlu1 %7615  ;;  %v7645_v27 = vmul.f32 %v16510_v29, %v16362_v6  ;;  %v16526_v43 = vpop.permute.xlu0 %7603  ;;  %v6683_v22 = vmax.f32 %v6667_v38, 0.0 }
 0x683   :  { %v16499_v51 = vpop.f32.mrf.mxu1  ;;  %v6648_v17 = vmul.f32 %v16346_v49, %v16264_v45  ;;  %v7189_v18 = vmax.f32 %v7173_v2, 0.0  ;;  %v7188_v12 = vmax.f32 %v7172_v3, 0.0  ;;  %v6684_v54 = vmax.f32 %v6668_v5, 0.0  ;;  %v12543_v2 = vld [vmem:[#allocation19 + $0x90] sm:$0xff]  }
 0x684   :  { %12108 = vmatpush3.bf16.msra.mxu1 %v12539_v31  ;;  %v6685_v6 = vmax.f32 %v6669_v34, 0.0  ;;  %v7197_v23 = vpack.c.bf16 %v7187_v13, %v7186_v37  ;;  %v7175_v25 = vadd.f32 %v16371_v42, %v7151_v19  ;;  %v7669_v45 = vadd.f32 %v16531_v11, %v7645_v27 }
 0x685   :  { %v16505_v47 = vpop.f32.mrf.mxu1  ;;  %12109 = vmatprep.subr.bf16.mxu1 %v12540_v57  ;;  %v7668_v49 = vadd.f32 %v16531_v11, %v7644_v62  ;;  %v6670_v24 = vadd.f32 %v16366_v16, %v6647_v58  ;;  %v6693_v15 = vpack.c.bf16 %v6683_v22, %v6682_v7  ;;  %v7198_v3 = vpack.c.bf16 %v7189_v18, %v7188_v12  ;;  %v12544_v58 = vld [vmem:[#allocation19 + $0x88] sm:$0xff]  }
 0x686   :  { %v16541_v63 = vpop.permute.xlu1 %7623  ;;  %v7612_v5 = vpop.permute.xlu0 %7611  ;;  %v7685_v13 = vmax.f32 %v7669_v45, 0.0  ;;  %v7648_v37 = vmul.f32 %v16510_v29, %v16428_v40  ;;  %v7649_v19 = vmul.f32 %v16510_v29, %v16497_v21  ;;  %v7651_v45 = vmul.f32 %v16510_v29, %v16526_v43 }
 0x687   :  { %v10899_v31 = vpop.f32.mrf.mxu1  ;;  %11998 = vmatmul.mubr.bf16.gmra.mxu0 %v6691_v20  ;;  %12062 = vmatmul.mubr.bf16.gmra.mxu1 %v7195_v44  ;;  %v7174_v44 = vadd.f32 %v16371_v42, %v7150_v1  ;;  %v6671_v20 = vadd.f32 %v16366_v16, %v6648_v17  ;;  %v7684_v16 = vmax.f32 %v7668_v49, 0.0  ;;  %v6686_v1 = vmax.f32 %v6670_v24, 0.0 }
 0x688   :  { %12001 = vmatprep.mubr.bf16.mxu0 %v6692_v10  ;;  %12110 = vmatpush3.bf16.msra.mxu1 %v12540_v57  ;;  %v12542_v57 = vld [vmem:[#allocation19 + $0x98] sm:$0xff]   ;;  %v7646_v10 = vmul.f32 %v16510_v29, %v16390_v46  ;;  %v7672_v21 = vadd.f32 %v16531_v11, %v7648_v37 }
 0x689   :  { %v10900_v59 = vpop.f32.mrf.mxu1  ;;  %12111 = vmatprep.subr.bf16.mxu1 %v12541_v50  ;;  %12065 = vmatprep.mubr.bf16.mxu1 %v7196_v28  ;;  %v6694_v28 = vpack.c.bf16 %v6685_v6, %v6684_v54  ;;  %v7190_v34 = vmax.f32 %v7174_v44, 0.0  ;;  %v6687_v7 = vmax.f32 %v6671_v20, 0.0  ;;  %v7700_v17 = vpack.c.bf16 %v7685_v13, %v7684_v16  ;;  %v12545_v54 = vld [vmem:[#allocation19 + $0x80] sm:$0xff]   ;;  %v12547_v16 = vld [vmem:[#allocation19 + $0xf0] sm:$0xff]  }
 0x68a   :  { %v16533_v32 = vadd.f32 %v10900_v59, %v10899_v31  ;;  %v7647_v31 = vmul.f32 %v16510_v29, %v16468_v41  ;;  %v16557_v27 = vpop.permute.xlu1 %7631  ;;  %v7670_v22 = vadd.f32 %v16531_v11, %v7646_v10  ;;  %v7673_v59 = vadd.f32 %v16531_v11, %v7649_v19  ;;  %v7620_v18 = vpop.permute.xlu0 %7619 }
 0x68b   :  { %v16535_v33 = vpop.f32.mrf.mxu1  ;;  %v6695_v12 = vpack.c.bf16 %v6687_v7, %v6686_v1  ;;  %v7650_v44 = vmul.f32 %v16510_v29, %v16460_v52  ;;  %v7688_v49 = vmax.f32 %v7672_v21, 0.0  ;;  %v7653_v20 = vmul.f32 %v16510_v29, %v7612_v5 }
 0x68c   :  { %12112 = vmatpush3.bf16.msra.mxu1 %v12541_v50  ;;  %v7191_v50 = vmax.f32 %v7175_v25, 0.0  ;;  %v7671_v40 = vadd.f32 %v16531_v11, %v7647_v31  ;;  %v7689_v24 = vmax.f32 %v7673_v59, 0.0  ;;  %v7675_v10 = vadd.f32 %v16531_v11, %v7651_v45 }
 0x68d   :  { %v16544_v38 = vpop.f32.mrf.mxu1  ;;  %12113 = vmatprep.subr.bf16.mxu1 %v12542_v57  ;;  %v7674_v43 = vadd.f32 %v16531_v11, %v7650_v44  ;;  %v7677_v31 = vadd.f32 %v16531_v11, %v7653_v20  ;;  %v16603_v20 = vld [vmem:[%s18097_s22 + $0x3] ss:$0 sm:$0xff] }
 0x68e   :  { %v7199_v62 = vpack.c.bf16 %v7191_v50, %v7190_v34  ;;  %v7687_v25 = vmax.f32 %v7671_v40, 0.0  ;;  %v7628_v50 = vpop.permute.xlu0 %7627  ;;  %v7702_v5 = vpack.c.bf16 %v7689_v24, %v7688_v49  ;;  %v7691_v7 = vmax.f32 %v7675_v10, 0.0 }
 0x68f   :  { %v10905_v42 = vpop.f32.mrf.mxu1  ;;  %12002 = vmatmul.mubr.bf16.gmra.mxu0 %v6693_v15  ;;  %12066 = vmatmul.mubr.bf16.gmra.mxu1 %v7197_v23  ;;  %v7686_v23 = vmax.f32 %v7670_v22, 0.0  ;;  %v7652_v15 = vmul.f32 %v16510_v29, %v16485_v55  ;;  %v7690_v1 = vmax.f32 %v7674_v43, 0.0  ;;  %v7693_v22 = vmax.f32 %v7677_v31, 0.0 }
 0x690   :  { %12005 = vmatprep.mubr.bf16.mxu0 %v6694_v28  ;;  %12114 = vmatpush3.bf16.msra.mxu1 %v12542_v57  ;;  %v12546_v28 = vld [vmem:[#allocation19 + $0xf8] sm:$0xff]   ;;  %v7656_v40 = vmul.f32 %v16510_v29, %v16541_v63  ;;  %v7657_v21 = vmul.f32 %v16510_v29, %v7628_v50 }
 0x691   :  { %v10906_v48 = vpop.f32.mrf.mxu1  ;;  %12115 = vmatprep.subr.bf16.mxu1 %v12543_v2  ;;  %12069 = vmatprep.mubr.bf16.mxu1 %v7198_v3  ;;  %v7701_v34 = vpack.c.bf16 %v7687_v25, %v7686_v23  ;;  %v7676_v55 = vadd.f32 %v16531_v11, %v7652_v15  ;;  %v12549_v15 = vld [vmem:[#allocation19 + $0xe0] sm:$0xff]  }
 0x692   :  { %v16555_v46 = vadd.f32 %v10906_v48, %v10905_v42  ;;  %v7654_v48 = vmul.f32 %v16510_v29, %v16514_v53  ;;  %v7636_v59 = vpop.permute.xlu0 %7635  ;;  %v7703_v53 = vpack.c.bf16 %v7691_v7, %v7690_v1  ;;  %v7680_v63 = vadd.f32 %v16531_v11, %v7656_v40  ;;  %v16611_v7 = vld [vmem:[%s18101_s4 + $0x3] ss:$0 sm:$0xff] }
 0x693   :  { %v16559_v41 = vpop.f32.mrf.mxu1  ;;  %v7681_v25 = vadd.f32 %v16531_v11, %v7657_v21  ;;  %v7659_v43 = vmul.f32 %v16510_v29, %v7636_v59 }
 0x694   :  { %12116 = vmatpush3.bf16.msra.mxu1 %v12543_v2  ;;  %v8084_v2 = vpop.permute.xlu1 %8083  ;;  %v7696_v10 = vmax.f32 %v7680_v63, 0.0 }
 0x695   :  { %v16565_v57 = vpop.f32.mrf.mxu1  ;;  %12117 = vmatprep.subr.bf16.mxu1 %v12544_v58  ;;  %v8152_v31 = vmul.f32 %v16603_v20, %v8084_v2  ;;  %v12554_v2 = vld [vmem:[#allocation20 + $0x38] sm:$0xff]  }
 0x696   :  { %v8088_v45 = vpop.permute.xlu0 %8087  ;;  %12009 = vmatprep.subr.bf16.mxu0 %v12554_v2 }
 0x697   :  { %v10911_v6 = vpop.f32.mrf.mxu1  ;;  %12006 = vmatmul.mubr.bf16.gmra.mxu0 %v6695_v12  ;;  %12070 = vmatmul.mubr.bf16.gmra.mxu1 %v7199_v62  ;;  %v7692_v62 = vmax.f32 %v7676_v55, 0.0  ;;  %v12548_v12 = vld [vmem:[#allocation19 + $0xe8] sm:$0xff]   ;;  %v7697_v55 = vmax.f32 %v7681_v25, 0.0  ;;  %v8176_v40 = vadd.f32 %v16611_v7, %v8152_v31 }
 0x698   :  { %12118 = vmatpush3.bf16.msra.mxu1 %v12544_v58  ;;  %12121 = vmatprep.mubr.bf16.mxu1 %v7700_v17  ;;  %v16584_v37 = vpop.permute.xlu1 %8091  ;;  %v7655_v58 = vmul.f32 %v16510_v29, %v7620_v18  ;;  %v7678_v18 = vadd.f32 %v16531_v11, %v7654_v48  ;;  %v12550_v48 = vld [vmem:[#allocation19 + $0xd8] sm:$0xff]  }
 0x699   :  { %v10912_v3 = vpop.f32.mrf.mxu1  ;;  %12119 = vmatprep.subr.bf16.mxu1 %v12545_v54  ;;  %v7704_v44 = vpack.c.bf16 %v7693_v22, %v7692_v62  ;;  %v7683_v22 = vadd.f32 %v16531_v11, %v7659_v43  ;;  %v7706_v59 = vpack.c.bf16 %v7697_v55, %v7696_v10  ;;  %12010 = vmatpush3.bf16.msra.mxu0 %v12554_v2  ;;  %v12552_v43 = vld [vmem:[#allocation19 + $0xc8] sm:$0xff]  }
 0x69a   :  { %v16574_v42 = vadd.f32 %v10912_v3, %v10911_v6  ;;  %v7679_v23 = vadd.f32 %v16531_v11, %v7655_v58 }
 0x69b   :  { %v16576_v52 = vpop.f32.mrf.mxu1  ;;  %v7699_v25 = vmax.f32 %v7683_v22, 0.0  ;;  %v12553_v22 = vld [vmem:[#allocation19 + $0xc0] sm:$0xff]  }
 0x69c   :  { %12120 = vmatpush3.bf16.msra.mxu1 %v12545_v54  ;;  %v8096_v49 = vpop.permute.xlu1 %8095  ;;  %v7695_v50 = vmax.f32 %v7679_v23, 0.0 }
 0x69d   :  { %v16582_v13 = vpop.f32.mrf.mxu1  ;;  %12169 = vmatprep.subr.bf16.mxu1 %v12546_v28 }
 0x69f   :  { %v10917_v19 = vpop.f32.mrf.mxu1  ;;  %12122 = vmatmul.mubr.bf16.vlgmr.msra.gmra.mxu1 %v7701_v34  ;;  %v7658_v34 = vmul.f32 %v16510_v29, %v16557_v27 }
 0x6a0   :  { %12170 = vmatpush3.bf16.msra.mxu1 %v12546_v28  ;;  %12125 = vmatprep.mubr.bf16.mxu1 %v7702_v5  ;;  %v7694_v28 = vmax.f32 %v7678_v18, 0.0  ;;  %v8153_v5 = vmul.f32 %v16603_v20, %v8088_v45  ;;  %v12555_v45 = vld [vmem:[#allocation20 + $0x30] sm:$0xff]  }
 0x6a1   :  { %v10918_v17 = vpop.f32.mrf.mxu1  ;;  %12171 = vmatprep.subr.bf16.mxu1 %v12547_v16  ;;  %v7682_v62 = vadd.f32 %v16531_v11, %v7658_v34  ;;  %v8154_v11 = vmul.f32 %v16603_v20, %v16584_v37  ;;  %12011 = vmatprep.subr.bf16.mxu0 %v12555_v45 }
 0x6a2   :  { %v16592_v54 = vadd.f32 %v10918_v17, %v10917_v19  ;;  %v8100_v19 = vpop.permute.xlu0 %8099  ;;  %v7705_v29 = vpack.c.bf16 %v7695_v50, %v7694_v28  ;;  %v8177_v21 = vadd.f32 %v16611_v7, %v8153_v5  ;;  %12012 = vmatpush3.bf16.msra.mxu0 %v12555_v45 }
 0x6a3   :  { %v16594_v6 = vpop.f32.mrf.mxu1  ;;  %v7698_v63 = vmax.f32 %v7682_v62, 0.0  ;;  %v8156_v50 = vmul.f32 %v16603_v20, %v8100_v19  ;;  %v8178_v5 = vadd.f32 %v16611_v7, %v8154_v11 }
 0x6a4   :  { %12172 = vmatpush3.bf16.msra.mxu1 %v12547_v16  ;;  %v8104_v16 = vpop.permute.xlu1 %8103 }
 0x6a5   :  { %v16600_v24 = vpop.f32.mrf.mxu1  ;;  %12173 = vmatprep.subr.bf16.mxu1 %v12548_v12  ;;  %v8157_v28 = vmul.f32 %v16603_v20, %v8104_v16 }
 0x6a6   :  { %v8108_v18 = vpop.permute.xlu0 %8107 }
 0x6a7   :  { %v10923_v3 = vpop.f32.mrf.mxu1  ;;  %12126 = vmatmul.mubr.bf16.gmra.mxu1 %v7703_v53  ;;  %v8181_v19 = vadd.f32 %v16611_v7, %v8157_v28 }
 0x6a8   :  { %12174 = vmatpush3.bf16.msra.mxu1 %v12548_v12  ;;  %12129 = vmatprep.mubr.bf16.mxu1 %v7704_v44  ;;  %v12551_v12 = vld [vmem:[#allocation19 + $0xd0] sm:$0xff]   ;;  %v8112_v53 = vpop.permute.xlu1 %8111  ;;  %v8155_v44 = vmul.f32 %v16603_v20, %v8096_v49  ;;  %v7707_v49 = vpack.c.bf16 %v7699_v25, %v7698_v63 }
 0x6a9   :  { %v10924_v1 = vpop.f32.mrf.mxu1  ;;  %12175 = vmatprep.subr.bf16.mxu1 %v12549_v15  ;;  %v8197_v63 = vmax.f32 %v8181_v19, 0.0 }
 0x6aa   :  { %v16613_v58 = vadd.f32 %v10924_v1, %v10923_v3  ;;  %v8193_v3 = vmax.f32 %v8177_v21, 0.0  ;;  %v8116_v31 = vpop.permute.xlu0 %8115  ;;  %v8179_v1 = vadd.f32 %v16611_v7, %v8155_v44 }
 0x6ab   :  { %v16615_v27 = vpop.f32.mrf.mxu1  ;;  %v8160_v44 = vmul.f32 %v16603_v20, %v8116_v31 }
 0x6ac   :  { %12176 = vmatpush3.bf16.msra.mxu1 %v12549_v15  ;;  %v8192_v15 = vmax.f32 %v8176_v40, 0.0  ;;  %v8120_v55 = vpop.permute.xlu1 %8119  ;;  %v8194_v40 = vmax.f32 %v8178_v5, 0.0  ;;  %v8195_v21 = vmax.f32 %v8179_v1, 0.0  ;;  %v16648_v1 = vld [vmem:[#allocation17] ss:$0 sm:$0xff] }
 0x6ad   :  { %v16621_v17 = vpop.f32.mrf.mxu1  ;;  %12177 = vmatprep.subr.bf16.mxu1 %v12550_v48  ;;  %v8161_v11 = vmul.f32 %v16603_v20, %v8120_v55  ;;  %v8184_v31 = vadd.f32 %v16611_v7, %v8160_v44 }
 0x6ae   :  { %v8208_v16 = vpack.c.bf16 %v8193_v3, %v8192_v15  ;;  %v8124_v15 = vpop.permute.xlu0 %8123 }
 0x6af   :  { %v10929_v23 = vpop.f32.mrf.mxu1  ;;  %12130 = vmatmul.mubr.bf16.gmra.mxu1 %v7705_v29  ;;  %v8180_v29 = vadd.f32 %v16611_v7, %v8156_v50  ;;  %v8185_v55 = vadd.f32 %v16611_v7, %v8161_v11 }
 0x6b0   :  { %12178 = vmatpush3.bf16.msra.mxu1 %v12550_v48  ;;  %12133 = vmatprep.mubr.bf16.mxu1 %v7706_v59  ;;  %v12556_v48 = vld [vmem:[#allocation20 + $0x28] sm:$0xff]   ;;  %v8159_v59 = vmul.f32 %v16603_v20, %v8112_v53  ;;  %v8128_v45 = vpop.permute.xlu1 %8127  ;;  %v8209_v53 = vpack.c.bf16 %v8195_v21, %v8194_v40  ;;  %v8200_v40 = vmax.f32 %v8184_v31, 0.0 }
 0x6b1   :  { %v10930_v34 = vpop.f32.mrf.mxu1  ;;  %12179 = vmatprep.subr.bf16.mxu1 %v12551_v12  ;;  %12013 = vmatprep.subr.bf16.mxu0 %v12556_v48  ;;  %v8196_v25 = vmax.f32 %v8180_v29, 0.0  ;;  %v8163_v29 = vmul.f32 %v16603_v20, %v8128_v45  ;;  %v12560_v31 = vld [vmem:[#allocation20 + $0x8] sm:$0xff]  }
 0x6b2   :  { %v16628_v10 = vadd.f32 %v10930_v34, %v10929_v23  ;;  %12014 = vmatpush3.bf16.msra.mxu0 %v12556_v48  ;;  %v8158_v23 = vmul.f32 %v16603_v20, %v8108_v18  ;;  %v8183_v18 = vadd.f32 %v16611_v7, %v8159_v59  ;;  %v12558_v34 = vld [vmem:[#allocation20 + $0x18] sm:$0xff]   ;;  %v8132_v5 = vpop.permute.xlu0 %8131 }
 0x6b3   :  { %v16630_v37 = vpop.f32.mrf.mxu1  ;;  %v8164_v59 = vmul.f32 %v16603_v20, %v8132_v5 }
 0x6b4   :  { %12180 = vmatpush3.bf16.msra.mxu1 %v12551_v12  ;;  %v12557_v12 = vld [vmem:[#allocation20 + $0x20] sm:$0xff]   ;;  %v8182_v50 = vadd.f32 %v16611_v7, %v8158_v23  ;;  %v12559_v23 = vld [vmem:[#allocation20 + $0x10] sm:$0xff]  }
 0x6b5   :  { %v16636_v62 = vpop.f32.mrf.mxu1  ;;  %12181 = vmatprep.subr.bf16.mxu1 %v12552_v43  ;;  %12015 = vmatprep.subr.bf16.mxu0 %v12557_v12 }
 0x6b6   :  { %12016 = vmatpush3.bf16.msra.mxu0 %v12557_v12  ;;  %v8198_v19 = vmax.f32 %v8182_v50, 0.0 }
 0x6b7   :  { %v10935_v2 = vpop.f32.mrf.mxu1  ;;  %12134 = vmatmul.mubr.bf16.gmra.mxu1 %v7707_v49  ;;  %12017 = vmatprep.subr.bf16.mxu0 %v12558_v34  ;;  %v8136_v49 = vpop.permute.xlu1 %8135 }
 0x6b8   :  { %12182 = vmatpush3.bf16.msra.mxu1 %v12552_v43  ;;  %12185 = vmatprep.mubr.bf16.mxu1 %v8208_v16  ;;  %v8210_v43 = vpack.c.bf16 %v8197_v63, %v8196_v25  ;;  %v8199_v16 = vmax.f32 %v8183_v18, 0.0  ;;  %v8165_v21 = vmul.f32 %v16603_v20, %v8136_v49  ;;  %v5985_v63 = vadd.f32 %v16242_v30, %v16648_v1  ;;  %v18107_v25 = vld [vmem:[#allocation61_spill] sm:$0xff] }
 0x6b9   :  { %v10936_v3 = vpop.f32.mrf.mxu1  ;;  %12183 = vmatprep.subr.bf16.mxu1 %v12553_v22  ;;  %v10850_v11 = vadd.f32 %v18107_v25, %v16244_v35  ;;  %v18110_v25 = vld [vmem:[#allocation59_spill] sm:$0xff] }
 0x6ba   :  { %v16642_v28 = vadd.f32 %v10936_v3, %v10935_v2  ;;  %12018 = vmatpush3.bf16.msra.mxu0 %v12558_v34  ;;  %v8162_v2 = vmul.f32 %v16603_v20, %v8124_v15  ;;  %v8211_v3 = vpack.c.bf16 %v8199_v16, %v8198_v19  ;;  %v8187_v15 = vadd.f32 %v16611_v7, %v8163_v29 }
 0x6bb   :  { %12019 = vmatprep.subr.bf16.mxu0 %v12559_v23  ;;  %v8189_v34 = vadd.f32 %v16611_v7, %v8165_v21  ;;  %v8144_v30 = vpop.permute.xlu1 %8143  ;;  %v5988_v49 = vadd.f32 %v10850_v11, %v16648_v1  ;;  %v10856_v11 = vadd.f32 %v16273_v60, %v18110_v25 }
 0x6bc   :  { %12184 = vmatpush3.bf16.msra.mxu1 %v12553_v22  ;;  %v8201_v22 = vmax.f32 %v8185_v55, 0.0  ;;  %v8140_v55 = vpop.permute.xlu0 %8139  ;;  %v8203_v16 = vmax.f32 %v8187_v15, 0.0  ;;  %v8167_v29 = vmul.f32 %v16603_v20, %v8144_v30 }
 0x6bd   :  { %v5996_v30 = vadd.f32 %v10856_v11, %v16648_v1 }
 0x6be   :  { %12020 = vmatpush3.bf16.msra.mxu0 %v12559_v23  ;;  %v8212_v50 = vpack.c.bf16 %v8201_v22, %v8200_v40  ;;  %v8205_v22 = vmax.f32 %v8189_v34, 0.0  ;;  %v16677_v34 = vld [vmem:[#allocation20 + $0x78] sm:$0xff]  }
 0x6bf   :  { %v10957_v48 = vpop.f32.mrf.mxu0  ;;  %12186 = vmatmul.mubr.bf16.vlgmr.msra.gmra.mxu1 %v8209_v53  ;;  %v8186_v53 = vadd.f32 %v16611_v7, %v8162_v2  ;;  %12021 = vmatprep.subr.bf16.mxu0 %v12560_v31  ;;  %v8166_v2 = vmul.f32 %v16603_v20, %v8140_v55  ;;  %v8191_v20 = vadd.f32 %v16611_v7, %v8167_v29 }
 0x6c0   :  { %12189 = vmatprep.mubr.bf16.mxu1 %v8210_v43  ;;  %v8188_v43 = vadd.f32 %v16611_v7, %v8164_v59  ;;  %v12561_v59 = vld [vmem:[#allocation20] sm:$0xff]  }
 0x6c1   :  { %v10958_v12 = vpop.f32.mrf.mxu0  ;;  %v8202_v19 = vmax.f32 %v8186_v53, 0.0  ;;  %v8190_v15 = vadd.f32 %v16611_v7, %v8166_v2 }
 0x6c2   :  { %v10959_v44 = vadd.f32 %v10958_v12, %v10957_v48  ;;  %12022 = vmatpush3.bf16.msra.mxu0 %v12560_v31  ;;  %v8204_v40 = vmax.f32 %v8188_v43, 0.0  ;;  %v18109_v12 = vld [vmem:[#allocation66_spill] sm:$0xff]  ;;  %v8207_v31 = vmax.f32 %v8191_v20, 0.0  ;;  %v18115_v20 = vld [vmem:[#allocation129_spill] sm:$0xff] }
 0x6c3   :  { %v10960_v45 = vpop.f32.mrf.mxu0  ;;  %12023 = vmatprep.subr.bf16.mxu0 %v12561_v59 }
 0x6c4   :  { %v16660_v18 = vadd.f32 %v10959_v44, %v5985_v63  ;;  %v5993_v63 = vadd.f32 %v18109_v12, %v16648_v1 }
 0x6c5   :  { %v10961_v35 = vpop.f32.mrf.mxu0 }
 0x6c6   :  { %v10962_v5 = vadd.f32 %v10961_v35, %v10960_v45  ;;  %12024 = vmatpush3.bf16.msra.mxu0 %v12561_v59  ;;  %v8206_v35 = vmax.f32 %v8190_v15, 0.0  ;;  %v18116_v15 = vld [vmem:[#allocation127_spill] sm:$0xff] }
 0x6c7   :  { %v10963_v48 = vpop.f32.mrf.mxu0  ;;  %12190 = vmatmul.mubr.bf16.gmra.mxu1 %v8211_v3  ;;  %v8213_v3 = vpack.c.bf16 %v8203_v16, %v8202_v19  ;;  %12073 = vmatprep.subr.bf16.mxu0 %v16677_v34  ;;  %v18112_v16 = vld [vmem:[#allocation123_spill] sm:$0xff]  ;;  %v18113_v19 = vld [vmem:[#allocation124_spill] sm:$0xff] }
 0x6c8   :  { %12193 = vmatprep.mubr.bf16.mxu1 %v8212_v50  ;;  %v16667_v21 = vadd.f32 %v10962_v5, %v5988_v49  ;;  %v8214_v50 = vpack.c.bf16 %v8205_v22, %v8204_v40  ;;  %v18111_v5 = vld [vmem:[#allocation125_spill] sm:$0xff]  ;;  %v10862_v29 = vadd.f32 %v18113_v19, %v18112_v16  ;;  %v8215_v40 = vpack.c.bf16 %v8207_v31, %v8206_v35  ;;  %v18117_v16 = vld [vmem:[#allocation128_spill] sm:$0xff] }
 0x6c9   :  { %v10964_v23 = vpop.f32.mrf.mxu0  ;;  %v6017_v19 = vadd.f32 %v18117_v16, %v16648_v1 }
 0x6ca   :  { %18108 = vst [vmem:[#allocation131_spill] sm:$0xff] %v16667_v21  ;;  %v10965_v44 = vadd.f32 %v10964_v23, %v10963_v48  ;;  %v6001_v48 = vadd.f32 %v18111_v5, %v16648_v1  ;;  %v6004_v12 = vadd.f32 %v10862_v29, %v16648_v1  ;;  %v18118_v29 = vld [vmem:[#allocation126_spill] sm:$0xff] }
 0x6cb   :  { %v10966_v45 = vpop.f32.mrf.mxu0 }
 0x6cc   :  { %v16675_v53 = vadd.f32 %v10965_v44, %v5993_v63 }
 0x6cd   :  { %v10967_v43 = vpop.f32.mrf.mxu0 }
 0x6ce   :  { %v10968_v55 = vadd.f32 %v10967_v43, %v10966_v45  ;;  %v18114_v45 = vld [vmem:[#allocation122_spill] sm:$0xff] }
 0x6cf   :  { %v10969_v60 = vpop.f32.mrf.mxu0  ;;  %12194 = vmatmul.mubr.bf16.gmra.mxu1 %v8213_v3  ;;  %v6009_v3 = vadd.f32 %v18114_v45, %v16648_v1 }
 0x6d0   :  { %v16681_v49 = vadd.f32 %v10968_v55, %v5996_v30  ;;  %12197 = vmatprep.mubr.bf16.mxu1 %v8214_v50  ;;  %v10868_v50 = vadd.f32 %v18116_v15, %v18115_v20  ;;  %v6025_v15 = vadd.f32 %v16375_v56, %v16648_v1  ;;  %v10886_v56 = vadd.f32 %v16430_v8, %v16420_v36 }
 0x6d1   :  { %v10970_v7 = vpop.f32.mrf.mxu0  ;;  %v6041_v36 = vadd.f32 %v16456_v4, %v16648_v1  ;;  %v10892_v8 = vadd.f32 %v16470_v0, %v16462_v14 }
 0x6d2   :  { %v10971_v2 = vadd.f32 %v10970_v7, %v10969_v60  ;;  %v6012_v31 = vadd.f32 %v10868_v50, %v16648_v1  ;;  %v10880_v50 = vadd.f32 %v16385_v26, %v16378_v9 }
 0x6d3   :  { %v10972_v22 = vpop.f32.mrf.mxu0 }
 0x6d4   :  { %v16687_v59 = vadd.f32 %v10971_v2, %v6001_v48  ;;  %v18119_v2 = vld [vmem:[#allocation133_spill] sm:$0xff] }
 0x6d5   :  { %v10973_v23 = vpop.f32.mrf.mxu0 }
 0x6d6   :  { %v10974_v63 = vadd.f32 %v10973_v23, %v10972_v22  ;;  %v10874_v22 = vadd.f32 %v18119_v2, %v18118_v29  ;;  %v6033_v29 = vadd.f32 %v16413_v39, %v16648_v1  ;;  %v16732_v39 = vpop.f32.mrf.mxu1 }
 0x6d7   :  { %v10975_v25 = vpop.f32.mrf.mxu0  ;;  %12198 = vmatmul.mubr.bf16.gmra.mxu1 %v8215_v40 }
 0x6d8   :  { %v16690_v11 = vadd.f32 %v10974_v63, %v6004_v12 }
 0x6d9   :  { %v10976_v44 = vpop.f32.mrf.mxu0 }
 0x6da   :  { %v10977_v43 = vadd.f32 %v10976_v44, %v10975_v25  ;;  %v6020_v25 = vadd.f32 %v10874_v22, %v16648_v1 }
 0x6db   :  { %v10978_v30 = vpop.f32.mrf.mxu0 }
 0x6dc   :  { %v16696_v55 = vadd.f32 %v10977_v43, %v6009_v3 }
 0x6dd   :  { %v10979_v60 = vpop.f32.mrf.mxu0 }
 0x6de   :  { %v10980_v35 = vadd.f32 %v10979_v60, %v10978_v30 }
 0x6df   :  { %v10981_v7 = vpop.f32.mrf.mxu0 }
 0x6e0   :  { %v16699_v5 = vadd.f32 %v10980_v35, %v6012_v31  ;;  %v6028_v35 = vadd.f32 %v10880_v50, %v16648_v1 }
 0x6e1   :  { %v10982_v48 = vpop.f32.mrf.mxu0 }
 0x6e2   :  { %v10983_v40 = vadd.f32 %v10982_v48, %v10981_v7 }
 0x6e3   :  { %v10984_v23 = vpop.f32.mrf.mxu0 }
 0x6e4   :  { %v16705_v12 = vadd.f32 %v10983_v40, %v6017_v19  ;;  %v16725_v40 = vld [vmem:[#allocation8 + $0x1] ss:$0 sm:$0xff] }
 0x6e5   :  { %v10985_v63 = vpop.f32.mrf.mxu0 }
 0x6e6   :  { %v10986_v44 = vadd.f32 %v10985_v63, %v10984_v23  ;;  %v6036_v23 = vadd.f32 %v10886_v56, %v16648_v1 }
 0x6e7   :  { %v10987_v45 = vpop.f32.mrf.mxu0 }
 0x6e8   :  { %v16708_v3 = vadd.f32 %v10986_v44, %v6020_v25 }
 0x6e9   :  { %v10988_v20 = vpop.f32.mrf.mxu0 }
 0x6ea   :  { %v10989_v43 = vadd.f32 %v10988_v20, %v10987_v45  ;;  %v18120_v45 = vld [vmem:[#allocation67_spill] sm:$0xff] }
 0x6eb   :  { %v10990_v30 = vpop.f32.mrf.mxu0  ;;  %v1329_v20 = vadd.f32 %v18120_v45, %v16725_v40 }
 0x6ec   :  { %v16714_v60 = vadd.f32 %v10989_v43, %v6025_v15  ;;  %v18121_v43 = vld [vmem:[#allocation65_spill] sm:$0xff] }
 0x6ed   :  { %v10991_v31 = vpop.f32.mrf.mxu0 }
 0x6ee   :  { %v10992_v7 = vadd.f32 %v10991_v31, %v10990_v30  ;;  %v1321_v30 = vadd.f32 %v16725_v40, %v18121_v43 }
 0x6ef   :  { %v10993_v48 = vpop.f32.mrf.mxu0 }
 0x6f0   :  { %v16717_v16 = vadd.f32 %v10992_v7, %v6028_v35  ;;  %v1449_v7 = vmax.f32 %v1329_v20, 0.0 }
 0x6f1   :  { %v10994_v19 = vpop.f32.mrf.mxu0 }
 0x6f2   :  { %v10995_v2 = vadd.f32 %v10994_v19, %v10993_v48  ;;  %v18122_v48 = vld [vmem:[#allocation68_spill] sm:$0xff] }
 0x6f3   :  { %v10996_v26 = vpop.f32.mrf.mxu0  ;;  %v1332_v19 = vadd.f32 %v18122_v48, %v16725_v40 }
 0x6f4   :  { %v16723_v9 = vadd.f32 %v10995_v2, %v6033_v29  ;;  %v16744_v29 = vpop.f32.mrf.mxu1  ;;  %v6044_v2 = vadd.f32 %v10892_v8, %v16648_v1 }
 0x6f5   :  { %v10997_v22 = vpop.f32.mrf.mxu0  ;;  %v1450_v20 = vmax.f32 %v1332_v19, 0.0 }
 0x6f6   :  { %v10998_v63 = vadd.f32 %v10997_v22, %v10996_v26  ;;  %v1447_v26 = vmax.f32 %v1321_v30, 0.0  ;;  %v10898_v30 = vadd.f32 %v16505_v47, %v16499_v51  ;;  %v18129_v51 = vld [vmem:[#allocation116_spill] sm:$0xff] }
 0x6f7   :  { %v10999_v25 = vpop.f32.mrf.mxu0  ;;  %v18130_v47 = vmax.f32 %v18129_v51, 0.0  ;;  %v18134_v51 = vld [vmem:[#allocation110_spill] sm:$0xff] }
 0x6f8   :  { %v16728_v44 = vadd.f32 %v10998_v63, %v6036_v23  ;;  %v18123_v63 = vld [vmem:[#allocation118_spill] sm:$0xff] }
 0x6f9   :  { %v11000_v15 = vpop.f32.mrf.mxu0 }
 0x6fa   :  { %v11001_v50 = vadd.f32 %v11000_v15, %v10999_v25  ;;  %v18124_v25 = vmax.f32 %v18123_v63, 0.0  ;;  %v18125_v15 = vld [vmem:[#allocation75_spill] sm:$0xff] }
 0x6fb   :  { %v11002_v31 = vpop.f32.mrf.mxu0 }
 0x6fc   :  { %v16740_v35 = vadd.f32 %v11001_v50, %v6041_v36  ;;  %v1481_v45 = vadd.f32 %v1449_v7, %v18124_v25  ;;  %v1345_v36 = vadd.f32 %v18125_v15, %v16725_v40  ;;  %v6049_v50 = vadd.f32 %v16491_v61, %v16648_v1  ;;  %v18128_v7 = vld [vmem:[#allocation69_spill] sm:$0xff] }
 0x6fd   :  { %v11003_v56 = vpop.f32.mrf.mxu0  ;;  %v1337_v19 = vadd.f32 %v16725_v40, %v18128_v7 }
 0x6fe   :  { %v11004_v4 = vadd.f32 %v11003_v56, %v11002_v31  ;;  %v18126_v56 = vld [vmem:[#allocation121_spill] sm:$0xff] }
 0x6ff   :  { %v11005_v22 = vpop.f32.mrf.mxu0  ;;  %v11947_v14 = vpop.f32.mrf.mxu1 }
 0x700   :  { %v6315_v0 = vadd.f32 %v11947_v14, %v16675_v53  ;;  %v16748_v23 = vadd.f32 %v11004_v4, %v6044_v2  ;;  %v18127_v2 = vmax.f32 %v18126_v56, 0.0  ;;  %v6052_v56 = vadd.f32 %v10898_v30, %v16648_v1 }
 0x701   :  { %v11006_v43 = vpop.f32.mrf.mxu0  ;;  %v6306_v8 = vpop.f32.mrf.mxu1 }
 0x702   :  { %v6435_v31 = vmax.f32 %v6315_v0, 0.0  ;;  %v11007_v48 = vadd.f32 %v11006_v43, %v11005_v22  ;;  %v6307_v53 = vadd.f32 %v6306_v8, %v16660_v18  ;;  %v1479_v4 = vadd.f32 %v1447_v26, %v18127_v2  ;;  %v18131_v18 = vld [vmem:[#allocation70_spill] sm:$0xff] }
 0x703   :  { %v11008_v14 = vpop.f32.mrf.mxu0  ;;  %v11948_v63 = vpop.f32.mrf.mxu1  ;;  %v1482_v22 = vadd.f32 %v1450_v20, %v18130_v47  ;;  %v1453_v0 = vmax.f32 %v1345_v36, 0.0  ;;  %v1348_v43 = vadd.f32 %v18131_v18, %v16725_v40  ;;  %v18135_v47 = vmax.f32 %v18134_v51, 0.0 }
 0x704   :  { %v16763_v25 = vadd.f32 %v6435_v31, %v1481_v45  ;;  %v16765_v61 = vadd.f32 %v11007_v48, %v6049_v50  ;;  %v6433_v15 = vmax.f32 %v6307_v53, 0.0  ;;  %v6318_v21 = vadd.f32 %v11948_v63, %v16681_v49  ;;  %v18133_v48 = vld [vmem:[#allocation71_spill] sm:$0xff] }
 0x705   :  { %v11009_v26 = vpop.f32.mrf.mxu0  ;;  %v16772_v8 = vpop.f32.mrf.mxu1  ;;  %v1451_v31 = vmax.f32 %v1337_v19, 0.0  ;;  %v1340_v49 = vadd.f32 %v16725_v40, %v18133_v48  ;;  %v1485_v18 = vadd.f32 %v1453_v0, %v18135_v47  ;;  %v1454_v30 = vmax.f32 %v1348_v43, 0.0  ;;  %v18139_v43 = vld [vmem:[#allocation73_spill] sm:$0xff] }
 0x706   :  { %v16775_v2 = vadd.f32 %v6433_v15, %v1479_v4  ;;  %v6436_v45 = vmax.f32 %v6318_v21, 0.0  ;;  %v11010_v50 = vadd.f32 %v11009_v26, %v11008_v14  ;;  %v18136_v4 = vld [vmem:[#allocation77_spill] sm:$0xff]  ;;  %v10904_v19 = vadd.f32 %v16544_v38, %v16535_v33 }
 0x707   :  { %v11011_v53 = vpop.f32.mrf.mxu0  ;;  %v11951_v7 = vpop.f32.mrf.mxu1  ;;  %v1361_v21 = vadd.f32 %v18136_v4, %v16725_v40  ;;  %v1452_v0 = vmax.f32 %v1340_v49, 0.0 }
 0x708   :  { %18132 = vst [vmem:[#allocation132_spill] sm:$0xff] %v16775_v2  ;;  %v16779_v20 = vadd.f32 %v6436_v45, %v1482_v22  ;;  %v6331_v36 = vadd.f32 %v11951_v7, %v16696_v55  ;;  %v16782_v63 = vadd.f32 %v11010_v50, %v6052_v56  ;;  %v6057_v22 = vadd.f32 %v16533_v32, %v16648_v1  ;;  %v18137_v56 = vld [vmem:[#allocation114_spill] sm:$0xff]  ;;  %v18140_v32 = vld [vmem:[#allocation108_spill] sm:$0xff] }
 0x709   :  { %v11012_v14 = vpop.f32.mrf.mxu0  ;;  %v6322_v15 = vpop.f32.mrf.mxu1  ;;  %v18138_v50 = vmax.f32 %v18137_v56, 0.0  ;;  %v1353_v7 = vadd.f32 %v16725_v40, %v18139_v43  ;;  %v6060_v49 = vadd.f32 %v10904_v19, %v16648_v1 }
 0x70a   :  { %v6439_v26 = vmax.f32 %v6331_v36, 0.0  ;;  %v11013_v45 = vadd.f32 %v11012_v14, %v11011_v53  ;;  %v6323_v55 = vadd.f32 %v6322_v15, %v16687_v59  ;;  %v18141_v53 = vmax.f32 %v18140_v32, 0.0  ;;  %v18142_v14 = vld [vmem:[#allocation80_spill] sm:$0xff] }
 0x70b   :  { %v1483_v48 = vadd.f32 %v1451_v31, %v18138_v50  ;;  %v11014_v51 = vpop.f32.mrf.mxu0  ;;  %v11952_v47 = vpop.f32.mrf.mxu1  ;;  %v1457_v59 = vmax.f32 %v1361_v21, 0.0  ;;  %v1364_v31 = vadd.f32 %v18142_v14, %v16725_v40  ;;  %v1455_v43 = vmax.f32 %v1353_v7, 0.0  ;;  %v18146_v21 = vld [vmem:[#allocation82_spill] sm:$0xff] }
 0x70c   :  { %v16797_v4 = vadd.f32 %v6439_v26, %v1485_v18  ;;  %v6437_v33 = vmax.f32 %v6323_v55, 0.0  ;;  %v6334_v38 = vadd.f32 %v11952_v47, %v16699_v5  ;;  %v16800_v2 = vadd.f32 %v11013_v45, %v6057_v22  ;;  %v18143_v5 = vld [vmem:[#allocation112_spill] sm:$0xff]  ;;  %v18145_v47 = vld [vmem:[#allocation74_spill] sm:$0xff] }
 0x70d   :  { %v1486_v36 = vadd.f32 %v1454_v30, %v18141_v53  ;;  %v11015_v15 = vpop.f32.mrf.mxu0  ;;  %v6325_v56 = vpop.f32.mrf.mxu1  ;;  %v18144_v22 = vmax.f32 %v18143_v5, 0.0  ;;  %v1356_v30 = vadd.f32 %v16725_v40, %v18145_v47  ;;  %v1377_v32 = vadd.f32 %v18146_v21, %v16725_v40 }
 0x70e   :  { %v16807_v50 = vadd.f32 %v6437_v33, %v1483_v48  ;;  %v6440_v18 = vmax.f32 %v6334_v38, 0.0  ;;  %v11016_v26 = vadd.f32 %v11015_v15, %v11014_v51  ;;  %v6326_v55 = vadd.f32 %v6325_v56, %v16690_v11  ;;  %v18147_v11 = vld [vmem:[#allocation102_spill] sm:$0xff] }
 0x70f   :  { %v1484_v45 = vadd.f32 %v1452_v0, %v18144_v22  ;;  %v11017_v53 = vpop.f32.mrf.mxu0  ;;  %v11955_v19 = vpop.f32.mrf.mxu1  ;;  %v18148_v38 = vmax.f32 %v18147_v11, 0.0  ;;  %v1458_v0 = vmax.f32 %v1364_v31, 0.0  ;;  %v6065_v7 = vadd.f32 %v16555_v46, %v16648_v1  ;;  %v18151_v31 = vld [vmem:[#allocation76_spill] sm:$0xff] }
 0x710   :  { %v16816_v14 = vadd.f32 %v6440_v18, %v1486_v36  ;;  %v6438_v48 = vmax.f32 %v6326_v55, 0.0  ;;  %v6347_v33 = vadd.f32 %v11955_v19, %v16714_v60  ;;  %v16819_v51 = vadd.f32 %v11016_v26, %v6060_v49  ;;  %v18149_v49 = vld [vmem:[#allocation106_spill] sm:$0xff] }
 0x711   :  { %v1489_v15 = vadd.f32 %v1457_v59, %v18148_v38  ;;  %v10910_v56 = vadd.f32 %v16565_v57, %v16559_v41  ;;  %v11018_v5 = vpop.f32.mrf.mxu0  ;;  %v6338_v22 = vpop.f32.mrf.mxu1  ;;  %v18150_v26 = vmax.f32 %v18149_v49, 0.0  ;;  %v1456_v21 = vmax.f32 %v1356_v30, 0.0 }
 0x712   :  { %v16827_v47 = vadd.f32 %v6438_v48, %v1484_v45  ;;  %v6443_v36 = vmax.f32 %v6347_v33, 0.0  ;;  %v11019_v18 = vadd.f32 %v11018_v5, %v11017_v53  ;;  %v6339_v60 = vadd.f32 %v6338_v22, %v16705_v12  ;;  %v18152_v53 = vld [vmem:[#allocation99_spill] sm:$0xff]  ;;  %v18154_v33 = vld [vmem:[#allocation84_spill] sm:$0xff] }
 0x713   :  { %v1487_v55 = vadd.f32 %v1455_v43, %v18150_v26  ;;  %v1461_v59 = vmax.f32 %v1377_v32, 0.0  ;;  %v1369_v19 = vadd.f32 %v16725_v40, %v18151_v31  ;;  %v11020_v46 = vpop.f32.mrf.mxu0  ;;  %v11956_v11 = vpop.f32.mrf.mxu1  ;;  %v18153_v48 = vmax.f32 %v18152_v53, 0.0 }
 0x714   :  { %v16834_v38 = vadd.f32 %v6443_v36, %v1489_v15  ;;  %v16836_v41 = vadd.f32 %v11019_v18, %v6065_v7  ;;  %v6441_v57 = vmax.f32 %v6339_v60, 0.0  ;;  %v6350_v45 = vadd.f32 %v11956_v11, %v16717_v16  ;;  %v18155_v36 = vld [vmem:[#allocation104_spill] sm:$0xff]  ;;  %v18157_v16 = vld [vmem:[#allocation89_spill] sm:$0xff]  ;;  %v18159_v11 = vld [vmem:[#allocation78_spill] sm:$0xff] }
 0x715   :  { %v1490_v12 = vadd.f32 %v1458_v0, %v18153_v48  ;;  %v1380_v43 = vadd.f32 %v18154_v33, %v16725_v40  ;;  %v6068_v30 = vadd.f32 %v10910_v56, %v16648_v1  ;;  %v11021_v32 = vpop.f32.mrf.mxu0  ;;  %v6341_v5 = vpop.f32.mrf.mxu1  ;;  %v18156_v18 = vmax.f32 %v18155_v36, 0.0 }
 0x716   :  { %v16844_v22 = vadd.f32 %v6441_v57, %v1487_v55  ;;  %v6444_v49 = vmax.f32 %v6350_v45, 0.0  ;;  %v11022_v15 = vadd.f32 %v11021_v32, %v11020_v46  ;;  %v6342_v7 = vadd.f32 %v6341_v5, %v16708_v3  ;;  %v18160_v45 = vld [vmem:[#allocation86_spill] sm:$0xff] }
 0x717   :  { %v1488_v60 = vadd.f32 %v1456_v21, %v18156_v18  ;;  %v18158_v26 = vmax.f32 %v18157_v16, 0.0  ;;  %v1459_v0 = vmax.f32 %v1369_v19, 0.0  ;;  %v1372_v53 = vadd.f32 %v16725_v40, %v18159_v11  ;;  %v11023_v48 = vpop.f32.mrf.mxu0  ;;  %v11959_v56 = vpop.f32.mrf.mxu1  ;;  %v18163_v18 = vld [vmem:[#allocation79_spill] sm:$0xff] }
 0x718   :  { %v16853_v33 = vadd.f32 %v6444_v49, %v1490_v12  ;;  %v6442_v55 = vmax.f32 %v6342_v7, 0.0  ;;  %v6363_v57 = vadd.f32 %v11959_v56, %v16740_v35  ;;  %v16856_v46 = vadd.f32 %v11022_v15, %v6068_v30  ;;  %v18161_v30 = vld [vmem:[#allocation96_spill] sm:$0xff]  ;;  %v18164_v56 = vld [vmem:[#allocation87_spill] sm:$0xff] }
 0x719   :  { %v1493_v31 = vadd.f32 %v1461_v59, %v18158_v26  ;;  %v1462_v3 = vmax.f32 %v1380_v43, 0.0  ;;  %v1393_v21 = vadd.f32 %v18160_v45, %v16725_v40  ;;  %v6073_v59 = vadd.f32 %v16574_v42, %v16648_v1  ;;  %v11024_v32 = vpop.f32.mrf.mxu0  ;;  %v6354_v5 = vpop.f32.mrf.mxu1 }
 0x71a   :  { %v10916_v19 = vadd.f32 %v16582_v13, %v16576_v52  ;;  %v16864_v36 = vadd.f32 %v6442_v55, %v1488_v60  ;;  %v6447_v12 = vmax.f32 %v6363_v57, 0.0  ;;  %v11025_v49 = vadd.f32 %v11024_v32, %v11023_v48 }
 0x71b   :  { %v6355_v35 = vadd.f32 %v6354_v5, %v16723_v9  ;;  %v18162_v15 = vmax.f32 %v18161_v30, 0.0  ;;  %v1460_v7 = vmax.f32 %v1372_v53, 0.0  ;;  %v1385_v16 = vadd.f32 %v16725_v40, %v18163_v18  ;;  %v11026_v26 = vpop.f32.mrf.mxu0  ;;  %v11960_v42 = vpop.f32.mrf.mxu1  ;;  %v18166_v9 = vld [vmem:[#allocation94_spill] sm:$0xff] }
 0x71c   :  { %v16871_v11 = vadd.f32 %v6447_v12, %v1493_v31  ;;  %v6366_v13 = vadd.f32 %v11960_v42, %v16748_v23  ;;  %v6234_v60 = vadd.f32 %v11025_v49, %v6073_v59  ;;  %v18165_v55 = vmax.f32 %v18164_v56, 0.0 }
 0x71d   :  { %v1491_v43 = vadd.f32 %v1459_v0, %v18162_v15  ;;  %v6445_v52 = vmax.f32 %v6355_v35, 0.0  ;;  %v1465_v57 = vmax.f32 %v1393_v21, 0.0  ;;  %v1396_v45 = vadd.f32 %v18166_v9, %v16725_v40  ;;  %v11027_v53 = vpop.f32.mrf.mxu0  ;;  %v6357_v32 = vpop.f32.mrf.mxu1  ;;  %v18167_v35 = vld [vmem:[#allocation92_spill] sm:$0xff]  ;;  %v18169_v15 = vld [vmem:[#allocation81_spill] sm:$0xff]  ;;  %v18170_v21 = vld [vmem:[#allocation83_spill] sm:$0xff] }
 0x71e   :  { %v1494_v48 = vadd.f32 %v1462_v3, %v18165_v55  ;;  %v6076_v0 = vadd.f32 %v10916_v19, %v16648_v1  ;;  %v6448_v30 = vmax.f32 %v6366_v13, 0.0  ;;  %v11028_v31 = vadd.f32 %v11027_v53, %v11026_v26  ;;  %v18171_v13 = vld [vmem:[#allocation115_spill] sm:$0xff] }
 0x71f   :  { %v16879_v5 = vadd.f32 %v6445_v52, %v1491_v43  ;;  %v6358_v12 = vadd.f32 %v6357_v32, %v16728_v44  ;;  %v18168_v23 = vmax.f32 %v18167_v35, 0.0  ;;  %v1463_v49 = vmax.f32 %v1385_v16, 0.0  ;;  %v11029_v42 = vpop.f32.mrf.mxu0  ;;  %v11963_v19 = vpop.f32.mrf.mxu1 }
 0x720   :  { %v1388_v3 = vadd.f32 %v16725_v40, %v18169_v15  ;;  %v1409_v18 = vadd.f32 %v18170_v21, %v16725_v40  ;;  %v16888_v56 = vadd.f32 %v6448_v30, %v1494_v48  ;;  %v6379_v52 = vadd.f32 %v11963_v19, %v16800_v2  ;;  %v18173_v2 = vld [vmem:[#allocation119_spill] sm:$0xff] }
 0x721   :  { %v1492_v59 = vadd.f32 %v1460_v7, %v18168_v23  ;;  %v6446_v43 = vmax.f32 %v6358_v12, 0.0  ;;  %v6237_v26 = vadd.f32 %v11028_v31, %v6076_v0  ;;  %v18172_v44 = vmax.f32 %v18171_v13, 0.0  ;;  %v11030_v53 = vpop.f32.mrf.mxu0  ;;  %v6370_v32 = vpop.f32.mrf.mxu1 }
 0x722   :  { %v1466_v9 = vmax.f32 %v1396_v45, 0.0  ;;  %v6081_v7 = vadd.f32 %v16592_v54, %v16648_v1  ;;  %v10922_v16 = vadd.f32 %v16600_v24, %v16594_v6  ;;  %v6451_v48 = vmax.f32 %v6379_v52, 0.0  ;;  %v18175_v45 = vld [vmem:[#allocation85_spill] sm:$0xff]  ;;  %v18179_v52 = vld [vmem:[#allocation90_spill] sm:$0xff] }
 0x723   :  { %v1497_v55 = vadd.f32 %v1465_v57, %v18172_v44  ;;  %v16897_v35 = vadd.f32 %v6446_v43, %v1492_v59  ;;  %v11031_v30 = vadd.f32 %v11030_v53, %v11029_v42  ;;  %v6371_v12 = vadd.f32 %v6370_v32, %v16765_v61  ;;  %v11032_v54 = vpop.f32.mrf.mxu0  ;;  %v11964_v21 = vpop.f32.mrf.mxu1  ;;  %v18177_v42 = vld [vmem:[#allocation113_spill] sm:$0xff] }
 0x724   :  { %v18174_v0 = vmax.f32 %v18173_v2, 0.0  ;;  %v1464_v23 = vmax.f32 %v1388_v3, 0.0  ;;  %v1469_v57 = vmax.f32 %v1409_v18, 0.0  ;;  %v1401_v15 = vadd.f32 %v16725_v40, %v18175_v45  ;;  %v18181_v32 = vld [vmem:[#allocation117_spill] sm:$0xff] }
 0x725   :  { %v16904_v19 = vadd.f32 %v6451_v48, %v1497_v55  ;;  %v16906_v6 = vadd.f32 %v11031_v30, %v6081_v7  ;;  %v6449_v24 = vmax.f32 %v6371_v12, 0.0  ;;  %v6382_v59 = vadd.f32 %v11964_v21, %v16819_v51  ;;  %v11033_v18 = vpop.f32.mrf.mxu0  ;;  %v6373_v13 = vpop.f32.mrf.mxu1  ;;  %v18183_v51 = vld [vmem:[#allocation107_spill] sm:$0xff] }
 0x726   :  { %v1495_v31 = vadd.f32 %v1463_v49, %v18174_v0  ;;  %v18178_v43 = vmax.f32 %v18177_v42, 0.0  ;;  %v1412_v49 = vadd.f32 %v18179_v52, %v16725_v40  ;;  %v6084_v3 = vadd.f32 %v10922_v16, %v16648_v1  ;;  %v18185_v0 = vld [vmem:[#allocation100_spill] sm:$0xff] }
 0x727   :  { %18176 = vst [vmem:[#allocation130_spill] sm:$0xff] %v16904_v19  ;;  %v6452_v53 = vmax.f32 %v6382_v59, 0.0  ;;  %v11034_v55 = vadd.f32 %v11033_v18, %v11032_v54  ;;  %v6374_v7 = vadd.f32 %v6373_v13, %v16782_v63  ;;  %v18182_v48 = vmax.f32 %v18181_v32, 0.0  ;;  %v11035_v21 = vpop.f32.mrf.mxu0  ;;  %v11967_v16 = vpop.f32.mrf.mxu1  ;;  %v18187_v63 = vld [vmem:[#allocation56_spill] sm:$0xff] }
 0x728   :  { %v1498_v61 = vadd.f32 %v1466_v9, %v18178_v43  ;;  %v16914_v44 = vadd.f32 %v6449_v24, %v1495_v31  ;;  %v18184_v12 = vmax.f32 %v18183_v51, 0.0  ;;  %v1467_v9 = vmax.f32 %v1401_v15, 0.0 }
 0x729   :  { %v1496_v30 = vadd.f32 %v1464_v23, %v18182_v48  ;;  %v1404_v45 = vadd.f32 %v16725_v40, %v18185_v0  ;;  %v6450_v31 = vmax.f32 %v6374_v7, 0.0  ;;  %v6395_v24 = vadd.f32 %v11967_v16, %v6234_v60  ;;  %v11036_v15 = vpop.f32.mrf.mxu0  ;;  %v6386_v52 = vpop.f32.mrf.mxu1  ;;  %v18191_v7 = vld [vmem:[#allocation58_spill] sm:$0xff] }
 0x72a   :  { %18180 = vst [vmem:[#allocation137_spill] sm:$0xff] %v16914_v44  ;;  %v1501_v2 = vadd.f32 %v1469_v57, %v18184_v12  ;;  %v16923_v42 = vadd.f32 %v6452_v53, %v1498_v61  ;;  %v16925_v59 = vadd.f32 %v11034_v55, %v6084_v3  ;;  %v1470_v54 = vmax.f32 %v1412_v49, 0.0  ;;  %v18189_v3 = vld [vmem:[#allocation111_spill] sm:$0xff] }
 0x72b   :  { %v1425_v43 = vadd.f32 %v18187_v63, %v16725_v40  ;;  %v6089_v23 = vadd.f32 %v16613_v58, %v16648_v1  ;;  %v10928_v57 = vadd.f32 %v16621_v17, %v16615_v27  ;;  %v16933_v18 = vadd.f32 %v6450_v31, %v1496_v30  ;;  %v11038_v48 = vpop.f32.mrf.mxu0  ;;  %v11968_v58 = vpop.f32.mrf.mxu1  ;;  %v18192_v30 = vld [vmem:[#allocation105_spill] sm:$0xff] }
 0x72c   :  { %18186 = vst [vmem:[#allocation135_spill] sm:$0xff] %v16923_v42  ;;  %v6455_v61 = vmax.f32 %v6395_v24, 0.0  ;;  %v11037_v13 = vadd.f32 %v11036_v15, %v11035_v21  ;;  %v6387_v60 = vadd.f32 %v6386_v52, %v16836_v41  ;;  %v18190_v53 = vmax.f32 %v18189_v3, 0.0  ;;  %v18194_v41 = vld [vmem:[#allocation54_spill] sm:$0xff] }
 0x72d   :  { %18188 = vst [vmem:[#allocation136_spill] sm:$0xff] %v16933_v18  ;;  %v1468_v55 = vmax.f32 %v1404_v45, 0.0  ;;  %v1417_v32 = vadd.f32 %v16725_v40, %v18191_v7  ;;  %v6398_v17 = vadd.f32 %v11968_v58, %v6237_v26  ;;  %v18193_v0 = vmax.f32 %v18192_v30, 0.0  ;;  %v11039_v45 = vpop.f32.mrf.mxu0  ;;  %v6389_v24 = vpop.f32.mrf.mxu1  ;;  %v9062_v18 = vld [vmem:[%s18211_s5 + $0x78] sm:$0xff] }
 0x72e   :  { %v1499_v49 = vadd.f32 %v1467_v9, %v18190_v53  ;;  %v16940_v51 = vadd.f32 %v6455_v61, %v1501_v2  ;;  %v6453_v27 = vmax.f32 %v6387_v60, 0.0  ;;  %v6250_v12 = vadd.f32 %v11037_v13, %v6089_v23  ;;  %v18195_v61 = vld [vmem:[#allocation109_spill] sm:$0xff]  ;;  %v18197_v60 = vld [vmem:[#allocation60_spill] sm:$0xff] }
 0x72f   :  { %v1502_v16 = vadd.f32 %v1470_v54, %v18193_v0  ;;  %v1473_v21 = vmax.f32 %v1425_v43, 0.0  ;;  %v1428_v31 = vadd.f32 %v18194_v41, %v16725_v40  ;;  %v6092_v9 = vadd.f32 %v10928_v57, %v16648_v1  ;;  %v11041_v43 = vpop.f32.mrf.mxu0  ;;  %v11971_v3 = vpop.f32.mrf.mxu1 }
 0x730   :  { %v16947_v63 = vadd.f32 %v6453_v27, %v1499_v49  ;;  %v6456_v15 = vmax.f32 %v6398_v17, 0.0  ;;  %v11040_v52 = vadd.f32 %v11039_v45, %v11038_v48  ;;  %v6390_v2 = vadd.f32 %v6389_v24, %v16856_v46  ;;  %v18198_v49 = vld [vmem:[#allocation97_spill] sm:$0xff] }
 0x731   :  { %v18196_v26 = vmax.f32 %v18195_v61, 0.0  ;;  %v1471_v13 = vmax.f32 %v1417_v32, 0.0  ;;  %v1420_v54 = vadd.f32 %v16725_v40, %v18197_v60  ;;  %v6411_v7 = vadd.f32 %v11971_v3, %v6250_v12  ;;  %v11042_v32 = vpop.f32.mrf.mxu0  ;;  %v6402_v30 = vpop.f32.mrf.mxu1  ;;  %v18200_v12 = vld [vmem:[#allocation103_spill] sm:$0xff] }
 0x732   :  { %v16954_v53 = vadd.f32 %v6456_v15, %v1502_v16  ;;  %v6454_v57 = vmax.f32 %v6390_v2, 0.0  ;;  %v6253_v58 = vadd.f32 %v11040_v52, %v6092_v9  ;;  %v18199_v27 = vmax.f32 %v18198_v49, 0.0  ;;  %v18205_v49 = vld [vmem:[#allocation101_spill] sm:$0xff] }
 0x733   :  { %v1500_v23 = vadd.f32 %v1468_v55, %v18196_v26  ;;  %v1474_v48 = vmax.f32 %v1428_v31, 0.0  ;;  %v6097_v46 = vadd.f32 %v16628_v10, %v16648_v1  ;;  %v10934_v55 = vadd.f32 %v16636_v62, %v16630_v37  ;;  %v11044_v52 = vpop.f32.mrf.mxu0  ;;  %v11972_v10 = vpop.f32.mrf.mxu1  ;;  %v18203_v26 = vld [vmem:[#allocation93_spill] sm:$0xff] }
 0x734   :  { %v1505_v17 = vadd.f32 %v1473_v21, %v18199_v27  ;;  %v6459_v41 = vmax.f32 %v6411_v7, 0.0  ;;  %v11043_v16 = vadd.f32 %v11042_v32, %v11041_v43  ;;  %v6403_v45 = vadd.f32 %v6402_v30, %v16906_v6  ;;  %v18202_v21 = vld [vmem:[#allocation62_spill] sm:$0xff] }
 0x735   :  { %v16962_v0 = vadd.f32 %v6454_v57, %v1500_v23  ;;  %v18201_v9 = vmax.f32 %v18200_v12, 0.0  ;;  %v1472_v15 = vmax.f32 %v1420_v54, 0.0  ;;  %v1433_v31 = vadd.f32 %v16725_v40, %v18202_v21  ;;  %v11045_v6 = vpop.f32.mrf.mxu0  ;;  %v6405_v3 = vpop.f32.mrf.mxu1 }
 0x736   :  { %v16969_v2 = vadd.f32 %v6459_v41, %v1505_v17  ;;  %v6258_v37 = vadd.f32 %v11043_v16, %v6097_v46  ;;  %v6457_v62 = vmax.f32 %v6403_v45, 0.0  ;;  %v6414_v61 = vadd.f32 %v11972_v10, %v6253_v58  ;;  %v18207_v46 = vld [vmem:[#allocation55_spill] sm:$0xff] }
 0x737   :  { %v1503_v24 = vadd.f32 %v1471_v13, %v18201_v9  ;;  %v18204_v23 = vmax.f32 %v18203_v26, 0.0  ;;  %v6100_v43 = vadd.f32 %v10934_v55, %v16648_v1  ;;  %v11046_v54 = vadd.f32 %v11045_v6, %v11044_v52  ;;  %v11047_v30 = vpop.f32.mrf.mxu0  ;;  %v11975_v41 = vpop.f32.mrf.mxu1  ;;  %v18209_v26 = vld [vmem:[#allocation91_spill] sm:$0xff] }
 0x738   :  { %v6460_v13 = vmax.f32 %v6414_v61, 0.0  ;;  %v6406_v7 = vadd.f32 %v6405_v3, %v16925_v59  ;;  %v18206_v27 = vmax.f32 %v18205_v49, 0.0  ;;  %v1441_v32 = vadd.f32 %v18207_v46, %v16725_v40 }
 0x739   :  { %v1506_v60 = vadd.f32 %v1474_v48, %v18204_v23  ;;  %v16974_v57 = vadd.f32 %v6457_v62, %v1503_v24  ;;  %v1475_v58 = vmax.f32 %v1433_v31, 0.0  ;;  %v18208_v48 = vld [vmem:[#allocation64_spill] sm:$0xff]  ;;  %v6261_v12 = vadd.f32 %v11046_v54, %v6100_v43  ;;  %v11048_v59 = vpop.f32.mrf.mxu0  ;;  %v6418_v24 = vpop.f32.mrf.mxu1 }
 0x73a   :  { %v1504_v17 = vadd.f32 %v1472_v15, %v18206_v27  ;;  %v1436_v55 = vadd.f32 %v16725_v40, %v18208_v48  ;;  %v6458_v45 = vmax.f32 %v6406_v7, 0.0  ;;  %v10940_v9 = vadd.f32 %v16744_v29, %v16732_v39  ;;  %v18212_v39 = vld [vmem:[#allocation57_spill] sm:$0xff]  ;;  %v9047_v48 = vld [vmem:[%s18211_s5] sm:$0xff] }
 0x73b   :  { %v16983_v16 = vadd.f32 %v6460_v13, %v1506_v60  ;;  %v6105_v15 = vadd.f32 %v16642_v28, %v16648_v1  ;;  %v11049_v31 = vadd.f32 %v11048_v59, %v11047_v30  ;;  %v6419_v52 = vadd.f32 %v6418_v24, %v6258_v37  ;;  %v11050_v62 = vpop.f32.mrf.mxu0  ;;  %v11976_v61 = vpop.f32.mrf.mxu1  ;;  %9080 = vperm.xlu0 %12328, %v9047_v48  }
 0x73c   :  { %v16989_v21 = vadd.f32 %v6458_v45, %v1504_v17  ;;  %v1477_v10 = vmax.f32 %v1441_v32, 0.0  ;;  %v18210_v23 = vmax.f32 %v18209_v26, 0.0  ;;  %v1476_v43 = vmax.f32 %v1436_v55, 0.0  ;;  %v18213_v17 = vld [vmem:[#allocation88_spill] sm:$0xff]  ;;  %v18216_v55 = vld [vmem:[#allocation98_spill] sm:$0xff] }
 0x73d   :  { %v6266_v6 = vadd.f32 %v11049_v31, %v6105_v15  ;;  %v6461_v3 = vmax.f32 %v6419_v52, 0.0  ;;  %v1444_v29 = vadd.f32 %v18212_v39, %v16725_v40  ;;  %v6108_v13 = vadd.f32 %v10940_v9, %v16648_v1  ;;  %v11051_v28 = vpop.f32.mrf.mxu0  ;;  %v6421_v54 = vpop.f32.mrf.mxu1  ;;  %v18218_v39 = vld [vmem:[#allocation95_spill] sm:$0xff] }
 0x73e   :  { %v1507_v60 = vadd.f32 %v1475_v58, %v18210_v23  ;;  %v11052_v37 = vadd.f32 %v11051_v28, %v11050_v62  ;;  %v6422_v27 = vadd.f32 %v6421_v54, %v6261_v12  ;;  %v18214_v46 = vmax.f32 %v18213_v17, 0.0  ;;  %v9048_v23 = vld [vmem:[%s18211_s5 + $0x8] sm:$0xff] }
 0x73f   :  { %v6427_v7 = vadd.f32 %v11975_v41, %v6266_v6  ;;  %v11995_v58 = vpop.f32.mrf.mxu0  ;;  %v17000_v30 = vpop.f32.mrf.mxu1  ;;  %v18217_v40 = vmax.f32 %v18216_v55, 0.0  ;;  %v1478_v59 = vmax.f32 %v1444_v29, 0.0  ;;  %9083 = vperm.xlu1 %12329, %v9048_v23   ;;  %v9054_v23 = vld [vmem:[%s18211_s5 + $0x38] sm:$0xff] }
 0x740   :  { %v16996_v49 = vadd.f32 %v6461_v3, %v1507_v60  ;;  %v1509_v32 = vadd.f32 %v1477_v10, %v18214_v46  ;;  %v6269_v9 = vadd.f32 %v11052_v37, %v6108_v13  ;;  %v6462_v41 = vmax.f32 %v6422_v27, 0.0  ;;  %v17012_v10 = vld [vmem:[%s18215_s28] ss:$0 sm:$0xff]  ;;  %v9050_v60 = vld [vmem:[%s18211_s5 + $0x18] sm:$0xff] }
 0x741   :  { %v1508_v1 = vadd.f32 %v1476_v43, %v18217_v40  ;;  %v6463_v45 = vmax.f32 %v6427_v7, 0.0  ;;  %v6801_v24 = vpop.f32.mrf.mxu0  ;;  %v17005_v12 = vpop.f32.mrf.mxu1  ;;  %9089 = vperm.xlu0 %12328, %v9050_v60   ;;  %v6810_v13 = vadd.f32 %v11995_v58, %v17012_v10  ;;  %v9049_v7 = vld [vmem:[%s18211_s5 + $0x10] sm:$0xff] }
 0x742   :  { %v6430_v31 = vadd.f32 %v11976_v61, %v6269_v9  ;;  %v6802_v6 = vadd.f32 %v17012_v10, %v6801_v24  ;;  %v18219_v61 = vmax.f32 %v18218_v39, 0.0  ;;  %v9051_v9 = vld [vmem:[%s18211_s5 + $0x20] sm:$0xff] }
 0x743   :  { %v17007_v15 = vadd.f32 %v6463_v45, %v1509_v32  ;;  %v17009_v52 = vadd.f32 %v6462_v41, %v1508_v1  ;;  %v11996_v62 = vpop.f32.mrf.mxu0  ;;  %v17014_v26 = vpop.f32.mrf.mxu1  ;;  %v9052_v32 = vld [vmem:[%s18211_s5 + $0x28] sm:$0xff]  ;;  %9086 = vperm.xlu1 %12329, %v9049_v7   ;;  %v6866_v58 = vmax.f32 %v6810_v13, 0.0 }
 0x744   :  { %v6464_v43 = vmax.f32 %v6430_v31, 0.0  ;;  %v6813_v3 = vadd.f32 %v11996_v62, %v17012_v10  ;;  %v1510_v29 = vadd.f32 %v1478_v59, %v18219_v61  ;;  %v6864_v55 = vmax.f32 %v6802_v6, 0.0  ;;  %v12563_v31 = vld [vmem:[#allocation20 + $0x70] sm:$0xff]  }
 0x745   :  { %v6804_v28 = vpop.f32.mrf.mxu0  ;;  %v17023_v54 = vpop.f32.mrf.mxu1  ;;  %9095 = vperm.xlu0 %12328, %v9052_v32  }
 0x746   :  { %v6805_v37 = vadd.f32 %v17012_v10, %v6804_v28  ;;  %v6867_v27 = vmax.f32 %v6813_v3, 0.0  ;;  %v17030_v48 = vadd.f32 %v6464_v43, %v1510_v29  ;;  %v12564_v28 = vld [vmem:[#allocation20 + $0x68] sm:$0xff]  }
 0x747   :  { %v11999_v17 = vpop.f32.mrf.mxu0  ;;  %v17027_v46 = vpop.f32.mrf.mxu1  ;;  %9092 = vperm.xlu1 %12329, %v9051_v9  }
 0x748   :  { %v6865_v40 = vmax.f32 %v6805_v37, 0.0  ;;  %v6881_v59 = vpack.c.bf16 %v6867_v27, %v6866_v58  ;;  %v6826_v6 = vadd.f32 %v11999_v17, %v17012_v10  ;;  %v9053_v37 = vld [vmem:[%s18211_s5 + $0x30] sm:$0xff]  ;;  %v9056_v27 = vld [vmem:[%s18211_s5 + $0x48] sm:$0xff] }
 0x749   :  { %v6817_v1 = vpop.f32.mrf.mxu0  ;;  %v17032_v45 = vpop.f32.mrf.mxu1  ;;  %9101 = vperm.xlu0 %12328, %v9054_v23   ;;  %v9058_v23 = vld [vmem:[%s18211_s5 + $0x58] sm:$0xff] }
 0x74a   :  { %v6880_v41 = vpack.c.bf16 %v6865_v40, %v6864_v55  ;;  %v6818_v60 = vadd.f32 %v17012_v10, %v6817_v1  ;;  %v6870_v55 = vmax.f32 %v6826_v6, 0.0 }
 0x74b   :  { %v12000_v24 = vpop.f32.mrf.mxu0  ;;  %v17035_v62 = vpop.f32.mrf.mxu1  ;;  %9098 = vperm.xlu1 %12329, %v9053_v37  }
 0x74c   :  { %v6829_v43 = vadd.f32 %v12000_v24, %v17012_v10  ;;  %12025 = vmatprep.mubr.bf16.mxu0 %v6880_v41  ;;  %v6868_v17 = vmax.f32 %v6818_v60, 0.0  ;;  %v12565_v41 = vld [vmem:[#allocation20 + $0x60] sm:$0xff]   ;;  %v9055_v24 = vld [vmem:[%s18211_s5 + $0x40] sm:$0xff] }
 0x74d   :  { %v6820_v3 = vpop.f32.mrf.mxu0  ;;  %12026 = vmatmul.mubr.bf16.vlgmr.msra.gmra.mxu0 %v6881_v59  ;;  %v17041_v39 = vpop.f32.mrf.mxu1  ;;  %9107 = vperm.xlu0 %12328, %v9056_v27   ;;  %v12566_v27 = vld [vmem:[#allocation20 + $0x58] sm:$0xff]  }
 0x74e   :  { %v6821_v61 = vadd.f32 %v17012_v10, %v6820_v3  ;;  %12074 = vmatpush3.bf16.msra.mxu0 %v16677_v34  ;;  %v6871_v29 = vmax.f32 %v6829_v43, 0.0 }
 0x74f   :  { %v12003_v13 = vpop.f32.mrf.mxu0  ;;  %12075 = vmatprep.subr.bf16.mxu0 %v12563_v31  ;;  %v17045_v7 = vpop.f32.mrf.mxu1  ;;  %9104 = vperm.xlu1 %12329, %v9055_v24  }
 0x750   :  { %v6869_v32 = vmax.f32 %v6821_v61, 0.0  ;;  %v6883_v34 = vpack.c.bf16 %v6871_v29, %v6870_v55  ;;  %v6842_v6 = vadd.f32 %v12003_v13, %v17012_v10  ;;  %v9060_v55 = vld [vmem:[%s18211_s5 + $0x68] sm:$0xff] }
 0x751   :  { %v6833_v40 = vpop.f32.mrf.mxu0  ;;  %v17049_v58 = vpop.f32.mrf.mxu1  ;;  %9113 = vperm.xlu0 %12328, %v9058_v23  }
 0x752   :  { %v6882_v1 = vpack.c.bf16 %v6869_v32, %v6868_v17  ;;  %12076 = vmatpush3.bf16.msra.mxu0 %v12563_v31  ;;  %v6834_v43 = vadd.f32 %v17012_v10, %v6833_v40  ;;  %v9057_v32 = vld [vmem:[%s18211_s5 + $0x50] sm:$0xff] }
 0x753   :  { %v12004_v9 = vpop.f32.mrf.mxu0  ;;  %12077 = vmatprep.subr.bf16.mxu0 %v12564_v28  ;;  %v17051_v59 = vpop.f32.mrf.mxu1  ;;  %9110 = vperm.xlu1 %12329, %v9057_v32  }
 0x754   :  { %v6845_v60 = vadd.f32 %v12004_v9, %v17012_v10  ;;  %12029 = vmatprep.mubr.bf16.mxu0 %v6882_v1  ;;  %v6872_v40 = vmax.f32 %v6834_v43, 0.0  ;;  %v17066_v1 = vld [vmem:[%s18215_s28 + $0x1] ss:$0 sm:$0xff]  ;;  %v12567_v43 = vld [vmem:[#allocation20 + $0x50] sm:$0xff]  }
 0x755   :  { %v6836_v31 = vpop.f32.mrf.mxu0  ;;  %12030 = vmatmul.mubr.bf16.gmra.mxu0 %v6883_v34  ;;  %v17058_v3 = vpop.f32.mrf.mxu1  ;;  %v6874_v34 = vmax.f32 %v6842_v6, 0.0  ;;  %9119 = vperm.xlu0 %12328, %v9060_v55  }
 0x756   :  { %v6837_v61 = vadd.f32 %v17012_v10, %v6836_v31  ;;  %12078 = vmatpush3.bf16.msra.mxu0 %v12564_v28  ;;  %v6875_v29 = vmax.f32 %v6845_v60, 0.0  ;;  %v7308_v31 = vadd.f32 %v17066_v1, %v17005_v12 }
 0x757   :  { %v12007_v37 = vpop.f32.mrf.mxu0  ;;  %12079 = vmatprep.subr.bf16.mxu0 %v12565_v41  ;;  %v17061_v17 = vpop.f32.mrf.mxu1 }
 0x758   :  { %v6873_v13 = vmax.f32 %v6837_v61, 0.0  ;;  %v6885_v23 = vpack.c.bf16 %v6875_v29, %v6874_v34  ;;  %v9059_v61 = vld [vmem:[%s18211_s5 + $0x60] sm:$0xff]  ;;  %v6858_v29 = vadd.f32 %v12007_v37, %v17012_v10  ;;  %v7370_v37 = vmax.f32 %v7308_v31, 0.0 }
 0x759   :  { %v6849_v9 = vpop.f32.mrf.mxu0  ;;  %v17068_v24 = vpop.f32.mrf.mxu1  ;;  %9116 = vperm.xlu1 %12329, %v9059_v61   ;;  %9125 = vperm.xlu0 %12328, %v9062_v18   ;;  %v12568_v34 = vld [vmem:[#allocation20 + $0x48] sm:$0xff]  }
 0x75a   :  { %v6884_v28 = vpack.c.bf16 %v6873_v13, %v6872_v40  ;;  %12080 = vmatpush3.bf16.msra.mxu0 %v12565_v41  ;;  %v6850_v32 = vadd.f32 %v17012_v10, %v6849_v9  ;;  %v7311_v41 = vadd.f32 %v17066_v1, %v17023_v54  ;;  %v9063_v31 = vld [vmem:[%s18211_s5 + $0x80] sm:$0xff] }
 0x75b   :  { %v12008_v60 = vpop.f32.mrf.mxu0  ;;  %12081 = vmatprep.subr.bf16.mxu0 %v12566_v27  ;;  %v17072_v44 = vpop.f32.mrf.mxu1 }
 0x75c   :  { %v6861_v6 = vadd.f32 %v12008_v60, %v17012_v10  ;;  %12033 = vmatprep.mubr.bf16.mxu0 %v6884_v28  ;;  %v9061_v28 = vld [vmem:[%s18211_s5 + $0x70] sm:$0xff]  ;;  %v9064_v60 = vld [vmem:[%s18211_s5 + $0x88] sm:$0xff]  ;;  %v6876_v19 = vmax.f32 %v6850_v32, 0.0  ;;  %v7371_v61 = vmax.f32 %v7311_v41, 0.0  ;;  %v9066_v41 = vld [vmem:[%s18211_s5 + $0x98] sm:$0xff] }
 0x75d   :  { %v6852_v55 = vpop.f32.mrf.mxu0  ;;  %12034 = vmatmul.mubr.bf16.gmra.mxu0 %v6885_v23  ;;  %v17081_v12 = vpop.f32.mrf.mxu1  ;;  %9122 = vperm.xlu1 %12329, %v9061_v28   ;;  %v6878_v23 = vmax.f32 %v6858_v29, 0.0  ;;  %v12569_v32 = vld [vmem:[#allocation20 + $0x40] sm:$0xff]   ;;  %v7327_v29 = vadd.f32 %v17066_v1, %v17041_v39 }
 0x75e   :  { %v6853_v40 = vadd.f32 %v17012_v10, %v6852_v55  ;;  %12082 = vmatpush3.bf16.msra.mxu0 %v12566_v27  ;;  %v6879_v13 = vmax.f32 %v6861_v6, 0.0  ;;  %9131 = vperm.xlu0 %12328, %v9064_v60   ;;  %v7316_v27 = vadd.f32 %v17000_v30, %v17066_v1  ;;  %v7319_v6 = vadd.f32 %v17014_v26, %v17066_v1  ;;  %v9068_v60 = vld [vmem:[%s18211_s5 + $0xa8] sm:$0xff] }
 0x75f   :  { %12083 = vmatprep.subr.bf16.mxu0 %v12567_v43  ;;  %v17084_v9 = vpop.f32.mrf.mxu1 }
 0x760   :  { %v6877_v54 = vmax.f32 %v6853_v40, 0.0  ;;  %v6887_v10 = vpack.c.bf16 %v6879_v13, %v6878_v23  ;;  %v7372_v26 = vmax.f32 %v7316_v27, 0.0  ;;  %v7373_v40 = vmax.f32 %v7319_v6, 0.0  ;;  %v12570_v13 = vld [vmem:[#allocation20 + $0xb8] sm:$0xff]   ;;  %v9067_v27 = vld [vmem:[%s18211_s5 + $0xa0] sm:$0xff]  ;;  %v9070_v6 = vld [vmem:[%s18211_s5 + $0xb8] sm:$0xff] }
 0x761   :  { %v17088_v42 = vpop.f32.mrf.mxu1  ;;  %9128 = vperm.xlu1 %12329, %v9063_v31   ;;  %v7335_v23 = vadd.f32 %v17035_v62, %v17066_v1  ;;  %v7340_v31 = vadd.f32 %v17066_v1, %v17049_v58  ;;  %v9069_v58 = vld [vmem:[%s18211_s5 + $0xb0] sm:$0xff] }
 0x762   :  { %v6886_v18 = vpack.c.bf16 %v6877_v54, %v6876_v19  ;;  %12084 = vmatpush3.bf16.msra.mxu0 %v12567_v43  ;;  %v7324_v19 = vadd.f32 %v17066_v1, %v17032_v45  ;;  %v7386_v43 = vpack.c.bf16 %v7371_v61, %v7370_v37  ;;  %9137 = vperm.xlu0 %12328, %v9066_v41   ;;  %v9065_v45 = vld [vmem:[%s18211_s5 + $0x90] sm:$0xff]  ;;  %v7375_v37 = vmax.f32 %v7327_v29, 0.0 }
 0x763   :  { %12085 = vmatprep.subr.bf16.mxu0 %v12568_v34  ;;  %v17094_v55 = vpop.f32.mrf.mxu1  ;;  %v7387_v61 = vpack.c.bf16 %v7373_v40, %v7372_v26  ;;  %v9072_v26 = vld [vmem:[%s18211_s5 + $0xc8] sm:$0xff]  ;;  %v7378_v40 = vmax.f32 %v7340_v31, 0.0 }
 0x764   :  { %12037 = vmatprep.mubr.bf16.mxu0 %v6886_v18  ;;  %v7374_v54 = vmax.f32 %v7324_v19, 0.0  ;;  %v12571_v18 = vld [vmem:[#allocation20 + $0xb0] sm:$0xff]   ;;  %v7377_v19 = vmax.f32 %v7335_v23, 0.0  ;;  %v9074_v23 = vld [vmem:[%s18211_s5 + $0xd8] sm:$0xff] }
 0x765   :  { %12038 = vmatmul.mubr.bf16.gmra.mxu0 %v6887_v10  ;;  %v17102_v30 = vpop.f32.mrf.mxu1  ;;  %9134 = vperm.xlu1 %12329, %v9065_v45  }
 0x766   :  { %12086 = vmatpush3.bf16.msra.mxu0 %v12568_v34  ;;  %12089 = vmatprep.mubr.bf16.mxu0 %v7386_v43  ;;  %v7332_v34 = vadd.f32 %v17027_v46, %v17066_v1  ;;  %v7388_v41 = vpack.c.bf16 %v7375_v37, %v7374_v54  ;;  %v12572_v43 = vld [vmem:[#allocation20 + $0xa8] sm:$0xff]   ;;  %v7351_v54 = vadd.f32 %v17051_v59, %v17066_v1  ;;  %v12573_v37 = vld [vmem:[#allocation20 + $0xa0] sm:$0xff]   ;;  %v12574_v59 = vld [vmem:[#allocation20 + $0x98] sm:$0xff]  }
 0x767   :  { %12087 = vmatprep.subr.bf16.mxu0 %v12569_v32  ;;  %v17104_v28 = vpop.f32.mrf.mxu1  ;;  %9143 = vperm.xlu0 %12328, %v9068_v60  }
 0x768   :  { %v7376_v62 = vmax.f32 %v7332_v34, 0.0  ;;  %v9071_v34 = vld [vmem:[%s18211_s5 + $0xc0] sm:$0xff] }
 0x769   :  { %v17108_v39 = vpop.f32.mrf.mxu1  ;;  %9140 = vperm.xlu1 %12329, %v9067_v27  }
 0x76a   :  { %12088 = vmatpush3.bf16.msra.mxu0 %v12569_v32  ;;  %v7343_v32 = vadd.f32 %v17066_v1, %v17058_v3  ;;  %v7389_v60 = vpack.c.bf16 %v7377_v19, %v7376_v62  ;;  %v9076_v19 = vld [vmem:[%s18211_s5 + $0xe8] sm:$0xff] }
 0x76b   :  { %12137 = vmatprep.subr.bf16.mxu0 %v12570_v13  ;;  %v17114_v10 = vpop.f32.mrf.mxu1  ;;  %9149 = vperm.xlu0 %12328, %v9070_v6  }
 0x76c   :  { %v7379_v45 = vmax.f32 %v7343_v32, 0.0  ;;  %v17145_v32 = vld [vmem:[%s18215_s28 + $0x2] ss:$0 sm:$0xff] }
 0x76d   :  { %12090 = vmatmul.mubr.bf16.vlgmr.msra.gmra.mxu0 %v7387_v61  ;;  %v17122_v46 = vpop.f32.mrf.mxu1  ;;  %9146 = vperm.xlu1 %12329, %v9069_v58  }
 0x76e   :  { %12138 = vmatpush3.bf16.msra.mxu0 %v12570_v13  ;;  %12093 = vmatprep.mubr.bf16.mxu0 %v7388_v41  ;;  %v7348_v13 = vadd.f32 %v17045_v7, %v17066_v1  ;;  %v7390_v27 = vpack.c.bf16 %v7379_v45, %v7378_v40  ;;  %v7356_v7 = vadd.f32 %v17066_v1, %v17068_v24  ;;  %v7381_v41 = vmax.f32 %v7351_v54, 0.0 }
 0x76f   :  { %12139 = vmatprep.subr.bf16.mxu0 %v12571_v18  ;;  %v17124_v29 = vpop.f32.mrf.mxu1  ;;  %9155 = vperm.xlu0 %12328, %v9072_v26   ;;  %v7816_v24 = vadd.f32 %v17145_v32, %v17088_v42  ;;  %v7819_v40 = vadd.f32 %v17145_v32, %v17102_v30 }
 0x770   :  { %v7380_v31 = vmax.f32 %v7348_v13, 0.0  ;;  %v12575_v13 = vld [vmem:[#allocation20 + $0x90] sm:$0xff]  }
 0x771   :  { %v17128_v3 = vpop.f32.mrf.mxu1  ;;  %9152 = vperm.xlu1 %12329, %v9071_v34   ;;  %v9075_v34 = vld [vmem:[%s18211_s5 + $0xe0] sm:$0xff]  ;;  %v7878_v30 = vmax.f32 %v7816_v24, 0.0 }
 0x772   :  { %12140 = vmatpush3.bf16.msra.mxu0 %v12571_v18  ;;  %v7359_v18 = vadd.f32 %v17066_v1, %v17081_v12  ;;  %v9073_v12 = vld [vmem:[%s18211_s5 + $0xd0] sm:$0xff]  ;;  %v7391_v45 = vpack.c.bf16 %v7381_v41, %v7380_v31 }
 0x773   :  { %12141 = vmatprep.subr.bf16.mxu0 %v12572_v43  ;;  %v17134_v61 = vpop.f32.mrf.mxu1  ;;  %9161 = vperm.xlu0 %12328, %v9074_v23   ;;  %v9078_v23 = vld [vmem:[%s18211_s5 + $0xf8] sm:$0xff]  ;;  %v9077_v41 = vld [vmem:[%s18211_s5 + $0xf0] sm:$0xff] }
 0x774   :  { %v7383_v58 = vmax.f32 %v7359_v18, 0.0  ;;  %v7879_v18 = vmax.f32 %v7819_v40, 0.0  ;;  %v12577_v40 = vld [vmem:[#allocation20 + $0x80] sm:$0xff]  }
 0x775   :  { %12094 = vmatmul.mubr.bf16.gmra.mxu0 %v7389_v60  ;;  %v17140_v6 = vpop.f32.mrf.mxu1  ;;  %9158 = vperm.xlu1 %12329, %v9073_v12   ;;  %v7367_v60 = vadd.f32 %v17072_v44, %v17066_v1 }
 0x776   :  { %12142 = vmatpush3.bf16.msra.mxu0 %v12572_v43  ;;  %12097 = vmatprep.mubr.bf16.mxu0 %v7390_v27  ;;  %v7382_v43 = vmax.f32 %v7356_v7, 0.0  ;;  %v12576_v7 = vld [vmem:[#allocation20 + $0x88] sm:$0xff]  }
 0x777   :  { %12143 = vmatprep.subr.bf16.mxu0 %v12573_v37  ;;  %v17147_v62 = vpop.f32.mrf.mxu1  ;;  %9167 = vperm.xlu0 %12328, %v9076_v19   ;;  %v7385_v44 = vmax.f32 %v7367_v60, 0.0  ;;  %v7824_v19 = vadd.f32 %v17084_v9, %v17145_v32 }
 0x778   :  { %v7392_v27 = vpack.c.bf16 %v7383_v58, %v7382_v43  ;;  %v7894_v58 = vpack.c.bf16 %v7879_v18, %v7878_v30  ;;  %v7835_v43 = vadd.f32 %v17145_v32, %v17122_v46  ;;  %v7840_v46 = vadd.f32 %v17104_v28, %v17145_v32 }
 0x779   :  { %v17151_v26 = vpop.f32.mrf.mxu1  ;;  %9164 = vperm.xlu1 %12329, %v9075_v34   ;;  %v7880_v60 = vmax.f32 %v7824_v19, 0.0  ;;  %v7848_v18 = vadd.f32 %v17145_v32, %v17128_v3  ;;  %v7856_v3 = vadd.f32 %v17124_v29, %v17145_v32 }
 0x77a   :  { %12144 = vmatpush3.bf16.msra.mxu0 %v12573_v37  ;;  %v7364_v37 = vadd.f32 %v17061_v17, %v17066_v1  ;;  %v7827_v17 = vadd.f32 %v17094_v55, %v17145_v32 }
 0x77b   :  { %12145 = vmatprep.subr.bf16.mxu0 %v12574_v59  ;;  %v17159_v54 = vpop.f32.mrf.mxu1  ;;  %9173 = vperm.xlu0 %12328, %v9078_v23   ;;  %v12578_v23 = vld [vmem:[#allocation20 + $0xf8] sm:$0xff]   ;;  %v7886_v28 = vmax.f32 %v7848_v18, 0.0 }
 0x77c   :  { %v7384_v12 = vmax.f32 %v7364_v37, 0.0  ;;  %v7881_v9 = vmax.f32 %v7827_v17, 0.0  ;;  %v7843_v37 = vadd.f32 %v17114_v10, %v17145_v32  ;;  %v12587_v18 = vld [vmem:[#allocation23 + $0x38] sm:$0xff]  }
 0x77d   :  { %12098 = vmatmul.mubr.bf16.gmra.mxu0 %v7391_v45  ;;  %v7866_v42 = vpop.f32.mrf.mxu1  ;;  %9170 = vperm.xlu1 %12329, %v9077_v41   ;;  %v12579_v41 = vld [vmem:[#allocation20 + $0xf0] sm:$0xff]  }
 0x77e   :  { %12146 = vmatpush3.bf16.msra.mxu0 %v12574_v59  ;;  %12101 = vmatprep.mubr.bf16.mxu0 %v7392_v27  ;;  %v7832_v59 = vadd.f32 %v17145_v32, %v17108_v39  ;;  %v7393_v24 = vpack.c.bf16 %v7385_v44, %v7384_v12  ;;  %v7895_v27 = vpack.c.bf16 %v7881_v9, %v7880_v60  ;;  %v7884_v12 = vmax.f32 %v7840_v46, 0.0  ;;  %v12581_v9 = vld [vmem:[#allocation20 + $0xe0] sm:$0xff]   ;;  %v17204_v46 = vld [vmem:[%s18215_s28 + $0x3] ss:$0 sm:$0xff] }
 0x77f   :  { %12147 = vmatprep.subr.bf16.mxu0 %v12575_v13  ;;  %v17165_v31 = vpop.f32.mrf.mxu1  ;;  %v7885_v19 = vmax.f32 %v7843_v37, 0.0  ;;  %v7867_v60 = vadd.f32 %v17145_v32, %v7866_v42 }
 0x780   :  { %v7882_v55 = vmax.f32 %v7832_v59, 0.0  ;;  %v12580_v59 = vld [vmem:[#allocation20 + $0xe8] sm:$0xff]  }
 0x781   :  { %v17172_v1 = vpop.f32.mrf.mxu1 }
 0x782   :  { %12148 = vmatpush3.bf16.msra.mxu0 %v12575_v13  ;;  %v7883_v13 = vmax.f32 %v7835_v43, 0.0 }
 0x783   :  { %12149 = vmatprep.subr.bf16.mxu0 %v12576_v7  ;;  %v17178_v45 = vpop.f32.mrf.mxu1 }
 0x784   :  { %v7896_v44 = vpack.c.bf16 %v7883_v13, %v7882_v55  ;;  %v7888_v13 = vmax.f32 %v7856_v3, 0.0 }
 0x785   :  { %12102 = vmatmul.mubr.bf16.gmra.mxu0 %v7393_v24  ;;  %v8326_v34 = vpop.f32.mrf.mxu1  ;;  %v7864_v24 = vadd.f32 %v17145_v32, %v17151_v26  ;;  %v12586_v26 = vld [vmem:[#allocation23 + $0x78] sm:$0xff]  }
 0x786   :  { %12150 = vmatpush3.bf16.msra.mxu0 %v12576_v7  ;;  %12153 = vmatprep.mubr.bf16.mxu0 %v7894_v58  ;;  %v7851_v7 = vadd.f32 %v17145_v32, %v17140_v6  ;;  %v7897_v58 = vpack.c.bf16 %v7885_v19, %v7884_v12  ;;  %v7859_v6 = vadd.f32 %v17134_v61, %v17145_v32  ;;  %v7891_v61 = vmax.f32 %v7867_v60, 0.0 }
 0x787   :  { %12151 = vmatprep.subr.bf16.mxu0 %v12577_v40  ;;  %v17180_v39 = vpop.f32.mrf.mxu1  ;;  %v7890_v29 = vmax.f32 %v7864_v24, 0.0  ;;  %11205 = vmatprep.subr.bf16.mxu1 %v12586_v26  ;;  %v8327_v19 = vadd.f32 %v17204_v46, %v8326_v34  ;;  %v12590_v34 = vld [vmem:[#allocation23 + $0x68] sm:$0xff]   ;;  %v8332_v60 = vadd.f32 %v17165_v31, %v17204_v46  ;;  %v12592_v26 = vld [vmem:[#allocation23 + $0x60] sm:$0xff]  }
 0x788   :  { %v7887_v10 = vmax.f32 %v7851_v7, 0.0  ;;  %v7875_v7 = vadd.f32 %v17159_v54, %v17145_v32  ;;  %11206 = vmatpush3.bf16.msra.mxu1 %v12587_v18  ;;  %v12591_v24 = vld [vmem:[#allocation23 + $0x28] sm:$0xff]   ;;  %v12593_v18 = vld [vmem:[#allocation23 + $0x20] sm:$0xff]  }
 0x789   :  { %v17186_v30 = vpop.f32.mrf.mxu1  ;;  %v7900_v12 = vpack.c.bf16 %v7891_v61, %v7890_v29  ;;  %v8387_v54 = vmax.f32 %v8327_v19, 0.0  ;;  %v12585_v61 = vld [vmem:[#allocation20 + $0xc0] sm:$0xff]  }
 0x78a   :  { %12152 = vmatpush3.bf16.msra.mxu0 %v12577_v40  ;;  %v7898_v40 = vpack.c.bf16 %v7887_v10, %v7886_v28  ;;  %v12583_v28 = vld [vmem:[#allocation20 + $0xd0] sm:$0xff]  }
 0x78b   :  { %12201 = vmatprep.subr.bf16.mxu0 %v12578_v23  ;;  %v17192_v17 = vpop.f32.mrf.mxu1 }
 0x78c   :  { %v8351_v19 = vadd.f32 %v17192_v17, %v17204_v46 }
 0x78d   :  { %12154 = vmatmul.mubr.bf16.vlgmr.msra.gmra.mxu0 %v7895_v27  ;;  %v8342_v43 = vpop.f32.mrf.mxu1  ;;  %v12582_v27 = vld [vmem:[#allocation20 + $0xd8] sm:$0xff]  }
 0x78e   :  { %12202 = vmatpush3.bf16.msra.mxu0 %v12578_v23  ;;  %12157 = vmatprep.mubr.bf16.mxu0 %v7896_v44  ;;  %v7889_v23 = vmax.f32 %v7859_v6, 0.0  ;;  %v7872_v44 = vadd.f32 %v17147_v62, %v17145_v32  ;;  %v7893_v62 = vmax.f32 %v7875_v7, 0.0  ;;  %v8343_v29 = vadd.f32 %v17204_v46, %v8342_v43 }
 0x78f   :  { %12203 = vmatprep.subr.bf16.mxu0 %v12579_v41  ;;  %v17201_v55 = vpop.f32.mrf.mxu1 }
 0x790   :  { %v7899_v42 = vpack.c.bf16 %v7889_v23, %v7888_v13  ;;  %v7892_v3 = vmax.f32 %v7872_v44, 0.0  ;;  %v8340_v23 = vadd.f32 %v17204_v46, %v17186_v30  ;;  %v12594_v30 = vld [vmem:[#allocation23 + $0x58] sm:$0xff]  }
 0x791   :  { %v17206_v37 = vpop.f32.mrf.mxu1 }
 0x792   :  { %12204 = vmatpush3.bf16.msra.mxu0 %v12579_v41  ;;  %v8324_v41 = vadd.f32 %v17204_v46, %v17172_v1  ;;  %v12584_v1 = vld [vmem:[#allocation20 + $0xc8] sm:$0xff]   ;;  %v8390_v31 = vmax.f32 %v8340_v23, 0.0 }
 0x793   :  { %12205 = vmatprep.subr.bf16.mxu0 %v12580_v59  ;;  %v17215_v10 = vpop.f32.mrf.mxu1 }
 0x794   :  { %v8386_v32 = vmax.f32 %v8324_v41, 0.0  ;;  %v12595_v41 = vld [vmem:[#allocation23 + $0x18] sm:$0xff]  }
 0x795   :  { %12158 = vmatmul.mubr.bf16.gmra.mxu0 %v7897_v58  ;;  %v12589_v58 = vld [vmem:[#allocation23 + $0x30] sm:$0xff]   ;;  %v8358_v6 = vpop.f32.mrf.mxu1 }
 0x796   :  { %12206 = vmatpush3.bf16.msra.mxu0 %v12580_v59  ;;  %12161 = vmatprep.mubr.bf16.mxu0 %v7898_v40  ;;  %v12588_v59 = vld [vmem:[#allocation23 + $0x70] sm:$0xff]   ;;  %v7901_v40 = vpack.c.bf16 %v7893_v62, %v7892_v3  ;;  %v8402_v13 = vpack.c.bf16 %v8387_v54, %v8386_v32 }
 0x797   :  { %12207 = vmatprep.subr.bf16.mxu0 %v12581_v9  ;;  %11207 = vmatprep.subr.bf16.mxu1 %v12588_v59  ;;  %v8356_v59 = vadd.f32 %v17204_v46, %v17206_v37  ;;  %v12596_v62 = vld [vmem:[#allocation23 + $0x50] sm:$0xff]   ;;  %v8364_v37 = vadd.f32 %v17201_v55, %v17204_v46  ;;  %v18220_v55 = vmov 0.0  }
 0x798   :  { %11208 = vmatpush3.bf16.msra.mxu1 %v12589_v58  ;;  %v8359_v58 = vadd.f32 %v17204_v46, %v8358_v6  ;;  %v12597_v32 = vld [vmem:[#allocation23 + $0x10] sm:$0xff]   ;;  %v8367_v6 = vadd.f32 %v17215_v10, %v17204_v46 }
 0x799   :  { %11209 = vmatprep.subr.bf16.mxu1 %v12590_v34 }
 0x79a   :  { %12208 = vmatpush3.bf16.msra.mxu0 %v12581_v9  ;;  %v8335_v9 = vadd.f32 %v17178_v45, %v17204_v46  ;;  %v8391_v45 = vmax.f32 %v8343_v29, 0.0  ;;  %v8395_v34 = vmax.f32 %v8359_v58, 0.0  ;;  %v12600_v29 = vld [vmem:[#allocation23 + $0x40] sm:$0xff]   ;;  %v12606_v58 = vld [vmem:[#allocation23 + $0xe8] sm:$0xff]  }
 0x79b   :  { %12209 = vmatprep.subr.bf16.mxu0 %v12582_v27 }
 0x79c   :  { %11210 = vmatpush3.bf16.msra.mxu1 %v12591_v24  ;;  %v8389_v44 = vmax.f32 %v8335_v9, 0.0  ;;  %v12598_v24 = vld [vmem:[#allocation23 + $0x48] sm:$0xff]  }
 0x79d   :  { %12162 = vmatmul.mubr.bf16.gmra.mxu0 %v7899_v42  ;;  %v8388_v42 = vmax.f32 %v8332_v60, 0.0  ;;  %11211 = vmatprep.subr.bf16.mxu1 %v12592_v26  ;;  %v8396_v26 = vmax.f32 %v8364_v37, 0.0 }
 0x79e   :  { %12210 = vmatpush3.bf16.msra.mxu0 %v12582_v27  ;;  %12165 = vmatprep.mubr.bf16.mxu0 %v7900_v12  ;;  %v12199_v27 = vpop.f32.mrf.mxu1  ;;  %v8348_v12 = vadd.f32 %v17180_v39, %v17204_v46  ;;  %v8394_v39 = vmax.f32 %v8356_v59, 0.0  ;;  %v12605_v59 = vld [vmem:[#allocation23 + $0xb0] sm:$0xff]  }
 0x79f   :  { %12211 = vmatprep.subr.bf16.mxu0 %v12583_v28  ;;  %v8403_v43 = vpack.c.bf16 %v8389_v44, %v8388_v42 }
 0x7a0   :  { %v8371_v7 = vpop.f32.mrf.mxu1  ;;  %11212 = vmatpush3.bf16.msra.mxu1 %v12593_v18  ;;  %v8392_v54 = vmax.f32 %v8348_v12, 0.0  ;;  %v8406_v9 = vpack.c.bf16 %v8395_v34, %v8394_v39  ;;  %v8397_v18 = vmax.f32 %v8367_v6, 0.0  ;;  %v12602_v12 = vld [vmem:[#allocation23 + $0xf8] sm:$0xff]   ;;  %v12614_v39 = vld [vmem:[#allocation23 + $0xc8] sm:$0xff]  }
 0x7a1   :  { %11213 = vmatprep.subr.bf16.mxu1 %v12594_v30  ;;  %v12615_v34 = vld [vmem:[#allocation23 + $0x88] sm:$0xff]  }
 0x7a2   :  { %12212 = vmatpush3.bf16.msra.mxu0 %v12583_v28  ;;  %v8404_v28 = vpack.c.bf16 %v8391_v45, %v8390_v31  ;;  %v12200_v3 = vpop.f32.mrf.mxu1  ;;  %v8407_v10 = vpack.c.bf16 %v8397_v18, %v8396_v26  ;;  %v8380_v31 = vadd.f32 %v12199_v27, %v17204_v46  ;;  %v12609_v27 = vld [vmem:[#allocation23 + $0xa0] sm:$0xff]  }
 0x7a3   :  { %12213 = vmatprep.subr.bf16.mxu0 %v12584_v1  ;;  %v8383_v45 = vadd.f32 %v12200_v3, %v17204_v46  ;;  %v12610_v3 = vld [vmem:[#allocation23 + $0xd8] sm:$0xff]  }
 0x7a4   :  { %11214 = vmatpush3.bf16.msra.mxu1 %v12595_v41  ;;  %v8374_v17 = vpop.f32.mrf.mxu1  ;;  %v8400_v30 = vmax.f32 %v8380_v31, 0.0  ;;  %v17254_v31 = vld [vmem:[#allocation22] ss:$0 sm:$0xff] }
 0x7a5   :  { %12166 = vmatmul.mubr.bf16.gmra.mxu0 %v7901_v40  ;;  %11215 = vmatprep.subr.bf16.mxu1 %v12596_v62  ;;  %v12599_v40 = vld [vmem:[#allocation23 + $0x8] sm:$0xff]   ;;  %v8375_v23 = vadd.f32 %v17204_v46, %v8374_v17  ;;  %v8401_v41 = vmax.f32 %v8383_v45, 0.0  ;;  %v12616_v17 = vld [vmem:[#allocation23 + $0xc0] sm:$0xff]  }
 0x7a6   :  { %12214 = vmatpush3.bf16.msra.mxu0 %v12584_v1  ;;  %12217 = vmatprep.mubr.bf16.mxu0 %v8402_v13  ;;  %v8393_v1 = vmax.f32 %v8351_v19, 0.0  ;;  %v8372_v13 = vadd.f32 %v17204_v46, %v8371_v7  ;;  %v12603_v19 = vld [vmem:[#allocation23 + $0xb8] sm:$0xff]   ;;  %v12607_v62 = vld [vmem:[#allocation23 + $0xa8] sm:$0xff]   ;;  %v12608_v46 = vld [vmem:[#allocation23 + $0xe0] sm:$0xff]  }
 0x7a7   :  { %12215 = vmatprep.subr.bf16.mxu0 %v12585_v61  ;;  %v8399_v44 = vmax.f32 %v8375_v23, 0.0 }
 0x7a8   :  { %11216 = vmatpush3.bf16.msra.mxu1 %v12597_v32  ;;  %v8405_v60 = vpack.c.bf16 %v8393_v1, %v8392_v54  ;;  %v8398_v42 = vmax.f32 %v8372_v13, 0.0  ;;  %v12611_v32 = vld [vmem:[#allocation23 + $0x98] sm:$0xff]   ;;  %v12612_v54 = vld [vmem:[#allocation23 + $0xd0] sm:$0xff]  }
 0x7a9   :  { %11217 = vmatprep.subr.bf16.mxu1 %v12598_v24  ;;  %v12613_v1 = vld [vmem:[#allocation23 + $0x90] sm:$0xff]   ;;  %v12617_v24 = vld [vmem:[#allocation23 + $0x80] sm:$0xff]  }
 0x7aa   :  { %12216 = vmatpush3.bf16.msra.mxu0 %v12585_v61  ;;  %v12601_v61 = vld [vmem:[#allocation23] sm:$0xff]   ;;  %v8408_v7 = vpack.c.bf16 %v8399_v44, %v8398_v42 }
 0x7ab   :  { %11269 = vmatprep.subr.bf16.mxu0 %v12602_v12 }
 0x7ac   :  { %11218 = vmatpush3.bf16.msra.mxu1 %v12599_v40 }
 0x7ad   :  { %12218 = vmatmul.mubr.bf16.vlgmr.msra.gmra.mxu0 %v8403_v43  ;;  %11219 = vmatprep.subr.bf16.mxu1 %v12600_v29  ;;  %v8409_v43 = vpack.c.bf16 %v8401_v41, %v8400_v30 }
 0x7ae   :  { %12221 = vmatprep.mubr.bf16.mxu0 %v8404_v28  ;;  %11270 = vmatpush3.bf16.msra.mxu0 %v12603_v19  ;;  %v12604_v28 = vld [vmem:[#allocation23 + $0xf0] sm:$0xff]  }
 0x7af   :  { %11271 = vmatprep.subr.bf16.mxu0 %v12604_v28 }
 0x7b0   :  { %11220 = vmatpush3.bf16.msra.mxu1 %v12601_v61 }
 0x7b1   :  { %9367 = vmatprep.subr.mxu1 %v18220_v55 }
 0x7b2   :  { %11272 = vmatpush3.bf16.msra.mxu0 %v12605_v59 }
 0x7b3   :  { %11273 = vmatprep.subr.bf16.mxu0 %v12606_v58  ;;  %v17267_v58 = vld [vmem:[#allocation22 + $0x1] ss:$0 sm:$0xff] }
 0x7b5   :  { %12222 = vmatmul.mubr.bf16.gmra.mxu0 %v8405_v60 }
 0x7b6   :  { %12225 = vmatprep.mubr.bf16.mxu0 %v8406_v9  ;;  %11274 = vmatpush3.bf16.msra.mxu0 %v12607_v62 }
 0x7b7   :  { %11275 = vmatprep.subr.bf16.mxu0 %v12608_v46 }
 0x7ba   :  { %11276 = vmatpush3.bf16.msra.mxu0 %v12609_v27 }
 0x7bb   :  { %11277 = vmatprep.subr.bf16.mxu0 %v12610_v3 }
 0x7bd   :  { %12226 = vmatmul.mubr.bf16.gmra.mxu0 %v8407_v10 }
 0x7be   :  { %12229 = vmatprep.mubr.bf16.mxu0 %v8408_v7  ;;  %11278 = vmatpush3.bf16.msra.mxu0 %v12611_v32 }
 0x7bf   :  { %11279 = vmatprep.subr.bf16.mxu0 %v12612_v54 }
 0x7c2   :  { %11280 = vmatpush3.bf16.msra.mxu0 %v12613_v1 }
 0x7c3   :  { %11281 = vmatprep.subr.bf16.mxu0 %v12614_v39 }
 0x7c5   :  { %12230 = vmatmul.mubr.bf16.gmra.mxu0 %v8409_v43 }
 0x7c6   :  { %11282 = vmatpush3.bf16.msra.mxu0 %v12615_v34 }
 0x7c7   :  { %11283 = vmatprep.subr.bf16.mxu0 %v12616_v17 }
 0x7ca   :  { %11284 = vmatpush3.bf16.msra.mxu0 %v12617_v24 }
 0x80d   :  { %v12027_v40 = vpop.f32.mrf.mxu0 }
 0x80f   :  { %v6993_v60 = vpop.f32.mrf.mxu0 }
 0x810   :  { %v6994_v32 = vadd.f32 %v17254_v31, %v6993_v60 }
 0x811   :  { %v12028_v37 = vpop.f32.mrf.mxu0 }
 0x813   :  { %v6996_v6 = vpop.f32.mrf.mxu0 }
 0x814   :  { %v6997_v59 = vadd.f32 %v17254_v31, %v6996_v6 }
 0x815   :  { %v17240_v9 = vpop.f32.mrf.mxu0 }
 0x816   :  { %v7056_v34 = vpack.c.bf16 %v6997_v59, %v6994_v32  ;;  %v18221_v32 = vld [vmem:[#allocation72_spill] sm:$0xff] }
 0x817   :  { %v7009_v13 = vpop.f32.mrf.mxu0 }
 0x819   :  { %v17242_v23 = vpop.f32.mrf.mxu0 }
 0x81b   :  { %v7012_v29 = vpop.f32.mrf.mxu0 }
 0x81d   :  { %v17244_v61 = vpop.f32.mrf.mxu0 }
 0x81f   :  { %v17246_v26 = vpop.f32.mrf.mxu0 }
 0x821   :  { %v17248_v18 = vpop.f32.mrf.mxu0 }
 0x823   :  { %v17250_v42 = vpop.f32.mrf.mxu0 }
 0x825   :  { %v12039_v44 = vpop.f32.mrf.mxu0 }
 0x826   :  { %v17257_v7 = vadd.f32 %v12039_v44, %v17254_v31  ;;  %v7005_v44 = vadd.f32 %v12028_v37, %v17254_v31 }
 0x827   :  { %v17252_v10 = vpop.f32.mrf.mxu0 }
 0x829   :  { %v12040_v45 = vpop.f32.mrf.mxu0 }
 0x82a   :  { %v17260_v30 = vadd.f32 %v12040_v45, %v17254_v31 }
 0x82b   :  { %v17262_v41 = vpop.f32.mrf.mxu0 }
 0x82c   :  { %v7063_v43 = vpack.c.bf16 %v17260_v30, %v17257_v7 }
 0x82d   :  { %v12091_v12 = vpop.f32.mrf.mxu0 }
 0x82e   :  { %v7510_v1 = vadd.f32 %v12091_v12, %v17267_v58  ;;  %v7002_v12 = vadd.f32 %v12027_v40, %v17254_v31  ;;  %v7013_v40 = vadd.f32 %v17254_v31, %v7012_v29 }
 0x82f   :  { %v7501_v19 = vpop.f32.mrf.mxu0 }
 0x830   :  { %v7502_v46 = vadd.f32 %v17267_v58, %v7501_v19 }
 0x831   :  { %v12092_v28 = vpop.f32.mrf.mxu0 }
 0x832   :  { %v7513_v27 = vadd.f32 %v12092_v28, %v17267_v58 }
 0x833   :  { %v7504_v62 = vpop.f32.mrf.mxu0 }
 0x834   :  { %v7505_v3 = vadd.f32 %v17267_v58, %v7504_v62  ;;  %v7565_v24 = vpack.c.bf16 %v7513_v27, %v7510_v1 }
 0x835   :  { %v12095_v54 = vpop.f32.mrf.mxu0 }
 0x836   :  { %v7564_v39 = vpack.c.bf16 %v7505_v3, %v7502_v46  ;;  %v7010_v46 = vadd.f32 %v17254_v31, %v7009_v13  ;;  %v7526_v27 = vadd.f32 %v12095_v54, %v17267_v58  ;;  %v12709_v13 = vld [vmem:[#allocation8 + $0x1] ss:$0 sm:$0xff] }
 0x837   :  { %v7517_v17 = vpop.f32.mrf.mxu0  ;;  %v1324_v1 = vadd.f32 %v12709_v13, %v18221_v32 }
 0x838   :  { %8818 = vmatprep.mubr.bf16.mxu1 %v7564_v39  ;;  %v7518_v28 = vadd.f32 %v17267_v58, %v7517_v17  ;;  %v18222_v39 = vld [vmem:[#allocation131_spill] sm:$0xff]  ;;  %v7018_v17 = vadd.f32 %v17240_v9, %v17254_v31  ;;  %v18223_v9 = vld [vmem:[#allocation120_spill] sm:$0xff] }
 0x839   :  { %v12096_v6 = vpop.f32.mrf.mxu0  ;;  %8819 = vmatmul.mubr.bf16.vlgmr.msra.gmra.mxu1 %v7056_v34 }
 0x83a   :  { %9368 = vmatpush1.msra.mxu1 %v16888_v56  ;;  %8826 = vmatprep.mubr.bf16.mxu1 %v7565_v24  ;;  %v7057_v56 = vpack.c.bf16 %v7005_v44, %v7002_v12  ;;  %v1448_v24 = vmax.f32 %v1324_v1, 0.0  ;;  %v17391_v1 = vld [vmem:[#allocation22 + $0x2] ss:$0 sm:$0xff] }
 0x83b   :  { %9369 = vmatprep.subr.mxu1 %v18220_v55  ;;  %v7520_v45 = vpop.f32.mrf.mxu0 }
 0x83c   :  { %v7521_v60 = vadd.f32 %v17267_v58, %v7520_v45  ;;  %9370 = vmatpush1.msra.mxu1 %v16871_v11 }
 0x83d   :  { %9371 = vmatprep.subr.mxu1 %v18220_v55  ;;  %v17281_v19 = vpop.f32.mrf.mxu0 }
 0x83e   :  { %9372 = vmatpush1.msra.mxu1 %v16897_v35  ;;  %v7566_v59 = vpack.c.bf16 %v7521_v60, %v7518_v28  ;;  %v7529_v35 = vadd.f32 %v12096_v6, %v17267_v58  ;;  %v18224_v60 = vmax.f32 %v18223_v9, 0.0 }
 0x83f   :  { %9373 = vmatprep.subr.mxu1 %v18220_v55  ;;  %v7533_v37 = vpop.f32.mrf.mxu0 }
 0x840   :  { %9374 = vmatpush1.msra.mxu1 %v16879_v5  ;;  %v7567_v3 = vpack.c.bf16 %v7529_v35, %v7526_v27  ;;  %v1480_v12 = vadd.f32 %v1448_v24, %v18224_v60  ;;  %v18228_v60 = vld [vmem:[#allocation136_spill] sm:$0xff] }
 0x841   :  { %9375 = vmatprep.subr.mxu1 %v18220_v55  ;;  %v12100_v11 = vpop.f32.mrf.mxu0  ;;  %8827 = vmatmul.mubr.bf16.gmra.mxu1 %v7057_v56 }
 0x842   :  { %9376 = vmatpush1.msra.mxu1 %v16853_v33  ;;  %8834 = vmatprep.mubr.bf16.mxu1 %v7566_v59  ;;  %v7058_v33 = vpack.c.bf16 %v7013_v40, %v7010_v46  ;;  %v7034_v46 = vadd.f32 %v17244_v61, %v17254_v31  ;;  %v7045_v61 = vadd.f32 %v17254_v31, %v17262_v41 }
 0x843   :  { %9377 = vmatprep.subr.mxu1 %v18220_v55  ;;  %v7536_v62 = vpop.f32.mrf.mxu0 }
 0x844   :  { %9378 = vmatpush1.msra.mxu1 %v16834_v38  ;;  %v7537_v34 = vadd.f32 %v17267_v58, %v7536_v62 }
 0x845   :  { %9379 = vmatprep.subr.mxu1 %v18220_v55  ;;  %v17295_v5 = vpop.f32.mrf.mxu0 }
 0x846   :  { %9380 = vmatpush1.msra.mxu1 %v16864_v36  ;;  %v7021_v36 = vadd.f32 %v17242_v23, %v17254_v31  ;;  %v7534_v23 = vadd.f32 %v17267_v58, %v7533_v37  ;;  %v7026_v37 = vadd.f32 %v17254_v31, %v17246_v26  ;;  %v7037_v26 = vadd.f32 %v17248_v18, %v17254_v31 }
 0x847   :  { %9381 = vmatprep.subr.mxu1 %v18220_v55  ;;  %v17300_v29 = vpop.f32.mrf.mxu0  ;;  %v7558_v32 = vadd.f32 %v17295_v5, %v17267_v58 }
 0x848   :  { %9382 = vmatpush1.msra.mxu1 %v16844_v22  ;;  %v6310_v22 = vadd.f32 %v16772_v8, %v18222_v39  ;;  %v7059_v6 = vpack.c.bf16 %v7021_v36, %v7018_v17  ;;  %v7568_v45 = vpack.c.bf16 %v7537_v34, %v7534_v23  ;;  %v7061_v18 = vpack.c.bf16 %v7037_v26, %v7034_v46  ;;  %v9081_v39 = vpop.permute.xlu0 %9080 }
 0x849   :  { %9383 = vmatprep.subr.mxu1 %v18220_v55  ;;  %v17304_v38 = vpop.f32.mrf.mxu0  ;;  %8835 = vmatmul.mubr.bf16.gmra.mxu1 %v7058_v33 }
 0x84a   :  { %9384 = vmatpush1.msra.mxu1 %v16816_v14  ;;  %8842 = vmatprep.mubr.bf16.mxu1 %v7567_v3  ;;  %v6434_v44 = vmax.f32 %v6310_v22, 0.0  ;;  %v7561_v13 = vadd.f32 %v17304_v38, %v17267_v58 }
 0x84b   :  { %9385 = vmatprep.subr.mxu1 %v18220_v55  ;;  %v7552_v54 = vpop.f32.mrf.mxu0 }
 0x84c   :  { %9386 = vmatpush1.msra.mxu1 %v16797_v4  ;;  %v9013_v56 = vadd.f32 %v6434_v44, %v1480_v12  ;;  %v7553_v35 = vadd.f32 %v17267_v58, %v7552_v54  ;;  %v9084_v12 = vpop.permute.xlu1 %9083  ;;  %v9090_v46 = vpop.permute.xlu0 %9089 }
 0x84d   :  { %9387 = vmatprep.subr.mxu1 %v18220_v55  ;;  %v17318_v14 = vpop.f32.mrf.mxu0 }
 0x84e   :  { %9388 = vmatpush1.msra.mxu1 %v16827_v47  ;;  %v7029_v47 = vadd.f32 %v17254_v31, %v17250_v42 }
 0x84f   :  { %9389 = vmatprep.subr.mxu1 %v18220_v55  ;;  %v17323_v8 = vpop.f32.mrf.mxu0 }
 0x850   :  { %9390 = vmatpush1.msra.mxu1 %v16807_v50  ;;  %v7545_v50 = vadd.f32 %v12100_v11, %v17267_v58  ;;  %v7060_v42 = vpack.c.bf16 %v7029_v47, %v7026_v37  ;;  %v18225_v11 = vld [vmem:[#allocation132_spill] sm:$0xff]  ;;  %v8010_v34 = vadd.f32 %v17391_v1, %v17323_v8 }
 0x851   :  { %9391 = vmatprep.subr.mxu1 %v18220_v55  ;;  %v17327_v4 = vpop.f32.mrf.mxu0  ;;  %8843 = vmatmul.mubr.bf16.gmra.mxu1 %v7059_v6  ;;  %v13148_v6 = vmov 1.0  }
 0x852   :  { %9392 = vmatpush1.msra.mxu1 %v16779_v20  ;;  %8850 = vmatprep.mubr.bf16.mxu1 %v7568_v45  ;;  %v7542_v20 = vadd.f32 %v17281_v19, %v17267_v58  ;;  %v18227_v45 = vld [vmem:[#allocation130_spill] sm:$0xff]  ;;  %v8021_v37 = vadd.f32 %v17327_v4, %v17391_v1 }
 0x853   :  { %9393 = vmatprep.subr.mxu1 %v18220_v55  ;;  %v17335_v28 = vpop.f32.mrf.mxu0 }
 0x854   :  { %9394 = vmatpush1.msra.mxu1 %v16763_v25  ;;  %v7569_v62 = vpack.c.bf16 %v7545_v50, %v7542_v20 }
 0x855   :  { %9395 = vmatprep.subr.mxu1 %v18220_v55  ;;  %v17342_v59 = vpop.f32.mrf.mxu0 }
 0x856   :  { %9396 = vmatpush1.msra.mxu1 %v9013_v56 }
 0x857   :  { %9397 = vmatprep.subr.mxu1 %v18220_v55  ;;  %v17347_v40 = vpop.f32.mrf.mxu0 }
 0x858   :  { %9398 = vmatpush1.msra.mxu1 %v18225_v11 }
 0x859   :  { %9399 = vmatprep.subr.mxu1 %v18220_v55  ;;  %v17351_v25 = vpop.f32.mrf.mxu0  ;;  %8851 = vmatmul.mubr.bf16.gmra.mxu1 %v7060_v42  ;;  %v9087_v42 = vpop.permute.xlu1 %9086 }
 0x85a   :  { %9400 = vmatpush2.msra.mxu1 %v17030_v48  ;;  %8858 = vmatprep.mubr.bf16.mxu1 %v7569_v62  ;;  %v7550_v48 = vadd.f32 %v17267_v58, %v17300_v29  ;;  %v9044_v29 = vlaneseq }
 0x85b   :  { %9401 = vmatprep.subr.mxu1 %v18220_v55  ;;  %v17357_v19 = vpop.f32.mrf.mxu0 }
 0x85c   :  { %9402 = vmatpush2.msra.mxu1 %v17007_v15  ;;  %v7570_v3 = vpack.c.bf16 %v7553_v35, %v7550_v48  ;;  %v17396_v38 = vand.u32 127, %v9044_v29 }
 0x85d   :  { %9403 = vmatprep.subr.mxu1 %v18220_v55  ;;  %v17364_v27 = vpop.f32.mrf.mxu0 }
 0x85e   :  { %9404 = vmatpush2.msra.mxu1 %v17009_v52  ;;  %v17411_v5 = vadd.s32 128, %v17396_v38  ;;  %vm9175_vm2 = vcmp.eq.s32.totalorder %v17396_v38, %v9081_v39  ;;  %vm9177_vm4 = vcmp.eq.s32.totalorder %v17396_v38, %v9084_v12  ;;  %vm9179_vm6 = vcmp.eq.s32.totalorder %v17396_v38, %v9087_v42 }
 0x85f   :  { %9405 = vmatprep.subr.mxu1 %v18220_v55  ;;  %v17370_v33 = vpop.f32.mrf.mxu0  ;;  %vm9181_vm8 = vcmp.eq.s32.totalorder %v17396_v38, %v9090_v46 }
 0x860   :  { %9406 = vmatpush2.msra.mxu1 %v16996_v49  ;;  %v7042_v49 = vadd.f32 %v17254_v31, %v17252_v10  ;;  %vm9176_vm1 = vcmp.eq.s32.totalorder %v17411_v5, %v9081_v39  ;;  %vm9178_vm3 = vcmp.eq.s32.totalorder %v17411_v5, %v9084_v12  ;;  %vm9180_vm5 = vcmp.eq.s32.totalorder %v17411_v5, %v9087_v42 }
 0x861   :  { %9407 = vmatprep.subr.mxu1 %v18220_v55  ;;  %v17374_v15 = vpop.f32.mrf.mxu0  ;;  %8859 = vmatmul.mubr.bf16.gmra.mxu1 %v7061_v18  ;;  %vm9182_vm7 = vcmp.eq.s32.totalorder %v17411_v5, %v9090_v46  ;;  %v8026_v18 = vadd.f32 %v17391_v1, %v17347_v40 }
 0x862   :  { %9408 = vmatpush2.msra.mxu1 %v16983_v16  ;;  %8866 = vmatprep.mubr.bf16.mxu1 %v7570_v3  ;;  %v7062_v41 = vpack.c.bf16 %v7045_v61, %v7042_v49  ;;  %v8029_v3 = vadd.f32 %v17391_v1, %v17357_v19  ;;  %v9093_v61 = vpop.permute.xlu1 %9092 }
 0x863   :  { %9409 = vmatprep.subr.mxu1 %v18220_v55  ;;  %v17380_v52 = vpop.f32.mrf.mxu0  ;;  %vm9184_vm9 = vcmp.eq.s32.totalorder %v17411_v5, %v9093_v61  ;;  %vm9183_vm10 = vcmp.eq.s32.totalorder %v17396_v38, %v9093_v61 }
 0x864   :  { %9410 = vmatpush2.msra.mxu1 %v16969_v2  ;;  %v7571_v2 = vpack.c.bf16 %v7561_v13, %v7558_v32  ;;  %v8074_v49 = vpack.c.bf16 %v8029_v3, %v8026_v18 }
 0x865   :  { %9411 = vmatprep.subr.mxu1 %v18220_v55  ;;  %v12167_v16 = vpop.f32.mrf.mxu0 }
 0x866   :  { %9412 = vmatpush2.msra.mxu1 %v16989_v21  ;;  %v17399_v10 = vadd.f32 %v12167_v16, %v17391_v1  ;;  %v9096_v16 = vpop.permute.xlu0 %9095 }
 0x867   :  { %9413 = vmatprep.subr.mxu1 %v18220_v55  ;;  %v17394_v36 = vpop.f32.mrf.mxu0  ;;  %vm9186_vm11 = vcmp.eq.s32.totalorder %v17411_v5, %v9096_v16  ;;  %vm9185_vm12 = vcmp.eq.s32.totalorder %v17396_v38, %v9096_v16 }
 0x868   :  { %9414 = vmatpush2.msra.mxu1 %v16974_v57 }
 0x869   :  { %9415 = vmatprep.subr.mxu1 %v18220_v55  ;;  %v12168_v31 = vpop.f32.mrf.mxu0  ;;  %8867 = vmatmul.mubr.bf16.gmra.mxu1 %v7062_v41  ;;  %v8034_v41 = vadd.f32 %v17342_v59, %v17391_v1 }
 0x86a   :  { %v17404_v21 = vadd.f32 %v12168_v31, %v17391_v1  ;;  %9416 = vmatpush2.msra.mxu1 %v16954_v53  ;;  %8874 = vmatprep.mubr.bf16.mxu1 %v7571_v2  ;;  %v17418_v53 = vld [vmem:[#allocation22 + $0x3] ss:$0 sm:$0xff]  ;;  %v8037_v2 = vadd.f32 %v17351_v25, %v17391_v1  ;;  %v9099_v31 = vpop.permute.xlu1 %9098 }
 0x86b   :  { %9417 = vmatprep.subr.mxu1 %v18220_v55  ;;  %v17408_v58 = vpop.f32.mrf.mxu0  ;;  %vm9188_vm13 = vcmp.eq.s32.totalorder %v17411_v5, %v9099_v31  ;;  %vm9187_vm14 = vcmp.eq.s32.totalorder %v17396_v38, %v9099_v31 }
 0x86c   :  { %v8079_v57 = vpack.c.bf16 %v17404_v21, %v17399_v10  ;;  %9418 = vmatpush2.msra.mxu1 %v16940_v51  ;;  %v8013_v51 = vadd.f32 %v17391_v1, %v17335_v28  ;;  %v18229_v28 = vld [vmem:[#allocation137_spill] sm:$0xff]  ;;  %v8061_v12 = vadd.f32 %v17391_v1, %v17408_v58 }
 0x86d   :  { %9419 = vmatprep.subr.mxu1 %v18220_v55  ;;  %v12219_v54 = vpop.f32.mrf.mxu0 }
 0x86e   :  { %9420 = vmatpush2.msra.mxu1 %v16962_v0  ;;  %v8526_v0 = vadd.f32 %v12219_v54, %v17418_v53  ;;  %v8072_v7 = vpack.c.bf16 %v8013_v51, %v8010_v34  ;;  %v9102_v34 = vpop.permute.xlu0 %9101 }
 0x86f   :  { %9421 = vmatprep.subr.mxu1 %v18220_v55  ;;  %v8517_v22 = vpop.f32.mrf.mxu0  ;;  %vm9190_vm15 = vcmp.eq.s32.totalorder %v17411_v5, %v9102_v34  ;;  %vm9189_vm0 = vcmp.eq.s32.totalorder %v17396_v38, %v9102_v34 }
 0x870   :  { %9422 = vmatpush2.msra.mxu1 %v16947_v63  ;;  %v8518_v24 = vadd.f32 %v17418_v53, %v8517_v22  ;;  %v18226_v63 = vld [vmem:[#allocation135_spill] sm:$0xff]  ;;  %v8075_v22 = vpack.c.bf16 %v8037_v2, %v8034_v41 }
 0x871   :  { %9423 = vmatprep.subr.mxu1 %v18220_v55  ;;  %v12220_v17 = vpop.f32.mrf.mxu0  ;;  %8875 = vmatmul.mubr.bf16.gmra.mxu1 %v7063_v43 }
 0x872   :  { %v8529_v23 = vadd.f32 %v12220_v17, %v17418_v53  ;;  %9424 = vmatpush2.msra.mxu1 %v18226_v63  ;;  %10244 = vmatprep.mubr.msk.f32.mxu1 %vm9176_vm1, %v13148_v6  ;;  %v8042_v17 = vadd.f32 %v17391_v1, %v17370_v33 }
 0x873   :  { %9425 = vmatprep.subr.mxu1 %v18220_v55  ;;  %v8520_v8 = vpop.f32.mrf.mxu0 }
 0x874   :  { %v8521_v44 = vadd.f32 %v17418_v53, %v8520_v8  ;;  %9426 = vmatpush2.msra.mxu1 %v18227_v45  ;;  %v8581_v43 = vpack.c.bf16 %v8529_v23, %v8526_v0  ;;  %v8045_v0 = vadd.f32 %v17391_v1, %v17380_v52  ;;  %v8050_v52 = vadd.f32 %v17364_v27, %v17391_v1 }
 0x875   :  { %9427 = vmatprep.subr.mxu1 %v18220_v55  ;;  %v12223_v30 = vpop.f32.mrf.mxu0  ;;  %v8053_v45 = vadd.f32 %v17374_v15, %v17391_v1  ;;  %v8058_v15 = vadd.f32 %v17391_v1, %v17394_v36 }
 0x876   :  { %v8580_v9 = vpack.c.bf16 %v8521_v44, %v8518_v24  ;;  %9428 = vmatpush2.msra.mxu1 %v18228_v60  ;;  %v8542_v4 = vadd.f32 %v12223_v30, %v17418_v53  ;;  %v9105_v24 = vpop.permute.xlu1 %9104  ;;  %v8076_v8 = vpack.c.bf16 %v8045_v0, %v8042_v17  ;;  %v9108_v44 = vpop.permute.xlu0 %9107 }
 0x877   :  { %9429 = vmatprep.subr.mxu1 %v18220_v55  ;;  %v8533_v47 = vpop.f32.mrf.mxu0  ;;  %v8018_v55 = vadd.f32 %v17318_v14, %v17391_v1  ;;  %vm9192_vm1 = vcmp.eq.s32.totalorder %v17411_v5, %v9105_v24 }
 0x878   :  { %9430 = vmatpush2.msra.mxu1 %v18229_v28  ;;  %8915 = vmatprep.mubr.bf16.mxu0 %v8580_v9  ;;  %v8534_v50 = vadd.f32 %v17418_v53, %v8533_v47  ;;  %v8077_v9 = vpack.c.bf16 %v8053_v45, %v8050_v52 }
 0x879   :  { %8916 = vmatmul.mubr.bf16.vlgmr.msra.gmra.mxu0 %v8072_v7  ;;  %10245 = vmatmul.mubr.msk.f32.vlgmr.msra.gmra.mxu1 %vm9175_vm2, %v13148_v6  ;;  %v12224_v56 = vpop.f32.mrf.mxu0  ;;  %v8073_v35 = vpack.c.bf16 %v8021_v37, %v8018_v55  ;;  %vm9191_vm2 = vcmp.eq.s32.totalorder %v17396_v38, %v9105_v24 }
 0x87a   :  { %10246 = vmatprep.mubr.msk.f32.mxu1 %vm9178_vm3, %v13148_v6  ;;  %8923 = vmatprep.mubr.bf16.mxu0 %v8581_v43  ;;  %v8545_v48 = vadd.f32 %v12224_v56, %v17418_v53  ;;  %vm9194_vm3 = vcmp.eq.s32.totalorder %v17411_v5, %v9108_v44  ;;  %v9111_v7 = vpop.permute.xlu1 %9110  ;;  %v9114_v27 = vpop.permute.xlu0 %9113 }
 0x87b   :  { %v8536_v20 = vpop.f32.mrf.mxu0 }
 0x87c   :  { %v8537_v62 = vadd.f32 %v17418_v53, %v8536_v20  ;;  %v8583_v13 = vpack.c.bf16 %v8545_v48, %v8542_v4 }
 0x87d   :  { %10247 = vmatmul.mubr.msk.f32.gmra.mxu1 %vm9177_vm4, %v13148_v6  ;;  %v12227_v11 = vpop.f32.mrf.mxu0  ;;  %vm9193_vm4 = vcmp.eq.s32.totalorder %v17396_v38, %v9108_v44 }
 0x87e   :  { %10248 = vmatprep.mubr.msk.f32.mxu1 %vm9180_vm5, %v13148_v6  ;;  %v8582_v26 = vpack.c.bf16 %v8537_v62, %v8534_v50  ;;  %v8558_v25 = vadd.f32 %v12227_v11, %v17418_v53  ;;  %vm9196_vm5 = vcmp.eq.s32.totalorder %v17411_v5, %v9111_v7  ;;  %v9117_v56 = vpop.permute.xlu1 %9116  ;;  %v8078_v50 = vpack.c.bf16 %v8061_v12, %v8058_v15  ;;  %v9120_v36 = vpop.permute.xlu0 %9119 }
 0x87f   :  { %v8549_v14 = vpop.f32.mrf.mxu0 }
 0x880   :  { %v8550_v19 = vadd.f32 %v17418_v53, %v8549_v14 }
 0x881   :  { %8924 = vmatmul.mubr.bf16.gmra.mxu0 %v8073_v35  ;;  %10249 = vmatmul.mubr.msk.f32.gmra.mxu1 %vm9179_vm6, %v13148_v6  ;;  %v12228_v29 = vpop.f32.mrf.mxu0  ;;  %vm9195_vm6 = vcmp.eq.s32.totalorder %v17396_v38, %v9111_v7 }
 0x882   :  { %10250 = vmatprep.mubr.msk.f32.mxu1 %vm9182_vm7, %v13148_v6  ;;  %8931 = vmatprep.mubr.bf16.mxu0 %v8582_v26  ;;  %v8561_v51 = vadd.f32 %v12228_v29, %v17418_v53  ;;  %vm9198_vm7 = vcmp.eq.s32.totalorder %v17411_v5, %v9114_v27  ;;  %v9123_v1 = vpop.permute.xlu1 %9122  ;;  %v9126_v58 = vpop.permute.xlu0 %9125 }
 0x883   :  { %v8552_v40 = vpop.f32.mrf.mxu0 }
 0x884   :  { %v8553_v32 = vadd.f32 %v17418_v53, %v8552_v40  ;;  %v8585_v63 = vpack.c.bf16 %v8561_v51, %v8558_v25 }
 0x885   :  { %10251 = vmatmul.mubr.msk.f32.gmra.mxu1 %vm9181_vm8, %v13148_v6  ;;  %v12231_v54 = vpop.f32.mrf.mxu0  ;;  %vm9197_vm8 = vcmp.eq.s32.totalorder %v17396_v38, %v9114_v27 }
 0x886   :  { %10252 = vmatprep.mubr.msk.f32.mxu1 %vm9184_vm9, %v13148_v6  ;;  %v8584_v39 = vpack.c.bf16 %v8553_v32, %v8550_v19  ;;  %v8574_v47 = vadd.f32 %v12231_v54, %v17418_v53  ;;  %vm9200_vm9 = vcmp.eq.s32.totalorder %v17411_v5, %v9117_v56  ;;  %v9132_v37 = vpop.permute.xlu0 %9131 }
 0x887   :  { %v8565_v59 = vpop.f32.mrf.mxu0 }
 0x888   :  { %v8566_v30 = vadd.f32 %v17418_v53, %v8565_v59 }
 0x889   :  { %8932 = vmatmul.mubr.bf16.gmra.mxu0 %v8074_v49  ;;  %10253 = vmatmul.mubr.msk.f32.gmra.mxu1 %vm9183_vm10, %v13148_v6  ;;  %v12232_v23 = vpop.f32.mrf.mxu0  ;;  %vm9199_vm10 = vcmp.eq.s32.totalorder %v17396_v38, %v9117_v56 }
 0x88a   :  { %10254 = vmatprep.mubr.msk.f32.mxu1 %vm9186_vm11, %v13148_v6  ;;  %8939 = vmatprep.mubr.bf16.mxu0 %v8583_v13  ;;  %v8577_v28 = vadd.f32 %v12232_v23, %v17418_v53  ;;  %vm9202_vm11 = vcmp.eq.s32.totalorder %v17411_v5, %v9120_v36  ;;  %v9138_v21 = vpop.permute.xlu0 %9137 }
 0x88b   :  { %v8568_v33 = vpop.f32.mrf.mxu0 }
 0x88c   :  { %v8569_v43 = vadd.f32 %v17418_v53, %v8568_v33  ;;  %v8587_v55 = vpack.c.bf16 %v8577_v28, %v8574_v47  ;;  %v9129_v53 = vpop.permute.xlu1 %9128 }
 0x88d   :  { %10255 = vmatmul.mubr.msk.f32.gmra.mxu1 %vm9185_vm12, %v13148_v6  ;;  %vm9201_vm12 = vcmp.eq.s32.totalorder %v17396_v38, %v9120_v36 }
 0x88e   :  { %10256 = vmatprep.mubr.msk.f32.mxu1 %vm9188_vm13, %v13148_v6  ;;  %v8586_v60 = vpack.c.bf16 %v8569_v43, %v8566_v30  ;;  %vm9204_vm13 = vcmp.eq.s32.totalorder %v17411_v5, %v9123_v1  ;;  %v9144_v20 = vpop.permute.xlu0 %9143  ;;  %v17661_v30 = vld [vmem:[%s18230_s29] ss:$0 sm:$0xff] }
 0x890   :  { %v9135_v10 = vpop.permute.xlu1 %9134 }
 0x891   :  { %8940 = vmatmul.mubr.bf16.gmra.mxu0 %v8075_v22  ;;  %10257 = vmatmul.mubr.msk.f32.gmra.mxu1 %vm9187_vm14, %v13148_v6  ;;  %vm9203_vm14 = vcmp.eq.s32.totalorder %v17396_v38, %v9123_v1 }
 0x892   :  { %10258 = vmatprep.mubr.msk.f32.mxu1 %vm9190_vm15, %v13148_v6  ;;  %8947 = vmatprep.mubr.bf16.mxu0 %v8584_v39  ;;  %vm9206_vm15 = vcmp.eq.s32.totalorder %v17411_v5, %v9126_v58  ;;  %v9150_v62 = vpop.permute.xlu0 %9149 }
 0x895   :  { %10259 = vmatmul.mubr.msk.f32.gmra.mxu1 %vm9189_vm0, %v13148_v6  ;;  %vm9205_vm0 = vcmp.eq.s32.totalorder %v17396_v38, %v9126_v58 }
 0x896   :  { %10260 = vmatprep.mubr.msk.f32.mxu1 %vm9192_vm1, %v13148_v6  ;;  %vm9208_vm1 = vcmp.eq.s32.totalorder %v17411_v5, %v9129_v53  ;;  %v9156_v26 = vpop.permute.xlu0 %9155 }
 0x899   :  { %8948 = vmatmul.mubr.bf16.gmra.mxu0 %v8076_v8  ;;  %10261 = vmatmul.mubr.msk.f32.gmra.mxu1 %vm9191_vm2, %v13148_v6  ;;  %vm9207_vm2 = vcmp.eq.s32.totalorder %v17396_v38, %v9129_v53 }
 0x89a   :  { %10262 = vmatprep.mubr.msk.f32.mxu1 %vm9194_vm3, %v13148_v6  ;;  %8955 = vmatprep.mubr.bf16.mxu0 %v8585_v63  ;;  %vm9210_vm3 = vcmp.eq.s32.totalorder %v17411_v5, %v9132_v37  ;;  %v9162_v46 = vpop.permute.xlu0 %9161 }
 0x89d   :  { %10263 = vmatmul.mubr.msk.f32.gmra.mxu1 %vm9193_vm4, %v13148_v6  ;;  %vm9209_vm4 = vcmp.eq.s32.totalorder %v17396_v38, %v9132_v37 }
 0x89e   :  { %10264 = vmatprep.mubr.msk.f32.mxu1 %vm9196_vm5, %v13148_v6  ;;  %vm9212_vm5 = vcmp.eq.s32.totalorder %v17411_v5, %v9135_v10  ;;  %v9168_v4 = vpop.permute.xlu0 %9167 }
 0x8a1   :  { %8956 = vmatmul.mubr.bf16.gmra.mxu0 %v8077_v9  ;;  %10265 = vmatmul.mubr.msk.f32.gmra.mxu1 %vm9195_vm6, %v13148_v6  ;;  %vm9211_vm6 = vcmp.eq.s32.totalorder %v17396_v38, %v9135_v10 }
 0x8a2   :  { %10266 = vmatprep.mubr.msk.f32.mxu1 %vm9198_vm7, %v13148_v6  ;;  %8963 = vmatprep.mubr.bf16.mxu0 %v8586_v60  ;;  %vm9214_vm7 = vcmp.eq.s32.totalorder %v17411_v5, %v9138_v21  ;;  %v9174_v18 = vpop.permute.xlu0 %9173 }
 0x8a5   :  { %10267 = vmatmul.mubr.msk.f32.gmra.mxu1 %vm9197_vm8, %v13148_v6  ;;  %vm9213_vm8 = vcmp.eq.s32.totalorder %v17396_v38, %v9138_v21 }
 0x8a6   :  { %10268 = vmatprep.mubr.msk.f32.mxu1 %vm9200_vm9, %v13148_v6 }
 0x8a9   :  { %8964 = vmatmul.mubr.bf16.gmra.mxu0 %v8078_v50  ;;  %10269 = vmatmul.mubr.msk.f32.gmra.mxu1 %vm9199_vm10, %v13148_v6 }
 0x8aa   :  { %10270 = vmatprep.mubr.msk.f32.mxu1 %vm9202_vm11, %v13148_v6  ;;  %8971 = vmatprep.mubr.bf16.mxu0 %v8587_v55  ;;  %vm9218_vm11 = vcmp.eq.s32.totalorder %v17411_v5, %v9144_v20 }
 0x8ad   :  { %10271 = vmatmul.mubr.msk.f32.gmra.mxu1 %vm9201_vm12, %v13148_v6  ;;  %vm9217_vm12 = vcmp.eq.s32.totalorder %v17396_v38, %v9144_v20 }
 0x8ae   :  { %10272 = vmatprep.mubr.msk.f32.mxu1 %vm9204_vm13, %v13148_v6 }
 0x8b1   :  { %8972 = vmatmul.mubr.bf16.gmra.mxu0 %v8079_v57  ;;  %10273 = vmatmul.mubr.msk.f32.gmra.mxu1 %vm9203_vm14, %v13148_v6  ;;  %v9141_v57 = vpop.permute.xlu1 %9140 }
 0x8b2   :  { %10274 = vmatprep.mubr.msk.f32.mxu1 %vm9206_vm15, %v13148_v6  ;;  %vm9216_vm9 = vcmp.eq.s32.totalorder %v17411_v5, %v9141_v57  ;;  %vm9215_vm10 = vcmp.eq.s32.totalorder %v17396_v38, %v9141_v57  ;;  %vm9222_vm15 = vcmp.eq.s32.totalorder %v17411_v5, %v9150_v62 }
 0x8b5   :  { %10275 = vmatmul.mubr.msk.f32.gmra.mxu1 %vm9205_vm0, %v13148_v6  ;;  %v9147_v42 = vpop.permute.xlu1 %9146  ;;  %vm9221_vm0 = vcmp.eq.s32.totalorder %v17396_v38, %v9150_v62 }
 0x8b6   :  { %10276 = vmatprep.mubr.msk.f32.mxu1 %vm9208_vm1, %v13148_v6  ;;  %vm9220_vm13 = vcmp.eq.s32.totalorder %v17411_v5, %v9147_v42  ;;  %vm9219_vm14 = vcmp.eq.s32.totalorder %v17396_v38, %v9147_v42 }
 0x8b9   :  { %10277 = vmatmul.mubr.msk.f32.gmra.mxu1 %vm9207_vm2, %v13148_v6  ;;  %v9153_v11 = vpop.permute.xlu1 %9152 }
 0x8ba   :  { %10278 = vmatprep.mubr.msk.f32.mxu1 %vm9210_vm3, %v13148_v6  ;;  %vm9224_vm1 = vcmp.eq.s32.totalorder %v17411_v5, %v9153_v11  ;;  %vm9223_vm2 = vcmp.eq.s32.totalorder %v17396_v38, %v9153_v11  ;;  %vm9226_vm3 = vcmp.eq.s32.totalorder %v17411_v5, %v9156_v26 }
 0x8bd   :  { %10279 = vmatmul.mubr.msk.f32.gmra.mxu1 %vm9209_vm4, %v13148_v6  ;;  %vm9225_vm4 = vcmp.eq.s32.totalorder %v17396_v38, %v9156_v26  ;;  %v9159_v35 = vpop.permute.xlu1 %9158 }
 0x8be   :  { %10280 = vmatprep.mubr.msk.f32.mxu1 %vm9212_vm5, %v13148_v6  ;;  %vm9228_vm5 = vcmp.eq.s32.totalorder %v17411_v5, %v9159_v35 }
 0x8c1   :  { %10281 = vmatmul.mubr.msk.f32.gmra.mxu1 %vm9211_vm6, %v13148_v6  ;;  %vm9227_vm6 = vcmp.eq.s32.totalorder %v17396_v38, %v9159_v35  ;;  %v9165_v14 = vpop.permute.xlu1 %9164 }
 0x8c2   :  { %10282 = vmatprep.mubr.msk.f32.mxu1 %vm9214_vm7, %v13148_v6  ;;  %vm9230_vm7 = vcmp.eq.s32.totalorder %v17411_v5, %v9162_v46 }
 0x8c5   :  { %10283 = vmatmul.mubr.msk.f32.gmra.mxu1 %vm9213_vm8, %v13148_v6  ;;  %vm9229_vm8 = vcmp.eq.s32.totalorder %v17396_v38, %v9162_v46  ;;  %v9171_v48 = vpop.permute.xlu1 %9170 }
 0x8c6   :  { %10284 = vmatprep.mubr.msk.f32.mxu1 %vm9216_vm9, %v13148_v6  ;;  %vm9232_vm9 = vcmp.eq.s32.totalorder %v17411_v5, %v9165_v14 }
 0x8c9   :  { %10285 = vmatmul.mubr.msk.f32.gmra.mxu1 %vm9215_vm10, %v13148_v6  ;;  %vm9231_vm10 = vcmp.eq.s32.totalorder %v17396_v38, %v9165_v14 }
 0x8ca   :  { %10286 = vmatprep.mubr.msk.f32.mxu1 %vm9218_vm11, %v13148_v6  ;;  %vm9234_vm11 = vcmp.eq.s32.totalorder %v17411_v5, %v9168_v4 }
 0x8cd   :  { %10287 = vmatmul.mubr.msk.f32.gmra.mxu1 %vm9217_vm12, %v13148_v6  ;;  %vm9233_vm12 = vcmp.eq.s32.totalorder %v17396_v38, %v9168_v4 }
 0x8ce   :  { %10288 = vmatprep.mubr.msk.f32.mxu1 %vm9220_vm13, %v13148_v6  ;;  %vm9236_vm13 = vcmp.eq.s32.totalorder %v17411_v5, %v9171_v48 }
 0x8d1   :  { %10289 = vmatmul.mubr.msk.f32.gmra.mxu1 %vm9219_vm14, %v13148_v6  ;;  %vm9235_vm14 = vcmp.eq.s32.totalorder %v17396_v38, %v9171_v48 }
 0x8d2   :  { %10290 = vmatprep.mubr.msk.f32.mxu1 %vm9222_vm15, %v13148_v6  ;;  %vm9238_vm15 = vcmp.eq.s32.totalorder %v17411_v5, %v9174_v18 }
 0x8d5   :  { %10291 = vmatmul.mubr.msk.f32.gmra.mxu1 %vm9221_vm0, %v13148_v6  ;;  %vm9237_vm0 = vcmp.eq.s32.totalorder %v17396_v38, %v9174_v18 }
 0x8d6   :  { %10292 = vmatprep.mubr.msk.f32.mxu1 %vm9224_vm1, %v13148_v6 }
 0x8d9   :  { %10293 = vmatmul.mubr.msk.f32.gmra.mxu1 %vm9223_vm2, %v13148_v6 }
 0x8da   :  { %10294 = vmatprep.mubr.msk.f32.mxu1 %vm9226_vm3, %v13148_v6 }
 0x8dd   :  { %10295 = vmatmul.mubr.msk.f32.gmra.mxu1 %vm9225_vm4, %v13148_v6 }
 0x8de   :  { %10296 = vmatprep.mubr.msk.f32.mxu1 %vm9228_vm5, %v13148_v6 }
 0x8e1   :  { %10297 = vmatmul.mubr.msk.f32.gmra.mxu1 %vm9227_vm6, %v13148_v6 }
 0x8e2   :  { %10298 = vmatprep.mubr.msk.f32.mxu1 %vm9230_vm7, %v13148_v6 }
 0x8e5   :  { %10299 = vmatmul.mubr.msk.f32.gmra.mxu1 %vm9229_vm8, %v13148_v6 }
 0x8e6   :  { %10300 = vmatprep.mubr.msk.f32.mxu1 %vm9232_vm9, %v13148_v6 }
 0x8e9   :  { %10301 = vmatmul.mubr.msk.f32.gmra.mxu1 %vm9231_vm10, %v13148_v6 }
 0x8ea   :  { %10302 = vmatprep.mubr.msk.f32.mxu1 %vm9234_vm11, %v13148_v6 }
 0x8ed   :  { %10303 = vmatmul.mubr.msk.f32.gmra.mxu1 %vm9233_vm12, %v13148_v6 }
 0x8ee   :  { %10304 = vmatprep.mubr.msk.f32.mxu1 %vm9236_vm13, %v13148_v6 }
 0x8f1   :  { %10305 = vmatmul.mubr.msk.f32.gmra.mxu1 %vm9235_vm14, %v13148_v6 }
 0x8f2   :  { %10306 = vmatprep.mubr.msk.f32.mxu1 %vm9238_vm15, %v13148_v6 }
 0x8f5   :  { %10307 = vmatmul.mubr.msk.f32.gmra.mxu1 %vm9237_vm0, %v13148_v6 }
 0x8f9   :  { %v11221_v3 = vpop.f32.mrf.mxu1 }
 0x8fb   :  { %v11222_v61 = vpop.f32.mrf.mxu1 }
 0x8fc   :  { %v11223_v7 = vadd.f32 %v11222_v61, %v11221_v3 }
 0x8fd   :  { %v11224_v29 = vpop.f32.mrf.mxu1 }
 0x8fe   :  { %v8821_v15 = vadd.f32 %v11223_v7, %v17661_v30 }
 0x8ff   :  { %v11225_v13 = vpop.f32.mrf.mxu1 }
 0x900   :  { %v11226_v12 = vadd.f32 %v11225_v13, %v11224_v29 }
 0x901   :  { %v11227_v49 = vpop.f32.mrf.mxu1 }
 0x903   :  { %v11228_v16 = vpop.f32.mrf.mxu1 }
 0x905   :  { %v17608_v40 = vpop.f32.mrf.mxu1 }
 0x907   :  { %v17610_v19 = vpop.f32.mrf.mxu1 }
 0x909   :  { %v17612_v32 = vpop.f32.mrf.mxu1 }
 0x90b   :  { %v17614_v5 = vpop.f32.mrf.mxu1 }
 0x90d   :  { %v17616_v41 = vpop.f32.mrf.mxu1 }
 0x90f   :  { %v17618_v2 = vpop.f32.mrf.mxu1 }
 0x911   :  { %v17620_v38 = vpop.f32.mrf.mxu1 }
 0x913   :  { %v17622_v6 = vpop.f32.mrf.mxu1 }
 0x915   :  { %v17624_v31 = vpop.f32.mrf.mxu1 }
 0x917   :  { %v17626_v54 = vpop.f32.mrf.mxu1 }
 0x919   :  { %v17628_v39 = vpop.f32.mrf.mxu1 }
 0x91b   :  { %v17630_v22 = vpop.f32.mrf.mxu1 }
 0x91d   :  { %v17632_v34 = vpop.f32.mrf.mxu1 }
 0x91f   :  { %v17634_v59 = vpop.f32.mrf.mxu1 }
 0x921   :  { %v17636_v25 = vpop.f32.mrf.mxu1 }
 0x923   :  { %v17638_v51 = vpop.f32.mrf.mxu1 }
 0x925   :  { %v17640_v17 = vpop.f32.mrf.mxu1 }
 0x927   :  { %v17642_v0 = vpop.f32.mrf.mxu1 }
 0x929   :  { %v17644_v24 = vpop.f32.mrf.mxu1 }
 0x92b   :  { %v17646_v23 = vpop.f32.mrf.mxu1 }
 0x92d   :  { %v17648_v63 = vpop.f32.mrf.mxu1 }
 0x92f   :  { %v17650_v8 = vpop.f32.mrf.mxu1 }
 0x931   :  { %v17652_v44 = vpop.f32.mrf.mxu1 }
 0x933   :  { %v17654_v33 = vpop.f32.mrf.mxu1 }
 0x935   :  { %v17656_v52 = vpop.f32.mrf.mxu1 }
 0x937   :  { %v17658_v45 = vpop.f32.mrf.mxu1 }
 0x939   :  { %v11285_v43 = vpop.f32.mrf.mxu0  ;;  %v9433_v9 = vpop.f32.mrf.mxu1 }
 0x93a   :  { %9592 = vst [vmem:[#allocation25] sm:$0xff] %v9433_v9 }
 0x93b   :  { %v11286_v27 = vpop.f32.mrf.mxu0  ;;  %v9435_v60 = vpop.f32.mrf.mxu1 }
 0x93c   :  { %v11287_v47 = vadd.f32 %v11286_v27, %v11285_v43 }
 0x93d   :  { %13001 = shalt.err (!%p12998_p4)
}
 0x93e   :  { %9669 = dma.vmem_to_hbm [thread:$0]  %s9667_s2, 128, %s13306_s8, [#allocation30]   ;;  %v11288_v28 = vpop.f32.mrf.mxu0  ;;  %v9438_v56 = vpop.f32.mrf.mxu1  ;;  %v8918_v50 = vadd.f32 %v11287_v47, %v8821_v15  ;;  %v8824_v1 = vadd.f32 %v11226_v12, %v17661_v30  ;;  %v11229_v58 = vadd.f32 %v11228_v16, %v11227_v49  ;;  %v11232_v11 = vadd.f32 %v17610_v19, %v17608_v40 }
 0x93f   :  { %9593 = vst [vmem:[#allocation25 + $0x8] sm:$0xff] %v9438_v56  ;;  %v11235_v61 = vadd.f32 %v17614_v5, %v17612_v32  ;;  %v11238_v9 = vadd.f32 %v17618_v2, %v17616_v41  ;;  %v11241_v56 = vadd.f32 %v17622_v6, %v17620_v38  ;;  %s13150_s8 = smov [#allocation25]  }
 0x940   :  { %v11289_v55 = vpop.f32.mrf.mxu0  ;;  %v9440_v36 = vpop.f32.mrf.mxu1  ;;  %v8980_v53 = vmax.f32 %v8918_v50, 0.0  ;;  %v8829_v62 = vadd.f32 %v11229_v58, %v17661_v30  ;;  %v8832_v3 = vadd.f32 %v11232_v11, %v17661_v30  ;;  %v11247_v11 = vadd.f32 %v17630_v22, %v17628_v39  ;;  %s9629_s25 = sshll.u32 %s13150_s8, 4  ;;  %s9630_s25 = int_to_ptr.vmem [resolvable:$true] %s9629_s25 }
 0x941   :  { %v11290_v37 = vadd.f32 %v11289_v55, %v11288_v28  ;;  %v8837_v43 = vadd.f32 %v11235_v61, %v17661_v30  ;;  %v8840_v28 = vadd.f32 %v11238_v9, %v17661_v30  ;;  %s13010_s9 = scalar_lea.vmem %s9630_s25, 2048  ;;  %p13015_p6 = scmp.lt.s32.totalorder %s9630_s25, %s9630_s25 }
 0x942   :  { %v11291_v10 = vpop.f32.mrf.mxu0  ;;  %v9443_v21 = vpop.f32.mrf.mxu1  ;;  %8996 = vst [vmem:[#allocation28] sm:$0xff] %v8980_v53  ;;  %v8845_v53 = vadd.f32 %v11241_v56, %v17661_v30  ;;  %p13011_p5 = scmp.ne.s32.totalorder %s9630_s25, %s13010_s9  ;;  %p13016_p7 = scmp.lt.s32.totalorder %s13010_s9, %s13010_s9 }
 0x943   :  { %v8921_v57 = vadd.f32 %v11290_v37, %v8824_v1  ;;  %9594 = vst [vmem:[#allocation25 + $0x10] sm:$0xff] %v9443_v21  ;;  %v11244_v37 = vadd.f32 %v17626_v54, %v17624_v31 }
 0x944   :  { %v11292_v20 = vpop.f32.mrf.mxu0  ;;  %v9445_v42 = vpop.f32.mrf.mxu1  ;;  %p13017_p8 = por %p13016_p7, %p13015_p6 }
 0x945   :  { %v8981_v26 = vmax.f32 %v8921_v57, 0.0  ;;  %v11293_v35 = vadd.f32 %v11292_v20, %v11291_v10 }
 0x946   :  { %v11294_v46 = vpop.f32.mrf.mxu0  ;;  %v9448_v14 = vpop.f32.mrf.mxu1  ;;  %p13018_p9 = pnand %p13017_p8, %p13011_p5 }
 0x947   :  { %8997 = vst [vmem:[#allocation28 + $0x8] sm:$0xff] %v8981_v26  ;;  %v8926_v4 = vadd.f32 %v11293_v35, %v8829_v62  ;;  %9595 = vst [vmem:[#allocation25 + $0x18] sm:$0xff] %v9448_v14  ;;  %v8848_v62 = vadd.f32 %v11244_v37, %v17661_v30 }
 0x948   :  { %v11295_v48 = vpop.f32.mrf.mxu0  ;;  %v9450_v18 = vpop.f32.mrf.mxu1 }
 0x949   :  { %v8982_v29 = vmax.f32 %v8926_v4, 0.0  ;;  %v11296_v13 = vadd.f32 %v11295_v48, %v11294_v46  ;;  %v8853_v48 = vadd.f32 %v11247_v11, %v17661_v30  ;;  %v11250_v18 = vadd.f32 %v17634_v59, %v17632_v34 }
 0x94a   :  { %v11297_v49 = vpop.f32.mrf.mxu0  ;;  %v9453_v16 = vpop.f32.mrf.mxu1 }
 0x94b   :  { %8998 = vst [vmem:[#allocation28 + $0x10] sm:$0xff] %v8982_v29  ;;  %v8929_v40 = vadd.f32 %v11296_v13, %v8832_v3  ;;  %9596 = vst [vmem:[#allocation25 + $0x20] sm:$0xff] %v9453_v16  ;;  %v8856_v16 = vadd.f32 %v11250_v18, %v17661_v30 }
 0x94c   :  { %v11298_v19 = vpop.f32.mrf.mxu0  ;;  %v9455_v7 = vpop.f32.mrf.mxu1 }
 0x94d   :  { %v8983_v27 = vmax.f32 %v8929_v40, 0.0  ;;  %v11299_v60 = vadd.f32 %v11298_v19, %v11297_v49  ;;  %v11253_v40 = vadd.f32 %v17638_v51, %v17636_v25 }
 0x94e   :  { %v11300_v15 = vpop.f32.mrf.mxu0  ;;  %v9458_v12 = vpop.f32.mrf.mxu1 }
 0x94f   :  { %8999 = vst [vmem:[#allocation28 + $0x18] sm:$0xff] %v8983_v27  ;;  %v8934_v32 = vadd.f32 %v11299_v60, %v8837_v43  ;;  %9597 = vst [vmem:[#allocation25 + $0x28] sm:$0xff] %v9458_v12  ;;  %v8861_v60 = vadd.f32 %v11253_v40, %v17661_v30 }
 0x950   :  { %v11301_v5 = vpop.f32.mrf.mxu0  ;;  %v9460_v47 = vpop.f32.mrf.mxu1 }
 0x951   :  { %v8984_v50 = vmax.f32 %v8934_v32, 0.0  ;;  %v11302_v55 = vadd.f32 %v11301_v5, %v11300_v15  ;;  %v11256_v15 = vadd.f32 %v17642_v0, %v17640_v17 }
 0x952   :  { %v11303_v36 = vpop.f32.mrf.mxu0  ;;  %v9463_v1 = vpop.f32.mrf.mxu1 }
 0x953   :  { %9000 = vst [vmem:[#allocation28 + $0x20] sm:$0xff] %v8984_v50  ;;  %v8937_v41 = vadd.f32 %v11302_v55, %v8840_v28  ;;  %9598 = vst [vmem:[#allocation25 + $0x30] sm:$0xff] %v9463_v1  ;;  %v8864_v56 = vadd.f32 %v11256_v15, %v17661_v30  ;;  %v11259_v50 = vadd.f32 %v17646_v23, %v17644_v24 }
 0x954   :  { %v11304_v2 = vpop.f32.mrf.mxu0  ;;  %v9465_v58 = vpop.f32.mrf.mxu1 }
 0x955   :  { %v8985_v10 = vmax.f32 %v8937_v41, 0.0  ;;  %v11305_v21 = vadd.f32 %v11304_v2, %v11303_v36  ;;  %v8869_v58 = vadd.f32 %v11259_v50, %v17661_v30 }
 0x956   :  { %v11306_v57 = vpop.f32.mrf.mxu0  ;;  %v9468_v20 = vpop.f32.mrf.mxu1 }
 0x957   :  { %9001 = vst [vmem:[#allocation28 + $0x28] sm:$0xff] %v8985_v10  ;;  %v8942_v38 = vadd.f32 %v11305_v21, %v8845_v53  ;;  %9599 = vst [vmem:[#allocation25 + $0x38] sm:$0xff] %v9468_v20  ;;  %v11262_v53 = vadd.f32 %v17650_v8, %v17648_v63 }
 0x958   :  { %v11307_v6 = vpop.f32.mrf.mxu0  ;;  %v9470_v42 = vpop.f32.mrf.mxu1 }
 0x959   :  { %v8986_v26 = vmax.f32 %v8942_v38, 0.0  ;;  %v11308_v35 = vadd.f32 %v11307_v6, %v11306_v57  ;;  %v8872_v38 = vadd.f32 %v11262_v53, %v17661_v30  ;;  %v11265_v6 = vadd.f32 %v17654_v33, %v17652_v44 }
 0x95a   :  { %v11309_v46 = vpop.f32.mrf.mxu0  ;;  %v9473_v14 = vpop.f32.mrf.mxu1 }
 0x95b   :  { %9002 = vst [vmem:[#allocation28 + $0x30] sm:$0xff] %v8986_v26  ;;  %v8945_v31 = vadd.f32 %v11308_v35, %v8848_v62  ;;  %9600 = vst [vmem:[#allocation25 + $0x40] sm:$0xff] %v9473_v14  ;;  %v11268_v14 = vadd.f32 %v17658_v45, %v17656_v52 }
 0x95c   :  { %v11310_v54 = vpop.f32.mrf.mxu0  ;;  %v9475_v4 = vpop.f32.mrf.mxu1 }
 0x95d   :  { %v8987_v3 = vmax.f32 %v8945_v31, 0.0  ;;  %v11311_v61 = vadd.f32 %v11310_v54, %v11309_v46  ;;  %v8877_v46 = vadd.f32 %v11265_v6, %v17661_v30 }
 0x95e   :  { %v11312_v29 = vpop.f32.mrf.mxu0  ;;  %v9478_v13 = vpop.f32.mrf.mxu1 }
 0x95f   :  { %9003 = vst [vmem:[#allocation28 + $0x38] sm:$0xff] %v8987_v3  ;;  %v8950_v39 = vadd.f32 %v11311_v61, %v8853_v48  ;;  %9601 = vst [vmem:[#allocation25 + $0x48] sm:$0xff] %v9478_v13 }
 0x960   :  { %v11313_v22 = vpop.f32.mrf.mxu0  ;;  %v9480_v49 = vpop.f32.mrf.mxu1 }
 0x961   :  { %v8988_v19 = vmax.f32 %v8950_v39, 0.0  ;;  %v11314_v7 = vadd.f32 %v11313_v22, %v11312_v29 }
 0x962   :  { %v11315_v43 = vpop.f32.mrf.mxu0  ;;  %v9483_v9 = vpop.f32.mrf.mxu1 }
 0x963   :  { %9004 = vst [vmem:[#allocation28 + $0x40] sm:$0xff] %v8988_v19  ;;  %v8953_v34 = vadd.f32 %v11314_v7, %v8856_v16  ;;  %9602 = vst [vmem:[#allocation25 + $0x50] sm:$0xff] %v9483_v9 }
 0x964   :  { %v11316_v59 = vpop.f32.mrf.mxu0  ;;  %v9485_v27 = vpop.f32.mrf.mxu1 }
 0x965   :  { %v8989_v12 = vmax.f32 %v8953_v34, 0.0  ;;  %v11317_v32 = vadd.f32 %v11316_v59, %v11315_v43 }
 0x966   :  { %v11318_v5 = vpop.f32.mrf.mxu0  ;;  %v9488_v47 = vpop.f32.mrf.mxu1 }
 0x967   :  { %9005 = vst [vmem:[#allocation28 + $0x48] sm:$0xff] %v8989_v12  ;;  %v8958_v25 = vadd.f32 %v11317_v32, %v8861_v60  ;;  %9603 = vst [vmem:[#allocation25 + $0x58] sm:$0xff] %v9488_v47 }
 0x968   :  { %v11319_v51 = vpop.f32.mrf.mxu0  ;;  %v9490_v28 = vpop.f32.mrf.mxu1 }
 0x969   :  { %v8990_v55 = vmax.f32 %v8958_v25, 0.0  ;;  %v11320_v36 = vadd.f32 %v11319_v51, %v11318_v5 }
 0x96a   :  { %v11321_v1 = vpop.f32.mrf.mxu0  ;;  %v9493_v41 = vpop.f32.mrf.mxu1 }
 0x96b   :  { %9006 = vst [vmem:[#allocation28 + $0x50] sm:$0xff] %v8990_v55  ;;  %v8961_v17 = vadd.f32 %v11320_v36, %v8864_v56  ;;  %9604 = vst [vmem:[#allocation25 + $0x60] sm:$0xff] %v9493_v41 }
 0x96c   :  { %v11322_v0 = vpop.f32.mrf.mxu0  ;;  %v9495_v2 = vpop.f32.mrf.mxu1 }
 0x96d   :  { %v8991_v37 = vmax.f32 %v8961_v17, 0.0  ;;  %v11323_v10 = vadd.f32 %v11322_v0, %v11321_v1 }
 0x96e   :  { %v11324_v21 = vpop.f32.mrf.mxu0  ;;  %v9498_v57 = vpop.f32.mrf.mxu1 }
 0x96f   :  { %9007 = vst [vmem:[#allocation28 + $0x58] sm:$0xff] %v8991_v37  ;;  %v8966_v24 = vadd.f32 %v11323_v10, %v8869_v58  ;;  %9605 = vst [vmem:[#allocation25 + $0x68] sm:$0xff] %v9498_v57 }
 0x970   :  { %v11325_v23 = vpop.f32.mrf.mxu0  ;;  %v9500_v20 = vpop.f32.mrf.mxu1 }
 0x971   :  { %v8992_v42 = vmax.f32 %v8966_v24, 0.0  ;;  %v11326_v62 = vadd.f32 %v11325_v23, %v11324_v21 }
 0x972   :  { %v11327_v11 = vpop.f32.mrf.mxu0  ;;  %v9503_v26 = vpop.f32.mrf.mxu1 }
 0x973   :  { %9008 = vst [vmem:[#allocation28 + $0x60] sm:$0xff] %v8992_v42  ;;  %v8969_v63 = vadd.f32 %v11326_v62, %v8872_v38  ;;  %9606 = vst [vmem:[#allocation25 + $0x70] sm:$0xff] %v9503_v26 }
 0x974   :  { %v11328_v8 = vpop.f32.mrf.mxu0  ;;  %v9505_v35 = vpop.f32.mrf.mxu1 }
 0x975   :  { %v8993_v31 = vmax.f32 %v8969_v63, 0.0  ;;  %v11329_v54 = vadd.f32 %v11328_v8, %v11327_v11 }
 0x976   :  { %v11330_v44 = vpop.f32.mrf.mxu0  ;;  %v9508_v33 = vpop.f32.mrf.mxu1 }
 0x977   :  { %9009 = vst [vmem:[#allocation28 + $0x68] sm:$0xff] %v8993_v31  ;;  %v8974_v4 = vadd.f32 %v11329_v54, %v8877_v46  ;;  %9607 = vst [vmem:[#allocation25 + $0x78] sm:$0xff] %v9508_v33 }
 0x978   :  { %v11331_v48 = vpop.f32.mrf.mxu0  ;;  %v9510_v18 = vpop.f32.mrf.mxu1 }
 0x979   :  { %13021 = shalt.err (!%p13018_p9)
}
 0x97a   :  { %9635 = dma.vmem_to_hbm [thread:$0]  %s9630_s25, 2048, %s13291_s19, [#allocation4], %s13123_s0, %s13123_s0, %s13124_s18   ;;  %v8880_v52 = vadd.f32 %v11268_v14, %v17661_v30  ;;  %v8994_v45 = vmax.f32 %v8974_v4, 0.0  ;;  %v11332_v3 = vadd.f32 %v11331_v48, %v11330_v44  ;;  %v9513_v61 = vpop.f32.mrf.mxu1 }
 0x97b   :  { %9608 = vst [vmem:[#allocation26] sm:$0xff] %v9513_v61  ;;  %s13151_s19 = smov [#allocation26]   ;;  %s13152_s20 = smov [#allocation28]  }
 0x97c   :  { %9010 = vst [vmem:[#allocation28 + $0x70] sm:$0xff] %v8994_v45  ;;  %v8977_v29 = vadd.f32 %v11332_v3, %v8880_v52  ;;  %v9515_v13 = vpop.f32.mrf.mxu1  ;;  %s9641_s10 = sshll.u32 %s13151_s19, 4  ;;  %s9653_s11 = sshll.u32 %s13152_s20, 4  ;;  %s9642_s10 = int_to_ptr.vmem [resolvable:$true] %s9641_s10  ;;  %s9654_s11 = int_to_ptr.vmem [resolvable:$true] %s9653_s11 }
 0x97d   :  { %s13030_s16 = scalar_lea.vmem %s9642_s10, 2048  ;;  %p13035_p11 = scmp.lt.s32.totalorder %s9642_s10, %s9642_s10 }
 0x97e   :  { %v8995_v39 = vmax.f32 %v8977_v29, 0.0  ;;  %v9518_v22 = vpop.f32.mrf.mxu1  ;;  %p13031_p10 = scmp.ne.s32.totalorder %s9642_s10, %s13030_s16  ;;  %p13036_p12 = scmp.lt.s32.totalorder %s13030_s16, %s13030_s16 }
 0x97f   :  { %9609 = vst [vmem:[#allocation26 + $0x8] sm:$0xff] %v9518_v22 }
 0x980   :  { %9011 = vst [vmem:[#allocation28 + $0x78] sm:$0xff] %v8995_v39  ;;  %v9520_v49 = vpop.f32.mrf.mxu1  ;;  %p13037_p13 = por %p13036_p12, %p13035_p11 }
 0x982   :  { %v9523_v16 = vpop.f32.mrf.mxu1  ;;  %p13038_p0 = pnand %p13037_p13, %p13031_p10 }
 0x983   :  { %9610 = vst [vmem:[#allocation26 + $0x10] sm:$0xff] %v9523_v16 }
 0x984   :  { %v9525_v40 = vpop.f32.mrf.mxu1 }
 0x986   :  { %v9528_v19 = vpop.f32.mrf.mxu1 }
 0x987   :  { %9611 = vst [vmem:[#allocation26 + $0x18] sm:$0xff] %v9528_v19 }
 0x988   :  { %v9530_v7 = vpop.f32.mrf.mxu1 }
 0x98a   :  { %v9533_v43 = vpop.f32.mrf.mxu1 }
 0x98b   :  { %9612 = vst [vmem:[#allocation26 + $0x20] sm:$0xff] %v9533_v43 }
 0x98c   :  { %v9535_v30 = vpop.f32.mrf.mxu1 }
 0x98e   :  { %v9538_v9 = vpop.f32.mrf.mxu1 }
 0x98f   :  { %9613 = vst [vmem:[#allocation26 + $0x28] sm:$0xff] %v9538_v9 }
 0x990   :  { %v9540_v34 = vpop.f32.mrf.mxu1 }
 0x992   :  { %v9543_v59 = vpop.f32.mrf.mxu1 }
 0x993   :  { %9614 = vst [vmem:[#allocation26 + $0x30] sm:$0xff] %v9543_v59 }
 0x994   :  { %v9545_v27 = vpop.f32.mrf.mxu1 }
 0x996   :  { %v9548_v60 = vpop.f32.mrf.mxu1 }
 0x997   :  { %9615 = vst [vmem:[#allocation26 + $0x38] sm:$0xff] %v9548_v60 }
 0x998   :  { %v9550_v15 = vpop.f32.mrf.mxu1 }
 0x99a   :  { %v9553_v12 = vpop.f32.mrf.mxu1 }
 0x99b   :  { %9616 = vst [vmem:[#allocation26 + $0x40] sm:$0xff] %v9553_v12 }
 0x99c   :  { %v9555_v32 = vpop.f32.mrf.mxu1 }
 0x99e   :  { %v9558_v5 = vpop.f32.mrf.mxu1 }
 0x99f   :  { %9617 = vst [vmem:[#allocation26 + $0x48] sm:$0xff] %v9558_v5 }
 0x9a0   :  { %v9560_v47 = vpop.f32.mrf.mxu1 }
 0x9a2   :  { %v9563_v25 = vpop.f32.mrf.mxu1 }
 0x9a3   :  { %9618 = vst [vmem:[#allocation26 + $0x50] sm:$0xff] %v9563_v25 }
 0x9a4   :  { %v9565_v51 = vpop.f32.mrf.mxu1 }
 0x9a6   :  { %v9568_v28 = vpop.f32.mrf.mxu1 }
 0x9a7   :  { %9619 = vst [vmem:[#allocation26 + $0x58] sm:$0xff] %v9568_v28 }
 0x9a8   :  { %v9570_v56 = vpop.f32.mrf.mxu1 }
 0x9aa   :  { %v9573_v50 = vpop.f32.mrf.mxu1 }
 0x9ab   :  { %9620 = vst [vmem:[#allocation26 + $0x60] sm:$0xff] %v9573_v50 }
 0x9ac   :  { %v9575_v55 = vpop.f32.mrf.mxu1 }
 0x9ae   :  { %v9578_v36 = vpop.f32.mrf.mxu1 }
 0x9af   :  { %9621 = vst [vmem:[#allocation26 + $0x68] sm:$0xff] %v9578_v36 }
 0x9b0   :  { %v9580_v1 = vpop.f32.mrf.mxu1 }
 0x9b2   :  { %v9583_v41 = vpop.f32.mrf.mxu1 }
 0x9b3   :  { %9622 = vst [vmem:[#allocation26 + $0x70] sm:$0xff] %v9583_v41 }
 0x9b4   :  { %v9585_v17 = vpop.f32.mrf.mxu1 }
 0x9b6   :  { %v9588_v0 = vpop.f32.mrf.mxu1 }
 0x9b7   :  { %9623 = vst [vmem:[#allocation26 + $0x78] sm:$0xff] %v9588_v0 }
 0x9b8   :  { %v9590_v2 = vpop.f32.mrf.mxu1 }
 0x9b9   :  { %13041 = shalt.err (!%p13038_p0)
}
 0x9ba   :  { %9647 = dma.vmem_to_hbm [thread:$0]  %s9642_s10, 2048, %s13296_s3, [#allocation27], %s13123_s0, %s13123_s0, %s13124_s18  }
 0x9bb   :  { %s13050_s24 = scalar_lea.vmem %s9654_s11, 2048  ;;  %p13055_p2 = scmp.lt.s32.totalorder %s9654_s11, %s9654_s11 }
 0x9bc   :  { %p13051_p1 = scmp.ne.s32.totalorder %s9654_s11, %s13050_s24  ;;  %p13056_p3 = scmp.lt.s32.totalorder %s13050_s24, %s13050_s24 }
 0x9be   :  { %p13057_p4 = por %p13056_p3, %p13055_p2 }
 0x9c0   :  { %p13058_p5 = pnand %p13057_p4, %p13051_p1 }
 0x9c2   :  { %13061 = shalt.err (!%p13058_p5)
}
 0x9c3   :  { %9659 = dma.vmem_to_hbm [thread:$0]  %s9654_s11, 2048, %s13301_s27, [#allocation27], %s13123_s0, %s13123_s0, %s13124_s18  }
 0x9c4   :  { %13086 = dma.done.wait [#allocation4], 2048  }
 0x9c5   :  { %13087 = vsyncadd [#allocation4], 4294965248 }
 0x9c6   :  { %13088 = dma.done.wait [#allocation27], 4096  }
 0x9c7   :  { %13089 = vsyncadd [#allocation27], 4294963200 }
 0x9c8   :  { %13090 = dma.done.wait [#allocation30], 128  }
 0x9c9   :  { %13091 = vsyncadd [#allocation30], 4294967168 }
 0x9ca   :  { %9682 = vsyncpa [#allocation3], 1 }
 0x9cb   :  { %9683 = vsyncpa [#allocation6], 1 }
 0x9cc   :  { %9684 = vsyncpa [#allocation9], 1 }
 0x9cd   :  { %9685 = vsyncpa [#allocation12], 1 }
 0x9ce   :  { %9686 = vsyncpa [#allocation15], 1 }
 0x9cf   :  { %9687 = vsyncpa [#allocation18], 1 }
 0x9d0   :  { %9688 = vsyncpa [#allocation21], 1 }
 0x9d1   :  { %9689 = vsyncpa [#allocation24], 1 }
 0x9d2   :  { %9690 = vsyncpa [#allocation4], 1 }
 0x9d3   :  { %9691 = vsyncpa [#allocation27], 1 }
 0x9d4   :  { %9692 = vsyncpa [#allocation30], 1 }

</bundles_post_ra>
